<compile_context>
chip_gen: v6e
topology: v6e:2x2x1
jax: 0.10.0
libtpu: 0.0.40
codegen_flags: <defaults>
</compile_context>

<pallas_src>
import jax
import jax.numpy as jnp
from jax.experimental import pallas as pl
from jax.experimental.pallas import tpu as pltpu

C1, C2, C3 = 64, 128, 1024   # conv channel widths
F1, F2 = 512, 256            # fc widths


# ----------------------------------------------------------------------------
# Kernel 1: conv1/2/3 (1x1 convs as bf16 matmuls) + global max-pool over points.
# ----------------------------------------------------------------------------
def _conv_pool_kernel(x_ref, w1_ref, b1_ref, w2_ref, b2_ref, w3_ref, b3_ref,
                      g_ref):
    n = pl.program_id(1)                       # point-tile index (reduction ax)
    bb, tn, k = x_ref.shape

    # Running-max accumulator init.  Must be -inf (not 0): bias3/ReLU3 are
    # hoisted past the pool, so the pooled values here are pre-bias and may
    # be negative.
    @pl.when(n == 0)
    def _():
        g_ref[...] = jnp.full(g_ref.shape, -jnp.inf, dtype=g_ref.dtype)

    # Pack BB batch elements into one M = bb*tn matmul (fills the MXU rows).
    x = x_ref[...].reshape(bb * tn, k)                         # bf16

    h = jnp.dot(x, w1_ref[...], preferred_element_type=jnp.float32) + b1_ref[...]
    h = jnp.maximum(h, 0.0).astype(jnp.bfloat16)               # (bb*tn, 64)
    h = jnp.dot(h, w2_ref[...], preferred_element_type=jnp.float32) + b2_ref[...]
    h = jnp.maximum(h, 0.0).astype(jnp.bfloat16)               # (bb*tn, 128)
    # conv3: raw matmul only -- bias3 + ReLU3 are applied after the pool.
    h = jnp.dot(h, w3_ref[...], preferred_element_type=jnp.float32)  # (bb*tn, 1024)

    g_tile = jnp.max(h.reshape(bb, tn, C3), axis=1)            # (bb, 1024)
    g_ref[0] = jnp.maximum(g_ref[0], g_tile)

    # Finalize: apply the hoisted bias3 + ReLU3 once per pooled row.
    @pl.when(n == pl.num_programs(1) - 1)
    def _():
        g_ref[0] = jnp.maximum(g_ref[0] + b3_ref[...], 0.0)


# ----------------------------------------------------------------------------
# Kernel 2: fc head on the pooled features, batched over all B rows at once,
#           column-tiled over the k*k outputs (2-way parallel for v7x).
# ----------------------------------------------------------------------------
def _head_kernel(g_ref, wf1_ref, bf1_ref, wf2_ref, bf2_ref, wf3_ref, bf3_ref,
                 o_ref):
    g = g_ref[...].astype(jnp.bfloat16)
    f = jnp.dot(g, wf1_ref[...], preferred_element_type=jnp.float32) + bf1_ref[...]
    f = jnp.maximum(f, 0.0).astype(jnp.bfloat16)               # (B, 512)
    f = jnp.dot(f, wf2_ref[...], preferred_element_type=jnp.float32) + bf2_ref[...]
    f = jnp.maximum(f, 0.0).astype(jnp.bfloat16)               # (B, 256)
    o = jnp.dot(f, wf3_ref[...], preferred_element_type=jnp.float32) + bf3_ref[...]
    o_ref[...] = o.astype(o_ref.dtype)                         # (B, KK/ncol)


def _full_spec(shape):
    nd = len(shape)
    return pl.BlockSpec(shape, lambda *_, _nd=nd: (0,) * _nd)


# ----------------------------------------------------------------------------
# Wrappers
# ----------------------------------------------------------------------------
def _conv_pool(x_nlc, conv_params, *, tn=512, bb=2):
    B, N, K = x_nlc.shape
    w1, b1, w2, b2, w3, b3 = conv_params

    # v7x megacore: keep the parallel batch-group axis >= 2 when possible;
    # with bb=1 the matmul rows are still M = tn >= 256.
    if B < 2 * bb:
        bb = 1
    B_pad = ((B + bb - 1) // bb) * bb

    if N < tn:
        tn = max(8, ((N + 7) // 8) * 8)
    N_pad = ((N + tn - 1) // tn) * tn

    # Edge-pad points (duplicated points are a no-op for the max pool);
    # zero-pad batch (extra rows are sliced off below).
    if N_pad != N:
        x_nlc = jnp.pad(x_nlc, ((0, 0), (0, N_pad - N), (0, 0)), mode="edge")
    if B_pad != B:
        x_nlc = jnp.pad(x_nlc, ((0, B_pad - B), (0, 0), (0, 0)))
    x_nlc = x_nlc.astype(jnp.bfloat16)     # halve input DMA bytes, bf16 MXU

    grid = (B_pad // bb, N_pad // tn)
    weights = [w1, b1, w2, b2, w3, b3]     # bf16 W / f32 b, ~0.3 MB total

    flops = 2 * B_pad * N_pad * (K * C1 + C1 * C2 + C2 * C3)
    bytes_accessed = (2 * int(x_nlc.size)
                      + sum(int(a.size) * a.dtype.itemsize for a in weights)
                      + 4 * B_pad * C3)

    g = pl.pallas_call(
        _conv_pool_kernel,
        out_shape=jax.ShapeDtypeStruct((B_pad // bb, bb, C3), jnp.float32),
        grid_spec=pltpu.PrefetchScalarGridSpec(
            num_scalar_prefetch=0,
            grid=grid,
            in_specs=[pl.BlockSpec((bb, tn, K), lambda b, n: (b, n, 0))]
                     + [_full_spec(a.shape) for a in weights],
            out_specs=pl.BlockSpec((1, bb, C3), lambda b, n: (b, 0, 0)),
        ),
        compiler_params=pltpu.CompilerParams(
            dimension_semantics=("parallel", "arbitrary"),
            vmem_limit_bytes=32 * 1024 * 1024,
        ),
        cost_estimate=pl.CostEstimate(
            flops=flops, transcendentals=0, bytes_accessed=bytes_accessed),
    )(x_nlc, *weights)
    return g.reshape(B_pad, C3)[:B]


def _head(g, head_params):
    B = g.shape[0]
    wf1, bf1, wf2, bf2, wf3, bf3 = head_params
    KK = wf3.shape[1]
    weights = [wf1, bf1, wf2, bf2, wf3, bf3]

    # Split the fc3 output columns across two parallel grid steps so v7x's
    # two TensorCores each stream half of the (HBM-bound) head weights.
    ncol = 2 if KK % 256 == 0 else 1
    tc = KK // ncol

    flops = 2 * B * (C3 * F1 + F1 * F2 + F2 * KK)
    bytes_accessed = (4 * int(g.size) + 4 * B * KK
                      + sum(int(a.size) * a.dtype.itemsize for a in weights))

    return pl.pallas_call(
        _head_kernel,
        out_shape=jax.ShapeDtypeStruct((B, KK), jnp.float32),
        grid_spec=pltpu.PrefetchScalarGridSpec(
            num_scalar_prefetch=0,
            grid=(ncol,),
            in_specs=[_full_spec(g.shape),
                      _full_spec(wf1.shape), _full_spec(bf1.shape),
                      _full_spec(wf2.shape), _full_spec(bf2.shape),
                      pl.BlockSpec((F2, tc), lambda j: (0, j)),
                      pl.BlockSpec((1, tc), lambda j: (0, j))],
            out_specs=pl.BlockSpec((B, tc), lambda j: (0, j)),
        ),
        compiler_params=pltpu.CompilerParams(
            dimension_semantics=("parallel",),
            vmem_limit_bytes=16 * 1024 * 1024,
        ),
        cost_estimate=pl.CostEstimate(
            flops=flops, transcendentals=0, bytes_accessed=bytes_accessed),
    )(g, *weights)


def _fold_bn(w, b, scale, shift):
    # bn(x @ W + b) = (x @ W + b) * scale + shift = x @ (W*scale) + (b*scale+shift)
    return w * scale, b * scale + shift


def fold_params(params, k):
    (w1, b1, s1, t1, w2, b2, s2, t2, w3, b3, s3, t3,
     wf1, bf1, s4, t4, wf2, bf2, s5, t5, wf3, bf3) = params
    w1f, b1f = _fold_bn(w1, b1, s1, t1)
    w2f, b2f = _fold_bn(w2, b2, s2, t2)
    w3f, b3f = _fold_bn(w3, b3, s3, t3)
    wf1f, bf1f = _fold_bn(wf1, bf1, s4, t4)
    wf2f, bf2f = _fold_bn(wf2, bf2, s5, t5)
    eye_flat = jnp.eye(k, dtype=jnp.float32).reshape(1, k * k)
    bf3f = bf3 + eye_flat
    # Weights in bf16 (MXU-native operands / halved HBM bytes), biases in f32
    # so the f32-accumulated matmul results keep full precision at the add.
    conv_p = (w1f.astype(jnp.bfloat16), b1f,
              w2f.astype(jnp.bfloat16), b2f,
              w3f.astype(jnp.bfloat16), b3f)
    head_p = (wf1f.astype(jnp.bfloat16), bf1f,
              wf2f.astype(jnp.bfloat16), bf2f,
              wf3.astype(jnp.bfloat16), bf3f)
    return conv_p, head_p


def t_net_feature_forward(x_nlc, params, k, *, tn=512, bb=2):
    """x_nlc: (B, N, k) float32 (NLC layout).  Returns (B, k, k) float32."""
    B = x_nlc.shape[0]
    conv_p, head_p = fold_params(params, k)
    g = _conv_pool(x_nlc, conv_p, tn=tn, bb=bb)    # (B, 1024) pooled features
    out = _head(g, head_p)                         # (B, k*k)
    return out.reshape(B, k, k)


# ----------------------------------------------------------------------------
# Synthetic parameters + pure-JAX reference
# ----------------------------------------------------------------------------
def make_params(key, k=64):
    keys = jax.random.split(key, 17)
    eps = 1e-5

    def lin_w(kk, fan_in, fan_out, scale=0.05):
        # stored as (fan_in, fan_out) so the kernel does x @ W
        return scale * jax.random.normal(kk, (fan_in, fan_out), dtype=jnp.float32)

    def bias(kk, c):
        return 0.05 * jax.random.normal(kk, (1, c), dtype=jnp.float32)

    def bn_affine(kk, c):
        k_g, k_b, k_m, k_v = jax.random.split(kk, 4)
        gamma = 1.0 + 0.1 * jax.random.normal(k_g, (1, c), dtype=jnp.float32)
        beta = 0.1 * jax.random.normal(k_b, (1, c), dtype=jnp.float32)
        run_mean = 0.1 * jax.random.normal(k_m, (1, c), dtype=jnp.float32)
        run_var = 1.0 + 0.1 * jax.random.uniform(k_v, (1, c), dtype=jnp.float32)
        scale = gamma / jnp.sqrt(run_var + eps)
        shift = beta - run_mean * scale
        return scale, shift

    w1 = lin_w(keys[0], k, C1);       b1 = bias(keys[1], C1)
    w2 = lin_w(keys[2], C1, C2);      b2 = bias(keys[3], C2)
    w3 = lin_w(keys[4], C2, C3);      b3 = bias(keys[5], C3)
    wf1 = lin_w(keys[6], C3, F1);     bf1 = bias(keys[7], F1)
    wf2 = lin_w(keys[8], F1, F2);     bf2 = bias(keys[9], F2)
    wf3 = lin_w(keys[10], F2, k * k); bf3 = bias(keys[11], k * k)

    s1, t1 = bn_affine(keys[12], C1)
    s2, t2 = bn_affine(keys[13], C2)
    s3, t3 = bn_affine(keys[14], C3)
    s4, t4 = bn_affine(keys[15], F1)
    s5, t5 = bn_affine(keys[16], F2)

    return (w1, b1, s1, t1, w2, b2, s2, t2, w3, b3, s3, t3,
            wf1, bf1, s4, t4, wf2, bf2, s5, t5, wf3, bf3)


def reference_forward(x_nlc, params, k):
    """Pure-JAX f32 reference using the *unfolded* BN affine (validates folding)."""
    (w1, b1, s1, t1, w2, b2, s2, t2, w3, b3, s3, t3,
     wf1, bf1, s4, t4, wf2, bf2, s5, t5, wf3, bf3) = params
    B = x_nlc.shape[0]
    h = jnp.maximum((x_nlc @ w1 + b1) * s1 + t1, 0.0)
    h = jnp.maximum((h @ w2 + b2) * s2 + t2, 0.0)
    h = jnp.maximum((h @ w3 + b3) * s3 + t3, 0.0)
    g = jnp.max(h, axis=1)                        # (B, 1024)
    f = jnp.maximum((g @ wf1 + bf1) * s4 + t4, 0.0)
    f = jnp.maximum((f @ wf2 + bf2) * s5 + t5, 0.0)
    o = f @ wf3 + bf3 + jnp.eye(k, dtype=jnp.float32).reshape(1, k * k)
    return o.reshape(B, k, k)


if __name__ == "__main__":
    K = 64          # module default k=64 (Conv1d(k, 64, 1) input channels)
    B = 4           # small batch -> bb=2 packing, parallel axis extent 2
    N = 600         # not a multiple of tn=512 -> exercises edge padding and
                    # the multi-tile running-max accumulator path

    key = jax.random.PRNGKey(0)
    k_x, k_p = jax.random.split(key)

    # Torch input would be (B, K, N) in NCL; the kernel consumes NLC.
    x_ncl = jax.random.normal(k_x, (B, K, N), dtype=jnp.float32)
    x_nlc = jnp.transpose(x_ncl, (0, 2, 1))      # (B, N, K)

    params = make_params(k_p, k=K)

    out = jax.block_until_ready(t_net_feature_forward(x_nlc, params, K))
    ref = jax.block_until_ready(reference_forward(x_nlc, params, K))

    assert out.shape == (B, K, K)
    # bf16 MXU operands (f32 accumulation) vs an f32 reference -> widened tol.
    max_err = float(jnp.max(jnp.abs(out - ref)))
    assert jnp.allclose(out, ref, atol=3e-2, rtol=3e-2), (
        f"mismatch vs reference (max abs err {max_err})")

    print("KERNEL_OK")
</pallas_src>

<mosaic_0001>
module attributes {stable_mosaic.version = 11 : i64} {
  func.func @_conv_pool_kernel(%arg0: i32, %arg1: i32, %arg2: memref<2x512x64xbf16, #tpu.memory_space<vmem>>, %arg3: memref<64x64xbf16, #tpu.memory_space<vmem>>, %arg4: memref<1x64xf32, #tpu.memory_space<vmem>>, %arg5: memref<64x128xbf16, #tpu.memory_space<vmem>>, %arg6: memref<1x128xf32, #tpu.memory_space<vmem>>, %arg7: memref<128x1024xbf16, #tpu.memory_space<vmem>>, %arg8: memref<1x1024xf32, #tpu.memory_space<vmem>>, %arg9: memref<1x2x1024xf32, #tpu.memory_space<vmem>>) attributes {dimension_semantics = [#tpu.dimension_semantics<parallel>, #tpu.dimension_semantics<arbitrary>], iteration_bounds = array<i64: 2, 2>, scalar_prefetch = 0 : i64, scratch_operands = 0 : i64, tpu.core_type = #tpu.core_type<tc>, window_params = [{transform_indices = @transform_0, window_bounds = array<i64: 2, 512, 64>}, {pipeline_mode = #tpu.pipeline_mode<synchronous>, transform_indices = @transform_1, window_bounds = array<i64: 64, 64>}, {pipeline_mode = #tpu.pipeline_mode<synchronous>, transform_indices = @transform_2, window_bounds = array<i64: 1, 64>}, {pipeline_mode = #tpu.pipeline_mode<synchronous>, transform_indices = @transform_3, window_bounds = array<i64: 64, 128>}, {pipeline_mode = #tpu.pipeline_mode<synchronous>, transform_indices = @transform_4, window_bounds = array<i64: 1, 128>}, {pipeline_mode = #tpu.pipeline_mode<synchronous>, transform_indices = @transform_5, window_bounds = array<i64: 128, 1024>}, {pipeline_mode = #tpu.pipeline_mode<synchronous>, transform_indices = @transform_6, window_bounds = array<i64: 1, 1024>}, {transform_indices = @transform_7, window_bounds = array<i64: 1, 2, 1024>}]} {
    %c0_i32 = arith.constant 0 : i32
    %0 = arith.cmpi eq, %arg1, %c0_i32 : i32
    %1 = arith.extui %0 : i1 to i32
    %c0_i32_0 = arith.constant 0 : i32
    %2 = arith.cmpi ne, %1, %c0_i32_0 : i32
    scf.if %2 {
      %cst_25 = arith.constant 0xFF800000 : f32
      %34 = vector.broadcast %cst_25 : f32 to vector<1x2x1024xf32>
      %c0_26 = arith.constant 0 : index
      %c0_27 = arith.constant 0 : index
      %c0_28 = arith.constant 0 : index
      %35 = vector.load %arg9[%c0_26, %c0_27, %c0_28] : memref<1x2x1024xf32, #tpu.memory_space<vmem>>, vector<1x2x1024xf32>
      tpu.vector_store %arg9[%c0_26, %c0_27, %c0_28], %34 {strides = array<i32>} : memref<1x2x1024xf32, #tpu.memory_space<vmem>>, vector<1x2x1024xf32>,
    } else {
    }
    %c0 = arith.constant 0 : index
    %c0_1 = arith.constant 0 : index
    %c0_2 = arith.constant 0 : index
    %3 = vector.load %arg2[%c0, %c0_1, %c0_2] : memref<2x512x64xbf16, #tpu.memory_space<vmem>>, vector<2x512x64xbf16>
    %4 = vector.shape_cast %3 : vector<2x512x64xbf16> to vector<1024x64xbf16>
    %c0_3 = arith.constant 0 : index
    %c0_4 = arith.constant 0 : index
    %5 = vector.load %arg3[%c0_3, %c0_4] : memref<64x64xbf16, #tpu.memory_space<vmem>>, vector<64x64xbf16>
    %cst = arith.constant dense<0.000000e+00> : vector<1024x64xf32>
    %6 = tpu.matmul %4, %5, %cst {dimension_numbers = #tpu.dot_dimension_numbers<[1], [0], [0], [1], [0, 0, 1, 1], [], []>} : vector<1024x64xbf16>, vector<64x64xbf16>, vector<1024x64xf32> -> vector<1024x64xf32>
    %c0_5 = arith.constant 0 : index
    %c0_6 = arith.constant 0 : index
    %7 = vector.load %arg4[%c0_5, %c0_6] : memref<1x64xf32, #tpu.memory_space<vmem>>, vector<1x64xf32>
    %8 = vector.broadcast %7 : vector<1x64xf32> to vector<1024x64xf32>
    %9 = arith.addf %6, %8 : vector<1024x64xf32>
    %cst_7 = arith.constant 0.000000e+00 : f32
    %10 = vector.broadcast %cst_7 : f32 to vector<1024x64xf32>
    %11 = arith.maximumf %9, %10 : vector<1024x64xf32>
    %12 = arith.truncf %11 : vector<1024x64xf32> to vector<1024x64xbf16>
    %c0_8 = arith.constant 0 : index
    %c0_9 = arith.constant 0 : index
    %13 = vector.load %arg5[%c0_8, %c0_9] : memref<64x128xbf16, #tpu.memory_space<vmem>>, vector<64x128xbf16>
    %cst_10 = arith.constant dense<0.000000e+00> : vector<1024x128xf32>
    %14 = tpu.matmul %12, %13, %cst_10 {dimension_numbers = #tpu.dot_dimension_numbers<[1], [0], [0], [1], [0, 0, 1, 1], [], []>} : vector<1024x64xbf16>, vector<64x128xbf16>, vector<1024x128xf32> -> vector<1024x128xf32>
    %c0_11 = arith.constant 0 : index
    %c0_12 = arith.constant 0 : index
    %15 = vector.load %arg6[%c0_11, %c0_12] : memref<1x128xf32, #tpu.memory_space<vmem>>, vector<1x128xf32>
    %16 = vector.broadcast %15 : vector<1x128xf32> to vector<1024x128xf32>
    %17 = arith.addf %14, %16 : vector<1024x128xf32>
    %cst_13 = arith.constant 0.000000e+00 : f32
    %18 = vector.broadcast %cst_13 : f32 to vector<1024x128xf32>
    %19 = arith.maximumf %17, %18 : vector<1024x128xf32>
    %20 = arith.truncf %19 : vector<1024x128xf32> to vector<1024x128xbf16>
    %c0_14 = arith.constant 0 : index
    %c0_15 = arith.constant 0 : index
    %21 = vector.load %arg7[%c0_14, %c0_15] : memref<128x1024xbf16, #tpu.memory_space<vmem>>, vector<128x1024xbf16>
    %cst_16 = arith.constant dense<0.000000e+00> : vector<1024x1024xf32>
    %22 = tpu.matmul %20, %21, %cst_16 {dimension_numbers = #tpu.dot_dimension_numbers<[1], [0], [0], [1], [0, 0, 1, 1], [], []>} : vector<1024x128xbf16>, vector<128x1024xbf16>, vector<1024x1024xf32> -> vector<1024x1024xf32>
    %23 = vector.shape_cast %22 : vector<1024x1024xf32> to vector<2x512x1024xf32>
    %cst_17 = arith.constant dense<0xFF800000> : vector<2x1024xf32>
    %24 = vector.multi_reduction <maximumf>, %23, %cst_17 [1] : vector<2x512x1024xf32> to vector<2x1024xf32>
    %c0_18 = arith.constant 0 : index
    %c0_19 = arith.constant 0 : index
    %c0_20 = arith.constant 0 : index
    %25 = vector.load %arg9[%c0_18, %c0_19, %c0_20] : memref<1x2x1024xf32, #tpu.memory_space<vmem>>, vector<1x2x1024xf32>
    %26 = vector.shape_cast %25 : vector<1x2x1024xf32> to vector<2x1024xf32>
    %27 = arith.maximumf %26, %24 : vector<2x1024xf32>
    %c0_21 = arith.constant 0 : index
    %c0_22 = arith.constant 0 : index
    %c0_23 = arith.constant 0 : index
    %28 = vector.load %arg9[%c0_21, %c0_22, %c0_23] : memref<1x2x1024xf32, #tpu.memory_space<vmem>>, vector<1x2x1024xf32>
    %29 = vector.shape_cast %28 : vector<1x2x1024xf32> to vector<2x1024xf32>
    %30 = vector.shape_cast %27 : vector<2x1024xf32> to vector<1x2x1024xf32>
    tpu.vector_store %arg9[%c0_21, %c0_22, %c0_23], %30 {strides = array<i32>} : memref<1x2x1024xf32, #tpu.memory_space<vmem>>, vector<1x2x1024xf32>,
    %c1_i32 = arith.constant 1 : i32
    %31 = arith.cmpi eq, %arg1, %c1_i32 : i32
    %32 = arith.extui %31 : i1 to i32
    %c0_i32_24 = arith.constant 0 : i32
    %33 = arith.cmpi ne, %32, %c0_i32_24 : i32
    scf.if %33 {
      %c0_25 = arith.constant 0 : index
      %c0_26 = arith.constant 0 : index
      %c0_27 = arith.constant 0 : index
      %34 = vector.load %arg9[%c0_25, %c0_26, %c0_27] : memref<1x2x1024xf32, #tpu.memory_space<vmem>>, vector<1x2x1024xf32>
      %35 = vector.shape_cast %34 : vector<1x2x1024xf32> to vector<2x1024xf32>
      %c0_28 = arith.constant 0 : index
      %c0_29 = arith.constant 0 : index
      %36 = vector.load %arg8[%c0_28, %c0_29] : memref<1x1024xf32, #tpu.memory_space<vmem>>, vector<1x1024xf32>
      %37 = vector.broadcast %36 : vector<1x1024xf32> to vector<2x1024xf32>
      %38 = arith.addf %35, %37 : vector<2x1024xf32>
      %cst_30 = arith.constant 0.000000e+00 : f32
      %39 = vector.broadcast %cst_30 : f32 to vector<2x1024xf32>
      %40 = arith.maximumf %38, %39 : vector<2x1024xf32>
      %c0_31 = arith.constant 0 : index
      %c0_32 = arith.constant 0 : index
      %c0_33 = arith.constant 0 : index
      %41 = vector.load %arg9[%c0_31, %c0_32, %c0_33] : memref<1x2x1024xf32, #tpu.memory_space<vmem>>, vector<1x2x1024xf32>
      %42 = vector.shape_cast %41 : vector<1x2x1024xf32> to vector<2x1024xf32>
      %43 = vector.shape_cast %40 : vector<2x1024xf32> to vector<1x2x1024xf32>
      tpu.vector_store %arg9[%c0_31, %c0_32, %c0_33], %43 {strides = array<i32>} : memref<1x2x1024xf32, #tpu.memory_space<vmem>>, vector<1x2x1024xf32>,
    } else {
    }
    return
  }
  func.func @transform_0(%arg0: i32, %arg1: i32) -> (i32, i32, i32) {
    %c0_i32 = arith.constant 0 : i32
    %c0_i32_0 = arith.constant 0 : i32
    return %arg0, %arg1, %c0_i32 : i32, i32, i32
  }
  func.func @transform_1(%arg0: i32, %arg1: i32) -> (i32, i32) {
    %c0_i32 = arith.constant 0 : i32
    %c0_i32_0 = arith.constant 0 : i32
    %c0_i32_1 = arith.constant 0 : i32
    return %c0_i32, %c0_i32_0 : i32, i32
  }
  func.func @transform_2(%arg0: i32, %arg1: i32) -> (i32, i32) {
    %c0_i32 = arith.constant 0 : i32
    %c0_i32_0 = arith.constant 0 : i32
    %c0_i32_1 = arith.constant 0 : i32
    return %c0_i32, %c0_i32_0 : i32, i32
  }
  func.func @transform_3(%arg0: i32, %arg1: i32) -> (i32, i32) {
    %c0_i32 = arith.constant 0 : i32
    %c0_i32_0 = arith.constant 0 : i32
    %c0_i32_1 = arith.constant 0 : i32
    return %c0_i32, %c0_i32_0 : i32, i32
  }
  func.func @transform_4(%arg0: i32, %arg1: i32) -> (i32, i32) {
    %c0_i32 = arith.constant 0 : i32
    %c0_i32_0 = arith.constant 0 : i32
    %c0_i32_1 = arith.constant 0 : i32
    return %c0_i32, %c0_i32_0 : i32, i32
  }
  func.func @transform_5(%arg0: i32, %arg1: i32) -> (i32, i32) {
    %c0_i32 = arith.constant 0 : i32
    %c0_i32_0 = arith.constant 0 : i32
    %c0_i32_1 = arith.constant 0 : i32
    return %c0_i32, %c0_i32_0 : i32, i32
  }
  func.func @transform_6(%arg0: i32, %arg1: i32) -> (i32, i32) {
    %c0_i32 = arith.constant 0 : i32
    %c0_i32_0 = arith.constant 0 : i32
    %c0_i32_1 = arith.constant 0 : i32
    return %c0_i32, %c0_i32_0 : i32, i32
  }
  func.func @transform_7(%arg0: i32, %arg1: i32) -> (i32, i32, i32) {
    %c0_i32 = arith.constant 0 : i32
    %c0_i32_0 = arith.constant 0 : i32
    %c0_i32_1 = arith.constant 0 : i32
    return %arg0, %c0_i32, %c0_i32_0 : i32, i32, i32
  }
}

</mosaic_0001>

<bundles_post_ra>
// kernel: tpu_custom_call.1
= control target key start
LH: loop header
LB: loop body
LE: loop exit
PB: predicated region body
PF: predicated region fallthrough
CT: control target
= control target key end

     0   :  { %12 = vsyncpa [#allocation4], 0  ;;  %s10918_s0 = inlined_call_operand.vmem [shape: bf16[4,1024,64], index: 0, kind: input, shape index: {}]   ;;  %s10919_s1 = inlined_call_operand.vmem [shape: bf16[64,64], index: 1, kind: input, shape index: {}]   ;;  %s10920_s2 = inlined_call_operand.vmem [shape: f32[1,64], index: 2, kind: input, shape index: {}]   ;;  %s10921_s3 = inlined_call_operand.vmem [shape: bf16[64,128], index: 3, kind: input, shape index: {}]   ;;  %s10922_s4 = inlined_call_operand.vmem [shape: f32[1,128], index: 4, kind: input, shape index: {}]   ;;  %s10923_s5 = inlined_call_operand.vmem [shape: bf16[128,1024], index: 5, kind: input, shape index: {}]   ;;  %s10924_s6 = inlined_call_operand.vmem [shape: f32[1,1024], index: 6, kind: input, shape index: {}]   ;;  %s10925_s7 = inlined_call_operand.hbm [shape: f32[2,2,1024], index: 7, kind: output, shape index: {}]  }
   0x1   :  { %14 = vsyncpa [#allocation4 + $0x1], 0  ;;  %s8721_s24 = smov 0   ;;  %s8723_s25 = smov 0  }
   0x2   :  { %s8725_s26 = smov 0   ;;  %s8727_s27 = smov 0  }
   0x3   :  { %s8729_s28 = smov 0   ;;  %s8731_s29 = smov 0  }
   0x4   :  { %s8733_s30 = smov 0   ;;  %s8735_s8 = smov 0  }
   0x5   :  { %s8737_s9 = smov 0   ;;  %s8739_s10 = smov 0  }
   0x6 LB: > { %s7708_s11 = sadd.s32 4294967295, %s8675_s10   ;;  %s7709_s12 = sadd.s32 4294967294, %s8675_s10   ;;  %s8675_s10 = sphi %s8739_s10, %s20_s10   ;;  %s8671_s9 = sphi %s8737_s9, %s11210_s9   ;;  %s8667_s8 = sphi %s8735_s8, %s11209_s8   ;;  %s8663_s30 = sphi %s8733_s30, %s11208_s30   ;;  %s8659_s29 = sphi %s8731_s29, %s11207_s29   ;;  %s8655_s28 = sphi %s8729_s28, %s11206_s28   ;;  %s8651_s27 = sphi %s8727_s27, %s11205_s27   ;;  %s8647_s26 = sphi %s8725_s26, %s11204_s26   ;;  %s8643_s25 = sphi %s8723_s25, %s11203_s25   ;;  %s8639_s24 = sphi %s8721_s24, %s11202_s24  }
   0x7   : > { %s29_s13 = sadd.s32 1, %s8667_s8  ;;  %s32_s14 = sadd.s32 1, %s8671_s9 }
   0x8   : > { %p30_p0 = scmp.ge.s32.totalorder %s29_s13, 2  ;;  %s41_s15 = sadd.s32 1, %s8655_s28 }
   0x9   : > { %p48_p1 = scmp.ne.s32.totalorder %s8655_s28, %s8651_s27  ;;  %p49_p2 = scmp.eq.s32.totalorder %s8675_s10, 0 }
   0xa   : > { %s11212_s13 = smov (%p30_p0, %s29_s13), 0  ;;  %s11214_s14 = smov (!%p30_p0, %s32_s14), %s8671_s9 }
   0xb   : > { %11058 = sst [smem:[#allocation6_spill]] %s11212_s13  ;;  %s37_s16 = ssub.s32 %s8667_s8, %s11212_s13 }
   0xc   : > { %p8784_p3 = por %p49_p2, %p48_p1  ;;  %p34_p4 = scmp.ge.s32.totalorder %s11214_s14, 2 }
   0xd   : > { %s193_s18 = sadd.s32 1, %s8647_s26  ;;  %p203_p5 = scmp.ne.s32.totalorder %s8647_s26, %s8643_s25 }
   0xe   : > { %p204_p6 = scmp.eq.s32.totalorder %s7708_s11, 3  ;;  %s11216_s14 = smov (%p34_p4, %s11214_s14), 0 }
   0xf   : > { %11060 = sst [smem:[#allocation7_spill]] %s11216_s14  ;;  %p209_p8 = scmp.ne.s32.totalorder %s8643_s25, %s8639_s24 }
  0x10   : > { %p8793_p7 = por %p204_p6, %p203_p5  ;;  %s36_s20 = ssub.s32 %s8671_s9, %s11216_s14 }
  0x11   : > { %p210_p9 = scmp.eq.s32.totalorder %s7709_s12, 3  ;;  %s38_s21 = sor.u32 %s37_s16, %s36_s20 }
  0x12   : > { %p191_p10 = scmp.eq.s32.totalorder %s36_s20, 0  ;;  %p39_p11 = scmp.eq.s32.totalorder %s38_s21, 0 }
  0x13   : > { %p8801_p12 = por %p210_p9, %p209_p8  ;;  %p7711_p13 = scmp.ge.s32.totalorder %s8675_s10, 4 }
  0x14   : > { %s8806_s23 = scalar_select %p191_p10, %s8647_s26, %s193_s18  }
  0x15   : > { %s11062_s22 = scalar_select %p8801_p12, 1, 0 }
  0x16   : > { %s8809_s11 = scalar_select %p39_p11, %s8655_s28, %s41_s15  }
  0x17   : > { %11063 = sst [smem:[#allocation8_spill]] %s11062_s22  ;;  %244 = sbr.rel (%p7711_p13) target bundleno = 67 (0x43), region = 40 }
  0x1c   : > { %247 = sbr.rel (!%p8784_p3) target bundleno = 67 (0x43), region = 44  ;;  %s249_s12 = sand.u32 (%p8784_p3), 1, %s8655_s28  }
  0x1d   : > { %s7714_s16 = sshll.u32 (%p8784_p3), %s8667_s8, 6  ;;  %s7712_s20 = sshll.u32 (%p8784_p3), %s249_s12, 9 }
  0x1e   : > { %s7993_s21 = sshll.u32 (%p8784_p3), %s8671_s9, 8  ;;  %s8825_s17 = scalar_lea.vmem (%p8784_p3), [#allocation2], %s7712_s20 }
  0x1f   : > { %s255_s14 = sadd.s32 (%p8784_p3), %s7993_s21, %s7714_s16 }
  0x20   : > { %s7716_s13 = sshll.u32 (%p8784_p3), %s255_s14, 2 }
  0x21   : > { %s8820_s15 = scalar_lea.vmem %s10918_s0, %s7716_s13 }
  0x22   : > { %v274_v0 = vld [vmem:[%s8820_s15] sm:$0xff]   ;;  %v278_v1 = vld [vmem:[%s8820_s15 + $0x8] sm:$0xff]   ;;  %v282_v2 = vld [vmem:[%s8820_s15 + $0x10] sm:$0xff]  }
  0x23   : > { %275 = vst [vmem:[%s8825_s17] sm:$0xff] %v274_v0   ;;  %279 = vst [vmem:[%s8825_s17 + $0x8] sm:$0xff] %v278_v1   ;;  %v286_v3 = vld [vmem:[%s8820_s15 + $0x18] sm:$0xff]   ;;  %v290_v4 = vld [vmem:[%s8820_s15 + $0x20] sm:$0xff]  }
  0x24   : > { %283 = vst [vmem:[%s8825_s17 + $0x10] sm:$0xff] %v282_v2   ;;  %v294_v5 = vld [vmem:[%s8820_s15 + $0x28] sm:$0xff]   ;;  %287 = vst [vmem:[%s8825_s17 + $0x18] sm:$0xff] %v286_v3   ;;  %v298_v6 = vld [vmem:[%s8820_s15 + $0x30] sm:$0xff]  }
  0x25   : > { %291 = vst [vmem:[%s8825_s17 + $0x20] sm:$0xff] %v290_v4   ;;  %295 = vst [vmem:[%s8825_s17 + $0x28] sm:$0xff] %v294_v5   ;;  %v302_v7 = vld [vmem:[%s8820_s15 + $0x38] sm:$0xff]   ;;  %v306_v8 = vld [vmem:[%s8820_s15 + $0x40] sm:$0xff]  }
  0x26   : > { %299 = vst [vmem:[%s8825_s17 + $0x30] sm:$0xff] %v298_v6   ;;  %303 = vst [vmem:[%s8825_s17 + $0x38] sm:$0xff] %v302_v7   ;;  %v310_v9 = vld [vmem:[%s8820_s15 + $0x48] sm:$0xff]   ;;  %v314_v10 = vld [vmem:[%s8820_s15 + $0x50] sm:$0xff]  }
  0x27   : > { %307 = vst [vmem:[%s8825_s17 + $0x40] sm:$0xff] %v306_v8   ;;  %v318_v11 = vld [vmem:[%s8820_s15 + $0x58] sm:$0xff]   ;;  %311 = vst [vmem:[%s8825_s17 + $0x48] sm:$0xff] %v310_v9   ;;  %v322_v12 = vld [vmem:[%s8820_s15 + $0x60] sm:$0xff]  }
  0x28   : > { %315 = vst [vmem:[%s8825_s17 + $0x50] sm:$0xff] %v314_v10   ;;  %319 = vst [vmem:[%s8825_s17 + $0x58] sm:$0xff] %v318_v11   ;;  %v326_v13 = vld [vmem:[%s8820_s15 + $0x68] sm:$0xff]   ;;  %v330_v14 = vld [vmem:[%s8820_s15 + $0x70] sm:$0xff]  }
  0x29   : > { %323 = vst [vmem:[%s8825_s17 + $0x60] sm:$0xff] %v322_v12   ;;  %327 = vst [vmem:[%s8825_s17 + $0x68] sm:$0xff] %v326_v13   ;;  %v334_v15 = vld [vmem:[%s8820_s15 + $0x78] sm:$0xff]   ;;  %v338_v16 = vld [vmem:[%s8820_s15 + $0x80] sm:$0xff]  }
  0x2a   : > { %331 = vst [vmem:[%s8825_s17 + $0x70] sm:$0xff] %v330_v14   ;;  %v342_v17 = vld [vmem:[%s8820_s15 + $0x88] sm:$0xff]   ;;  %335 = vst [vmem:[%s8825_s17 + $0x78] sm:$0xff] %v334_v15   ;;  %v346_v18 = vld [vmem:[%s8820_s15 + $0x90] sm:$0xff]  }
  0x2b   : > { %339 = vst [vmem:[%s8825_s17 + $0x80] sm:$0xff] %v338_v16   ;;  %343 = vst [vmem:[%s8825_s17 + $0x88] sm:$0xff] %v342_v17   ;;  %v350_v19 = vld [vmem:[%s8820_s15 + $0x98] sm:$0xff]   ;;  %v354_v20 = vld [vmem:[%s8820_s15 + $0xa0] sm:$0xff]  }
  0x2c   : > { %347 = vst [vmem:[%s8825_s17 + $0x90] sm:$0xff] %v346_v18   ;;  %351 = vst [vmem:[%s8825_s17 + $0x98] sm:$0xff] %v350_v19   ;;  %v358_v21 = vld [vmem:[%s8820_s15 + $0xa8] sm:$0xff]   ;;  %v362_v22 = vld [vmem:[%s8820_s15 + $0xb0] sm:$0xff]  }
  0x2d   : > { %355 = vst [vmem:[%s8825_s17 + $0xa0] sm:$0xff] %v354_v20   ;;  %v366_v23 = vld [vmem:[%s8820_s15 + $0xb8] sm:$0xff]   ;;  %359 = vst [vmem:[%s8825_s17 + $0xa8] sm:$0xff] %v358_v21   ;;  %v370_v24 = vld [vmem:[%s8820_s15 + $0xc0] sm:$0xff]  }
  0x2e   : > { %363 = vst [vmem:[%s8825_s17 + $0xb0] sm:$0xff] %v362_v22   ;;  %367 = vst [vmem:[%s8825_s17 + $0xb8] sm:$0xff] %v366_v23   ;;  %v374_v25 = vld [vmem:[%s8820_s15 + $0xc8] sm:$0xff]   ;;  %v378_v26 = vld [vmem:[%s8820_s15 + $0xd0] sm:$0xff]  }
  0x2f   : > { %371 = vst [vmem:[%s8825_s17 + $0xc0] sm:$0xff] %v370_v24   ;;  %375 = vst [vmem:[%s8825_s17 + $0xc8] sm:$0xff] %v374_v25   ;;  %v382_v27 = vld [vmem:[%s8820_s15 + $0xd8] sm:$0xff]   ;;  %v386_v28 = vld [vmem:[%s8820_s15 + $0xe0] sm:$0xff]  }
  0x30   : > { %379 = vst [vmem:[%s8825_s17 + $0xd0] sm:$0xff] %v378_v26   ;;  %v390_v29 = vld [vmem:[%s8820_s15 + $0xe8] sm:$0xff]   ;;  %383 = vst [vmem:[%s8825_s17 + $0xd8] sm:$0xff] %v382_v27   ;;  %v394_v30 = vld [vmem:[%s8820_s15 + $0xf0] sm:$0xff]  }
  0x31   : > { %387 = vst [vmem:[%s8825_s17 + $0xe0] sm:$0xff] %v386_v28   ;;  %391 = vst [vmem:[%s8825_s17 + $0xe8] sm:$0xff] %v390_v29   ;;  %v398_v31 = vld [vmem:[%s8820_s15 + $0xf8] sm:$0xff]   ;;  %v402_v32 = vld [vmem:[%s8820_s15 + $0x200] sm:$0xff]  }
  0x32   : > { %395 = vst [vmem:[%s8825_s17 + $0xf0] sm:$0xff] %v394_v30   ;;  %399 = vst [vmem:[%s8825_s17 + $0xf8] sm:$0xff] %v398_v31   ;;  %v406_v33 = vld [vmem:[%s8820_s15 + $0x208] sm:$0xff]   ;;  %v410_v34 = vld [vmem:[%s8820_s15 + $0x210] sm:$0xff]  }
  0x33   : > { %403 = vst [vmem:[%s8825_s17 + $0x100] sm:$0xff] %v402_v32   ;;  %v414_v35 = vld [vmem:[%s8820_s15 + $0x218] sm:$0xff]   ;;  %407 = vst [vmem:[%s8825_s17 + $0x108] sm:$0xff] %v406_v33   ;;  %v418_v36 = vld [vmem:[%s8820_s15 + $0x220] sm:$0xff]  }
  0x34   : > { %411 = vst [vmem:[%s8825_s17 + $0x110] sm:$0xff] %v410_v34   ;;  %415 = vst [vmem:[%s8825_s17 + $0x118] sm:$0xff] %v414_v35   ;;  %v422_v37 = vld [vmem:[%s8820_s15 + $0x228] sm:$0xff]   ;;  %v426_v38 = vld [vmem:[%s8820_s15 + $0x230] sm:$0xff]  }
  0x35   : > { %419 = vst [vmem:[%s8825_s17 + $0x120] sm:$0xff] %v418_v36   ;;  %423 = vst [vmem:[%s8825_s17 + $0x128] sm:$0xff] %v422_v37   ;;  %v430_v39 = vld [vmem:[%s8820_s15 + $0x238] sm:$0xff]   ;;  %v434_v40 = vld [vmem:[%s8820_s15 + $0x240] sm:$0xff]  }
  0x36   : > { %427 = vst [vmem:[%s8825_s17 + $0x130] sm:$0xff] %v426_v38   ;;  %v438_v41 = vld [vmem:[%s8820_s15 + $0x248] sm:$0xff]   ;;  %431 = vst [vmem:[%s8825_s17 + $0x138] sm:$0xff] %v430_v39   ;;  %v442_v42 = vld [vmem:[%s8820_s15 + $0x250] sm:$0xff]  }
  0x37   : > { %435 = vst [vmem:[%s8825_s17 + $0x140] sm:$0xff] %v434_v40   ;;  %439 = vst [vmem:[%s8825_s17 + $0x148] sm:$0xff] %v438_v41   ;;  %v446_v43 = vld [vmem:[%s8820_s15 + $0x258] sm:$0xff]   ;;  %v450_v44 = vld [vmem:[%s8820_s15 + $0x260] sm:$0xff]  }
  0x38   : > { %443 = vst [vmem:[%s8825_s17 + $0x150] sm:$0xff] %v442_v42   ;;  %447 = vst [vmem:[%s8825_s17 + $0x158] sm:$0xff] %v446_v43   ;;  %v454_v45 = vld [vmem:[%s8820_s15 + $0x268] sm:$0xff]   ;;  %v458_v46 = vld [vmem:[%s8820_s15 + $0x270] sm:$0xff]  }
  0x39   : > { %451 = vst [vmem:[%s8825_s17 + $0x160] sm:$0xff] %v450_v44   ;;  %v462_v47 = vld [vmem:[%s8820_s15 + $0x278] sm:$0xff]   ;;  %455 = vst [vmem:[%s8825_s17 + $0x168] sm:$0xff] %v454_v45   ;;  %v466_v48 = vld [vmem:[%s8820_s15 + $0x280] sm:$0xff]  }
  0x3a   : > { %459 = vst [vmem:[%s8825_s17 + $0x170] sm:$0xff] %v458_v46   ;;  %463 = vst [vmem:[%s8825_s17 + $0x178] sm:$0xff] %v462_v47   ;;  %v470_v49 = vld [vmem:[%s8820_s15 + $0x288] sm:$0xff]   ;;  %v474_v50 = vld [vmem:[%s8820_s15 + $0x290] sm:$0xff]  }
  0x3b   : > { %467 = vst [vmem:[%s8825_s17 + $0x180] sm:$0xff] %v466_v48   ;;  %471 = vst [vmem:[%s8825_s17 + $0x188] sm:$0xff] %v470_v49   ;;  %v478_v51 = vld [vmem:[%s8820_s15 + $0x298] sm:$0xff]   ;;  %v482_v52 = vld [vmem:[%s8820_s15 + $0x2a0] sm:$0xff]  }
  0x3c   : > { %475 = vst [vmem:[%s8825_s17 + $0x190] sm:$0xff] %v474_v50   ;;  %v486_v53 = vld [vmem:[%s8820_s15 + $0x2a8] sm:$0xff]   ;;  %479 = vst [vmem:[%s8825_s17 + $0x198] sm:$0xff] %v478_v51   ;;  %v490_v54 = vld [vmem:[%s8820_s15 + $0x2b0] sm:$0xff]  }
  0x3d   : > { %483 = vst [vmem:[%s8825_s17 + $0x1a0] sm:$0xff] %v482_v52   ;;  %487 = vst [vmem:[%s8825_s17 + $0x1a8] sm:$0xff] %v486_v53   ;;  %v494_v55 = vld [vmem:[%s8820_s15 + $0x2b8] sm:$0xff]   ;;  %v498_v56 = vld [vmem:[%s8820_s15 + $0x2c0] sm:$0xff]  }
  0x3e   : > { %491 = vst [vmem:[%s8825_s17 + $0x1b0] sm:$0xff] %v490_v54   ;;  %495 = vst [vmem:[%s8825_s17 + $0x1b8] sm:$0xff] %v494_v55   ;;  %v502_v57 = vld [vmem:[%s8820_s15 + $0x2c8] sm:$0xff]   ;;  %v506_v58 = vld [vmem:[%s8820_s15 + $0x2d0] sm:$0xff]  }
  0x3f   : > { %499 = vst [vmem:[%s8825_s17 + $0x1c0] sm:$0xff] %v498_v56   ;;  %v510_v59 = vld [vmem:[%s8820_s15 + $0x2d8] sm:$0xff]   ;;  %503 = vst [vmem:[%s8825_s17 + $0x1c8] sm:$0xff] %v502_v57   ;;  %v514_v60 = vld [vmem:[%s8820_s15 + $0x2e0] sm:$0xff]  }
  0x40   : > { %507 = vst [vmem:[%s8825_s17 + $0x1d0] sm:$0xff] %v506_v58   ;;  %511 = vst [vmem:[%s8825_s17 + $0x1d8] sm:$0xff] %v510_v59   ;;  %v518_v61 = vld [vmem:[%s8820_s15 + $0x2e8] sm:$0xff]   ;;  %v522_v62 = vld [vmem:[%s8820_s15 + $0x2f0] sm:$0xff]  }
  0x41   : > { %515 = vst [vmem:[%s8825_s17 + $0x1e0] sm:$0xff] %v514_v60   ;;  %519 = vst [vmem:[%s8825_s17 + $0x1e8] sm:$0xff] %v518_v61   ;;  %v526_v63 = vld [vmem:[%s8820_s15 + $0x2f8] sm:$0xff]  }
  0x42   : > { %523 = vst [vmem:[%s8825_s17 + $0x1f0] sm:$0xff] %v522_v62   ;;  %527 = vst [vmem:[%s8825_s17 + $0x1f8] sm:$0xff] %v526_v63  }
  0x43 PF: > { %p7717_p0 = scmp.ge.s32.totalorder %s8675_s10, 1  ;;  %p808_p1 = scmp.lt.s32.totalorder %s8675_s10, 5 }
  0x45   : > { %p809_p2 = pnand %p7717_p0, %p808_p1 }
  0x47   : > { %812 = sbr.rel (%p809_p2) target bundleno = 1852 (0x73c), region = 85 }
  0x4c   : > { %s815_s13 = sand.u32 1, %s8651_s27   ;;  %s843_s14 = sand.u32 1, %s8643_s25  }
  0x4d   : > { %s7718_s22 = sshll.u32 %s815_s13, 9  ;;  %s7719_s12 = sshll.u32 %s843_s14, 4 }
  0x4e   : > { %s8958_s16 = scalar_lea.vmem [#allocation2], %s7718_s22  ;;  %s8960_s20 = scalar_lea.vmem [#allocation3], %s7719_s12 }
  0x4f   : > { %p7720_p3 = scmp.ne.s32.totalorder %s8659_s29, 0 }
  0x51   : > { %852 = sbr.rel (%p7720_p3) target bundleno = 88 (0x58), region = 93 }
  0x56   : > { %v8677_v0 = vmov -inf  }
  0x57   : > { %853 = vst [vmem:[%s8960_s20] sm:$0xff] %v8677_v0  ;;  %854 = vst [vmem:[%s8960_s20 + $0x8] sm:$0xff] %v8677_v0 }
  0x58 PF: > { %v8493_v1 = vld [vmem:[%s10919_s1 + $0x18] sm:$0xff]   ;;  %v8494_v2 = vld [vmem:[%s10919_s1 + $0x10] sm:$0xff]   ;;  %v8495_v3 = vld [vmem:[%s10919_s1 + $0x8] sm:$0xff]   ;;  %vm1342_vm0 = vcmask 523264   ;;  %vm7511_vm1 = vcmask 1041409   ;;  %vm7513_vm2 = vcmask 1043459  }
  0x59   : > { %8131 = vmatprep.subr.bf16.mxu0 %v8493_v1  ;;  %v8497_v4 = vld [vmem:[%s8958_s16] sm:$0xff]   ;;  %v8498_v6 = vld [vmem:[%s8958_s16 + $0x8] sm:$0xff]   ;;  %v8499_v7 = vld [vmem:[%s8958_s16 + $0x10] sm:$0xff]   ;;  %vm7515_vm3 = vcmask 1045509   ;;  %vm7517_vm4 = vcmask 1047559   ;;  %p7987_p4 = scmp.ne.s32.totalorder %s8659_s29, 1 }
  0x5a   : > { %8132 = vmatpush3.bf16.msra.mxu0 %v8493_v1  ;;  %8139 = vmatprep.mubr.msk.bf16.mxu0 %vm1342_vm0, %v8497_v4  ;;  %v8496_v5 = vld [vmem:[%s10919_s1] sm:$0xff]   ;;  %v8500_v8 = vld [vmem:[%s8958_s16 + $0x18] sm:$0xff]   ;;  %v8502_v10 = vld [vmem:[%s8958_s16 + $0x28] sm:$0xff]  }
  0x5b   : > { %8133 = vmatprep.subr.bf16.mxu0 %v8494_v2  ;;  %v8501_v9 = vld [vmem:[%s8958_s16 + $0x20] sm:$0xff]   ;;  %v8503_v11 = vld [vmem:[%s8958_s16 + $0x30] sm:$0xff]   ;;  %v8504_v12 = vld [vmem:[%s8958_s16 + $0x38] sm:$0xff]  }
  0x5c   : > { %v8505_v13 = vld [vmem:[%s8958_s16 + $0x40] sm:$0xff]   ;;  %v8506_v14 = vld [vmem:[%s8958_s16 + $0x48] sm:$0xff]   ;;  %v8507_v15 = vld [vmem:[%s8958_s16 + $0x50] sm:$0xff]  }
  0x5d   : > { %v8508_v16 = vld [vmem:[%s8958_s16 + $0x58] sm:$0xff]   ;;  %v8509_v17 = vld [vmem:[%s8958_s16 + $0x60] sm:$0xff]   ;;  %v8510_v18 = vld [vmem:[%s8958_s16 + $0x68] sm:$0xff]  }
  0x5e   : > { %8134 = vmatpush3.bf16.msra.mxu0 %v8494_v2  ;;  %v8511_v19 = vld [vmem:[%s8958_s16 + $0x70] sm:$0xff]   ;;  %v8512_v20 = vld [vmem:[%s8958_s16 + $0x78] sm:$0xff]   ;;  %v8513_v21 = vld [vmem:[%s8958_s16 + $0x80] sm:$0xff]  }
  0x5f   : > { %8135 = vmatprep.subr.bf16.mxu0 %v8495_v3  ;;  %v8545_v22 = vld [vmem:[%s10921_s3 + $0x18] sm:$0xff]   ;;  %v8514_v23 = vld [vmem:[%s8958_s16 + $0x88] sm:$0xff]   ;;  %v8515_v24 = vld [vmem:[%s8958_s16 + $0x90] sm:$0xff]  }
  0x60   : > { %8267 = vmatprep.subr.bf16.mxu1 %v8545_v22  ;;  %v8548_v25 = vld [vmem:[%s10921_s3 + $0x10] sm:$0xff]   ;;  %v8516_v26 = vld [vmem:[%s8958_s16 + $0x98] sm:$0xff]   ;;  %v8549_v27 = vld [vmem:[%s10921_s3 + $0x8] sm:$0xff]  }
  0x61   : > { %8268 = vmatpush3.bf16.msra.mxu1 %v8545_v22  ;;  %v8517_v28 = vld [vmem:[%s8958_s16 + $0xa0] sm:$0xff]   ;;  %v8518_v30 = vld [vmem:[%s8958_s16 + $0xa8] sm:$0xff]   ;;  %v8519_v31 = vld [vmem:[%s8958_s16 + $0xb0] sm:$0xff]  }
  0x62   : > { %8136 = vmatpush3.bf16.msra.mxu0 %v8495_v3  ;;  %8269 = vmatprep.subr.bf16.mxu1 %v8548_v25  ;;  %v8552_v29 = vld [vmem:[%s10921_s3] sm:$0xff]   ;;  %v9044_v34 = vld [vmem:[%s10923_s5 + $0x1c8] sm:$0xff]  ;;  %v8520_v40 = vld [vmem:[%s8958_s16 + $0xb8] sm:$0xff]  }
  0x63   : > { %8137 = vmatprep.subr.bf16.mxu0 %v8496_v5  ;;  %v3296_v32 = vld [vmem:[%s10923_s5 + $0x1c0] sm:$0xff]  ;;  %v9049_v37 = vld [vmem:[%s10923_s5 + $0x1e8] sm:$0xff]  ;;  %v8523_v43 = vld [vmem:[%s8958_s16 + $0xd0] sm:$0xff]  }
  0x64   : > { %v3300_v33 = vld [vmem:[%s10923_s5 + $0x1e0] sm:$0xff]  ;;  %v7981_v38 = vcombine.low %v9044_v34, %v9049_v37  ;;  %v7982_v39 = vcombine.high %v9044_v34, %v9049_v37  ;;  %v8522_v42 = vld [vmem:[%s8958_s16 + $0xc8] sm:$0xff]   ;;  %v8524_v44 = vld [vmem:[%s8958_s16 + $0xd8] sm:$0xff]  }
  0x65   : > { %8270 = vmatpush3.bf16.msra.mxu1 %v8548_v25  ;;  %v7979_v35 = vcombine.low %v3296_v32, %v3300_v33  ;;  %v7980_v36 = vcombine.high %v3296_v32, %v3300_v33  ;;  %v8521_v41 = vld [vmem:[%s8958_s16 + $0xc0] sm:$0xff]   ;;  %v8526_v46 = vld [vmem:[%s8958_s16 + $0xe8] sm:$0xff]   ;;  %v8527_v47 = vld [vmem:[%s8958_s16 + $0xf0] sm:$0xff]  }
  0x66   : > { %8138 = vmatpush3.bf16.msra.mxu0 %v8496_v5  ;;  %8271 = vmatprep.subr.bf16.mxu1 %v8549_v27  ;;  %v8525_v45 = vld [vmem:[%s8958_s16 + $0xe0] sm:$0xff]   ;;  %v8528_v52 = vld [vmem:[%s8958_s16 + $0xf8] sm:$0xff]   ;;  %v8530_v54 = vld [vmem:[%s8958_s16 + $0x108] sm:$0xff]  }
  0x67   : > { %3624 = vmatprep.subr.bf16.mxu0 %v7980_v36  ;;  %v3288_v48 = vld [vmem:[%s10923_s5 + $0x180] sm:$0xff]  ;;  %v8531_v55 = vld [vmem:[%s8958_s16 + $0x110] sm:$0xff]   ;;  %v8532_v56 = vld [vmem:[%s8958_s16 + $0x118] sm:$0xff]  }
  0x68   : > { %v3292_v49 = vld [vmem:[%s10923_s5 + $0x1a0] sm:$0xff]  ;;  %v8534_v58 = vld [vmem:[%s8958_s16 + $0x128] sm:$0xff]   ;;  %v8535_v59 = vld [vmem:[%s8958_s16 + $0x130] sm:$0xff]  }
  0x69   : > { %8140 = vmatmul.mubr.msk.bf16.vlgmr.msra.gmra.mxu0 %vm1342_vm0, %v8498_v6  ;;  %8272 = vmatpush3.bf16.msra.mxu1 %v8549_v27  ;;  %v7971_v50 = vcombine.low %v3288_v48, %v3292_v49  ;;  %v7972_v51 = vcombine.high %v3288_v48, %v3292_v49  ;;  %v8529_v53 = vld [vmem:[%s8958_s16 + $0x100] sm:$0xff]   ;;  %v8536_v0 = vld [vmem:[%s8958_s16 + $0x138] sm:$0xff]   ;;  %v8538_v2 = vld [vmem:[%s8958_s16 + $0x148] sm:$0xff]  }
  0x6a   : > { %8143 = vmatprep.mubr.msk.bf16.mxu0 %vm1342_vm0, %v8499_v7  ;;  %8273 = vmatprep.subr.bf16.mxu1 %v8552_v29  ;;  %v8533_v57 = vld [vmem:[%s8958_s16 + $0x120] sm:$0xff]   ;;  %v8539_v3 = vld [vmem:[%s8958_s16 + $0x150] sm:$0xff]   ;;  %v8540_v4 = vld [vmem:[%s8958_s16 + $0x158] sm:$0xff]  }
  0x6b   : > { %3625 = vmatpush1.bf16.msra.mxu0 %v7979_v35  ;;  %v3280_v60 = vld [vmem:[%s10923_s5 + $0x140] sm:$0xff]  ;;  %v8542_v6 = vld [vmem:[%s8958_s16 + $0x168] sm:$0xff]   ;;  %v8543_v7 = vld [vmem:[%s8958_s16 + $0x170] sm:$0xff]  }
  0x6c   : > { %3626 = vmatprep.subr.bf16.mxu0 %v7972_v51  ;;  %v3284_v61 = vld [vmem:[%s10923_s5 + $0x160] sm:$0xff]  ;;  %v3293_v32 = vld [vmem:[%s10923_s5 + $0x1a8] sm:$0xff] }
  0x6d   : > { %8274 = vmatpush3.bf16.msra.mxu1 %v8552_v29  ;;  %v7963_v62 = vcombine.low %v3280_v60, %v3284_v61  ;;  %v7964_v63 = vcombine.high %v3280_v60, %v3284_v61  ;;  %v8537_v1 = vld [vmem:[%s8958_s16 + $0x140] sm:$0xff]   ;;  %v3277_v34 = vld [vmem:[%s10923_s5 + $0x128] sm:$0xff] }
  0x6e   : > { %4297 = vmatprep.subr.bf16.mxu1 %v7982_v39  ;;  %v8541_v5 = vld [vmem:[%s8958_s16 + $0x160] sm:$0xff]  }
  0x6f   : > { %3627 = vmatpush1.bf16.msra.mxu0 %v7971_v50  ;;  %v3264_v37 = vld [vmem:[%s10923_s5 + $0xc0] sm:$0xff] }
  0x70   : > { %3628 = vmatprep.subr.bf16.mxu0 %v7964_v63 }
  0x71   : > { %8144 = vmatmul.mubr.msk.bf16.gmra.mxu0 %vm1342_vm0, %v8500_v8  ;;  %v3272_v8 = vld [vmem:[%s10923_s5 + $0x100] sm:$0xff] }
  0x72   : > { %8147 = vmatprep.mubr.msk.bf16.mxu0 %vm1342_vm0, %v8501_v9  ;;  %v3276_v9 = vld [vmem:[%s10923_s5 + $0x120] sm:$0xff] }
  0x73   : > { %3629 = vmatpush1.bf16.msra.mxu0 %v7963_v62 }
  0x79   : > { %8148 = vmatmul.mubr.msk.bf16.gmra.mxu0 %vm1342_vm0, %v8502_v10  ;;  %v7955_v10 = vcombine.low %v3272_v8, %v3276_v9 }
  0x7a   : > { %8151 = vmatprep.mubr.msk.bf16.mxu0 %vm1342_vm0, %v8503_v11  ;;  %v7956_v11 = vcombine.high %v3272_v8, %v3276_v9  ;;  %v3269_v8 = vld [vmem:[%s10923_s5 + $0xe8] sm:$0xff] }
  0x7c   : > { %3630 = vmatprep.subr.bf16.mxu0 %v7956_v11 }
  0x7d   : > { %3631 = vmatpush1.bf16.msra.mxu0 %v7955_v10 }
  0x81   : > { %8152 = vmatmul.mubr.msk.bf16.gmra.mxu0 %vm1342_vm0, %v8504_v12  ;;  %v8544_v12 = vld [vmem:[%s8958_s16 + $0x178] sm:$0xff]  }
  0x82   : > { %8155 = vmatprep.mubr.msk.bf16.mxu0 %vm1342_vm0, %v8505_v13  ;;  %v8546_v13 = vld [vmem:[%s8958_s16 + $0x180] sm:$0xff]  }
  0x89   : > { %8156 = vmatmul.mubr.msk.bf16.gmra.mxu0 %vm1342_vm0, %v8506_v14  ;;  %v8547_v14 = vld [vmem:[%s8958_s16 + $0x188] sm:$0xff]  }
  0x8a   : > { %8159 = vmatprep.mubr.msk.bf16.mxu0 %vm1342_vm0, %v8507_v15  ;;  %v8550_v15 = vld [vmem:[%s8958_s16 + $0x190] sm:$0xff]  }
  0x91   : > { %8160 = vmatmul.mubr.msk.bf16.gmra.mxu0 %vm1342_vm0, %v8508_v16 }
  0x92   : > { %8163 = vmatprep.mubr.msk.bf16.mxu0 %vm1342_vm0, %v8509_v17 }
  0x99   : > { %8164 = vmatmul.mubr.msk.bf16.gmra.mxu0 %vm1342_vm0, %v8510_v18  ;;  %v9132_v18 = vld [vmem:[%s10920_s2] ss:$0 sm:$0xff] }
  0x9a   : > { %8167 = vmatprep.mubr.msk.bf16.mxu0 %vm1342_vm0, %v8511_v19 }
  0xa1   : > { %8168 = vmatmul.mubr.msk.bf16.gmra.mxu0 %vm1342_vm0, %v8512_v20  ;;  %v8551_v20 = vld [vmem:[%s8958_s16 + $0x198] sm:$0xff]  }
  0xa2   : > { %8171 = vmatprep.mubr.msk.bf16.mxu0 %vm1342_vm0, %v8513_v21 }
  0xa9   : > { %8172 = vmatmul.mubr.msk.bf16.gmra.mxu0 %vm1342_vm0, %v8514_v23  ;;  %v8553_v23 = vld [vmem:[%s8958_s16 + $0x1a0] sm:$0xff]  }
  0xaa   : > { %8175 = vmatprep.mubr.msk.bf16.mxu0 %vm1342_vm0, %v8515_v24 }
  0xb1   : > { %8176 = vmatmul.mubr.msk.bf16.gmra.mxu0 %vm1342_vm0, %v8516_v26 }
  0xb2   : > { %8179 = vmatprep.mubr.msk.bf16.mxu0 %vm1342_vm0, %v8517_v28 }
  0xb9   : > { %8180 = vmatmul.mubr.msk.bf16.gmra.mxu0 %vm1342_vm0, %v8518_v30 }
  0xba   : > { %8183 = vmatprep.mubr.msk.bf16.mxu0 %vm1342_vm0, %v8519_v31  ;;  %v3289_v31 = vld [vmem:[%s10923_s5 + $0x188] sm:$0xff] }
  0xbb   : > { %v7973_v51 = vcombine.low %v3289_v31, %v3293_v32 }
  0xc1   : > { %8184 = vmatmul.mubr.msk.bf16.gmra.mxu0 %vm1342_vm0, %v8520_v40 }
  0xc2   : > { %8187 = vmatprep.mubr.msk.bf16.mxu0 %vm1342_vm0, %v8521_v41  ;;  %v8554_v41 = vld [vmem:[%s8958_s16 + $0x1a8] sm:$0xff]  }
  0xc9   : > { %8188 = vmatmul.mubr.msk.bf16.gmra.mxu0 %vm1342_vm0, %v8522_v42  ;;  %v7974_v42 = vcombine.high %v3289_v31, %v3293_v32 }
  0xca   : > { %8191 = vmatprep.mubr.msk.bf16.mxu0 %vm1342_vm0, %v8523_v43 }
  0xd1   : > { %8192 = vmatmul.mubr.msk.bf16.gmra.mxu0 %vm1342_vm0, %v8524_v44 }
  0xd2   : > { %8195 = vmatprep.mubr.msk.bf16.mxu0 %vm1342_vm0, %v8525_v45  ;;  %v8555_v45 = vld [vmem:[%s8958_s16 + $0x1b0] sm:$0xff]  }
  0xd9   : > { %8196 = vmatmul.mubr.msk.bf16.gmra.mxu0 %vm1342_vm0, %v8526_v46  ;;  %v3281_v46 = vld [vmem:[%s10923_s5 + $0x148] sm:$0xff] }
  0xda   : > { %8199 = vmatprep.mubr.msk.bf16.mxu0 %vm1342_vm0, %v8527_v47  ;;  %v3285_v47 = vld [vmem:[%s10923_s5 + $0x168] sm:$0xff] }
  0xdb   : > { %v7965_v63 = vcombine.low %v3281_v46, %v3285_v47 }
  0xe1   : > { %8200 = vmatmul.mubr.msk.bf16.gmra.mxu0 %vm1342_vm0, %v8528_v52 }
  0xe2   : > { %8203 = vmatprep.mubr.msk.bf16.mxu0 %vm1342_vm0, %v8529_v53 }
  0xe9   : > { %8204 = vmatmul.mubr.msk.bf16.gmra.mxu0 %vm1342_vm0, %v8530_v54  ;;  %v7966_v54 = vcombine.high %v3281_v46, %v3285_v47  ;;  %v8561_v47 = vld [vmem:[%s8958_s16 + $0x1e0] sm:$0xff]  }
  0xea   : > { %8207 = vmatprep.mubr.msk.bf16.mxu0 %vm1342_vm0, %v8531_v55  ;;  %v3273_v55 = vld [vmem:[%s10923_s5 + $0x108] sm:$0xff] }
  0xf1   : > { %8208 = vmatmul.mubr.msk.bf16.gmra.mxu0 %vm1342_vm0, %v8532_v56 }
  0xf2   : > { %8211 = vmatprep.mubr.msk.bf16.mxu0 %vm1342_vm0, %v8533_v57 }
  0xf9   : > { %8212 = vmatmul.mubr.msk.bf16.gmra.mxu0 %vm1342_vm0, %v8534_v58 }
  0xfa   : > { %8215 = vmatprep.mubr.msk.bf16.mxu0 %vm1342_vm0, %v8535_v59 }
 0x101   : > { %8216 = vmatmul.mubr.msk.bf16.gmra.mxu0 %vm1342_vm0, %v8536_v0 }
 0x102   : > { %8219 = vmatprep.mubr.msk.bf16.mxu0 %vm1342_vm0, %v8537_v1 }
 0x109   : > { %8220 = vmatmul.mubr.msk.bf16.gmra.mxu0 %vm1342_vm0, %v8538_v2  ;;  %v8556_v2 = vld [vmem:[%s8958_s16 + $0x1b8] sm:$0xff]  }
 0x10a   : > { %8223 = vmatprep.mubr.msk.bf16.mxu0 %vm1342_vm0, %v8539_v3  ;;  %v7958_v3 = vcombine.high %v3273_v55, %v3277_v34 }
 0x111   : > { %8224 = vmatmul.mubr.msk.bf16.gmra.mxu0 %vm1342_vm0, %v8540_v4 }
 0x112   : > { %8227 = vmatprep.mubr.msk.bf16.mxu0 %vm1342_vm0, %v8541_v5 }
 0x119   : > { %8228 = vmatmul.mubr.msk.bf16.gmra.mxu0 %vm1342_vm0, %v8542_v6  ;;  %v8557_v6 = vld [vmem:[%s8958_s16 + $0x1c0] sm:$0xff]  }
 0x11a   : > { %8231 = vmatprep.mubr.msk.bf16.mxu0 %vm1342_vm0, %v8543_v7  ;;  %v3265_v7 = vld [vmem:[%s10923_s5 + $0xc8] sm:$0xff] }
 0x121   : > { %8232 = vmatmul.mubr.msk.bf16.gmra.mxu0 %vm1342_vm0, %v8544_v12  ;;  %v7957_v12 = vcombine.low %v3273_v55, %v3277_v34 }
 0x122   : > { %8235 = vmatprep.mubr.msk.bf16.mxu0 %vm1342_vm0, %v8546_v13 }
 0x129   : > { %v8141_v16 = vpop.f32.mrf.mxu0  ;;  %8236 = vmatmul.mubr.msk.bf16.gmra.mxu0 %vm1342_vm0, %v8547_v14 }
 0x12a   : > { %8239 = vmatprep.mubr.msk.bf16.mxu0 %vm1342_vm0, %v8550_v15  ;;  %v1578_v24 = vadd.f32 %v8141_v16, %v9132_v18  ;;  %v7950_v15 = vcombine.high %v3265_v7, %v3269_v8 }
 0x12b   : > { %v1569_v17 = vpop.f32.mrf.mxu0 }
 0x12c   : > { %v1570_v21 = vadd.f32 %v9132_v18, %v1569_v17  ;;  %v2082_v33 = vmax.f32 %v1578_v24, 0.0 }
 0x12d   : > { %v8142_v19 = vpop.f32.mrf.mxu0 }
 0x12e   : > { %v1581_v22 = vadd.f32 %v8142_v19, %v9132_v18  ;;  %v2080_v29 = vmax.f32 %v1570_v21, 0.0 }
 0x12f   : > { %v1572_v25 = vpop.f32.mrf.mxu0 }
 0x130   : > { %v1573_v26 = vadd.f32 %v9132_v18, %v1572_v25  ;;  %v2083_v27 = vmax.f32 %v1581_v22, 0.0  ;;  %v7949_v22 = vcombine.low %v3265_v7, %v3269_v8  ;;  %v8558_v25 = vld [vmem:[%s8958_s16 + $0x1c8] sm:$0xff]  }
 0x131   : > { %v8145_v28 = vpop.f32.mrf.mxu0  ;;  %8240 = vmatmul.mubr.msk.bf16.gmra.mxu0 %vm1342_vm0, %v8551_v20 }
 0x132   : > { %v2081_v30 = vmax.f32 %v1573_v26, 0.0  ;;  %8243 = vmatprep.mubr.msk.bf16.mxu0 %vm1342_vm0, %v8553_v23  ;;  %v2209_v39 = vpack.c.bf16 %v2083_v27, %v2082_v33  ;;  %v1594_v48 = vadd.f32 %v8145_v28, %v9132_v18  ;;  %v8559_v28 = vld [vmem:[%s8958_s16 + $0x1d0] sm:$0xff]  }
 0x133   : > { %v1585_v35 = vpop.f32.mrf.mxu0 }
 0x134   : > { %v2208_v36 = vpack.c.bf16 %v2081_v30, %v2080_v29  ;;  %v1586_v43 = vadd.f32 %v9132_v18, %v1585_v35  ;;  %v2086_v58 = vmax.f32 %v1594_v48, 0.0 }
 0x135   : > { %v8146_v40 = vpop.f32.mrf.mxu0 }
 0x136   : > { %v1597_v44 = vadd.f32 %v8146_v40, %v9132_v18  ;;  %8275 = vmatprep.mubr.msk.bf16.mxu1 %vm1342_vm0, %v2208_v36  ;;  %v2084_v56 = vmax.f32 %v1586_v43, 0.0 }
 0x137   : > { %v1588_v49 = vpop.f32.mrf.mxu0  ;;  %8276 = vmatmul.mubr.msk.bf16.vlgmr.msra.gmra.mxu1 %vm1342_vm0, %v2209_v39 }
 0x138   : > { %v1589_v50 = vadd.f32 %v9132_v18, %v1588_v49  ;;  %4298 = vmatpush1.bf16.msra.mxu1 %v7981_v38  ;;  %v2087_v52 = vmax.f32 %v1597_v44, 0.0  ;;  %v3268_v38 = vld [vmem:[%s10923_s5 + $0xe0] sm:$0xff]  ;;  %v8560_v44 = vld [vmem:[%s8958_s16 + $0x1d8] sm:$0xff]  }
 0x139   : > { %v8149_v53 = vpop.f32.mrf.mxu0  ;;  %8244 = vmatmul.mubr.msk.bf16.gmra.mxu0 %vm1342_vm0, %v8554_v41  ;;  %4299 = vmatprep.subr.bf16.mxu1 %v7974_v42  ;;  %v7947_v60 = vcombine.low %v3264_v37, %v3268_v38  ;;  %v7948_v61 = vcombine.high %v3264_v37, %v3268_v38  ;;  %v8562_v38 = vld [vmem:[%s8958_s16 + $0x1e8] sm:$0xff]  }
 0x13a   : > { %v2085_v57 = vmax.f32 %v1589_v50, 0.0  ;;  %8247 = vmatprep.mubr.msk.bf16.mxu0 %vm1342_vm0, %v8555_v45  ;;  %v2211_v0 = vpack.c.bf16 %v2087_v52, %v2086_v58  ;;  %v1610_v9 = vadd.f32 %v8149_v53, %v9132_v18 }
 0x13b   : > { %v1601_v59 = vpop.f32.mrf.mxu0  ;;  %3632 = vmatprep.subr.bf16.mxu0 %v7948_v61 }
 0x13c   : > { %v2210_v62 = vpack.c.bf16 %v2085_v57, %v2084_v56  ;;  %4300 = vmatpush1.bf16.msra.mxu1 %v7973_v51  ;;  %v1602_v4 = vadd.f32 %v9132_v18, %v1601_v59  ;;  %3633 = vmatpush1.bf16.msra.mxu0 %v7947_v60  ;;  %v2090_v19 = vmax.f32 %v1610_v9, 0.0  ;;  %v8563_v60 = vld [vmem:[%s8958_s16 + $0x1f0] sm:$0xff]  }
 0x13d   : > { %v8150_v1 = vpop.f32.mrf.mxu0  ;;  %4301 = vmatprep.subr.bf16.mxu1 %v7966_v54 }
 0x13e   : > { %v1613_v5 = vadd.f32 %v8150_v1, %v9132_v18  ;;  %8279 = vmatprep.mubr.msk.bf16.mxu1 %vm1342_vm0, %v2210_v62  ;;  %v2088_v16 = vmax.f32 %v1602_v4, 0.0  ;;  %v3256_v4 = vld [vmem:[%s10923_s5 + $0x80] sm:$0xff] }
 0x13f   : > { %v1604_v10 = vpop.f32.mrf.mxu0  ;;  %8280 = vmatmul.mubr.msk.bf16.gmra.mxu1 %vm1342_vm0, %v2211_v0 }
 0x140   : > { %v1605_v11 = vadd.f32 %v9132_v18, %v1604_v10  ;;  %4302 = vmatpush1.bf16.msra.mxu1 %v7965_v63  ;;  %v2091_v13 = vmax.f32 %v1613_v5, 0.0  ;;  %v3260_v5 = vld [vmem:[%s10923_s5 + $0xa0] sm:$0xff] }
 0x141   : > { %v8153_v14 = vpop.f32.mrf.mxu0  ;;  %8248 = vmatmul.mubr.msk.bf16.gmra.mxu0 %vm1342_vm0, %v8556_v2  ;;  %4303 = vmatprep.subr.bf16.mxu1 %v7958_v3  ;;  %v7939_v9 = vcombine.low %v3256_v4, %v3260_v5  ;;  %v7940_v10 = vcombine.high %v3256_v4, %v3260_v5  ;;  %v3248_v4 = vld [vmem:[%s10923_s5 + $0x40] sm:$0xff] }
 0x142   : > { %v2089_v17 = vmax.f32 %v1605_v11, 0.0  ;;  %8251 = vmatprep.mubr.msk.bf16.mxu0 %vm1342_vm0, %v8557_v6  ;;  %v2213_v23 = vpack.c.bf16 %v2091_v13, %v2090_v19  ;;  %v1626_v29 = vadd.f32 %v8153_v14, %v9132_v18  ;;  %v3257_v6 = vld [vmem:[%s10923_s5 + $0x88] sm:$0xff]  ;;  %v3252_v5 = vld [vmem:[%s10923_s5 + $0x60] sm:$0xff] }
 0x143   : > { %v1617_v20 = vpop.f32.mrf.mxu0  ;;  %v3261_v11 = vld [vmem:[%s10923_s5 + $0xa8] sm:$0xff]  ;;  %3634 = vmatprep.subr.bf16.mxu0 %v7940_v10 }
 0x144   : > { %v2212_v21 = vpack.c.bf16 %v2089_v17, %v2088_v16  ;;  %4304 = vmatpush1.bf16.msra.mxu1 %v7957_v12  ;;  %v1618_v26 = vadd.f32 %v9132_v18, %v1617_v20  ;;  %v2094_v39 = vmax.f32 %v1626_v29, 0.0  ;;  %v7941_v13 = vcombine.low %v3257_v6, %v3261_v11  ;;  %v8564_v16 = vld [vmem:[%s8958_s16 + $0x1f8] sm:$0xff]   ;;  %3635 = vmatpush1.bf16.msra.mxu0 %v7939_v9  ;;  %v3249_v9 = vld [vmem:[%s10923_s5 + $0x48] sm:$0xff] }
 0x145   : > { %v8154_v24 = vpop.f32.mrf.mxu0  ;;  %4305 = vmatprep.subr.bf16.mxu1 %v7950_v15  ;;  %v7942_v17 = vcombine.high %v3257_v6, %v3261_v11  ;;  %v3253_v10 = vld [vmem:[%s10923_s5 + $0x68] sm:$0xff] }
 0x146   : > { %v1629_v27 = vadd.f32 %v8154_v24, %v9132_v18  ;;  %8283 = vmatprep.mubr.msk.bf16.mxu1 %vm1342_vm0, %v2212_v21  ;;  %v2092_v35 = vmax.f32 %v1618_v26, 0.0 }
 0x147   : > { %v1620_v30 = vpop.f32.mrf.mxu0  ;;  %8284 = vmatmul.mubr.msk.bf16.gmra.mxu1 %vm1342_vm0, %v2213_v23 }
 0x148   : > { %v1621_v31 = vadd.f32 %v9132_v18, %v1620_v30  ;;  %4306 = vmatpush1.bf16.msra.mxu1 %v7949_v22  ;;  %v2095_v32 = vmax.f32 %v1629_v27, 0.0 }
 0x149   : > { %v8157_v33 = vpop.f32.mrf.mxu0  ;;  %8252 = vmatmul.mubr.msk.bf16.gmra.mxu0 %vm1342_vm0, %v8558_v25  ;;  %4307 = vmatprep.subr.bf16.mxu1 %v7942_v17 }
 0x14a   : > { %v2093_v36 = vmax.f32 %v1621_v31, 0.0  ;;  %8255 = vmatprep.mubr.msk.bf16.mxu0 %vm1342_vm0, %v8559_v28  ;;  %v2215_v42 = vpack.c.bf16 %v2095_v32, %v2094_v39  ;;  %v1642_v48 = vadd.f32 %v8157_v33, %v9132_v18 }
 0x14b   : > { %v1633_v40 = vpop.f32.mrf.mxu0 }
 0x14c   : > { %v2214_v41 = vpack.c.bf16 %v2093_v36, %v2092_v35  ;;  %v1634_v45 = vadd.f32 %v9132_v18, %v1633_v40  ;;  %v2098_v55 = vmax.f32 %v1642_v48, 0.0  ;;  %4308 = vmatpush1.bf16.msra.mxu1 %v7941_v13  ;;  %v7932_v13 = vcombine.high %v3248_v4, %v3252_v5 }
 0x14d   : > { %v8158_v43 = vpop.f32.mrf.mxu0 }
 0x14e   : > { %v1645_v46 = vadd.f32 %v8158_v43, %v9132_v18  ;;  %8287 = vmatprep.mubr.msk.bf16.mxu1 %vm1342_vm0, %v2214_v41  ;;  %v2096_v53 = vmax.f32 %v1634_v45, 0.0  ;;  %3636 = vmatprep.subr.bf16.mxu0 %v7932_v13  ;;  %v3245_v13 = vld [vmem:[%s10923_s5 + $0x28] sm:$0xff] }
 0x14f   : > { %v1636_v49 = vpop.f32.mrf.mxu0  ;;  %8288 = vmatmul.mubr.msk.bf16.gmra.mxu1 %vm1342_vm0, %v2215_v42 }
 0x150   : > { %v1637_v50 = vadd.f32 %v9132_v18, %v1636_v49  ;;  %v2099_v51 = vmax.f32 %v1645_v46, 0.0 }
 0x151   : > { %v8161_v52 = vpop.f32.mrf.mxu0  ;;  %8256 = vmatmul.mubr.msk.bf16.gmra.mxu0 %vm1342_vm0, %v8560_v44 }
 0x152   : > { %v2097_v54 = vmax.f32 %v1637_v50, 0.0  ;;  %8259 = vmatprep.mubr.msk.bf16.mxu0 %vm1342_vm0, %v8561_v47  ;;  %v2217_v34 = vpack.c.bf16 %v2099_v51, %v2098_v55  ;;  %v1658_v61 = vadd.f32 %v8161_v52, %v9132_v18 }
 0x153   : > { %v1649_v56 = vpop.f32.mrf.mxu0 }
 0x154   : > { %v2216_v57 = vpack.c.bf16 %v2097_v54, %v2096_v53  ;;  %v1650_v58 = vadd.f32 %v9132_v18, %v1649_v56  ;;  %v2102_v7 = vmax.f32 %v1658_v61, 0.0 }
 0x155   : > { %v8162_v37 = vpop.f32.mrf.mxu0 }
 0x156   : > { %v1661_v59 = vadd.f32 %v8162_v37, %v9132_v18  ;;  %8291 = vmatprep.mubr.msk.bf16.mxu1 %vm1342_vm0, %v2216_v57  ;;  %v2100_v2 = vmax.f32 %v1650_v58, 0.0 }
 0x157   : > { %v1652_v62 = vpop.f32.mrf.mxu0  ;;  %8292 = vmatmul.mubr.msk.bf16.gmra.mxu1 %vm1342_vm0, %v2217_v34 }
 0x158   : > { %v1653_v63 = vadd.f32 %v9132_v18, %v1652_v62  ;;  %v2103_v0 = vmax.f32 %v1661_v59, 0.0 }
 0x159   : > { %v8165_v1 = vpop.f32.mrf.mxu0  ;;  %8260 = vmatmul.mubr.msk.bf16.gmra.mxu0 %vm1342_vm0, %v8562_v38 }
 0x15a   : > { %v2101_v3 = vmax.f32 %v1653_v63, 0.0  ;;  %8263 = vmatprep.mubr.msk.bf16.mxu0 %vm1342_vm0, %v8563_v60  ;;  %v2219_v14 = vpack.c.bf16 %v2103_v0, %v2102_v7  ;;  %v1674_v21 = vadd.f32 %v8165_v1, %v9132_v18 }
 0x15b   : > { %v1665_v8 = vpop.f32.mrf.mxu0 }
 0x15c   : > { %v2218_v12 = vpack.c.bf16 %v2101_v3, %v2100_v2  ;;  %v1666_v19 = vadd.f32 %v9132_v18, %v1665_v8  ;;  %v2106_v28 = vmax.f32 %v1674_v21, 0.0  ;;  %v7931_v8 = vcombine.low %v3248_v4, %v3252_v5 }
 0x15d   : > { %v8166_v15 = vpop.f32.mrf.mxu0 }
 0x15e   : > { %v1677_v20 = vadd.f32 %v8166_v15, %v9132_v18  ;;  %8295 = vmatprep.mubr.msk.bf16.mxu1 %vm1342_vm0, %v2218_v12  ;;  %v2104_v26 = vmax.f32 %v1666_v19, 0.0  ;;  %3637 = vmatpush1.bf16.msra.mxu0 %v7931_v8 }
 0x15f   : > { %v1668_v22 = vpop.f32.mrf.mxu0  ;;  %8296 = vmatmul.mubr.msk.bf16.gmra.mxu1 %vm1342_vm0, %v2219_v14  ;;  %v7934_v14 = vcombine.high %v3249_v9, %v3253_v10 }
 0x160   : > { %v1669_v23 = vadd.f32 %v9132_v18, %v1668_v22  ;;  %v2107_v24 = vmax.f32 %v1677_v20, 0.0  ;;  %v3240_v22 = vld [vmem:[%s10923_s5] sm:$0xff] }
 0x161   : > { %v8169_v25 = vpop.f32.mrf.mxu0  ;;  %8264 = vmatmul.mubr.msk.bf16.gmra.mxu0 %vm1342_vm0, %v8564_v16  ;;  %v7933_v16 = vcombine.low %v3249_v9, %v3253_v10  ;;  %4309 = vmatprep.subr.bf16.mxu1 %v7934_v14 }
 0x162   : > { %v2105_v27 = vmax.f32 %v1669_v23, 0.0  ;;  %v2221_v31 = vpack.c.bf16 %v2107_v24, %v2106_v28  ;;  %v1690_v36 = vadd.f32 %v8169_v25, %v9132_v18  ;;  %v3244_v23 = vld [vmem:[%s10923_s5 + $0x20] sm:$0xff] }
 0x163   : > { %v1681_v29 = vpop.f32.mrf.mxu0  ;;  %4310 = vmatpush1.bf16.msra.mxu1 %v7933_v16  ;;  %v7923_v28 = vcombine.low %v3240_v22, %v3244_v23 }
 0x164   : > { %v2220_v30 = vpack.c.bf16 %v2105_v27, %v2104_v26  ;;  %v1682_v33 = vadd.f32 %v9132_v18, %v1681_v29  ;;  %v2110_v45 = vmax.f32 %v1690_v36, 0.0  ;;  %v7924_v26 = vcombine.high %v3240_v22, %v3244_v23 }
 0x165   : > { %v8170_v32 = vpop.f32.mrf.mxu0 }
 0x166   : > { %v1693_v35 = vadd.f32 %v8170_v32, %v9132_v18  ;;  %8299 = vmatprep.mubr.msk.bf16.mxu1 %vm1342_vm0, %v2220_v30  ;;  %v2108_v43 = vmax.f32 %v1682_v33, 0.0  ;;  %3638 = vmatprep.subr.bf16.mxu0 %v7924_v26 }
 0x167   : > { %v1684_v39 = vpop.f32.mrf.mxu0  ;;  %8300 = vmatmul.mubr.msk.bf16.gmra.mxu1 %vm1342_vm0, %v2221_v31  ;;  %3639 = vmatpush1.bf16.msra.mxu0 %v7923_v28 }
 0x168   : > { %v1685_v40 = vadd.f32 %v9132_v18, %v1684_v39  ;;  %v2111_v41 = vmax.f32 %v1693_v35, 0.0  ;;  %v10971_v39 = vmov 0  }
 0x169   : > { %v8173_v42 = vpop.f32.mrf.mxu0  ;;  %3656 = vmatprep.mubr.bf16.mxu0 %v10971_v39 }
 0x16a   : > { %v2109_v44 = vmax.f32 %v1685_v40, 0.0  ;;  %v2223_v48 = vpack.c.bf16 %v2111_v41, %v2110_v45  ;;  %v1706_v52 = vadd.f32 %v8173_v42, %v9132_v18 }
 0x16b   : > { %v1697_v46 = vpop.f32.mrf.mxu0 }
 0x16c   : > { %v2222_v47 = vpack.c.bf16 %v2109_v44, %v2108_v43  ;;  %v1698_v50 = vadd.f32 %v9132_v18, %v1697_v46  ;;  %v2114_v37 = vmax.f32 %v1706_v52, 0.0 }
 0x16d   : > { %v8174_v49 = vpop.f32.mrf.mxu0 }
 0x16e   : > { %v1709_v51 = vadd.f32 %v8174_v49, %v9132_v18  ;;  %8303 = vmatprep.mubr.msk.bf16.mxu1 %vm1342_vm0, %v2222_v47  ;;  %v2112_v57 = vmax.f32 %v1698_v50, 0.0 }
 0x16f   : > { %v1700_v53 = vpop.f32.mrf.mxu0  ;;  %8304 = vmatmul.mubr.msk.bf16.gmra.mxu1 %vm1342_vm0, %v2223_v48 }
 0x170   : > { %v1701_v54 = vadd.f32 %v9132_v18, %v1700_v53  ;;  %v2115_v55 = vmax.f32 %v1709_v51, 0.0 }
 0x171   : > { %v8177_v56 = vpop.f32.mrf.mxu0 }
 0x172   : > { %v2113_v34 = vmax.f32 %v1701_v54, 0.0  ;;  %v2225_v59 = vpack.c.bf16 %v2115_v55, %v2114_v37  ;;  %v1722_v63 = vadd.f32 %v8177_v56, %v9132_v18 }
 0x173   : > { %v1713_v38 = vpop.f32.mrf.mxu0 }
 0x174   : > { %v2224_v58 = vpack.c.bf16 %v2113_v34, %v2112_v57  ;;  %v1714_v61 = vadd.f32 %v9132_v18, %v1713_v38  ;;  %v2118_v11 = vmax.f32 %v1722_v63, 0.0 }
 0x175   : > { %v8178_v60 = vpop.f32.mrf.mxu0 }
 0x176   : > { %v1725_v62 = vadd.f32 %v8178_v60, %v9132_v18  ;;  %8307 = vmatprep.mubr.msk.bf16.mxu1 %vm1342_vm0, %v2224_v58  ;;  %v2116_v6 = vmax.f32 %v1714_v61, 0.0 }
 0x177   : > { %v1716_v0 = vpop.f32.mrf.mxu0  ;;  %8308 = vmatmul.mubr.msk.bf16.gmra.mxu1 %vm1342_vm0, %v2225_v59 }
 0x178   : > { %v1717_v1 = vadd.f32 %v9132_v18, %v1716_v0  ;;  %v2119_v2 = vmax.f32 %v1725_v62, 0.0 }
 0x179   : > { %v8181_v3 = vpop.f32.mrf.mxu0 }
 0x17a   : > { %v2117_v7 = vmax.f32 %v1717_v1, 0.0  ;;  %v2227_v17 = vpack.c.bf16 %v2119_v2, %v2118_v11  ;;  %v1738_v24 = vadd.f32 %v8181_v3, %v9132_v18 }
 0x17b   : > { %v1729_v12 = vpop.f32.mrf.mxu0 }
 0x17c   : > { %v2226_v15 = vpack.c.bf16 %v2117_v7, %v2116_v6  ;;  %v1730_v20 = vadd.f32 %v9132_v18, %v1729_v12  ;;  %v2122_v33 = vmax.f32 %v1738_v24, 0.0  ;;  %v3241_v12 = vld [vmem:[%s10923_s5 + $0x8] sm:$0xff] }
 0x17d   : > { %v8182_v19 = vpop.f32.mrf.mxu0  ;;  %v7925_v16 = vcombine.low %v3241_v12, %v3245_v13 }
 0x17e   : > { %v1741_v21 = vadd.f32 %v8182_v19, %v9132_v18  ;;  %8311 = vmatprep.mubr.msk.bf16.mxu1 %vm1342_vm0, %v2226_v15  ;;  %v2120_v31 = vmax.f32 %v1730_v20, 0.0 }
 0x17f   : > { %v1732_v25 = vpop.f32.mrf.mxu0  ;;  %8312 = vmatmul.mubr.msk.bf16.gmra.mxu1 %vm1342_vm0, %v2227_v17  ;;  %v7926_v17 = vcombine.high %v3241_v12, %v3245_v13  ;;  %v9349_v12 = vld [vmem:[%s10923_s5 + $0x1d8] sm:$0xff] }
 0x180   : > { %v1733_v27 = vadd.f32 %v9132_v18, %v1732_v25  ;;  %v2123_v29 = vmax.f32 %v1741_v21, 0.0 }
 0x181   : > { %v8185_v30 = vpop.f32.mrf.mxu0  ;;  %4311 = vmatprep.subr.bf16.mxu1 %v7926_v17  ;;  %v9358_v17 = vld [vmem:[%s10923_s5 + $0x1f8] sm:$0xff] }
 0x182   : > { %v2121_v32 = vmax.f32 %v1733_v27, 0.0  ;;  %v2229_v40 = vpack.c.bf16 %v2123_v29, %v2122_v33  ;;  %v1754_v44 = vadd.f32 %v8185_v30, %v9132_v18  ;;  %4312 = vmatpush1.bf16.msra.mxu1 %v7925_v16 }
 0x183   : > { %v1745_v35 = vpop.f32.mrf.mxu0 }
 0x184   : > { %v2228_v36 = vpack.c.bf16 %v2121_v32, %v2120_v31  ;;  %v1746_v42 = vadd.f32 %v9132_v18, %v1745_v35  ;;  %v2126_v51 = vmax.f32 %v1754_v44, 0.0 }
 0x185   : > { %v8186_v41 = vpop.f32.mrf.mxu0 }
 0x186   : > { %v1757_v43 = vadd.f32 %v8186_v41, %v9132_v18  ;;  %8315 = vmatprep.mubr.msk.bf16.mxu1 %vm1342_vm0, %v2228_v36  ;;  %v2124_v49 = vmax.f32 %v1746_v42, 0.0 }
 0x187   : > { %v1748_v45 = vpop.f32.mrf.mxu0  ;;  %8316 = vmatmul.mubr.msk.bf16.gmra.mxu1 %vm1342_vm0, %v2229_v40 }
 0x188   : > { %v1749_v46 = vadd.f32 %v9132_v18, %v1748_v45  ;;  %v2127_v47 = vmax.f32 %v1757_v43, 0.0 }
 0x189   : > { %v8189_v48 = vpop.f32.mrf.mxu0 }
 0x18a   : > { %v2125_v50 = vmax.f32 %v1749_v46, 0.0  ;;  %v2231_v54 = vpack.c.bf16 %v2127_v47, %v2126_v51  ;;  %v1770_v34 = vadd.f32 %v8189_v48, %v9132_v18 }
 0x18b   : > { %v1761_v52 = vpop.f32.mrf.mxu0 }
 0x18c   : > { %v2230_v53 = vpack.c.bf16 %v2125_v50, %v2124_v49  ;;  %v1762_v56 = vadd.f32 %v9132_v18, %v1761_v52  ;;  %v2130_v62 = vmax.f32 %v1770_v34, 0.0 }
 0x18d   : > { %v8190_v55 = vpop.f32.mrf.mxu0 }
 0x18e   : > { %v1773_v57 = vadd.f32 %v8190_v55, %v9132_v18  ;;  %8319 = vmatprep.mubr.msk.bf16.mxu1 %vm1342_vm0, %v2230_v53  ;;  %v2128_v60 = vmax.f32 %v1762_v56, 0.0 }
 0x18f   : > { %v1764_v37 = vpop.f32.mrf.mxu0  ;;  %8320 = vmatmul.mubr.msk.bf16.gmra.mxu1 %vm1342_vm0, %v2231_v54 }
 0x190   : > { %v1765_v38 = vadd.f32 %v9132_v18, %v1764_v37  ;;  %v2131_v58 = vmax.f32 %v1773_v57, 0.0 }
 0x191   : > { %v8193_v59 = vpop.f32.mrf.mxu0 }
 0x192   : > { %v2129_v61 = vmax.f32 %v1765_v38, 0.0  ;;  %v2233_v1 = vpack.c.bf16 %v2131_v58, %v2130_v62  ;;  %v1786_v5 = vadd.f32 %v8193_v59, %v9132_v18 }
 0x193   : > { %v1777_v63 = vpop.f32.mrf.mxu0 }
 0x194   : > { %v2232_v0 = vpack.c.bf16 %v2129_v61, %v2128_v60  ;;  %v1778_v3 = vadd.f32 %v9132_v18, %v1777_v63  ;;  %v2134_v14 = vmax.f32 %v1786_v5, 0.0 }
 0x195   : > { %v8194_v2 = vpop.f32.mrf.mxu0 }
 0x196   : > { %v1789_v4 = vadd.f32 %v8194_v2, %v9132_v18  ;;  %8323 = vmatprep.mubr.msk.bf16.mxu1 %vm1342_vm0, %v2232_v0  ;;  %v2132_v10 = vmax.f32 %v1778_v3, 0.0 }
 0x197   : > { %v1780_v6 = vpop.f32.mrf.mxu0  ;;  %8324 = vmatmul.mubr.msk.bf16.gmra.mxu1 %vm1342_vm0, %v2233_v1 }
 0x198   : > { %v1781_v7 = vadd.f32 %v9132_v18, %v1780_v6  ;;  %v2135_v8 = vmax.f32 %v1789_v4, 0.0 }
 0x199   : > { %v8197_v9 = vpop.f32.mrf.mxu0 }
 0x19a   : > { %v2133_v11 = vmax.f32 %v1781_v7, 0.0  ;;  %v2235_v20 = vpack.c.bf16 %v2135_v8, %v2134_v14  ;;  %v1802_v24 = vadd.f32 %v8197_v9, %v9132_v18 }
 0x19b   : > { %v1793_v15 = vpop.f32.mrf.mxu0 }
 0x19c   : > { %v2234_v19 = vpack.c.bf16 %v2133_v11, %v2132_v10  ;;  %v1794_v22 = vadd.f32 %v9132_v18, %v1793_v15  ;;  %v2138_v31 = vmax.f32 %v1802_v24, 0.0  ;;  %v9339_v10 = vld [vmem:[%s10923_s5 + $0x1d0] sm:$0xff] }
 0x19d   : > { %v8198_v21 = vpop.f32.mrf.mxu0  ;;  %v9344_v11 = vld [vmem:[%s10923_s5 + $0x1f0] sm:$0xff] }
 0x19e   : > { %v1805_v23 = vadd.f32 %v8198_v21, %v9132_v18  ;;  %8327 = vmatprep.mubr.msk.bf16.mxu1 %vm1342_vm0, %v2234_v19  ;;  %v2136_v29 = vmax.f32 %v1794_v22, 0.0  ;;  %v7983_v15 = vcombine.low %v9339_v10, %v9344_v11  ;;  %v7984_v16 = vcombine.high %v9339_v10, %v9344_v11 }
 0x19f   : > { %v1796_v25 = vpop.f32.mrf.mxu0  ;;  %8328 = vmatmul.mubr.msk.bf16.gmra.mxu1 %vm1342_vm0, %v2235_v20  ;;  %v7985_v20 = vcombine.low %v9349_v12, %v9358_v17 }
 0x1a0   : > { %v1797_v26 = vadd.f32 %v9132_v18, %v1796_v25  ;;  %v2139_v27 = vmax.f32 %v1805_v23, 0.0  ;;  %4970 = vmatprep.subr.bf16.mxu0 %v7984_v16  ;;  %v7986_v23 = vcombine.high %v9349_v12, %v9358_v17  ;;  %v3286_v12 = vld [vmem:[%s10923_s5 + $0x170] sm:$0xff]  ;;  %v3283_v17 = vld [vmem:[%s10923_s5 + $0x158] sm:$0xff] }
 0x1a1   : > { %v8201_v28 = vpop.f32.mrf.mxu0 }
 0x1a2   : > { %v2137_v30 = vmax.f32 %v1797_v26, 0.0  ;;  %v2237_v35 = vpack.c.bf16 %v2139_v27, %v2138_v31  ;;  %v1818_v42 = vadd.f32 %v8201_v28, %v9132_v18  ;;  %5643 = vmatprep.subr.bf16.mxu1 %v7986_v23 }
 0x1a3   : > { %v1809_v32 = vpop.f32.mrf.mxu0 }
 0x1a4   : > { %v2236_v33 = vpack.c.bf16 %v2137_v30, %v2136_v29  ;;  %v1810_v40 = vadd.f32 %v9132_v18, %v1809_v32  ;;  %v2142_v49 = vmax.f32 %v1818_v42, 0.0 }
 0x1a5   : > { %v8202_v36 = vpop.f32.mrf.mxu0 }
 0x1a6   : > { %v1821_v41 = vadd.f32 %v8202_v36, %v9132_v18  ;;  %8331 = vmatprep.mubr.msk.bf16.mxu1 %vm1342_vm0, %v2236_v33  ;;  %v2140_v47 = vmax.f32 %v1810_v40, 0.0 }
 0x1a7   : > { %v1812_v43 = vpop.f32.mrf.mxu0  ;;  %8332 = vmatmul.mubr.msk.bf16.gmra.mxu1 %vm1342_vm0, %v2237_v35 }
 0x1a8   : > { %v1813_v44 = vadd.f32 %v9132_v18, %v1812_v43  ;;  %v2143_v45 = vmax.f32 %v1821_v41, 0.0 }
 0x1a9   : > { %v8205_v46 = vpop.f32.mrf.mxu0 }
 0x1aa   : > { %v2141_v48 = vmax.f32 %v1813_v44, 0.0  ;;  %v2239_v52 = vpack.c.bf16 %v2143_v45, %v2142_v49  ;;  %v1834_v56 = vadd.f32 %v8205_v46, %v9132_v18 }
 0x1ab   : > { %v1825_v50 = vpop.f32.mrf.mxu0 }
 0x1ac   : > { %v2238_v51 = vpack.c.bf16 %v2141_v48, %v2140_v47  ;;  %v1826_v54 = vadd.f32 %v9132_v18, %v1825_v50  ;;  %v2146_v60 = vmax.f32 %v1834_v56, 0.0 }
 0x1ad   : > { %v8206_v53 = vpop.f32.mrf.mxu0 }
 0x1ae   : > { %v1837_v55 = vadd.f32 %v8206_v53, %v9132_v18  ;;  %8335 = vmatprep.mubr.msk.bf16.mxu1 %vm1342_vm0, %v2238_v51  ;;  %v2144_v58 = vmax.f32 %v1826_v54, 0.0 }
 0x1af   : > { %v1828_v57 = vpop.f32.mrf.mxu0  ;;  %8336 = vmatmul.mubr.msk.bf16.gmra.mxu1 %vm1342_vm0, %v2239_v52 }
 0x1b0   : > { %v1829_v34 = vadd.f32 %v9132_v18, %v1828_v57  ;;  %v2147_v37 = vmax.f32 %v1837_v55, 0.0 }
 0x1b1   : > { %v8209_v38 = vpop.f32.mrf.mxu0 }
 0x1b2   : > { %v2145_v59 = vmax.f32 %v1829_v34, 0.0  ;;  %v2241_v63 = vpack.c.bf16 %v2147_v37, %v2146_v60  ;;  %v1850_v3 = vadd.f32 %v8209_v38, %v9132_v18 }
 0x1b3   : > { %v1841_v61 = vpop.f32.mrf.mxu0 }
 0x1b4   : > { %v2240_v62 = vpack.c.bf16 %v2145_v59, %v2144_v58  ;;  %v1842_v1 = vadd.f32 %v9132_v18, %v1841_v61  ;;  %v2150_v13 = vmax.f32 %v1850_v3, 0.0 }
 0x1b5   : > { %v8210_v0 = vpop.f32.mrf.mxu0 }
 0x1b6   : > { %v1853_v2 = vadd.f32 %v8210_v0, %v9132_v18  ;;  %8339 = vmatprep.mubr.msk.bf16.mxu1 %vm1342_vm0, %v2240_v62  ;;  %v2148_v8 = vmax.f32 %v1842_v1, 0.0 }
 0x1b7   : > { %v1844_v4 = vpop.f32.mrf.mxu0  ;;  %8340 = vmatmul.mubr.msk.bf16.gmra.mxu1 %vm1342_vm0, %v2241_v63 }
 0x1b8   : > { %v1845_v5 = vadd.f32 %v9132_v18, %v1844_v4  ;;  %v2151_v6 = vmax.f32 %v1853_v2, 0.0 }
 0x1b9   : > { %v8213_v7 = vpop.f32.mrf.mxu0 }
 0x1ba   : > { %v2149_v9 = vmax.f32 %v1845_v5, 0.0  ;;  %v2243_v21 = vpack.c.bf16 %v2151_v6, %v2150_v13  ;;  %v1866_v26 = vadd.f32 %v8213_v7, %v9132_v18 }
 0x1bb   : > { %v1857_v14 = vpop.f32.mrf.mxu0 }
 0x1bc   : > { %v2242_v19 = vpack.c.bf16 %v2149_v9, %v2148_v8  ;;  %v1858_v24 = vadd.f32 %v9132_v18, %v1857_v14  ;;  %v2154_v33 = vmax.f32 %v1866_v26, 0.0 }
 0x1bd   : > { %v8214_v22 = vpop.f32.mrf.mxu0 }
 0x1be   : > { %v1869_v25 = vadd.f32 %v8214_v22, %v9132_v18  ;;  %8343 = vmatprep.mubr.msk.bf16.mxu1 %vm1342_vm0, %v2242_v19  ;;  %v2152_v31 = vmax.f32 %v1858_v24, 0.0 }
 0x1bf   : > { %v1860_v27 = vpop.f32.mrf.mxu0  ;;  %8344 = vmatmul.mubr.msk.bf16.gmra.mxu1 %vm1342_vm0, %v2243_v21 }
 0x1c0   : > { %v1861_v28 = vadd.f32 %v9132_v18, %v1860_v27  ;;  %v2155_v29 = vmax.f32 %v1869_v25, 0.0 }
 0x1c1   : > { %v8217_v30 = vpop.f32.mrf.mxu0 }
 0x1c2   : > { %v2153_v32 = vmax.f32 %v1861_v28, 0.0  ;;  %v2245_v40 = vpack.c.bf16 %v2155_v29, %v2154_v33  ;;  %v1882_v44 = vadd.f32 %v8217_v30, %v9132_v18 }
 0x1c3   : > { %v1873_v35 = vpop.f32.mrf.mxu0 }
 0x1c4   : > { %v2244_v36 = vpack.c.bf16 %v2153_v32, %v2152_v31  ;;  %v1874_v42 = vadd.f32 %v9132_v18, %v1873_v35  ;;  %v2158_v51 = vmax.f32 %v1882_v44, 0.0 }
 0x1c5   : > { %v8218_v41 = vpop.f32.mrf.mxu0 }
 0x1c6   : > { %v1885_v43 = vadd.f32 %v8218_v41, %v9132_v18  ;;  %8347 = vmatprep.mubr.msk.bf16.mxu1 %vm1342_vm0, %v2244_v36  ;;  %v2156_v49 = vmax.f32 %v1874_v42, 0.0 }
 0x1c7   : > { %v1876_v45 = vpop.f32.mrf.mxu0  ;;  %8348 = vmatmul.mubr.msk.bf16.gmra.mxu1 %vm1342_vm0, %v2245_v40 }
 0x1c8   : > { %v1877_v46 = vadd.f32 %v9132_v18, %v1876_v45  ;;  %v2159_v47 = vmax.f32 %v1885_v43, 0.0 }
 0x1c9   : > { %v8221_v48 = vpop.f32.mrf.mxu0 }
 0x1ca   : > { %v2157_v50 = vmax.f32 %v1877_v46, 0.0  ;;  %v2247_v54 = vpack.c.bf16 %v2159_v47, %v2158_v51  ;;  %v1898_v34 = vadd.f32 %v8221_v48, %v9132_v18 }
 0x1cb   : > { %v1889_v52 = vpop.f32.mrf.mxu0 }
 0x1cc   : > { %v2246_v53 = vpack.c.bf16 %v2157_v50, %v2156_v49  ;;  %v1890_v56 = vadd.f32 %v9132_v18, %v1889_v52  ;;  %v2162_v62 = vmax.f32 %v1898_v34, 0.0 }
 0x1cd   : > { %v8222_v55 = vpop.f32.mrf.mxu0 }
 0x1ce   : > { %v1901_v57 = vadd.f32 %v8222_v55, %v9132_v18  ;;  %8351 = vmatprep.mubr.msk.bf16.mxu1 %vm1342_vm0, %v2246_v53  ;;  %v2160_v60 = vmax.f32 %v1890_v56, 0.0 }
 0x1cf   : > { %v1892_v37 = vpop.f32.mrf.mxu0  ;;  %8352 = vmatmul.mubr.msk.bf16.gmra.mxu1 %vm1342_vm0, %v2247_v54 }
 0x1d0   : > { %v1893_v38 = vadd.f32 %v9132_v18, %v1892_v37  ;;  %v2163_v58 = vmax.f32 %v1901_v57, 0.0 }
 0x1d1   : > { %v8225_v59 = vpop.f32.mrf.mxu0 }
 0x1d2   : > { %v2161_v61 = vmax.f32 %v1893_v38, 0.0  ;;  %v2249_v1 = vpack.c.bf16 %v2163_v58, %v2162_v62  ;;  %v1914_v5 = vadd.f32 %v8225_v59, %v9132_v18 }
 0x1d3   : > { %v1905_v63 = vpop.f32.mrf.mxu0 }
 0x1d4   : > { %v2248_v0 = vpack.c.bf16 %v2161_v61, %v2160_v60  ;;  %v1906_v3 = vadd.f32 %v9132_v18, %v1905_v63  ;;  %v2166_v16 = vmax.f32 %v1914_v5, 0.0 }
 0x1d5   : > { %v8226_v2 = vpop.f32.mrf.mxu0 }
 0x1d6   : > { %v1917_v4 = vadd.f32 %v8226_v2, %v9132_v18  ;;  %8355 = vmatprep.mubr.msk.bf16.mxu1 %vm1342_vm0, %v2248_v0  ;;  %v2164_v13 = vmax.f32 %v1906_v3, 0.0 }
 0x1d7   : > { %v1908_v6 = vpop.f32.mrf.mxu0  ;;  %8356 = vmatmul.mubr.msk.bf16.gmra.mxu1 %vm1342_vm0, %v2249_v1 }
 0x1d8   : > { %v1909_v7 = vadd.f32 %v9132_v18, %v1908_v6  ;;  %v2167_v8 = vmax.f32 %v1917_v4, 0.0 }
 0x1d9   : > { %v8229_v9 = vpop.f32.mrf.mxu0 }
 0x1da   : > { %v2165_v14 = vmax.f32 %v1909_v7, 0.0  ;;  %v2251_v22 = vpack.c.bf16 %v2167_v8, %v2166_v16  ;;  %v1930_v26 = vadd.f32 %v8229_v9, %v9132_v18  ;;  %v9414_v8 = vld [vmem:[%s10920_s2] ss:$0 sm:$0xff] }
 0x1db   : > { %v1921_v19 = vpop.f32.mrf.mxu0 }
 0x1dc   : > { %v2250_v21 = vpack.c.bf16 %v2165_v14, %v2164_v13  ;;  %v1922_v24 = vadd.f32 %v9132_v18, %v1921_v19  ;;  %v2170_v33 = vmax.f32 %v1930_v26, 0.0 }
 0x1dd   : > { %v8230_v23 = vpop.f32.mrf.mxu0 }
 0x1de   : > { %v1933_v25 = vadd.f32 %v8230_v23, %v9132_v18  ;;  %8359 = vmatprep.mubr.msk.bf16.mxu1 %vm1342_vm0, %v2250_v21  ;;  %v2168_v31 = vmax.f32 %v1922_v24, 0.0 }
 0x1df   : > { %v1924_v27 = vpop.f32.mrf.mxu0  ;;  %8360 = vmatmul.mubr.msk.bf16.gmra.mxu1 %vm1342_vm0, %v2251_v22 }
 0x1e0   : > { %v1925_v28 = vadd.f32 %v9132_v18, %v1924_v27  ;;  %v2171_v29 = vmax.f32 %v1933_v25, 0.0 }
 0x1e1   : > { %v8233_v30 = vpop.f32.mrf.mxu0 }
 0x1e2   : > { %v2169_v32 = vmax.f32 %v1925_v28, 0.0  ;;  %v2253_v40 = vpack.c.bf16 %v2171_v29, %v2170_v33  ;;  %v1946_v44 = vadd.f32 %v8233_v30, %v9132_v18  ;;  %v3290_v33 = vld [vmem:[%s10923_s5 + $0x190] sm:$0xff] }
 0x1e3   : > { %v1937_v35 = vpop.f32.mrf.mxu0 }
 0x1e4   : > { %v2252_v36 = vpack.c.bf16 %v2169_v32, %v2168_v31  ;;  %v1938_v42 = vadd.f32 %v9132_v18, %v1937_v35  ;;  %v2174_v51 = vmax.f32 %v1946_v44, 0.0  ;;  %v3294_v35 = vld [vmem:[%s10923_s5 + $0x1b0] sm:$0xff] }
 0x1e5   : > { %v8234_v41 = vpop.f32.mrf.mxu0 }
 0x1e6   : > { %v1949_v43 = vadd.f32 %v8234_v41, %v9132_v18  ;;  %8363 = vmatprep.mubr.msk.bf16.mxu1 %vm1342_vm0, %v2252_v36  ;;  %v2172_v49 = vmax.f32 %v1938_v42, 0.0 }
 0x1e7   : > { %v1940_v45 = vpop.f32.mrf.mxu0  ;;  %8364 = vmatmul.mubr.msk.bf16.gmra.mxu1 %vm1342_vm0, %v2253_v40 }
 0x1e8   : > { %v1941_v46 = vadd.f32 %v9132_v18, %v1940_v45  ;;  %v2175_v47 = vmax.f32 %v1949_v43, 0.0 }
 0x1e9   : > { %v8237_v48 = vpop.f32.mrf.mxu0 }
 0x1ea   : > { %v2173_v50 = vmax.f32 %v1941_v46, 0.0  ;;  %v2255_v54 = vpack.c.bf16 %v2175_v47, %v2174_v51  ;;  %v1962_v34 = vadd.f32 %v8237_v48, %v9132_v18  ;;  %v7976_v48 = vcombine.high %v3290_v33, %v3294_v35 }
 0x1eb   : > { %v1953_v52 = vpop.f32.mrf.mxu0 }
 0x1ec   : > { %v2254_v53 = vpack.c.bf16 %v2173_v50, %v2172_v49  ;;  %v1954_v56 = vadd.f32 %v9132_v18, %v1953_v52  ;;  %v2178_v62 = vmax.f32 %v1962_v34, 0.0 }
 0x1ed   : > { %v8238_v55 = vpop.f32.mrf.mxu0 }
 0x1ee   : > { %v1965_v57 = vadd.f32 %v8238_v55, %v9132_v18  ;;  %8367 = vmatprep.mubr.msk.bf16.mxu1 %vm1342_vm0, %v2254_v53  ;;  %v2176_v60 = vmax.f32 %v1954_v56, 0.0 }
 0x1ef   : > { %v1956_v37 = vpop.f32.mrf.mxu0  ;;  %8368 = vmatmul.mubr.msk.bf16.gmra.mxu1 %vm1342_vm0, %v2255_v54 }
 0x1f0   : > { %v1957_v38 = vadd.f32 %v9132_v18, %v1956_v37  ;;  %v2179_v58 = vmax.f32 %v1965_v57, 0.0 }
 0x1f1   : > { %v8241_v59 = vpop.f32.mrf.mxu0 }
 0x1f2   : > { %v2177_v61 = vmax.f32 %v1957_v38, 0.0  ;;  %v2257_v1 = vpack.c.bf16 %v2179_v58, %v2178_v62  ;;  %v1978_v5 = vadd.f32 %v8241_v59, %v9132_v18  ;;  %v7975_v58 = vcombine.low %v3290_v33, %v3294_v35 }
 0x1f3   : > { %v1969_v63 = vpop.f32.mrf.mxu0 }
 0x1f4   : > { %v2256_v0 = vpack.c.bf16 %v2177_v61, %v2176_v60  ;;  %v1970_v3 = vadd.f32 %v9132_v18, %v1969_v63  ;;  %v2182_v22 = vmax.f32 %v1978_v5, 0.0 }
 0x1f5   : > { %v8242_v2 = vpop.f32.mrf.mxu0 }
 0x1f6   : > { %v1981_v4 = vadd.f32 %v8242_v2, %v9132_v18  ;;  %8371 = vmatprep.mubr.msk.bf16.mxu1 %vm1342_vm0, %v2256_v0  ;;  %v2180_v19 = vmax.f32 %v1970_v3, 0.0  ;;  %v9420_v18 = vld [vmem:[%s10922_s4] ss:$0 sm:$0xff] }
 0x1f7   : > { %v1972_v6 = vpop.f32.mrf.mxu0  ;;  %v8277_v7 = vpop.f32.mrf.mxu1  ;;  %8372 = vmatmul.mubr.msk.bf16.gmra.mxu1 %vm1342_vm0, %v2257_v1 }
 0x1f8   : > { %v1973_v9 = vadd.f32 %v9414_v8, %v1972_v6  ;;  %v2183_v13 = vmax.f32 %v1981_v4, 0.0  ;;  %v2546_v56 = vadd.f32 %v8277_v7, %v9420_v18 }
 0x1f9   : > { %v8245_v14 = vpop.f32.mrf.mxu0  ;;  %v2537_v16 = vpop.f32.mrf.mxu1 }
 0x1fa   : > { %v2181_v21 = vmax.f32 %v1973_v9, 0.0  ;;  %v2538_v26 = vadd.f32 %v9420_v18, %v2537_v16  ;;  %v2259_v27 = vpack.c.bf16 %v2183_v13, %v2182_v22  ;;  %v1994_v36 = vadd.f32 %v9414_v8, %v8245_v14 }
 0x1fb   : > { %v1985_v23 = vpop.f32.mrf.mxu0  ;;  %v8278_v24 = vpop.f32.mrf.mxu1  ;;  %v3050_v1 = vmax.f32 %v2546_v56, 0.0 }
 0x1fc   : > { %v2258_v25 = vpack.c.bf16 %v2181_v21, %v2180_v19  ;;  %v1986_v30 = vadd.f32 %v9414_v8, %v1985_v23  ;;  %v3048_v42 = vmax.f32 %v2538_v26, 0.0  ;;  %v2549_v50 = vadd.f32 %v8278_v24, %v9420_v18 }
 0x1fd   : > { %v8246_v28 = vpop.f32.mrf.mxu0  ;;  %v2540_v29 = vpop.f32.mrf.mxu1  ;;  %v2186_v53 = vmax.f32 %v1994_v36, 0.0 }
 0x1fe   : > { %v1997_v31 = vadd.f32 %v9414_v8, %v8246_v28  ;;  %v2541_v32 = vadd.f32 %v9420_v18, %v2540_v29  ;;  %8375 = vmatprep.mubr.msk.bf16.mxu1 %vm1342_vm0, %v2258_v25  ;;  %v2184_v49 = vmax.f32 %v1986_v30, 0.0  ;;  %v3051_v59 = vmax.f32 %v2549_v50, 0.0 }
 0x1ff   : > { %v1988_v40 = vpop.f32.mrf.mxu0  ;;  %v9434_v41 = vpop.f32.mrf.mxu1  ;;  %8376 = vmatmul.mubr.msk.bf16.gmra.mxu1 %vm1342_vm0, %v2259_v27 }
 0x200   : > { %v3049_v43 = vmax.f32 %v2541_v32, 0.0  ;;  %v1989_v44 = vadd.f32 %v9414_v8, %v1988_v40  ;;  %v2187_v45 = vmax.f32 %v1997_v31, 0.0  ;;  %v9457_v3 = vpack.c.bf16 %v3051_v59, %v3050_v1 }
 0x201   : > { %v8249_v46 = vpop.f32.mrf.mxu0  ;;  %v2553_v47 = vpop.f32.mrf.mxu1 }
 0x202   : > { %v9439_v51 = vpack.c.bf16 %v3049_v43, %v3048_v42  ;;  %v2185_v52 = vmax.f32 %v1989_v44, 0.0  ;;  %v2261_v34 = vpack.c.bf16 %v2187_v45, %v2186_v53  ;;  %v2010_v62 = vadd.f32 %v9414_v8, %v8249_v46 }
 0x203   : > { %v2001_v54 = vpop.f32.mrf.mxu0  ;;  %v8282_v55 = vpop.f32.mrf.mxu1  ;;  %v2554_v14 = vadd.f32 %v9420_v18, %v2553_v47  ;;  %v2562_v46 = vadd.f32 %v9434_v41, %v9420_v18 }
 0x204   : > { %v2260_v57 = vpack.c.bf16 %v2185_v52, %v2184_v49  ;;  %3657 = vmatmul.mubr.bf16.vlgmr.msra.gmra.mxu0 %v9439_v51  ;;  %v2002_v60 = vadd.f32 %v9414_v8, %v2001_v54  ;;  %v2190_v7 = vmax.f32 %v2010_v62, 0.0  ;;  %v2565_v35 = vadd.f32 %v8282_v55, %v9420_v18 }
 0x205   : > { %v8250_v37 = vpop.f32.mrf.mxu0  ;;  %v2556_v38 = vpop.f32.mrf.mxu1  ;;  %3666 = vmatprep.mubr.bf16.mxu0 %v10971_v39  ;;  %4971 = vmatpush1.bf16.msra.mxu0 %v7983_v15  ;;  %v3052_v29 = vmax.f32 %v2554_v14, 0.0 }
 0x206   : > { %v2013_v61 = vadd.f32 %v9414_v8, %v8250_v37  ;;  %8379 = vmatprep.mubr.msk.bf16.mxu1 %vm1342_vm0, %v2260_v57  ;;  %4972 = vmatprep.subr.bf16.mxu0 %v7976_v48  ;;  %v2188_v4 = vmax.f32 %v2002_v60, 0.0  ;;  %v2557_v5 = vadd.f32 %v9420_v18, %v2556_v38  ;;  %v3055_v52 = vmax.f32 %v2565_v35, 0.0 }
 0x207   : > { %v2004_v63 = vpop.f32.mrf.mxu0  ;;  %v9451_v0 = vpop.f32.mrf.mxu1  ;;  %8380 = vmatmul.mubr.msk.bf16.gmra.mxu1 %vm1342_vm0, %v2261_v34  ;;  %v3054_v57 = vmax.f32 %v2562_v46, 0.0 }
 0x208   : > { %v2005_v10 = vadd.f32 %v9414_v8, %v2004_v63  ;;  %v2191_v11 = vmax.f32 %v2013_v61, 0.0  ;;  %v3053_v23 = vmax.f32 %v2557_v5, 0.0 }
 0x209   : > { %v8253_v15 = vpop.f32.mrf.mxu0  ;;  %v9455_v2 = vpop.f32.mrf.mxu1  ;;  %4973 = vmatpush1.bf16.msra.mxu0 %v7975_v58  ;;  %v9496_v59 = vpack.c.bf16 %v3055_v52, %v3054_v57 }
 0x20a   : > { %v2189_v6 = vmax.f32 %v2005_v10, 0.0  ;;  %v2263_v19 = vpack.c.bf16 %v2191_v11, %v2190_v7  ;;  %v2026_v26 = vadd.f32 %v9414_v8, %v8253_v15  ;;  %v9476_v36 = vpack.c.bf16 %v3053_v23, %v3052_v29 }
 0x20b   : > { %v2017_v9 = vpop.f32.mrf.mxu0  ;;  %v9460_v13 = vpop.f32.mrf.mxu1  ;;  %11064 = vst [vmem:[#allocation9_spill] sm:$0xff] %v9496_v59  ;;  %v2570_v11 = vadd.f32 %v9420_v18, %v9455_v2 }
 0x20c   : > { %v2262_v16 = vpack.c.bf16 %v2189_v6, %v2188_v4  ;;  %3667 = vmatmul.mubr.bf16.gmra.mxu0 %v9457_v3  ;;  %v2018_v24 = vadd.f32 %v9414_v8, %v2017_v9  ;;  %v2194_v43 = vmax.f32 %v2026_v26, 0.0  ;;  %v2581_v26 = vadd.f32 %v9460_v13, %v9420_v18 }
 0x20d   : > { %v8254_v21 = vpop.f32.mrf.mxu0  ;;  %v2572_v22 = vpop.f32.mrf.mxu1  ;;  %3676 = vmatprep.mubr.bf16.mxu0 %v10971_v39 }
 0x20e   : > { %v2029_v25 = vadd.f32 %v9414_v8, %v8254_v21  ;;  %8383 = vmatprep.mubr.msk.bf16.mxu1 %vm1342_vm0, %v2262_v16  ;;  %v2192_v40 = vmax.f32 %v2018_v24, 0.0  ;;  %v2573_v60 = vadd.f32 %v9420_v18, %v2572_v22  ;;  %v3056_v21 = vmax.f32 %v2570_v11, 0.0 }
 0x20f   : > { %v2020_v27 = vpop.f32.mrf.mxu0  ;;  %v9469_v28 = vpop.f32.mrf.mxu1  ;;  %8384 = vmatmul.mubr.msk.bf16.gmra.mxu1 %vm1342_vm0, %v2263_v19  ;;  %v3059_v13 = vmax.f32 %v2581_v26, 0.0 }
 0x210   : > { %v2021_v30 = vadd.f32 %v9414_v8, %v2020_v27  ;;  %v2195_v31 = vmax.f32 %v2029_v25, 0.0  ;;  %v3057_v7 = vmax.f32 %v2573_v60, 0.0 }
 0x211   : > { %v8257_v32 = vpop.f32.mrf.mxu0  ;;  %v9473_v33 = vpop.f32.mrf.mxu1 }
 0x212   : > { %v2193_v42 = vmax.f32 %v2021_v30, 0.0  ;;  %v2265_v48 = vpack.c.bf16 %v2195_v31, %v2194_v43  ;;  %v2042_v55 = vadd.f32 %v9414_v8, %v8257_v32  ;;  %v9519_v27 = vpack.c.bf16 %v3057_v7, %v3056_v21 }
 0x213   : > { %v2033_v44 = vpop.f32.mrf.mxu0  ;;  %v9478_v45 = vpop.f32.mrf.mxu1 }
 0x214   : > { %v2264_v47 = vpack.c.bf16 %v2193_v42, %v2192_v40  ;;  %3677 = vmatmul.mubr.bf16.gmra.mxu0 %v9476_v36  ;;  %v2034_v53 = vadd.f32 %v9414_v8, %v2033_v44  ;;  %v2198_v63 = vmax.f32 %v2042_v55, 0.0  ;;  %11065 = vst [vmem:[#allocation10_spill] sm:$0xff] %v9519_v27  ;;  %v2578_v40 = vadd.f32 %v9451_v0, %v9420_v18 }
 0x215   : > { %v8258_v49 = vpop.f32.mrf.mxu0  ;;  %v9483_v50 = vpop.f32.mrf.mxu1  ;;  %3686 = vmatprep.mubr.bf16.mxu0 %v10971_v39 }
 0x216   : > { %v2045_v54 = vadd.f32 %v9414_v8, %v8258_v49  ;;  %8387 = vmatprep.mubr.msk.bf16.mxu1 %vm1342_vm0, %v2264_v47  ;;  %v2196_v61 = vmax.f32 %v2034_v53, 0.0  ;;  %v3058_v53 = vmax.f32 %v2578_v40, 0.0 }
 0x217   : > { %v2036_v56 = vpop.f32.mrf.mxu0  ;;  %v9490_v41 = vpop.f32.mrf.mxu1  ;;  %8388 = vmatmul.mubr.msk.bf16.gmra.mxu1 %vm1342_vm0, %v2265_v48 }
 0x218   : > { %v2037_v34 = vadd.f32 %v9414_v8, %v2036_v56  ;;  %v2199_v37 = vmax.f32 %v2045_v54, 0.0  ;;  %v9539_v57 = vpack.c.bf16 %v3059_v13, %v3058_v53 }
 0x219   : > { %v8261_v38 = vpop.f32.mrf.mxu0  ;;  %v9494_v58 = vpop.f32.mrf.mxu1 }
 0x21a   : > { %v2197_v62 = vmax.f32 %v2037_v34, 0.0  ;;  %v2267_v4 = vpack.c.bf16 %v2199_v37, %v2198_v63  ;;  %v2058_v16 = vadd.f32 %v9414_v8, %v8261_v38  ;;  %11066 = vst [vmem:[#allocation11_spill] sm:$0xff] %v9539_v57  ;;  %v2589_v34 = vadd.f32 %v9420_v18, %v9483_v50 }
 0x21b   : > { %v2049_v1 = vpop.f32.mrf.mxu0  ;;  %v9499_v10 = vpop.f32.mrf.mxu1 }
 0x21c   : > { %v2266_v15 = vpack.c.bf16 %v2197_v62, %v2196_v61  ;;  %3687 = vmatmul.mubr.bf16.gmra.mxu0 %v9496_v59  ;;  %v2050_v9 = vadd.f32 %v9414_v8, %v2049_v1  ;;  %v2202_v31 = vmax.f32 %v2058_v16, 0.0  ;;  %v2586_v62 = vadd.f32 %v9420_v18, %v9473_v33 }
 0x21d   : > { %v8262_v5 = vpop.f32.mrf.mxu0  ;;  %v9504_v6 = vpop.f32.mrf.mxu1  ;;  %3696 = vmatprep.mubr.bf16.mxu0 %v10971_v39  ;;  %v3061_v11 = vmax.f32 %v2589_v34, 0.0  ;;  %v2597_v33 = vadd.f32 %v9478_v45, %v9420_v18 }
 0x21e   : > { %v2061_v14 = vadd.f32 %v9414_v8, %v8262_v5  ;;  %8391 = vmatprep.mubr.msk.bf16.mxu1 %vm1342_vm0, %v2266_v15  ;;  %v2200_v29 = vmax.f32 %v2050_v9, 0.0  ;;  %v3060_v15 = vmax.f32 %v2586_v62, 0.0  ;;  %v3291_v9 = vld [vmem:[%s10923_s5 + $0x198] sm:$0xff] }
 0x21f   : > { %v2052_v19 = vpop.f32.mrf.mxu0  ;;  %v9511_v2 = vpop.f32.mrf.mxu1  ;;  %8392 = vmatmul.mubr.msk.bf16.gmra.mxu1 %vm1342_vm0, %v2267_v4 }
 0x220   : > { %v2053_v22 = vadd.f32 %v9414_v8, %v2052_v19  ;;  %v2203_v23 = vmax.f32 %v2061_v14, 0.0  ;;  %v9558_v5 = vpack.c.bf16 %v3061_v11, %v3060_v15  ;;  %v3295_v14 = vld [vmem:[%s10923_s5 + $0x1b8] sm:$0xff]  ;;  %v2594_v19 = vadd.f32 %v9469_v28, %v9420_v18 }
 0x221   : > { %v8265_v24 = vpop.f32.mrf.mxu0  ;;  %v9515_v25 = vpop.f32.mrf.mxu1  ;;  %v7977_v28 = vcombine.low %v3291_v9, %v3295_v14  ;;  %v2613_v15 = vadd.f32 %v9499_v10, %v9420_v18 }
 0x222   : > { %v2201_v30 = vmax.f32 %v2053_v22, 0.0  ;;  %v2269_v43 = vpack.c.bf16 %v2203_v23, %v2202_v31  ;;  %v2074_v49 = vadd.f32 %v9414_v8, %v8265_v24  ;;  %11067 = vst [vmem:[#allocation12_spill] sm:$0xff] %v9558_v5  ;;  %v7978_v22 = vcombine.high %v3291_v9, %v3295_v14 }
 0x223   : > { %v2065_v32 = vpop.f32.mrf.mxu0  ;;  %v9521_v35 = vpop.f32.mrf.mxu1  ;;  %v3063_v23 = vmax.f32 %v2597_v33, 0.0  ;;  %v3067_v10 = vmax.f32 %v2613_v15, 0.0 }
 0x224   : > { %v2268_v42 = vpack.c.bf16 %v2201_v30, %v2200_v29  ;;  %3697 = vmatmul.mubr.bf16.gmra.mxu0 %v9519_v27  ;;  %v2066_v47 = vadd.f32 %v9414_v8, %v2065_v32  ;;  %v2206_v60 = vmax.f32 %v2074_v49, 0.0  ;;  %v3062_v30 = vmax.f32 %v2594_v19, 0.0  ;;  %v3287_v49 = vld [vmem:[%s10923_s5 + $0x178] sm:$0xff] }
 0x225   : > { %v8266_v44 = vpop.f32.mrf.mxu0  ;;  %v9526_v46 = vpop.f32.mrf.mxu1  ;;  %3706 = vmatprep.mubr.bf16.mxu0 %v10971_v39  ;;  %v7969_v53 = vcombine.low %v3283_v17, %v3287_v49 }
 0x226   : > { %v2077_v48 = vadd.f32 %v9414_v8, %v8266_v44  ;;  %8395 = vmatprep.mubr.msk.bf16.mxu1 %vm1342_vm0, %v2268_v42  ;;  %v2204_v37 = vmax.f32 %v2066_v47, 0.0  ;;  %v9581_v40 = vpack.c.bf16 %v3063_v23, %v3062_v30  ;;  %v2605_v42 = vadd.f32 %v9420_v18, %v9504_v6  ;;  %v3282_v44 = vld [vmem:[%s10923_s5 + $0x150] sm:$0xff] }
 0x227   : > { %v2068_v52 = vpop.f32.mrf.mxu0  ;;  %v9533_v0 = vpop.f32.mrf.mxu1  ;;  %8396 = vmatmul.mubr.msk.bf16.gmra.mxu1 %vm1342_vm0, %v2269_v43  ;;  %v7967_v47 = vcombine.low %v3282_v44, %v3286_v12 }
 0x228   : > { %v2069_v54 = vadd.f32 %v9414_v8, %v2068_v52  ;;  %v2207_v55 = vmax.f32 %v2077_v48, 0.0  ;;  %11069 = vst [vmem:[#allocation14_spill] sm:$0xff] %v9581_v40  ;;  %v7968_v48 = vcombine.high %v3282_v44, %v3286_v12  ;;  %v2621_v44 = vadd.f32 %v9420_v18, %v9526_v46 }
 0x229   : > { %v9537_v56 = vpop.f32.mrf.mxu1 }
 0x22a   : > { %v2205_v38 = vmax.f32 %v2069_v54, 0.0  ;;  %v2271_v8 = vpack.c.bf16 %v2207_v55, %v2206_v60  ;;  %v7970_v54 = vcombine.high %v3283_v17, %v3287_v49  ;;  %4974 = vmatprep.subr.bf16.mxu0 %v7968_v48  ;;  %v3069_v49 = vmax.f32 %v2621_v44, 0.0 }
 0x22b   : > { %v9543_v61 = vpop.f32.mrf.mxu1  ;;  %4975 = vmatpush1.bf16.msra.mxu0 %v7967_v47  ;;  %v2634_v44 = vadd.f32 %v9420_v18, %v9537_v56 }
 0x22c   : > { %v2270_v63 = vpack.c.bf16 %v2205_v38, %v2204_v37  ;;  %3707 = vmatmul.mubr.bf16.gmra.mxu0 %v9539_v57 }
 0x22d   : > { %v9548_v1 = vpop.f32.mrf.mxu1  ;;  %3716 = vmatprep.mubr.bf16.mxu0 %v10971_v39 }
 0x22e   : > { %8399 = vmatprep.mubr.msk.bf16.mxu1 %vm1342_vm0, %v2270_v63 }
 0x22f   : > { %v8305_v50 = vpop.f32.mrf.mxu1  ;;  %8400 = vmatmul.mubr.msk.bf16.gmra.mxu1 %vm1342_vm0, %v2271_v8 }
 0x230   : > { %4329 = vmatprep.mubr.bf16.mxu1 %v10971_v39  ;;  %v2658_v7 = vadd.f32 %v8305_v50, %v9420_v18 }
 0x231   : > { %v9554_v4 = vpop.f32.mrf.mxu1 }
 0x232   : > { %v3078_v24 = vmax.f32 %v2658_v7, 0.0 }
 0x233   : > { %v8306_v16 = vpop.f32.mrf.mxu1 }
 0x234   : > { %v2661_v21 = vadd.f32 %v8306_v16, %v9420_v18  ;;  %3717 = vmatmul.mubr.bf16.gmra.mxu0 %v9558_v5  ;;  %v2610_v16 = vadd.f32 %v9490_v41, %v9420_v18 }
 0x235   : > { %v9571_v45 = vpop.f32.mrf.mxu1  ;;  %3726 = vmatprep.mubr.bf16.mxu0 %v10971_v39 }
 0x236   : > { %v3079_v26 = vmax.f32 %v2661_v21, 0.0  ;;  %v3066_v30 = vmax.f32 %v2610_v16, 0.0 }
 0x237   : > { %v8309_v29 = vpop.f32.mrf.mxu1  ;;  %4330 = vmatmul.mubr.bf16.vlgmr.msra.gmra.mxu1 %v9439_v51 }
 0x238   : > { %v9575_v31 = vpack.c.bf16 %v3079_v26, %v3078_v24  ;;  %5644 = vmatpush1.bf16.msra.mxu1 %v7985_v20  ;;  %4339 = vmatprep.mubr.bf16.mxu1 %v10971_v39  ;;  %v2674_v43 = vadd.f32 %v8309_v29, %v9420_v18  ;;  %v2602_v20 = vadd.f32 %v9420_v18, %v9494_v58  ;;  %v3065_v58 = vmax.f32 %v2605_v42, 0.0 }
 0x239   : > { %v2665_v32 = vpop.f32.mrf.mxu1  ;;  %5645 = vmatprep.subr.bf16.mxu1 %v7978_v22 }
 0x23a   : > { %11068 = vst [vmem:[#allocation13_spill] sm:$0xff] %v9575_v31  ;;  %v2666_v13 = vadd.f32 %v9420_v18, %v2665_v32  ;;  %v3082_v34 = vmax.f32 %v2674_v43, 0.0  ;;  %v3064_v62 = vmax.f32 %v2602_v20, 0.0  ;;  %v9627_v43 = vpack.c.bf16 %v3067_v10, %v3066_v30 }
 0x23b   : > { %v8310_v6 = vpop.f32.mrf.mxu1  ;;  %v2637_v30 = vadd.f32 %v9420_v18, %v9548_v1 }
 0x23c   : > { %v2677_v52 = vadd.f32 %v8310_v6, %v9420_v18  ;;  %3727 = vmatmul.mubr.bf16.gmra.mxu0 %v9581_v40  ;;  %5646 = vmatpush1.bf16.msra.mxu1 %v7977_v28  ;;  %v3080_v63 = vmax.f32 %v2666_v13, 0.0  ;;  %v9611_v33 = vpack.c.bf16 %v3065_v58, %v3064_v62  ;;  %11074 = vst [vmem:[#allocation19_spill] sm:$0xff] %v9627_v43 }
 0x23d   : > { %v2668_v55 = vpop.f32.mrf.mxu1  ;;  %3736 = vmatprep.mubr.bf16.mxu0 %v10971_v39  ;;  %5647 = vmatprep.subr.bf16.mxu1 %v7970_v54  ;;  %v2618_v13 = vadd.f32 %v9420_v18, %v9515_v25 }
 0x23e   : > { %v3083_v37 = vmax.f32 %v2677_v52, 0.0  ;;  %v2669_v38 = vadd.f32 %v9420_v18, %v2668_v55  ;;  %11071 = vst [vmem:[#allocation16_spill] sm:$0xff] %v9611_v33 }
 0x23f   : > { %v8313_v60 = vpop.f32.mrf.mxu1  ;;  %4340 = vmatmul.mubr.bf16.gmra.mxu1 %v9457_v3  ;;  %v3068_v55 = vmax.f32 %v2618_v13, 0.0 }
 0x240   : > { %v9606_v8 = vpack.c.bf16 %v3083_v37, %v3082_v34  ;;  %v3081_v11 = vmax.f32 %v2669_v38, 0.0  ;;  %4349 = vmatprep.mubr.bf16.mxu1 %v10971_v39  ;;  %5648 = vmatpush1.bf16.msra.mxu1 %v7969_v53  ;;  %v2690_v9 = vadd.f32 %v8313_v60, %v9420_v18  ;;  %v2629_v38 = vadd.f32 %v9521_v35, %v9420_v18 }
 0x241   : > { %v2681_v50 = vpop.f32.mrf.mxu1  ;;  %v9647_v60 = vpack.c.bf16 %v3069_v49, %v3068_v55  ;;  %v2645_v55 = vadd.f32 %v9543_v61, %v9420_v18 }
 0x242   : > { %11070 = vst [vmem:[#allocation15_spill] sm:$0xff] %v9606_v8  ;;  %v9613_v7 = vpack.c.bf16 %v3081_v11, %v3080_v63  ;;  %v2682_v19 = vadd.f32 %v9420_v18, %v2681_v50  ;;  %v3086_v23 = vmax.f32 %v2690_v9, 0.0  ;;  %v2626_v50 = vadd.f32 %v9511_v2, %v9420_v18 }
 0x243   : > { %v8314_v14 = vpop.f32.mrf.mxu1  ;;  %11077 = vst [vmem:[#allocation22_spill] sm:$0xff] %v9647_v60  ;;  %v3071_v35 = vmax.f32 %v2629_v38, 0.0  ;;  %v3075_v61 = vmax.f32 %v2645_v55, 0.0 }
 0x244   : > { %11072 = vst [vmem:[#allocation17_spill] sm:$0xff] %v9613_v7  ;;  %v2693_v21 = vadd.f32 %v8314_v14, %v9420_v18  ;;  %3737 = vmatmul.mubr.bf16.gmra.mxu0 %v9611_v33  ;;  %v3084_v28 = vmax.f32 %v2682_v19, 0.0  ;;  %v3070_v10 = vmax.f32 %v2626_v50, 0.0 }
 0x245   : > { %v2684_v22 = vpop.f32.mrf.mxu1  ;;  %3746 = vmatprep.mubr.bf16.mxu0 %v10971_v39 }
 0x246   : > { %v3087_v24 = vmax.f32 %v2693_v21, 0.0  ;;  %v2685_v26 = vadd.f32 %v9420_v18, %v2684_v22 }
 0x247   : > { %v8317_v29 = vpop.f32.mrf.mxu1  ;;  %4350 = vmatmul.mubr.bf16.gmra.mxu1 %v9476_v36 }
 0x248   : > { %v9624_v41 = vpack.c.bf16 %v3087_v24, %v3086_v23  ;;  %v3085_v32 = vmax.f32 %v2685_v26, 0.0  ;;  %4359 = vmatprep.mubr.bf16.mxu1 %v10971_v39  ;;  %v2706_v17 = vadd.f32 %v8317_v29, %v9420_v18  ;;  %v9663_v29 = vpack.c.bf16 %v3071_v35, %v3070_v10 }
 0x249   : > { %v2697_v42 = vpop.f32.mrf.mxu1 }
 0x24a   : > { %11073 = vst [vmem:[#allocation18_spill] sm:$0xff] %v9624_v41  ;;  %v9631_v12 = vpack.c.bf16 %v3085_v32, %v3084_v28  ;;  %v2698_v6 = vadd.f32 %v9420_v18, %v2697_v42  ;;  %v3090_v52 = vmax.f32 %v2706_v17, 0.0  ;;  %11080 = vst [vmem:[#allocation25_spill] sm:$0xff] %v9663_v29 }
 0x24b   : > { %v8318_v20 = vpop.f32.mrf.mxu1 }
 0x24c   : > { %11075 = vst [vmem:[#allocation20_spill] sm:$0xff] %v9631_v12  ;;  %v2709_v47 = vadd.f32 %v8318_v20, %v9420_v18  ;;  %3747 = vmatmul.mubr.bf16.gmra.mxu0 %v9627_v43  ;;  %v3088_v58 = vmax.f32 %v2698_v6, 0.0  ;;  %v3073_v6 = vmax.f32 %v2637_v30, 0.0 }
 0x24d   : > { %v2700_v48 = vpop.f32.mrf.mxu1  ;;  %3756 = vmatprep.mubr.bf16.mxu0 %v10971_v39 }
 0x24e   : > { %v3091_v46 = vmax.f32 %v2709_v47, 0.0  ;;  %v2701_v53 = vadd.f32 %v9420_v18, %v2700_v48 }
 0x24f   : > { %v8321_v54 = vpop.f32.mrf.mxu1  ;;  %4360 = vmatmul.mubr.bf16.gmra.mxu1 %v9496_v59  ;;  %v11124_v59 = vmov 0  }
 0x250   : > { %v9642_v25 = vpack.c.bf16 %v3091_v46, %v3090_v52  ;;  %v3089_v34 = vmax.f32 %v2701_v53, 0.0  ;;  %4369 = vmatprep.mubr.bf16.mxu1 %v10971_v39  ;;  %v2722_v63 = vadd.f32 %v8321_v54, %v9420_v18  ;;  %v3072_v52 = vmax.f32 %v2634_v44, 0.0 }
 0x251   : > { %v2713_v37 = vpop.f32.mrf.mxu1 }
 0x252   : > { %11076 = vst [vmem:[#allocation21_spill] sm:$0xff] %v9642_v25  ;;  %v9649_v62 = vpack.c.bf16 %v3089_v34, %v3088_v58  ;;  %v2714_v15 = vadd.f32 %v9420_v18, %v2713_v37  ;;  %v3094_v16 = vmax.f32 %v2722_v63, 0.0  ;;  %v9683_v58 = vpack.c.bf16 %v3073_v6, %v3072_v52 }
 0x253   : > { %v8322_v11 = vpop.f32.mrf.mxu1  ;;  %v2642_v63 = vadd.f32 %v9533_v0, %v9420_v18 }
 0x254   : > { %11078 = vst [vmem:[#allocation23_spill] sm:$0xff] %v9649_v62  ;;  %v2725_v9 = vadd.f32 %v8322_v11, %v9420_v18  ;;  %3757 = vmatmul.mubr.bf16.gmra.mxu0 %v9647_v60  ;;  %v3092_v23 = vmax.f32 %v2714_v15, 0.0  ;;  %11082 = vst [vmem:[#allocation27_spill] sm:$0xff] %v9683_v58 }
 0x255   : > { %v2716_v14 = vpop.f32.mrf.mxu1  ;;  %3766 = vmatprep.mubr.bf16.mxu0 %v10971_v39 }
 0x256   : > { %v3095_v19 = vmax.f32 %v2725_v9, 0.0  ;;  %v2717_v21 = vadd.f32 %v9420_v18, %v2716_v14 }
 0x257   : > { %v8325_v22 = vpop.f32.mrf.mxu1  ;;  %4370 = vmatmul.mubr.bf16.gmra.mxu1 %v9519_v27 }
 0x258   : > { %v9660_v2 = vpack.c.bf16 %v3095_v19, %v3094_v16  ;;  %v3093_v24 = vmax.f32 %v2717_v21, 0.0  ;;  %4379 = vmatprep.mubr.bf16.mxu1 %v10971_v39  ;;  %v2738_v32 = vadd.f32 %v8325_v22, %v9420_v18  ;;  %v3074_v19 = vmax.f32 %v2642_v63, 0.0 }
 0x259   : > { %v2729_v26 = vpop.f32.mrf.mxu1 }
 0x25a   : > { %11079 = vst [vmem:[#allocation24_spill] sm:$0xff] %v9660_v2  ;;  %v9667_v28 = vpack.c.bf16 %v3093_v24, %v3092_v23  ;;  %v2730_v17 = vadd.f32 %v9420_v18, %v2729_v26  ;;  %v3098_v47 = vmax.f32 %v2738_v32, 0.0  ;;  %v9699_v23 = vpack.c.bf16 %v3075_v61, %v3074_v19 }
 0x25b   : > { %v8326_v42 = vpop.f32.mrf.mxu1  ;;  %v2653_v24 = vadd.f32 %v9420_v18, %v9571_v45 }
 0x25c   : > { %11081 = vst [vmem:[#allocation26_spill] sm:$0xff] %v9667_v28  ;;  %v2741_v20 = vadd.f32 %v8326_v42, %v9420_v18  ;;  %3767 = vmatmul.mubr.bf16.gmra.mxu0 %v9663_v29  ;;  %v3096_v46 = vmax.f32 %v2730_v17, 0.0  ;;  %11085 = vst [vmem:[#allocation30_spill] sm:$0xff] %v9699_v23  ;;  %v2650_v42 = vadd.f32 %v9420_v18, %v9554_v4 }
 0x25d   : > { %v2732_v13 = vpop.f32.mrf.mxu1  ;;  %3776 = vmatprep.mubr.bf16.mxu0 %v10971_v39 }
 0x25e   : > { %v3099_v1 = vmax.f32 %v2741_v20, 0.0  ;;  %v2733_v48 = vadd.f32 %v9420_v18, %v2732_v13  ;;  %v3077_v13 = vmax.f32 %v2653_v24, 0.0  ;;  %v3278_v24 = vld [vmem:[%s10923_s5 + $0x130] sm:$0xff] }
 0x25f   : > { %v8329_v49 = vpop.f32.mrf.mxu1  ;;  %4380 = vmatmul.mubr.bf16.gmra.mxu1 %v9539_v57 }
 0x260   : > { %v9678_v56 = vpack.c.bf16 %v3099_v1, %v3098_v47  ;;  %v3097_v53 = vmax.f32 %v2733_v48, 0.0  ;;  %4389 = vmatprep.mubr.bf16.mxu1 %v10971_v39  ;;  %v2754_v37 = vadd.f32 %v8329_v49, %v9420_v18  ;;  %v3076_v48 = vmax.f32 %v2650_v42, 0.0 }
 0x261   : > { %v2745_v54 = vpop.f32.mrf.mxu1 }
 0x262   : > { %v9685_v34 = vpack.c.bf16 %v3097_v53, %v3096_v46  ;;  %v2746_v11 = vadd.f32 %v9420_v18, %v2745_v54  ;;  %v3102_v9 = vmax.f32 %v2754_v37, 0.0  ;;  %v9717_v53 = vpack.c.bf16 %v3077_v13, %v3076_v48 }
 0x263   : > { %v8330_v38 = vpop.f32.mrf.mxu1 }
 0x264   : > { %11083 = vst [vmem:[#allocation28_spill] sm:$0xff] %v9685_v34  ;;  %v2757_v50 = vadd.f32 %v8330_v38, %v9420_v18  ;;  %3777 = vmatmul.mubr.bf16.gmra.mxu0 %v9683_v58  ;;  %v3100_v21 = vmax.f32 %v2746_v11, 0.0  ;;  %11088 = vst [vmem:[#allocation33_spill] sm:$0xff] %v9717_v53 }
 0x265   : > { %v2748_v15 = vpop.f32.mrf.mxu1  ;;  %3786 = vmatprep.mubr.bf16.mxu0 %v10971_v39 }
 0x266   : > { %v3103_v14 = vmax.f32 %v2757_v50, 0.0  ;;  %v2749_v35 = vadd.f32 %v9420_v18, %v2748_v15 }
 0x267   : > { %v8333_v16 = vpop.f32.mrf.mxu1  ;;  %4390 = vmatmul.mubr.bf16.gmra.mxu1 %v9558_v5 }
 0x268   : > { %v9696_v0 = vpack.c.bf16 %v3103_v14, %v3102_v9  ;;  %v3101_v22 = vmax.f32 %v2749_v35, 0.0  ;;  %4399 = vmatprep.mubr.bf16.mxu1 %v10971_v39  ;;  %v2770_v30 = vadd.f32 %v8333_v16, %v9420_v18 }
 0x269   : > { %v2761_v10 = vpop.f32.mrf.mxu1 }
 0x26a   : > { %11084 = vst [vmem:[#allocation29_spill] sm:$0xff] %v9696_v0  ;;  %v9703_v26 = vpack.c.bf16 %v3101_v22, %v3100_v21  ;;  %v2762_v44 = vadd.f32 %v9420_v18, %v2761_v10  ;;  %v3106_v6 = vmax.f32 %v2770_v30, 0.0  ;;  %v3274_v10 = vld [vmem:[%s10923_s5 + $0x110] sm:$0xff]  ;;  %v3275_v30 = vld [vmem:[%s10923_s5 + $0x118] sm:$0xff] }
 0x26b   : > { %v8334_v32 = vpop.f32.mrf.mxu1  ;;  %v7959_v42 = vcombine.low %v3274_v10, %v3278_v24 }
 0x26c   : > { %11086 = vst [vmem:[#allocation31_spill] sm:$0xff] %v9703_v26  ;;  %v2773_v17 = vadd.f32 %v8334_v32, %v9420_v18  ;;  %3787 = vmatmul.mubr.bf16.gmra.mxu0 %v9699_v23  ;;  %v3104_v49 = vmax.f32 %v2762_v44, 0.0  ;;  %v7960_v44 = vcombine.high %v3274_v10, %v3278_v24 }
 0x26d   : > { %v2764_v20 = vpop.f32.mrf.mxu1  ;;  %3796 = vmatprep.mubr.bf16.mxu0 %v10971_v39 }
 0x26e   : > { %v3107_v45 = vmax.f32 %v2773_v17, 0.0  ;;  %v2765_v47 = vadd.f32 %v9420_v18, %v2764_v20  ;;  %v3279_v17 = vld [vmem:[%s10923_s5 + $0x138] sm:$0xff]  ;;  %4976 = vmatprep.subr.bf16.mxu0 %v7960_v44 }
 0x26f   : > { %v8337_v1 = vpop.f32.mrf.mxu1  ;;  %4400 = vmatmul.mubr.bf16.gmra.mxu1 %v9581_v40  ;;  %4977 = vmatpush1.bf16.msra.mxu0 %v7959_v42 }
 0x270   : > { %v9714_v4 = vpack.c.bf16 %v3107_v45, %v3106_v6  ;;  %v3105_v52 = vmax.f32 %v2765_v47, 0.0  ;;  %4409 = vmatprep.mubr.bf16.mxu1 %v10971_v39  ;;  %v2786_v55 = vadd.f32 %v8337_v1, %v9420_v18  ;;  %v7961_v6 = vcombine.low %v3275_v30, %v3279_v17 }
 0x271   : > { %v2777_v46 = vpop.f32.mrf.mxu1  ;;  %v7962_v45 = vcombine.high %v3275_v30, %v3279_v17 }
 0x272   : > { %11087 = vst [vmem:[#allocation32_spill] sm:$0xff] %v9714_v4  ;;  %v9719_v54 = vpack.c.bf16 %v3105_v52, %v3104_v49  ;;  %v2778_v38 = vadd.f32 %v9420_v18, %v2777_v46  ;;  %v3110_v50 = vmax.f32 %v2786_v55, 0.0 }
 0x273   : > { %v8338_v37 = vpop.f32.mrf.mxu1  ;;  %5649 = vmatprep.subr.bf16.mxu1 %v7962_v45 }
 0x274   : > { %11089 = vst [vmem:[#allocation34_spill] sm:$0xff] %v9719_v54  ;;  %v2789_v63 = vadd.f32 %v8338_v37, %v9420_v18  ;;  %3797 = vmatmul.mubr.bf16.gmra.mxu0 %v9717_v53  ;;  %v3108_v14 = vmax.f32 %v2778_v38, 0.0  ;;  %5650 = vmatpush1.bf16.msra.mxu1 %v7961_v6 }
 0x275   : > { %v2780_v11 = vpop.f32.mrf.mxu1  ;;  %3806 = vmatprep.mubr.bf16.mxu0 %v10971_v39 }
 0x276   : > { %v3111_v15 = vmax.f32 %v2789_v63, 0.0  ;;  %v2781_v61 = vadd.f32 %v9420_v18, %v2780_v11 }
 0x277   : > { %v8341_v9 = vpop.f32.mrf.mxu1  ;;  %4410 = vmatmul.mubr.bf16.gmra.mxu1 %v9611_v33 }
 0x278   : > { %v9728_v35 = vpack.c.bf16 %v3111_v15, %v3110_v50  ;;  %v3109_v16 = vmax.f32 %v2781_v61, 0.0  ;;  %4419 = vmatprep.mubr.bf16.mxu1 %v10971_v39  ;;  %v2802_v22 = vadd.f32 %v8341_v9, %v9420_v18 }
 0x279   : > { %v2793_v19 = vpop.f32.mrf.mxu1 }
 0x27a   : > { %11090 = vst [vmem:[#allocation35_spill] sm:$0xff] %v9728_v35  ;;  %v9731_v21 = vpack.c.bf16 %v3109_v16, %v3108_v14  ;;  %v2794_v20 = vadd.f32 %v9420_v18, %v2793_v19  ;;  %v3114_v1 = vmax.f32 %v2802_v22, 0.0 }
 0x27b   : > { %v8342_v32 = vpop.f32.mrf.mxu1 }
 0x27c   : > { %11091 = vst [vmem:[#allocation36_spill] sm:$0xff] %v9731_v21  ;;  %v2805_v13 = vadd.f32 %v8342_v32, %v9420_v18  ;;  %3807 = vmatmul.mubr.bf16.gmra.mxu0 %v9575_v31  ;;  %v3112_v46 = vmax.f32 %v2794_v20, 0.0 }
 0x27d   : > { %v2796_v47 = vpop.f32.mrf.mxu1  ;;  %3816 = vmatprep.mubr.bf16.mxu0 %v10971_v39 }
 0x27e   : > { %v3115_v48 = vmax.f32 %v2805_v13, 0.0  ;;  %v2797_v49 = vadd.f32 %v9420_v18, %v2796_v47 }
 0x27f   : > { %v8345_v52 = vpop.f32.mrf.mxu1  ;;  %4420 = vmatmul.mubr.bf16.gmra.mxu1 %v9627_v43 }
 0x280   : > { %v9752_v55 = vpack.c.bf16 %v3115_v48, %v3114_v1  ;;  %v3113_v37 = vmax.f32 %v2797_v49, 0.0  ;;  %4429 = vmatprep.mubr.bf16.mxu1 %v10971_v39  ;;  %v2818_v11 = vadd.f32 %v8345_v52, %v9420_v18 }
 0x281   : > { %v2809_v38 = vpop.f32.mrf.mxu1 }
 0x282   : > { %11092 = vst [vmem:[#allocation37_spill] sm:$0xff] %v9752_v55  ;;  %v9755_v63 = vpack.c.bf16 %v3113_v37, %v3112_v46  ;;  %v2810_v15 = vadd.f32 %v9420_v18, %v2809_v38  ;;  %v3118_v14 = vmax.f32 %v2818_v11, 0.0 }
 0x283   : > { %v8346_v50 = vpop.f32.mrf.mxu1 }
 0x284   : > { %11093 = vst [vmem:[#allocation38_spill] sm:$0xff] %v9755_v63  ;;  %v2821_v61 = vadd.f32 %v8346_v50, %v9420_v18  ;;  %3817 = vmatmul.mubr.bf16.gmra.mxu0 %v9613_v7  ;;  %v3116_v10 = vmax.f32 %v2810_v15, 0.0 }
 0x285   : > { %v2812_v9 = vpop.f32.mrf.mxu1  ;;  %3826 = vmatprep.mubr.bf16.mxu0 %v10971_v39 }
 0x286   : > { %v3119_v16 = vmax.f32 %v2821_v61, 0.0  ;;  %v2813_v19 = vadd.f32 %v9420_v18, %v2812_v9 }
 0x287   : > { %v8349_v22 = vpop.f32.mrf.mxu1  ;;  %4430 = vmatmul.mubr.bf16.gmra.mxu1 %v9647_v60 }
 0x288   : > { %v9764_v24 = vpack.c.bf16 %v3119_v16, %v3118_v14  ;;  %v3117_v30 = vmax.f32 %v2813_v19, 0.0  ;;  %4439 = vmatprep.mubr.bf16.mxu1 %v10971_v39  ;;  %v2834_v44 = vadd.f32 %v8349_v22, %v9420_v18 }
 0x289   : > { %v2825_v32 = vpop.f32.mrf.mxu1 }
 0x28a   : > { %11094 = vst [vmem:[#allocation39_spill] sm:$0xff] %v9764_v24  ;;  %v9767_v42 = vpack.c.bf16 %v3117_v30, %v3116_v10  ;;  %v2826_v20 = vadd.f32 %v9420_v18, %v2825_v32  ;;  %v3122_v45 = vmax.f32 %v2834_v44, 0.0 }
 0x28b   : > { %v8350_v17 = vpop.f32.mrf.mxu1 }
 0x28c   : > { %11095 = vst [vmem:[#allocation40_spill] sm:$0xff] %v9767_v42  ;;  %v2837_v13 = vadd.f32 %v8350_v17, %v9420_v18  ;;  %3827 = vmatmul.mubr.bf16.gmra.mxu0 %v9606_v8  ;;  %v3120_v49 = vmax.f32 %v2826_v20, 0.0 }
 0x28d   : > { %v2828_v6 = vpop.f32.mrf.mxu1  ;;  %3836 = vmatprep.mubr.bf16.mxu0 %v10971_v39 }
 0x28e   : > { %v3123_v47 = vmax.f32 %v2837_v13, 0.0  ;;  %v2829_v1 = vadd.f32 %v9420_v18, %v2828_v6 }
 0x28f   : > { %v8353_v48 = vpop.f32.mrf.mxu1  ;;  %4440 = vmatmul.mubr.bf16.gmra.mxu1 %v9663_v29 }
 0x290   : > { %v9776_v52 = vpack.c.bf16 %v3123_v47, %v3122_v45  ;;  %v3121_v46 = vmax.f32 %v2829_v1, 0.0  ;;  %4449 = vmatprep.mubr.bf16.mxu1 %v10971_v39  ;;  %v2850_v11 = vadd.f32 %v8353_v48, %v9420_v18 }
 0x291   : > { %v2841_v37 = vpop.f32.mrf.mxu1 }
 0x292   : > { %11096 = vst [vmem:[#allocation41_spill] sm:$0xff] %v9776_v52  ;;  %v9779_v38 = vpack.c.bf16 %v3121_v46, %v3120_v49  ;;  %v2842_v15 = vadd.f32 %v9420_v18, %v2841_v37  ;;  %v3126_v14 = vmax.f32 %v2850_v11, 0.0 }
 0x293   : > { %v8354_v50 = vpop.f32.mrf.mxu1 }
 0x294   : > { %11097 = vst [vmem:[#allocation42_spill] sm:$0xff] %v9779_v38  ;;  %v2853_v61 = vadd.f32 %v8354_v50, %v9420_v18  ;;  %3837 = vmatmul.mubr.bf16.gmra.mxu0 %v9631_v12  ;;  %v3124_v10 = vmax.f32 %v2842_v15, 0.0 }
 0x295   : > { %v2844_v9 = vpop.f32.mrf.mxu1  ;;  %3846 = vmatprep.mubr.bf16.mxu0 %v10971_v39 }
 0x296   : > { %v3127_v16 = vmax.f32 %v2853_v61, 0.0  ;;  %v2845_v19 = vadd.f32 %v9420_v18, %v2844_v9 }
 0x297   : > { %v8357_v22 = vpop.f32.mrf.mxu1  ;;  %4450 = vmatmul.mubr.bf16.gmra.mxu1 %v9683_v58 }
 0x298   : > { %v9788_v30 = vpack.c.bf16 %v3127_v16, %v3126_v14  ;;  %v3125_v32 = vmax.f32 %v2845_v19, 0.0  ;;  %4459 = vmatprep.mubr.bf16.mxu1 %v10971_v39  ;;  %v2866_v20 = vadd.f32 %v8357_v22, %v9420_v18 }
 0x299   : > { %v2857_v44 = vpop.f32.mrf.mxu1 }
 0x29a   : > { %11098 = vst [vmem:[#allocation43_spill] sm:$0xff] %v9788_v30  ;;  %v9791_v17 = vpack.c.bf16 %v3125_v32, %v3124_v10  ;;  %v2858_v6 = vadd.f32 %v9420_v18, %v2857_v44  ;;  %v3130_v1 = vmax.f32 %v2866_v20, 0.0 }
 0x29b   : > { %v8358_v13 = vpop.f32.mrf.mxu1 }
 0x29c   : > { %11099 = vst [vmem:[#allocation44_spill] sm:$0xff] %v9791_v17  ;;  %v2869_v45 = vadd.f32 %v8358_v13, %v9420_v18  ;;  %3847 = vmatmul.mubr.bf16.gmra.mxu0 %v9624_v41  ;;  %v3128_v37 = vmax.f32 %v2858_v6, 0.0 }
 0x29d   : > { %v2860_v47 = vpop.f32.mrf.mxu1  ;;  %3856 = vmatprep.mubr.bf16.mxu0 %v10971_v39 }
 0x29e   : > { %v3131_v48 = vmax.f32 %v2869_v45, 0.0  ;;  %v2861_v49 = vadd.f32 %v9420_v18, %v2860_v47 }
 0x29f   : > { %v8361_v46 = vpop.f32.mrf.mxu1  ;;  %4460 = vmatmul.mubr.bf16.gmra.mxu1 %v9699_v23 }
 0x2a0   : > { %v9800_v11 = vpack.c.bf16 %v3131_v48, %v3130_v1  ;;  %v3129_v50 = vmax.f32 %v2861_v49, 0.0  ;;  %4469 = vmatprep.mubr.bf16.mxu1 %v10971_v39  ;;  %v2882_v9 = vadd.f32 %v8361_v46, %v9420_v18  ;;  %v9820_v48 = vld [vmem:[%s10922_s4] ss:$0 sm:$0xff] }
 0x2a1   : > { %v2873_v15 = vpop.f32.mrf.mxu1 }
 0x2a2   : > { %11100 = vst [vmem:[#allocation45_spill] sm:$0xff] %v9800_v11  ;;  %v9803_v61 = vpack.c.bf16 %v3129_v50, %v3128_v37  ;;  %v2874_v16 = vadd.f32 %v9420_v18, %v2873_v15  ;;  %v3134_v10 = vmax.f32 %v2882_v9, 0.0 }
 0x2a3   : > { %v8362_v14 = vpop.f32.mrf.mxu1 }
 0x2a4   : > { %11101 = vst [vmem:[#allocation46_spill] sm:$0xff] %v9803_v61  ;;  %v2885_v19 = vadd.f32 %v8362_v14, %v9420_v18  ;;  %3857 = vmatmul.mubr.bf16.gmra.mxu0 %v9649_v62  ;;  %v3132_v13 = vmax.f32 %v2874_v16, 0.0 }
 0x2a5   : > { %v2876_v22 = vpop.f32.mrf.mxu1  ;;  %3866 = vmatprep.mubr.bf16.mxu0 %v10971_v39 }
 0x2a6   : > { %v3135_v32 = vmax.f32 %v2885_v19, 0.0  ;;  %v2877_v44 = vadd.f32 %v9420_v18, %v2876_v22 }
 0x2a7   : > { %v8365_v20 = vpop.f32.mrf.mxu1  ;;  %4470 = vmatmul.mubr.bf16.gmra.mxu1 %v9717_v53 }
 0x2a8   : > { %v9812_v6 = vpack.c.bf16 %v3135_v32, %v3134_v10  ;;  %v3133_v45 = vmax.f32 %v2877_v44, 0.0  ;;  %4479 = vmatprep.mubr.bf16.mxu1 %v10971_v39  ;;  %v2898_v49 = vadd.f32 %v9820_v48, %v8365_v20 }
 0x2a9   : > { %v2889_v47 = vpop.f32.mrf.mxu1 }
 0x2aa   : > { %11102 = vst [vmem:[#allocation47_spill] sm:$0xff] %v9812_v6  ;;  %v9815_v1 = vpack.c.bf16 %v3133_v45, %v3132_v13  ;;  %v2890_v46 = vadd.f32 %v9820_v48, %v2889_v47  ;;  %v3138_v15 = vmax.f32 %v2898_v49, 0.0 }
 0x2ab   : > { %v8366_v18 = vpop.f32.mrf.mxu1 }
 0x2ac   : > { %11103 = vst [vmem:[#allocation48_spill] sm:$0xff] %v9815_v1  ;;  %v2901_v37 = vadd.f32 %v9820_v48, %v8366_v18  ;;  %3867 = vmatmul.mubr.bf16.gmra.mxu0 %v9642_v25  ;;  %v3136_v19 = vmax.f32 %v2890_v46, 0.0 }
 0x2ad   : > { %v2892_v50 = vpop.f32.mrf.mxu1  ;;  %3876 = vmatprep.mubr.bf16.mxu0 %v10971_v39 }
 0x2ae   : > { %v3139_v9 = vmax.f32 %v2901_v37, 0.0  ;;  %v2893_v14 = vadd.f32 %v9820_v48, %v2892_v50 }
 0x2af   : > { %v8369_v16 = vpop.f32.mrf.mxu1  ;;  %4480 = vmatmul.mubr.bf16.gmra.mxu1 %v9575_v31 }
 0x2b0   : > { %v9829_v22 = vpack.c.bf16 %v3139_v9, %v3138_v15  ;;  %v3137_v10 = vmax.f32 %v2893_v14, 0.0  ;;  %4489 = vmatprep.mubr.bf16.mxu1 %v10971_v39  ;;  %v2914_v20 = vadd.f32 %v9820_v48, %v8369_v16  ;;  %v3266_v15 = vld [vmem:[%s10923_s5 + $0xd0] sm:$0xff]  ;;  %v3267_v14 = vld [vmem:[%s10923_s5 + $0xd8] sm:$0xff] }
 0x2b1   : > { %v2905_v32 = vpop.f32.mrf.mxu1  ;;  %v3270_v9 = vld [vmem:[%s10923_s5 + $0xf0] sm:$0xff] }
 0x2b2   : > { %11104 = vst [vmem:[#allocation49_spill] sm:$0xff] %v9829_v22  ;;  %v9832_v44 = vpack.c.bf16 %v3137_v10, %v3136_v19  ;;  %v2906_v45 = vadd.f32 %v9820_v48, %v2905_v32  ;;  %v3142_v18 = vmax.f32 %v2914_v20, 0.0  ;;  %v3271_v32 = vld [vmem:[%s10923_s5 + $0xf8] sm:$0xff] }
 0x2b3   : > { %v8370_v13 = vpop.f32.mrf.mxu1 }
 0x2b4   : > { %11105 = vst [vmem:[#allocation50_spill] sm:$0xff] %v9832_v44  ;;  %v2917_v47 = vadd.f32 %v9820_v48, %v8370_v13  ;;  %3877 = vmatmul.mubr.bf16.gmra.mxu0 %v9667_v28  ;;  %v3140_v16 = vmax.f32 %v2906_v45, 0.0  ;;  %v7951_v13 = vcombine.low %v3266_v15, %v3270_v9 }
 0x2b5   : > { %v2908_v49 = vpop.f32.mrf.mxu1  ;;  %3886 = vmatprep.mubr.bf16.mxu0 %v10971_v39 }
 0x2b6   : > { %v3143_v46 = vmax.f32 %v2917_v47, 0.0  ;;  %v2909_v37 = vadd.f32 %v9820_v48, %v2908_v49  ;;  %v7952_v47 = vcombine.high %v3266_v15, %v3270_v9  ;;  %v7953_v49 = vcombine.low %v3267_v14, %v3271_v32 }
 0x2b7   : > { %v8373_v50 = vpop.f32.mrf.mxu1  ;;  %4490 = vmatmul.mubr.bf16.gmra.mxu1 %v9613_v7  ;;  %v7954_v7 = vcombine.high %v3267_v14, %v3271_v32 }
 0x2b8   : > { %v9850_v19 = vpack.c.bf16 %v3143_v46, %v3142_v18  ;;  %v3141_v10 = vmax.f32 %v2909_v37, 0.0  ;;  %4499 = vmatprep.mubr.bf16.mxu1 %v10971_v39  ;;  %v2930_v53 = vadd.f32 %v9820_v48, %v8373_v50  ;;  %4978 = vmatprep.subr.bf16.mxu0 %v7952_v47 }
 0x2b9   : > { %v2921_v20 = vpop.f32.mrf.mxu1  ;;  %5651 = vmatprep.subr.bf16.mxu1 %v7954_v7  ;;  %4979 = vmatpush1.bf16.msra.mxu0 %v7951_v13 }
 0x2ba   : > { %11106 = vst [vmem:[#allocation51_spill] sm:$0xff] %v9850_v19  ;;  %v9856_v31 = vpack.c.bf16 %v3141_v10, %v3140_v16  ;;  %v2922_v45 = vadd.f32 %v9820_v48, %v2921_v20  ;;  %5652 = vmatpush1.bf16.msra.mxu1 %v7953_v49  ;;  %v3146_v37 = vmax.f32 %v2930_v53, 0.0 }
 0x2bb   : > { %v8374_v23 = vpop.f32.mrf.mxu1 }
 0x2bc   : > { %11107 = vst [vmem:[#allocation52_spill] sm:$0xff] %v9856_v31  ;;  %v2933_v18 = vadd.f32 %v9820_v48, %v8374_v23  ;;  %3887 = vmatmul.mubr.bf16.gmra.mxu0 %v9660_v2  ;;  %v3144_v50 = vmax.f32 %v2922_v45, 0.0 }
 0x2bd   : > { %v2924_v46 = vpop.f32.mrf.mxu1  ;;  %3896 = vmatprep.mubr.bf16.mxu0 %v10971_v39 }
 0x2be   : > { %v3147_v15 = vmax.f32 %v2933_v18, 0.0  ;;  %v2925_v9 = vadd.f32 %v9820_v48, %v2924_v46 }
 0x2bf   : > { %v8377_v14 = vpop.f32.mrf.mxu1  ;;  %4500 = vmatmul.mubr.bf16.gmra.mxu1 %v9606_v8 }
 0x2c0   : > { %v9865_v7 = vpack.c.bf16 %v3147_v15, %v3146_v37  ;;  %v3145_v16 = vmax.f32 %v2925_v9, 0.0  ;;  %4509 = vmatprep.mubr.bf16.mxu1 %v10971_v39  ;;  %v2946_v32 = vadd.f32 %v9820_v48, %v8377_v14 }
 0x2c1   : > { %v2937_v23 = vpop.f32.mrf.mxu1 }
 0x2c2   : > { %11108 = vst [vmem:[#allocation53_spill] sm:$0xff] %v9865_v7  ;;  %v9868_v10 = vpack.c.bf16 %v3145_v16, %v3144_v50  ;;  %v2938_v53 = vadd.f32 %v9820_v48, %v2937_v23  ;;  %v3150_v45 = vmax.f32 %v2946_v32, 0.0 }
 0x2c3   : > { %v8378_v20 = vpop.f32.mrf.mxu1 }
 0x2c4   : > { %11109 = vst [vmem:[#allocation54_spill] sm:$0xff] %v9868_v10  ;;  %v2949_v13 = vadd.f32 %v9820_v48, %v8378_v20  ;;  %v3658_v47 = vpop.f32.mrf.mxu0  ;;  %3897 = vmatmul.mubr.bf16.gmra.mxu0 %v9685_v34  ;;  %v3148_v9 = vmax.f32 %v2938_v53, 0.0 }
 0x2c5   : > { %v2940_v49 = vpop.f32.mrf.mxu1  ;;  %3906 = vmatprep.mubr.bf16.mxu0 %v10971_v39 }
 0x2c6   : > { %v3151_v18 = vmax.f32 %v2949_v13, 0.0  ;;  %v2941_v46 = vadd.f32 %v9820_v48, %v2940_v49  ;;  %v3660_v37 = vpop.f32.mrf.mxu0 }
 0x2c7   : > { %v8381_v15 = vpop.f32.mrf.mxu1  ;;  %4510 = vmatmul.mubr.bf16.gmra.mxu1 %v9631_v12 }
 0x2c8   : > { %v9877_v14 = vpack.c.bf16 %v3151_v18, %v3150_v45  ;;  %v3149_v50 = vmax.f32 %v2941_v46, 0.0  ;;  %v3662_v16 = vpop.f32.mrf.mxu0  ;;  %4519 = vmatprep.mubr.bf16.mxu1 %v10971_v39  ;;  %v2962_v32 = vadd.f32 %v9820_v48, %v8381_v15 }
 0x2c9   : > { %v6316_v23 = vmax.f32 %v3658_v47, %v3662_v16  ;;  %v2953_v20 = vpop.f32.mrf.mxu1 }
 0x2ca   : > { %11110 = vst [vmem:[#allocation55_spill] sm:$0xff] %v9877_v14  ;;  %v9880_v8 = vpack.c.bf16 %v3149_v50, %v3148_v9  ;;  %v3664_v13 = vpop.f32.mrf.mxu0  ;;  %v2954_v29 = vadd.f32 %v9820_v48, %v2953_v20  ;;  %v3154_v47 = vmax.f32 %v2962_v32, 0.0 }
 0x2cb   : > { %v6385_v58 = vmax.f32 %v3660_v37, %v3664_v13  ;;  %v8382_v49 = vpop.f32.mrf.mxu1 }
 0x2cc   : > { %11111 = vst [vmem:[#allocation56_spill] sm:$0xff] %v9880_v8  ;;  %v2965_v12 = vadd.f32 %v9820_v48, %v8382_v49  ;;  %v3668_v53 = vpop.f32.mrf.mxu0  ;;  %3907 = vmatmul.mubr.bf16.gmra.mxu0 %v9678_v56  ;;  %v3152_v37 = vmax.f32 %v2954_v29, 0.0 }
 0x2cd   : > { %v6317_v45 = vmax.f32 %v6316_v23, %v3668_v53  ;;  %v2956_v18 = vpop.f32.mrf.mxu1  ;;  %3916 = vmatprep.mubr.bf16.mxu0 %v10971_v39 }
 0x2ce   : > { %v3155_v46 = vmax.f32 %v2965_v12, 0.0  ;;  %v2957_v9 = vadd.f32 %v9820_v48, %v2956_v18  ;;  %v3670_v50 = vpop.f32.mrf.mxu0 }
 0x2cf   : > { %v6386_v15 = vmax.f32 %v6385_v58, %v3670_v50  ;;  %v8385_v16 = vpop.f32.mrf.mxu1  ;;  %4520 = vmatmul.mubr.bf16.gmra.mxu1 %v9624_v41 }
 0x2d0   : > { %v9889_v20 = vpack.c.bf16 %v3155_v46, %v3154_v47  ;;  %v3153_v13 = vmax.f32 %v2957_v9, 0.0  ;;  %v3672_v49 = vpop.f32.mrf.mxu0  ;;  %4529 = vmatprep.mubr.bf16.mxu1 %v10971_v39  ;;  %v2978_v12 = vadd.f32 %v9820_v48, %v8385_v16 }
 0x2d1   : > { %v6318_v23 = vmax.f32 %v6317_v45, %v3672_v49  ;;  %v2969_v53 = vpop.f32.mrf.mxu1 }
 0x2d2   : > { %11112 = vst [vmem:[#allocation57_spill] sm:$0xff] %v9889_v20  ;;  %v9892_v60 = vpack.c.bf16 %v3153_v13, %v3152_v37  ;;  %v3674_v32 = vpop.f32.mrf.mxu0  ;;  %v2970_v58 = vadd.f32 %v9820_v48, %v2969_v53  ;;  %v3158_v45 = vmax.f32 %v2978_v12, 0.0 }
 0x2d3   : > { %v6387_v18 = vmax.f32 %v6386_v15, %v3674_v32  ;;  %v8386_v43 = vpop.f32.mrf.mxu1 }
 0x2d4   : > { %11113 = vst [vmem:[#allocation58_spill] sm:$0xff] %v9892_v60  ;;  %v2981_v50 = vadd.f32 %v9820_v48, %v8386_v43  ;;  %v3678_v29 = vpop.f32.mrf.mxu0  ;;  %3917 = vmatmul.mubr.bf16.gmra.mxu0 %v9703_v26  ;;  %v3156_v15 = vmax.f32 %v2970_v58, 0.0 }
 0x2d5   : > { %v6319_v47 = vmax.f32 %v6318_v23, %v3678_v29  ;;  %v2972_v46 = vpop.f32.mrf.mxu1  ;;  %3926 = vmatprep.mubr.bf16.mxu0 %v10971_v39 }
 0x2d6   : > { %v3159_v9 = vmax.f32 %v2981_v50, 0.0  ;;  %v2973_v37 = vadd.f32 %v9820_v48, %v2972_v46  ;;  %v3680_v13 = vpop.f32.mrf.mxu0 }
 0x2d7   : > { %v6388_v16 = vmax.f32 %v6387_v18, %v3680_v13  ;;  %v8389_v49 = vpop.f32.mrf.mxu1  ;;  %4530 = vmatmul.mubr.bf16.gmra.mxu1 %v9649_v62 }
 0x2d8   : > { %v9901_v53 = vpack.c.bf16 %v3159_v9, %v3158_v45  ;;  %v3157_v43 = vmax.f32 %v2973_v37, 0.0  ;;  %v3682_v32 = vpop.f32.mrf.mxu0  ;;  %4539 = vmatprep.mubr.bf16.mxu1 %v10971_v39  ;;  %v2994_v12 = vadd.f32 %v9820_v48, %v8389_v49 }
 0x2d9   : > { %v6320_v23 = vmax.f32 %v6319_v47, %v3682_v32  ;;  %v2985_v29 = vpop.f32.mrf.mxu1 }
 0x2da   : > { %11114 = vst [vmem:[#allocation59_spill] sm:$0xff] %v9901_v53  ;;  %v9904_v41 = vpack.c.bf16 %v3157_v43, %v3156_v15  ;;  %v3684_v50 = vpop.f32.mrf.mxu0  ;;  %v2986_v18 = vadd.f32 %v9820_v48, %v2985_v29  ;;  %v3162_v47 = vmax.f32 %v2994_v12, 0.0 }
 0x2db   : > { %v6389_v46 = vmax.f32 %v6388_v16, %v3684_v50  ;;  %v8390_v33 = vpop.f32.mrf.mxu1 }
 0x2dc   : > { %11115 = vst [vmem:[#allocation60_spill] sm:$0xff] %v9904_v41  ;;  %v2997_v13 = vadd.f32 %v9820_v48, %v8390_v33  ;;  %v3688_v58 = vpop.f32.mrf.mxu0  ;;  %3927 = vmatmul.mubr.bf16.gmra.mxu0 %v9696_v0  ;;  %v3160_v16 = vmax.f32 %v2986_v18, 0.0 }
 0x2dd   : > { %v6321_v45 = vmax.f32 %v6320_v23, %v3688_v58  ;;  %v2988_v9 = vpop.f32.mrf.mxu1  ;;  %3936 = vmatprep.mubr.bf16.mxu0 %v10971_v39 }
 0x2de   : > { %v3163_v37 = vmax.f32 %v2997_v13, 0.0  ;;  %v2989_v15 = vadd.f32 %v9820_v48, %v2988_v9  ;;  %v3690_v43 = vpop.f32.mrf.mxu0 }
 0x2df   : > { %v6390_v49 = vmax.f32 %v6389_v46, %v3690_v43  ;;  %v8393_v32 = vpop.f32.mrf.mxu1  ;;  %4540 = vmatmul.mubr.bf16.gmra.mxu1 %v9642_v25 }
 0x2e0   : > { %v9913_v29 = vpack.c.bf16 %v3163_v37, %v3162_v47  ;;  %v3161_v33 = vmax.f32 %v2989_v15, 0.0  ;;  %v3692_v50 = vpop.f32.mrf.mxu0  ;;  %4549 = vmatprep.mubr.bf16.mxu1 %v10971_v39  ;;  %v3010_v12 = vadd.f32 %v9820_v48, %v8393_v32 }
 0x2e1   : > { %v6322_v23 = vmax.f32 %v6321_v45, %v3692_v50  ;;  %v3001_v58 = vpop.f32.mrf.mxu1 }
 0x2e2   : > { %11116 = vst [vmem:[#allocation61_spill] sm:$0xff] %v9913_v29  ;;  %v9916_v62 = vpack.c.bf16 %v3161_v33, %v3160_v16  ;;  %v3694_v13 = vpop.f32.mrf.mxu0  ;;  %v3002_v46 = vadd.f32 %v9820_v48, %v3001_v58  ;;  %v3166_v45 = vmax.f32 %v3010_v12, 0.0 }
 0x2e3   : > { %v6391_v9 = vmax.f32 %v6390_v49, %v3694_v13  ;;  %v8394_v40 = vpop.f32.mrf.mxu1 }
 0x2e4   : > { %11117 = vst [vmem:[#allocation62_spill] sm:$0xff] %v9916_v62  ;;  %v3013_v43 = vadd.f32 %v9820_v48, %v8394_v40  ;;  %v3698_v18 = vpop.f32.mrf.mxu0  ;;  %3937 = vmatmul.mubr.bf16.gmra.mxu0 %v9719_v54  ;;  %v3164_v49 = vmax.f32 %v3002_v46, 0.0 }
 0x2e5   : > { %v6323_v47 = vmax.f32 %v6322_v23, %v3698_v18  ;;  %v3004_v37 = vpop.f32.mrf.mxu1  ;;  %3946 = vmatprep.mubr.bf16.mxu0 %v10971_v39 }
 0x2e6   : > { %v3167_v15 = vmax.f32 %v3013_v43, 0.0  ;;  %v3005_v16 = vadd.f32 %v9820_v48, %v3004_v37  ;;  %v3700_v33 = vpop.f32.mrf.mxu0 }
 0x2e7   : > { %v6392_v32 = vmax.f32 %v6391_v9, %v3700_v33  ;;  %v8397_v50 = vpop.f32.mrf.mxu1  ;;  %4550 = vmatmul.mubr.bf16.gmra.mxu1 %v9667_v28 }
 0x2e8   : > { %v9925_v58 = vpack.c.bf16 %v3167_v15, %v3166_v45  ;;  %v3165_v40 = vmax.f32 %v3005_v16, 0.0  ;;  %v3702_v13 = vpop.f32.mrf.mxu0  ;;  %4559 = vmatprep.mubr.bf16.mxu1 %v10971_v39  ;;  %v3026_v12 = vadd.f32 %v9820_v48, %v8397_v50 }
 0x2e9   : > { %v6324_v23 = vmax.f32 %v6323_v47, %v3702_v13  ;;  %v3017_v18 = vpop.f32.mrf.mxu1 }
 0x2ea   : > { %11118 = vst [vmem:[#allocation63_spill] sm:$0xff] %v9925_v58  ;;  %v9928_v25 = vpack.c.bf16 %v3165_v40, %v3164_v49  ;;  %v3704_v43 = vpop.f32.mrf.mxu0  ;;  %v3018_v9 = vadd.f32 %v9820_v48, %v3017_v18  ;;  %v3170_v47 = vmax.f32 %v3026_v12, 0.0 }
 0x2eb   : > { %v6393_v37 = vmax.f32 %v6392_v32, %v3704_v43  ;;  %v8398_v5 = vpop.f32.mrf.mxu1 }
 0x2ec   : > { %11119 = vst [vmem:[#allocation64_spill] sm:$0xff] %v9928_v25  ;;  %v3029_v33 = vadd.f32 %v9820_v48, %v8398_v5  ;;  %v3708_v46 = vpop.f32.mrf.mxu0  ;;  %3947 = vmatmul.mubr.bf16.gmra.mxu0 %v9714_v4  ;;  %v3168_v32 = vmax.f32 %v3018_v9, 0.0 }
 0x2ed   : > { %v6325_v45 = vmax.f32 %v6324_v23, %v3708_v46  ;;  %v3020_v15 = vpop.f32.mrf.mxu1  ;;  %3956 = vmatprep.mubr.bf16.mxu0 %v10971_v39 }
 0x2ee   : > { %v3171_v16 = vmax.f32 %v3029_v33, 0.0  ;;  %v3021_v49 = vadd.f32 %v9820_v48, %v3020_v15  ;;  %v3710_v40 = vpop.f32.mrf.mxu0 }
 0x2ef   : > { %v6394_v50 = vmax.f32 %v6393_v37, %v3710_v40  ;;  %v8401_v13 = vpop.f32.mrf.mxu1  ;;  %4560 = vmatmul.mubr.bf16.gmra.mxu1 %v9660_v2 }
 0x2f0   : > { %v9937_v18 = vpack.c.bf16 %v3171_v16, %v3170_v47  ;;  %v3169_v5 = vmax.f32 %v3021_v49, 0.0  ;;  %v3712_v43 = vpop.f32.mrf.mxu0  ;;  %4569 = vmatprep.mubr.bf16.mxu1 %v10971_v39  ;;  %v3042_v12 = vadd.f32 %v9820_v48, %v8401_v13 }
 0x2f1   : > { %v6326_v23 = vmax.f32 %v6325_v45, %v3712_v43  ;;  %v3033_v46 = vpop.f32.mrf.mxu1 }
 0x2f2   : > { %11120 = vst [vmem:[#allocation65_spill] sm:$0xff] %v9937_v18  ;;  %v9940_v28 = vpack.c.bf16 %v3169_v5, %v3168_v32  ;;  %v3714_v33 = vpop.f32.mrf.mxu0  ;;  %v3034_v15 = vadd.f32 %v9820_v48, %v3033_v46  ;;  %v3174_v45 = vmax.f32 %v3042_v12, 0.0 }
 0x2f3   : > { %v6395_v37 = vmax.f32 %v6394_v50, %v3714_v33  ;;  %v8402_v40 = vpop.f32.mrf.mxu1  ;;  %v3258_v50 = vld [vmem:[%s10923_s5 + $0x90] sm:$0xff] }
 0x2f4   : > { %11121 = vst [vmem:[#allocation66_spill] sm:$0xff] %v9940_v28  ;;  %v3045_v2 = vadd.f32 %v9820_v48, %v8402_v40  ;;  %v3718_v9 = vpop.f32.mrf.mxu0  ;;  %3957 = vmatmul.mubr.bf16.gmra.mxu0 %v9731_v21  ;;  %v3172_v13 = vmax.f32 %v3034_v15, 0.0 }
 0x2f5   : > { %v6327_v47 = vmax.f32 %v6326_v23, %v3718_v9  ;;  %v3036_v16 = vpop.f32.mrf.mxu1  ;;  %3966 = vmatprep.mubr.bf16.mxu0 %v10971_v39  ;;  %v3262_v23 = vld [vmem:[%s10923_s5 + $0xb0] sm:$0xff] }
 0x2f6   : > { %v3175_v49 = vmax.f32 %v3045_v2, 0.0  ;;  %v3037_v32 = vadd.f32 %v9820_v48, %v3036_v16  ;;  %v3720_v5 = vpop.f32.mrf.mxu0  ;;  %v3259_v2 = vld [vmem:[%s10923_s5 + $0x98] sm:$0xff]  ;;  %v7943_v33 = vcombine.low %v3258_v50, %v3262_v23  ;;  %v7944_v15 = vcombine.high %v3258_v50, %v3262_v23 }
 0x2f7   : > { %v6396_v43 = vmax.f32 %v6395_v37, %v3720_v5  ;;  %v4331_v57 = vpop.f32.mrf.mxu1  ;;  %4570 = vmatmul.mubr.bf16.gmra.mxu1 %v9685_v34  ;;  %v3263_v37 = vld [vmem:[%s10923_s5 + $0xb8] sm:$0xff] }
 0x2f8   : > { %v9958_v46 = vpack.c.bf16 %v3175_v49, %v3174_v45  ;;  %v3173_v48 = vmax.f32 %v3037_v32, 0.0  ;;  %v3722_v12 = vpop.f32.mrf.mxu0  ;;  %4579 = vmatprep.mubr.bf16.mxu1 %v10971_v39  ;;  %v7945_v16 = vcombine.low %v3259_v2, %v3263_v37  ;;  %v7946_v5 = vcombine.high %v3259_v2, %v3263_v37  ;;  %4980 = vmatprep.subr.bf16.mxu0 %v7944_v15 }
 0x2f9   : > { %v6328_v40 = vmax.f32 %v6327_v47, %v3722_v12  ;;  %v4333_v9 = vpop.f32.mrf.mxu1  ;;  %4981 = vmatpush1.bf16.msra.mxu0 %v7943_v33 }
 0x2fa   : > { %11122 = vst [vmem:[#allocation67_spill] sm:$0xff] %v9958_v46  ;;  %v9964_v34 = vpack.c.bf16 %v3173_v48, %v3172_v13  ;;  %v3724_v27 = vpop.f32.mrf.mxu0  ;;  %5653 = vmatprep.subr.bf16.mxu1 %v7946_v5 }
 0x2fb   : > { %v6397_v45 = vmax.f32 %v6396_v43, %v3724_v27  ;;  %v4335_v49 = vpop.f32.mrf.mxu1  ;;  %5654 = vmatpush1.bf16.msra.mxu1 %v7945_v16 }
 0x2fc   : > { %11123 = vst [vmem:[#allocation68_spill] sm:$0xff] %v9964_v34  ;;  %v6454_v32 = vmax.f32 %v4331_v57, %v4335_v49  ;;  %v3728_v39 = vpop.f32.mrf.mxu0  ;;  %3967 = vmatmul.mubr.bf16.gmra.mxu0 %v9728_v35 }
 0x2fd   : > { %v6329_v50 = vmax.f32 %v6328_v40, %v3728_v39  ;;  %v4337_v23 = vpop.f32.mrf.mxu1  ;;  %3976 = vmatprep.mubr.bf16.mxu0 %v11124_v59 }
 0x2fe   : > { %v6523_v47 = vmax.f32 %v4333_v9, %v4337_v23  ;;  %v3730_v12 = vpop.f32.mrf.mxu0 }
 0x2ff   : > { %v6398_v2 = vmax.f32 %v6397_v45, %v3730_v12  ;;  %v4341_v13 = vpop.f32.mrf.mxu1  ;;  %4580 = vmatmul.mubr.bf16.gmra.mxu1 %v9678_v56 }
 0x300   : > { %v6455_v48 = vmax.f32 %v6454_v32, %v4341_v13  ;;  %v3732_v27 = vpop.f32.mrf.mxu0  ;;  %4589 = vmatprep.mubr.bf16.mxu1 %v11124_v59 }
 0x301   : > { %v6330_v43 = vmax.f32 %v6329_v50, %v3732_v27  ;;  %v4343_v57 = vpop.f32.mrf.mxu1 }
 0x302   : > { %v6524_v33 = vmax.f32 %v6523_v47, %v4343_v57  ;;  %v3734_v15 = vpop.f32.mrf.mxu0 }
 0x303   : > { %v6399_v37 = vmax.f32 %v6398_v2, %v3734_v15  ;;  %v4345_v16 = vpop.f32.mrf.mxu1 }
 0x304   : > { %v6456_v39 = vmax.f32 %v6455_v48, %v4345_v16  ;;  %v3738_v40 = vpop.f32.mrf.mxu0  ;;  %3977 = vmatmul.mubr.bf16.gmra.mxu0 %v9755_v63 }
 0x305   : > { %v6331_v9 = vmax.f32 %v6330_v43, %v3738_v40  ;;  %v4347_v5 = vpop.f32.mrf.mxu1  ;;  %3986 = vmatprep.mubr.bf16.mxu0 %v11124_v59 }
 0x306   : > { %v6525_v45 = vmax.f32 %v6524_v33, %v4347_v5  ;;  %v3740_v49 = vpop.f32.mrf.mxu0 }
 0x307   : > { %v6400_v32 = vmax.f32 %v6399_v37, %v3740_v49  ;;  %v4351_v23 = vpop.f32.mrf.mxu1  ;;  %4590 = vmatmul.mubr.bf16.gmra.mxu1 %v9703_v26 }
 0x308   : > { %v6457_v50 = vmax.f32 %v6456_v39, %v4351_v23  ;;  %v3742_v12 = vpop.f32.mrf.mxu0  ;;  %4599 = vmatprep.mubr.bf16.mxu1 %v11124_v59 }
 0x309   : > { %v6332_v47 = vmax.f32 %v6331_v9, %v3742_v12  ;;  %v4353_v2 = vpop.f32.mrf.mxu1 }
 0x30a   : > { %v6526_v13 = vmax.f32 %v6525_v45, %v4353_v2  ;;  %v3744_v48 = vpop.f32.mrf.mxu0 }
 0x30b   : > { %v6401_v27 = vmax.f32 %v6400_v32, %v3744_v48  ;;  %v4355_v57 = vpop.f32.mrf.mxu1 }
 0x30c   : > { %v6458_v43 = vmax.f32 %v6457_v50, %v4355_v57  ;;  %v3748_v15 = vpop.f32.mrf.mxu0  ;;  %3987 = vmatmul.mubr.bf16.gmra.mxu0 %v9752_v55 }
 0x30d   : > { %v6333_v33 = vmax.f32 %v6332_v47, %v3748_v15  ;;  %v4357_v16 = vpop.f32.mrf.mxu1  ;;  %3996 = vmatprep.mubr.bf16.mxu0 %v11124_v59 }
 0x30e   : > { %v6527_v37 = vmax.f32 %v6526_v13, %v4357_v16  ;;  %v3750_v40 = vpop.f32.mrf.mxu0 }
 0x30f   : > { %v6402_v39 = vmax.f32 %v6401_v27, %v3750_v40  ;;  %v4361_v5 = vpop.f32.mrf.mxu1  ;;  %4600 = vmatmul.mubr.bf16.gmra.mxu1 %v9696_v0 }
 0x310   : > { %v6459_v9 = vmax.f32 %v6458_v43, %v4361_v5  ;;  %v3752_v49 = vpop.f32.mrf.mxu0  ;;  %4609 = vmatprep.mubr.bf16.mxu1 %v11124_v59 }
 0x311   : > { %v6334_v45 = vmax.f32 %v6333_v33, %v3752_v49  ;;  %v4363_v32 = vpop.f32.mrf.mxu1 }
 0x312   : > { %v6528_v23 = vmax.f32 %v6527_v37, %v4363_v32  ;;  %v3754_v50 = vpop.f32.mrf.mxu0 }
 0x313   : > { %v6403_v12 = vmax.f32 %v6402_v39, %v3754_v50  ;;  %v4365_v2 = vpop.f32.mrf.mxu1 }
 0x314   : > { %v6460_v47 = vmax.f32 %v6459_v9, %v4365_v2  ;;  %v3758_v48 = vpop.f32.mrf.mxu0  ;;  %3997 = vmatmul.mubr.bf16.gmra.mxu0 %v9767_v42 }
 0x315   : > { %v6335_v13 = vmax.f32 %v6334_v45, %v3758_v48  ;;  %v4367_v57 = vpop.f32.mrf.mxu1  ;;  %4006 = vmatprep.mubr.bf16.mxu0 %v11124_v59 }
 0x316   : > { %v6529_v27 = vmax.f32 %v6528_v23, %v4367_v57  ;;  %v3760_v15 = vpop.f32.mrf.mxu0 }
 0x317   : > { %v6404_v43 = vmax.f32 %v6403_v12, %v3760_v15  ;;  %v4371_v16 = vpop.f32.mrf.mxu1  ;;  %4610 = vmatmul.mubr.bf16.gmra.mxu1 %v9719_v54 }
 0x318   : > { %v6461_v33 = vmax.f32 %v6460_v47, %v4371_v16  ;;  %v3762_v40 = vpop.f32.mrf.mxu0  ;;  %4619 = vmatprep.mubr.bf16.mxu1 %v11124_v59 }
 0x319   : > { %v6336_v37 = vmax.f32 %v6335_v13, %v3762_v40  ;;  %v4373_v39 = vpop.f32.mrf.mxu1 }
 0x31a   : > { %v6530_v5 = vmax.f32 %v6529_v27, %v4373_v39  ;;  %v3764_v9 = vpop.f32.mrf.mxu0 }
 0x31b   : > { %v6405_v49 = vmax.f32 %v6404_v43, %v3764_v9  ;;  %v4375_v32 = vpop.f32.mrf.mxu1 }
 0x31c   : > { %v6462_v45 = vmax.f32 %v6461_v33, %v4375_v32  ;;  %v3768_v50 = vpop.f32.mrf.mxu0  ;;  %4007 = vmatmul.mubr.bf16.gmra.mxu0 %v9764_v24 }
 0x31d   : > { %v6337_v23 = vmax.f32 %v6336_v37, %v3768_v50  ;;  %v4377_v2 = vpop.f32.mrf.mxu1  ;;  %4016 = vmatprep.mubr.bf16.mxu0 %v11124_v59 }
 0x31e   : > { %v6531_v12 = vmax.f32 %v6530_v5, %v4377_v2  ;;  %v3770_v48 = vpop.f32.mrf.mxu0 }
 0x31f   : > { %v6406_v47 = vmax.f32 %v6405_v49, %v3770_v48  ;;  %v4381_v57 = vpop.f32.mrf.mxu1  ;;  %4620 = vmatmul.mubr.bf16.gmra.mxu1 %v9714_v4 }
 0x320   : > { %v6463_v13 = vmax.f32 %v6462_v45, %v4381_v57  ;;  %v3772_v15 = vpop.f32.mrf.mxu0  ;;  %4629 = vmatprep.mubr.bf16.mxu1 %v11124_v59 }
 0x321   : > { %v6338_v27 = vmax.f32 %v6337_v23, %v3772_v15  ;;  %v4383_v43 = vpop.f32.mrf.mxu1 }
 0x322   : > { %v6532_v16 = vmax.f32 %v6531_v12, %v4383_v43  ;;  %v3774_v33 = vpop.f32.mrf.mxu0 }
 0x323   : > { %v6407_v40 = vmax.f32 %v6406_v47, %v3774_v33  ;;  %v4385_v39 = vpop.f32.mrf.mxu1 }
 0x324   : > { %v6464_v37 = vmax.f32 %v6463_v13, %v4385_v39  ;;  %v3778_v9 = vpop.f32.mrf.mxu0  ;;  %4017 = vmatmul.mubr.bf16.gmra.mxu0 %v9779_v38 }
 0x325   : > { %v6339_v5 = vmax.f32 %v6338_v27, %v3778_v9  ;;  %v4387_v32 = vpop.f32.mrf.mxu1  ;;  %4026 = vmatprep.mubr.bf16.mxu0 %v11124_v59 }
 0x326   : > { %v6533_v49 = vmax.f32 %v6532_v16, %v4387_v32  ;;  %v3780_v50 = vpop.f32.mrf.mxu0 }
 0x327   : > { %v6408_v45 = vmax.f32 %v6407_v40, %v3780_v50  ;;  %v4391_v2 = vpop.f32.mrf.mxu1  ;;  %4630 = vmatmul.mubr.bf16.gmra.mxu1 %v9731_v21 }
 0x328   : > { %v6465_v23 = vmax.f32 %v6464_v37, %v4391_v2  ;;  %v3782_v48 = vpop.f32.mrf.mxu0  ;;  %4639 = vmatprep.mubr.bf16.mxu1 %v11124_v59 }
 0x329   : > { %v6340_v12 = vmax.f32 %v6339_v5, %v3782_v48  ;;  %v4393_v47 = vpop.f32.mrf.mxu1 }
 0x32a   : > { %v6534_v57 = vmax.f32 %v6533_v49, %v4393_v47  ;;  %v3784_v13 = vpop.f32.mrf.mxu0 }
 0x32b   : > { %v6409_v15 = vmax.f32 %v6408_v45, %v3784_v13  ;;  %v4395_v43 = vpop.f32.mrf.mxu1 }
 0x32c   : > { %v6466_v27 = vmax.f32 %v6465_v23, %v4395_v43  ;;  %v3788_v33 = vpop.f32.mrf.mxu0  ;;  %4027 = vmatmul.mubr.bf16.gmra.mxu0 %v9776_v52 }
 0x32d   : > { %v6341_v16 = vmax.f32 %v6340_v12, %v3788_v33  ;;  %v4397_v39 = vpop.f32.mrf.mxu1  ;;  %4036 = vmatprep.mubr.bf16.mxu0 %v11124_v59 }
 0x32e   : > { %v6535_v40 = vmax.f32 %v6534_v57, %v4397_v39  ;;  %v3790_v9 = vpop.f32.mrf.mxu0 }
 0x32f   : > { %v6410_v37 = vmax.f32 %v6409_v15, %v3790_v9  ;;  %v4401_v32 = vpop.f32.mrf.mxu1  ;;  %4640 = vmatmul.mubr.bf16.gmra.mxu1 %v9728_v35  ;;  %v3251_v9 = vld [vmem:[%s10923_s5 + $0x58] sm:$0xff] }
 0x330   : > { %v6467_v5 = vmax.f32 %v6466_v27, %v4401_v32  ;;  %v3792_v50 = vpop.f32.mrf.mxu0  ;;  %4649 = vmatprep.mubr.bf16.mxu1 %v11124_v59 }
 0x331   : > { %v6342_v49 = vmax.f32 %v6341_v16, %v3792_v50  ;;  %v4403_v45 = vpop.f32.mrf.mxu1  ;;  %v3250_v16 = vld [vmem:[%s10923_s5 + $0x50] sm:$0xff] }
 0x332   : > { %v6536_v2 = vmax.f32 %v6535_v40, %v4403_v45  ;;  %v3794_v23 = vpop.f32.mrf.mxu0  ;;  %v3254_v40 = vld [vmem:[%s10923_s5 + $0x70] sm:$0xff] }
 0x333   : > { %v6411_v48 = vmax.f32 %v6410_v37, %v3794_v23  ;;  %v4405_v47 = vpop.f32.mrf.mxu1  ;;  %v7936_v50 = vcombine.high %v3250_v16, %v3254_v40 }
 0x334   : > { %v6468_v12 = vmax.f32 %v6467_v5, %v4405_v47  ;;  %v3798_v13 = vpop.f32.mrf.mxu0  ;;  %4037 = vmatmul.mubr.bf16.gmra.mxu0 %v9791_v17  ;;  %v7935_v5 = vcombine.low %v3250_v16, %v3254_v40 }
 0x335   : > { %v6343_v57 = vmax.f32 %v6342_v49, %v3798_v13  ;;  %v4407_v43 = vpop.f32.mrf.mxu1  ;;  %4046 = vmatprep.mubr.bf16.mxu0 %v11124_v59  ;;  %v3255_v49 = vld [vmem:[%s10923_s5 + $0x78] sm:$0xff]  ;;  %4982 = vmatprep.subr.bf16.mxu0 %v7936_v50 }
 0x336   : > { %v6537_v15 = vmax.f32 %v6536_v2, %v4407_v43  ;;  %v3800_v33 = vpop.f32.mrf.mxu0  ;;  %v7937_v23 = vcombine.low %v3251_v9, %v3255_v49  ;;  %4983 = vmatpush1.bf16.msra.mxu0 %v7935_v5 }
 0x337   : > { %v6412_v27 = vmax.f32 %v6411_v48, %v3800_v33  ;;  %v4411_v39 = vpop.f32.mrf.mxu1  ;;  %4650 = vmatmul.mubr.bf16.gmra.mxu1 %v9755_v63  ;;  %v7938_v48 = vcombine.high %v3251_v9, %v3255_v49 }
 0x338   : > { %v6469_v37 = vmax.f32 %v6468_v12, %v4411_v39  ;;  %v3802_v32 = vpop.f32.mrf.mxu0  ;;  %4659 = vmatprep.mubr.bf16.mxu1 %v11124_v59 }
 0x339   : > { %v6344_v45 = vmax.f32 %v6343_v57, %v3802_v32  ;;  %v4413_v2 = vpop.f32.mrf.mxu1  ;;  %5655 = vmatprep.subr.bf16.mxu1 %v7938_v48 }
 0x33a   : > { %v6538_v47 = vmax.f32 %v6537_v15, %v4413_v2  ;;  %v3804_v13 = vpop.f32.mrf.mxu0  ;;  %5656 = vmatpush1.bf16.msra.mxu1 %v7937_v23 }
 0x33b   : > { %v6413_v43 = vmax.f32 %v6412_v27, %v3804_v13  ;;  %v4415_v33 = vpop.f32.mrf.mxu1 }
 0x33c   : > { %v6470_v12 = vmax.f32 %v6469_v37, %v4415_v33  ;;  %v3808_v39 = vpop.f32.mrf.mxu0  ;;  %4047 = vmatmul.mubr.bf16.gmra.mxu0 %v9788_v30 }
 0x33d   : > { %v6345_v16 = vmax.f32 %v6344_v45, %v3808_v39  ;;  %v4417_v40 = vpop.f32.mrf.mxu1  ;;  %4056 = vmatprep.mubr.bf16.mxu0 %v11124_v59 }
 0x33e   : > { %v6539_v57 = vmax.f32 %v6538_v47, %v4417_v40  ;;  %v3810_v32 = vpop.f32.mrf.mxu0 }
 0x33f   : > { %v6414_v63 = vmax.f32 %v6413_v43, %v3810_v32  ;;  %v4421_v9 = vpop.f32.mrf.mxu1  ;;  %4660 = vmatmul.mubr.bf16.gmra.mxu1 %v9752_v55 }
 0x340   : > { %v6471_v15 = vmax.f32 %v6470_v12, %v4421_v9  ;;  %v3812_v27 = vpop.f32.mrf.mxu0  ;;  %4669 = vmatprep.mubr.bf16.mxu1 %v11124_v59 }
 0x341   : > { %v6346_v5 = vmax.f32 %v6345_v16, %v3812_v27  ;;  %v4423_v37 = vpop.f32.mrf.mxu1 }
 0x342   : > { %v6540_v50 = vmax.f32 %v6539_v57, %v4423_v37  ;;  %v3814_v49 = vpop.f32.mrf.mxu0 }
 0x343   : > { %v6415_v2 = vmax.f32 %v6414_v63, %v3814_v49  ;;  %v4425_v23 = vpop.f32.mrf.mxu1 }
 0x344   : > { %v6472_v45 = vmax.f32 %v6471_v15, %v4425_v23  ;;  %v3818_v48 = vpop.f32.mrf.mxu0  ;;  %4057 = vmatmul.mubr.bf16.gmra.mxu0 %v9803_v61 }
 0x345   : > { %v6347_v47 = vmax.f32 %v6346_v5, %v3818_v48  ;;  %v4427_v13 = vpop.f32.mrf.mxu1  ;;  %4066 = vmatprep.mubr.bf16.mxu0 %v11124_v59 }
 0x346   : > { %v6541_v43 = vmax.f32 %v6540_v50, %v4427_v13  ;;  %v3820_v33 = vpop.f32.mrf.mxu0 }
 0x347   : > { %v6416_v12 = vmax.f32 %v6415_v2, %v3820_v33  ;;  %v4431_v39 = vpop.f32.mrf.mxu1  ;;  %4670 = vmatmul.mubr.bf16.gmra.mxu1 %v9767_v42  ;;  %v11146_v42 = vld [vmem:[#allocation18_spill] sm:$0xff] }
 0x348   : > { %v6473_v16 = vmax.f32 %v6472_v45, %v4431_v39  ;;  %v3822_v40 = vpop.f32.mrf.mxu0  ;;  %4679 = vmatprep.mubr.bf16.mxu1 %v11124_v59 }
 0x349   : > { %v6348_v63 = vmax.f32 %v6347_v47, %v3822_v40  ;;  %v4433_v57 = vpop.f32.mrf.mxu1 }
 0x34a   : > { %v6542_v32 = vmax.f32 %v6541_v43, %v4433_v57  ;;  %v3824_v9 = vpop.f32.mrf.mxu0 }
 0x34b   : > { %v6417_v15 = vmax.f32 %v6416_v12, %v3824_v9  ;;  %v4435_v27 = vpop.f32.mrf.mxu1 }
 0x34c   : > { %v6474_v5 = vmax.f32 %v6473_v16, %v4435_v27  ;;  %v3828_v37 = vpop.f32.mrf.mxu0  ;;  %4067 = vmatmul.mubr.bf16.gmra.mxu0 %v9800_v11 }
 0x34d   : > { %v6349_v50 = vmax.f32 %v6348_v63, %v3828_v37  ;;  %v4437_v49 = vpop.f32.mrf.mxu1  ;;  %4076 = vmatprep.mubr.bf16.mxu0 %v11124_v59 }
 0x34e   : > { %v6543_v2 = vmax.f32 %v6542_v32, %v4437_v49  ;;  %v3830_v23 = vpop.f32.mrf.mxu0 }
 0x34f   : > { %v6418_v45 = vmax.f32 %v6417_v15, %v3830_v23  ;;  %v4441_v48 = vpop.f32.mrf.mxu1  ;;  %4680 = vmatmul.mubr.bf16.gmra.mxu1 %v9764_v24 }
 0x350   : > { %v6475_v47 = vmax.f32 %v6474_v5, %v4441_v48  ;;  %v3832_v13 = vpop.f32.mrf.mxu0  ;;  %4689 = vmatprep.mubr.bf16.mxu1 %v11124_v59 }
 0x351   : > { %v6350_v43 = vmax.f32 %v6349_v50, %v3832_v13  ;;  %v4443_v33 = vpop.f32.mrf.mxu1 }
 0x352   : > { %v6544_v12 = vmax.f32 %v6543_v2, %v4443_v33  ;;  %v3834_v39 = vpop.f32.mrf.mxu0 }
 0x353   : > { %v6419_v16 = vmax.f32 %v6418_v45, %v3834_v39  ;;  %v4445_v40 = vpop.f32.mrf.mxu1 }
 0x354   : > { %v6476_v63 = vmax.f32 %v6475_v47, %v4445_v40  ;;  %v3838_v57 = vpop.f32.mrf.mxu0  ;;  %4077 = vmatmul.mubr.bf16.gmra.mxu0 %v9815_v1 }
 0x355   : > { %v6351_v32 = vmax.f32 %v6350_v43, %v3838_v57  ;;  %v4447_v9 = vpop.f32.mrf.mxu1  ;;  %4086 = vmatprep.mubr.bf16.mxu0 %v11124_v59 }
 0x356   : > { %v6545_v15 = vmax.f32 %v6544_v12, %v4447_v9  ;;  %v3840_v27 = vpop.f32.mrf.mxu0 }
 0x357   : > { %v6420_v5 = vmax.f32 %v6419_v16, %v3840_v27  ;;  %v4451_v37 = vpop.f32.mrf.mxu1  ;;  %4690 = vmatmul.mubr.bf16.gmra.mxu1 %v9779_v38 }
 0x358   : > { %v6477_v50 = vmax.f32 %v6476_v63, %v4451_v37  ;;  %v3842_v49 = vpop.f32.mrf.mxu0  ;;  %4699 = vmatprep.mubr.bf16.mxu1 %v11124_v59 }
 0x359   : > { %v6352_v2 = vmax.f32 %v6351_v32, %v3842_v49  ;;  %v4453_v23 = vpop.f32.mrf.mxu1 }
 0x35a   : > { %v6546_v45 = vmax.f32 %v6545_v15, %v4453_v23  ;;  %v3844_v48 = vpop.f32.mrf.mxu0 }
 0x35b   : > { %v6421_v47 = vmax.f32 %v6420_v5, %v3844_v48  ;;  %v4455_v13 = vpop.f32.mrf.mxu1 }
 0x35c   : > { %v6478_v43 = vmax.f32 %v6477_v50, %v4455_v13  ;;  %v3848_v33 = vpop.f32.mrf.mxu0  ;;  %4087 = vmatmul.mubr.bf16.gmra.mxu0 %v9812_v6 }
 0x35d   : > { %v6353_v12 = vmax.f32 %v6352_v2, %v3848_v33  ;;  %v4457_v39 = vpop.f32.mrf.mxu1  ;;  %4096 = vmatprep.mubr.bf16.mxu0 %v11124_v59 }
 0x35e   : > { %v6547_v16 = vmax.f32 %v6546_v45, %v4457_v39  ;;  %v3850_v40 = vpop.f32.mrf.mxu0 }
 0x35f   : > { %v6422_v63 = vmax.f32 %v6421_v47, %v3850_v40  ;;  %v4461_v57 = vpop.f32.mrf.mxu1  ;;  %4700 = vmatmul.mubr.bf16.gmra.mxu1 %v9776_v52 }
 0x360   : > { %v6479_v32 = vmax.f32 %v6478_v43, %v4461_v57  ;;  %v3852_v9 = vpop.f32.mrf.mxu0  ;;  %4709 = vmatprep.mubr.bf16.mxu1 %v11124_v59 }
 0x361   : > { %v6354_v15 = vmax.f32 %v6353_v12, %v3852_v9  ;;  %v4463_v27 = vpop.f32.mrf.mxu1 }
 0x362   : > { %v6548_v5 = vmax.f32 %v6547_v16, %v4463_v27  ;;  %v3854_v37 = vpop.f32.mrf.mxu0 }
 0x363   : > { %v6423_v50 = vmax.f32 %v6422_v63, %v3854_v37  ;;  %v4465_v49 = vpop.f32.mrf.mxu1 }
 0x364   : > { %v6480_v2 = vmax.f32 %v6479_v32, %v4465_v49  ;;  %v3858_v23 = vpop.f32.mrf.mxu0  ;;  %4097 = vmatmul.mubr.bf16.gmra.mxu0 %v9832_v44 }
 0x365   : > { %v6355_v45 = vmax.f32 %v6354_v15, %v3858_v23  ;;  %v4467_v48 = vpop.f32.mrf.mxu1  ;;  %4106 = vmatprep.mubr.bf16.mxu0 %v11124_v59 }
 0x366   : > { %v6549_v47 = vmax.f32 %v6548_v5, %v4467_v48  ;;  %v3860_v13 = vpop.f32.mrf.mxu0 }
 0x367   : > { %v6424_v43 = vmax.f32 %v6423_v50, %v3860_v13  ;;  %v4471_v33 = vpop.f32.mrf.mxu1  ;;  %4710 = vmatmul.mubr.bf16.gmra.mxu1 %v9791_v17 }
 0x368   : > { %v6481_v12 = vmax.f32 %v6480_v2, %v4471_v33  ;;  %v3862_v39 = vpop.f32.mrf.mxu0  ;;  %4719 = vmatprep.mubr.bf16.mxu1 %v11124_v59 }
 0x369   : > { %v6356_v16 = vmax.f32 %v6355_v45, %v3862_v39  ;;  %v4473_v40 = vpop.f32.mrf.mxu1 }
 0x36a   : > { %v6550_v63 = vmax.f32 %v6549_v47, %v4473_v40  ;;  %v3864_v57 = vpop.f32.mrf.mxu0 }
 0x36b   : > { %v6425_v32 = vmax.f32 %v6424_v43, %v3864_v57  ;;  %v4475_v9 = vpop.f32.mrf.mxu1 }
 0x36c   : > { %v6482_v15 = vmax.f32 %v6481_v12, %v4475_v9  ;;  %v3868_v27 = vpop.f32.mrf.mxu0  ;;  %4107 = vmatmul.mubr.bf16.gmra.mxu0 %v9829_v22 }
 0x36d   : > { %v6357_v5 = vmax.f32 %v6356_v16, %v3868_v27  ;;  %v4477_v37 = vpop.f32.mrf.mxu1  ;;  %4116 = vmatprep.mubr.bf16.mxu0 %v11124_v59 }
 0x36e   : > { %v6551_v50 = vmax.f32 %v6550_v63, %v4477_v37  ;;  %v3870_v49 = vpop.f32.mrf.mxu0 }
 0x36f   : > { %v6426_v2 = vmax.f32 %v6425_v32, %v3870_v49  ;;  %v4481_v23 = vpop.f32.mrf.mxu1  ;;  %4720 = vmatmul.mubr.bf16.gmra.mxu1 %v9788_v30 }
 0x370   : > { %v6483_v45 = vmax.f32 %v6482_v15, %v4481_v23  ;;  %v3872_v48 = vpop.f32.mrf.mxu0  ;;  %4729 = vmatprep.mubr.bf16.mxu1 %v11124_v59 }
 0x371   : > { %v6358_v47 = vmax.f32 %v6357_v5, %v3872_v48  ;;  %v4483_v13 = vpop.f32.mrf.mxu1 }
 0x372   : > { %v6552_v43 = vmax.f32 %v6551_v50, %v4483_v13  ;;  %v3874_v33 = vpop.f32.mrf.mxu0 }
 0x373   : > { %v6427_v12 = vmax.f32 %v6426_v2, %v3874_v33  ;;  %v4485_v39 = vpop.f32.mrf.mxu1 }
 0x374   : > { %v6484_v16 = vmax.f32 %v6483_v45, %v4485_v39  ;;  %v3878_v40 = vpop.f32.mrf.mxu0  ;;  %4117 = vmatmul.mubr.bf16.gmra.mxu0 %v9856_v31 }
 0x375   : > { %v6359_v63 = vmax.f32 %v6358_v47, %v3878_v40  ;;  %v4487_v57 = vpop.f32.mrf.mxu1  ;;  %4126 = vmatprep.mubr.bf16.mxu0 %v11124_v59  ;;  %v3246_v40 = vld [vmem:[%s10923_s5 + $0x30] sm:$0xff] }
 0x376   : > { %v6553_v32 = vmax.f32 %v6552_v43, %v4487_v57  ;;  %v3880_v9 = vpop.f32.mrf.mxu0 }
 0x377   : > { %v6428_v15 = vmax.f32 %v6427_v12, %v3880_v9  ;;  %v4491_v27 = vpop.f32.mrf.mxu1  ;;  %4730 = vmatmul.mubr.bf16.gmra.mxu1 %v9803_v61 }
 0x378   : > { %v6485_v5 = vmax.f32 %v6484_v16, %v4491_v27  ;;  %v3882_v37 = vpop.f32.mrf.mxu0  ;;  %4739 = vmatprep.mubr.bf16.mxu1 %v11124_v59  ;;  %v3242_v16 = vld [vmem:[%s10923_s5 + $0x10] sm:$0xff] }
 0x379   : > { %v6360_v50 = vmax.f32 %v6359_v63, %v3882_v37  ;;  %v4493_v49 = vpop.f32.mrf.mxu1  ;;  %v7927_v27 = vcombine.low %v3242_v16, %v3246_v40 }
 0x37a   : > { %v6554_v2 = vmax.f32 %v6553_v32, %v4493_v49  ;;  %v3884_v23 = vpop.f32.mrf.mxu0  ;;  %v7928_v32 = vcombine.high %v3242_v16, %v3246_v40  ;;  %v3243_v40 = vld [vmem:[%s10923_s5 + $0x18] sm:$0xff] }
 0x37b   : > { %v6429_v45 = vmax.f32 %v6428_v15, %v3884_v23  ;;  %v4495_v48 = vpop.f32.mrf.mxu1 }
 0x37c   : > { %v6486_v47 = vmax.f32 %v6485_v5, %v4495_v48  ;;  %v3888_v13 = vpop.f32.mrf.mxu0  ;;  %4127 = vmatmul.mubr.bf16.gmra.mxu0 %v9850_v19  ;;  %4984 = vmatprep.subr.bf16.mxu0 %v7928_v32 }
 0x37d   : > { %v6361_v43 = vmax.f32 %v6360_v50, %v3888_v13  ;;  %v4497_v33 = vpop.f32.mrf.mxu1  ;;  %4136 = vmatprep.mubr.bf16.mxu0 %v11124_v59  ;;  %4985 = vmatpush1.bf16.msra.mxu0 %v7927_v27 }
 0x37e   : > { %v6555_v12 = vmax.f32 %v6554_v2, %v4497_v33  ;;  %v3890_v39 = vpop.f32.mrf.mxu0 }
 0x37f   : > { %v6430_v63 = vmax.f32 %v6429_v45, %v3890_v39  ;;  %v4501_v57 = vpop.f32.mrf.mxu1  ;;  %4740 = vmatmul.mubr.bf16.gmra.mxu1 %v9800_v11 }
 0x380   : > { %v6487_v9 = vmax.f32 %v6486_v47, %v4501_v57  ;;  %v3892_v15 = vpop.f32.mrf.mxu0  ;;  %4749 = vmatprep.mubr.bf16.mxu1 %v11124_v59 }
 0x381   : > { %v6362_v5 = vmax.f32 %v6361_v43, %v3892_v15  ;;  %v4503_v37 = vpop.f32.mrf.mxu1 }
 0x382   : > { %v6556_v50 = vmax.f32 %v6555_v12, %v4503_v37  ;;  %v3894_v49 = vpop.f32.mrf.mxu0 }
 0x383   : > { %v6431_v2 = vmax.f32 %v6430_v63, %v3894_v49  ;;  %v4505_v23 = vpop.f32.mrf.mxu1  ;;  %v3247_v63 = vld [vmem:[%s10923_s5 + $0x38] sm:$0xff] }
 0x384   : > { %v6488_v48 = vmax.f32 %v6487_v9, %v4505_v23  ;;  %v3898_v13 = vpop.f32.mrf.mxu0  ;;  %4137 = vmatmul.mubr.bf16.gmra.mxu0 %v9868_v10  ;;  %v7929_v15 = vcombine.low %v3243_v40, %v3247_v63  ;;  %v7930_v27 = vcombine.high %v3243_v40, %v3247_v63 }
 0x385   : > { %v6363_v45 = vmax.f32 %v6362_v5, %v3898_v13  ;;  %v4507_v33 = vpop.f32.mrf.mxu1  ;;  %4146 = vmatprep.mubr.bf16.mxu0 %v11124_v59 }
 0x386   : > { %v6557_v47 = vmax.f32 %v6556_v50, %v4507_v33  ;;  %v3900_v39 = vpop.f32.mrf.mxu0  ;;  %5657 = vmatprep.subr.bf16.mxu1 %v7930_v27 }
 0x387   : > { %v6432_v57 = vmax.f32 %v6431_v2, %v3900_v39  ;;  %v4511_v16 = vpop.f32.mrf.mxu1  ;;  %4750 = vmatmul.mubr.bf16.gmra.mxu1 %v9815_v1  ;;  %v11145_v1 = vld [vmem:[#allocation20_spill] sm:$0xff] }
 0x388   : > { %v6489_v43 = vmax.f32 %v6488_v48, %v4511_v16  ;;  %v3902_v12 = vpop.f32.mrf.mxu0  ;;  %4759 = vmatprep.mubr.bf16.mxu1 %v11124_v59  ;;  %5658 = vmatpush1.bf16.msra.mxu1 %v7929_v15 }
 0x389   : > { %v6364_v32 = vmax.f32 %v6363_v45, %v3902_v12  ;;  %v4513_v9 = vpop.f32.mrf.mxu1 }
 0x38a   : > { %v6558_v5 = vmax.f32 %v6557_v47, %v4513_v9  ;;  %v3904_v37 = vpop.f32.mrf.mxu0 }
 0x38b   : > { %v6433_v50 = vmax.f32 %v6432_v57, %v3904_v37  ;;  %v4515_v49 = vpop.f32.mrf.mxu1 }
 0x38c   : > { %v6490_v2 = vmax.f32 %v6489_v43, %v4515_v49  ;;  %v3908_v23 = vpop.f32.mrf.mxu0  ;;  %4147 = vmatmul.mubr.bf16.gmra.mxu0 %v9865_v7 }
 0x38d   : > { %v6365_v48 = vmax.f32 %v6364_v32, %v3908_v23  ;;  %v4517_v13 = vpop.f32.mrf.mxu1  ;;  %4156 = vmatprep.mubr.bf16.mxu0 %v11124_v59 }
 0x38e   : > { %v6559_v33 = vmax.f32 %v6558_v5, %v4517_v13  ;;  %v3910_v39 = vpop.f32.mrf.mxu0 }
 0x38f   : > { %v6434_v45 = vmax.f32 %v6433_v50, %v3910_v39  ;;  %v4521_v16 = vpop.f32.mrf.mxu1  ;;  %4760 = vmatmul.mubr.bf16.gmra.mxu1 %v9812_v6 }
 0x390   : > { %v6491_v47 = vmax.f32 %v6490_v2, %v4521_v16  ;;  %v3912_v12 = vpop.f32.mrf.mxu0  ;;  %4769 = vmatprep.mubr.bf16.mxu1 %v11124_v59 }
 0x391   : > { %v6366_v57 = vmax.f32 %v6365_v48, %v3912_v12  ;;  %v4523_v43 = vpop.f32.mrf.mxu1 }
 0x392   : > { %v6560_v40 = vmax.f32 %v6559_v33, %v4523_v43  ;;  %v3914_v63 = vpop.f32.mrf.mxu0 }
 0x393   : > { %v6435_v9 = vmax.f32 %v6434_v45, %v3914_v63  ;;  %v4525_v15 = vpop.f32.mrf.mxu1 }
 0x394   : > { %v6492_v32 = vmax.f32 %v6491_v47, %v4525_v15  ;;  %v3918_v27 = vpop.f32.mrf.mxu0  ;;  %4157 = vmatmul.mubr.bf16.gmra.mxu0 %v9880_v8 }
 0x395   : > { %v6367_v5 = vmax.f32 %v6366_v57, %v3918_v27  ;;  %v4527_v37 = vpop.f32.mrf.mxu1  ;;  %4166 = vmatprep.mubr.bf16.mxu0 %v11124_v59 }
 0x396   : > { %v6561_v50 = vmax.f32 %v6560_v40, %v4527_v37  ;;  %v3920_v49 = vpop.f32.mrf.mxu0 }
 0x397   : > { %v6436_v2 = vmax.f32 %v6435_v9, %v3920_v49  ;;  %v4531_v23 = vpop.f32.mrf.mxu1  ;;  %4770 = vmatmul.mubr.bf16.gmra.mxu1 %v9832_v44 }
 0x398   : > { %v6493_v48 = vmax.f32 %v6492_v32, %v4531_v23  ;;  %v3922_v13 = vpop.f32.mrf.mxu0  ;;  %4779 = vmatprep.mubr.bf16.mxu1 %v11124_v59 }
 0x399   : > { %v6368_v33 = vmax.f32 %v6367_v5, %v3922_v13  ;;  %v4533_v39 = vpop.f32.mrf.mxu1 }
 0x39a   : > { %v6562_v45 = vmax.f32 %v6561_v50, %v4533_v39  ;;  %v3924_v16 = vpop.f32.mrf.mxu0 }
 0x39b   : > { %v6437_v47 = vmax.f32 %v6436_v2, %v3924_v16  ;;  %v4535_v12 = vpop.f32.mrf.mxu1 }
 0x39c   : > { %v6494_v57 = vmax.f32 %v6493_v48, %v4535_v12  ;;  %v3928_v43 = vpop.f32.mrf.mxu0  ;;  %4167 = vmatmul.mubr.bf16.gmra.mxu0 %v9877_v14 }
 0x39d   : > { %v6369_v40 = vmax.f32 %v6368_v33, %v3928_v43  ;;  %v4537_v63 = vpop.f32.mrf.mxu1  ;;  %4176 = vmatprep.mubr.bf16.mxu0 %v11124_v59 }
 0x39e   : > { %v6563_v9 = vmax.f32 %v6562_v45, %v4537_v63  ;;  %v3930_v15 = vpop.f32.mrf.mxu0 }
 0x39f   : > { %v6438_v32 = vmax.f32 %v6437_v47, %v3930_v15  ;;  %v4541_v27 = vpop.f32.mrf.mxu1  ;;  %4780 = vmatmul.mubr.bf16.gmra.mxu1 %v9829_v22 }
 0x3a0   : > { %v6495_v5 = vmax.f32 %v6494_v57, %v4541_v27  ;;  %v3932_v37 = vpop.f32.mrf.mxu0  ;;  %4789 = vmatprep.mubr.bf16.mxu1 %v11124_v59 }
 0x3a1   : > { %v6370_v50 = vmax.f32 %v6369_v40, %v3932_v37  ;;  %v4543_v49 = vpop.f32.mrf.mxu1 }
 0x3a2   : > { %v6564_v2 = vmax.f32 %v6563_v9, %v4543_v49  ;;  %v3934_v23 = vpop.f32.mrf.mxu0 }
 0x3a3   : > { %v6439_v48 = vmax.f32 %v6438_v32, %v3934_v23  ;;  %v4545_v13 = vpop.f32.mrf.mxu1 }
 0x3a4   : > { %v6496_v33 = vmax.f32 %v6495_v5, %v4545_v13  ;;  %v3938_v39 = vpop.f32.mrf.mxu0  ;;  %4177 = vmatmul.mubr.bf16.gmra.mxu0 %v9892_v60 }
 0x3a5   : > { %v6371_v45 = vmax.f32 %v6370_v50, %v3938_v39  ;;  %v4547_v16 = vpop.f32.mrf.mxu1  ;;  %4186 = vmatprep.mubr.bf16.mxu0 %v11124_v59 }
 0x3a6   : > { %v6565_v47 = vmax.f32 %v6564_v2, %v4547_v16  ;;  %v3940_v12 = vpop.f32.mrf.mxu0 }
 0x3a7   : > { %v6440_v57 = vmax.f32 %v6439_v48, %v3940_v12  ;;  %v4551_v43 = vpop.f32.mrf.mxu1  ;;  %4790 = vmatmul.mubr.bf16.gmra.mxu1 %v9856_v31 }
 0x3a8   : > { %v6497_v40 = vmax.f32 %v6496_v33, %v4551_v43  ;;  %v3942_v63 = vpop.f32.mrf.mxu0  ;;  %4799 = vmatprep.mubr.bf16.mxu1 %v11124_v59 }
 0x3a9   : > { %v6372_v9 = vmax.f32 %v6371_v45, %v3942_v63  ;;  %v4553_v15 = vpop.f32.mrf.mxu1 }
 0x3aa   : > { %v6566_v32 = vmax.f32 %v6565_v47, %v4553_v15  ;;  %v3944_v27 = vpop.f32.mrf.mxu0 }
 0x3ab   : > { %v6441_v5 = vmax.f32 %v6440_v57, %v3944_v27  ;;  %v4555_v37 = vpop.f32.mrf.mxu1 }
 0x3ac   : > { %v6498_v50 = vmax.f32 %v6497_v40, %v4555_v37  ;;  %v3948_v49 = vpop.f32.mrf.mxu0  ;;  %4187 = vmatmul.mubr.bf16.gmra.mxu0 %v9889_v20 }
 0x3ad   : > { %v6373_v2 = vmax.f32 %v6372_v9, %v3948_v49  ;;  %v4557_v23 = vpop.f32.mrf.mxu1  ;;  %4196 = vmatprep.mubr.bf16.mxu0 %v11124_v59 }
 0x3ae   : > { %v6567_v48 = vmax.f32 %v6566_v32, %v4557_v23  ;;  %v3950_v13 = vpop.f32.mrf.mxu0 }
 0x3af   : > { %v6442_v33 = vmax.f32 %v6441_v5, %v3950_v13  ;;  %v4561_v39 = vpop.f32.mrf.mxu1  ;;  %4800 = vmatmul.mubr.bf16.gmra.mxu1 %v9850_v19 }
 0x3b0   : > { %v6499_v45 = vmax.f32 %v6498_v50, %v4561_v39  ;;  %v3952_v16 = vpop.f32.mrf.mxu0  ;;  %4809 = vmatprep.mubr.bf16.mxu1 %v11124_v59 }
 0x3b1   : > { %v6374_v47 = vmax.f32 %v6373_v2, %v3952_v16  ;;  %v4563_v12 = vpop.f32.mrf.mxu1 }
 0x3b2   : > { %v6568_v57 = vmax.f32 %v6567_v48, %v4563_v12  ;;  %v3954_v43 = vpop.f32.mrf.mxu0 }
 0x3b3   : > { %v6443_v40 = vmax.f32 %v6442_v33, %v3954_v43  ;;  %v4565_v63 = vpop.f32.mrf.mxu1 }
 0x3b4   : > { %v6500_v9 = vmax.f32 %v6499_v45, %v4565_v63  ;;  %v3958_v15 = vpop.f32.mrf.mxu0  ;;  %4197 = vmatmul.mubr.bf16.gmra.mxu0 %v9904_v41 }
 0x3b5   : > { %v6375_v32 = vmax.f32 %v6374_v47, %v3958_v15  ;;  %v4567_v27 = vpop.f32.mrf.mxu1  ;;  %4206 = vmatprep.mubr.bf16.mxu0 %v11124_v59 }
 0x3b6   : > { %v6569_v5 = vmax.f32 %v6568_v57, %v4567_v27  ;;  %v3960_v37 = vpop.f32.mrf.mxu0 }
 0x3b7   : > { %v6444_v50 = vmax.f32 %v6443_v40, %v3960_v37  ;;  %v4571_v49 = vpop.f32.mrf.mxu1  ;;  %4810 = vmatmul.mubr.bf16.gmra.mxu1 %v9868_v10 }
 0x3b8   : > { %v6501_v2 = vmax.f32 %v6500_v9, %v4571_v49  ;;  %v3962_v23 = vpop.f32.mrf.mxu0  ;;  %4819 = vmatprep.mubr.bf16.mxu1 %v11124_v59 }
 0x3b9   : > { %v6376_v48 = vmax.f32 %v6375_v32, %v3962_v23  ;;  %v4573_v13 = vpop.f32.mrf.mxu1 }
 0x3ba   : > { %v6570_v33 = vmax.f32 %v6569_v5, %v4573_v13  ;;  %v3964_v39 = vpop.f32.mrf.mxu0 }
 0x3bb   : > { %v6445_v45 = vmax.f32 %v6444_v50, %v3964_v39  ;;  %v4575_v16 = vpop.f32.mrf.mxu1 }
 0x3bc   : > { %v6502_v47 = vmax.f32 %v6501_v2, %v4575_v16  ;;  %v3968_v12 = vpop.f32.mrf.mxu0  ;;  %4207 = vmatmul.mubr.bf16.gmra.mxu0 %v9901_v53 }
 0x3bd   : > { %v6377_v57 = vmax.f32 %v6376_v48, %v3968_v12  ;;  %v4577_v43 = vpop.f32.mrf.mxu1  ;;  %4216 = vmatprep.mubr.bf16.mxu0 %v11124_v59 }
 0x3be   : > { %v6571_v40 = vmax.f32 %v6570_v33, %v4577_v43  ;;  %v3970_v63 = vpop.f32.mrf.mxu0 }
 0x3bf   : > { %v6446_v9 = vmax.f32 %v6445_v45, %v3970_v63  ;;  %v4581_v15 = vpop.f32.mrf.mxu1  ;;  %4820 = vmatmul.mubr.bf16.gmra.mxu1 %v9865_v7 }
 0x3c0   : > { %v6503_v32 = vmax.f32 %v6502_v47, %v4581_v15  ;;  %v3972_v27 = vpop.f32.mrf.mxu0  ;;  %4829 = vmatprep.mubr.bf16.mxu1 %v11124_v59 }
 0x3c1   : > { %v6378_v5 = vmax.f32 %v6377_v57, %v3972_v27  ;;  %v4583_v37 = vpop.f32.mrf.mxu1 }
 0x3c2   : > { %v6572_v50 = vmax.f32 %v6571_v40, %v4583_v37  ;;  %v3974_v49 = vpop.f32.mrf.mxu0 }
 0x3c3   : > { %v6379_v2 = vrot.slane %v6378_v5, 4  ;;  %v6447_v23 = vmax.f32 %v6446_v9, %v3974_v49  ;;  %v4585_v48 = vpop.f32.mrf.mxu1 }
 0x3c4   : > { %v6504_v13 = vmax.f32 %v6503_v32, %v4585_v48  ;;  %v3978_v39 = vpop.f32.mrf.mxu0  ;;  %4217 = vmatmul.mubr.bf16.gmra.mxu0 %v9916_v62 }
 0x3c5   : > { %v6380_v33 = vmax.f32 %v6378_v5, %v6379_v2  ;;  %v6448_v45 = vrot.slane %v6447_v23, 4  ;;  %v4587_v16 = vpop.f32.mrf.mxu1  ;;  %4226 = vmatprep.mubr.bf16.mxu0 %v11124_v59 }
 0x3c6   : > { %v6573_v47 = vmax.f32 %v6572_v50, %v4587_v16  ;;  %v3980_v12 = vpop.f32.mrf.mxu0 }
 0x3c7   : > { %v6381_v43 = vrot.slane %v6380_v33, 2  ;;  %v6449_v63 = vmax.f32 %v6447_v23, %v6448_v45  ;;  %v4591_v57 = vpop.f32.mrf.mxu1  ;;  %4830 = vmatmul.mubr.bf16.gmra.mxu1 %v9880_v8 }
 0x3c8   : > { %v6505_v40 = vmax.f32 %v6504_v13, %v4591_v57  ;;  %v3982_v15 = vpop.f32.mrf.mxu0  ;;  %4839 = vmatprep.mubr.bf16.mxu1 %v11124_v59 }
 0x3c9   : > { %v6382_v9 = vmax.f32 %v6380_v33, %v6381_v43  ;;  %v6450_v32 = vrot.slane %v6449_v63, 2  ;;  %v6868_v27 = vmax.f32 %v3978_v39, %v3982_v15  ;;  %v4593_v37 = vpop.f32.mrf.mxu1 }
 0x3ca   : > { %v6574_v5 = vmax.f32 %v6573_v47, %v4593_v37  ;;  %v3984_v49 = vpop.f32.mrf.mxu0 }
 0x3cb   : > { %v6383_v2 = vrot.slane %v6382_v9, 1  ;;  %v6451_v48 = vmax.f32 %v6449_v63, %v6450_v32  ;;  %v6937_v7 = vmax.f32 %v3980_v12, %v3984_v49  ;;  %v4595_v50 = vpop.f32.mrf.mxu1 }
 0x3cc   : > { %v6506_v16 = vmax.f32 %v6505_v40, %v4595_v50  ;;  %v3988_v10 = vpop.f32.mrf.mxu0  ;;  %4227 = vmatmul.mubr.bf16.gmra.mxu0 %v9913_v29 }
 0x3cd   : > { %v6452_v23 = vrot.slane %v6451_v48, 1  ;;  %v6869_v45 = vmax.f32 %v6868_v27, %v3988_v10  ;;  %v4597_v13 = vpop.f32.mrf.mxu1  ;;  %4236 = vmatprep.mubr.bf16.mxu0 %v11124_v59  ;;  %v10096_v43 = vmax.f32 %v6382_v9, %v6383_v2 }
 0x3ce   : > { %v6575_v57 = vmax.f32 %v6574_v5, %v4597_v13  ;;  %v3990_v33 = vpop.f32.mrf.mxu0 }
 0x3cf   : > { %v10098_v39 = vmax.f32 %v6451_v48, %v6452_v23  ;;  %v6938_v47 = vmax.f32 %v6937_v7, %v3990_v33  ;;  %v4601_v15 = vpop.f32.mrf.mxu1  ;;  %4840 = vmatmul.mubr.bf16.gmra.mxu1 %v9877_v14 }
 0x3d0   : > { %v6507_v12 = vmax.f32 %v6506_v16, %v4601_v15  ;;  %v3992_v63 = vpop.f32.mrf.mxu0  ;;  %4849 = vmatprep.mubr.bf16.mxu1 %v11124_v59 }
 0x3d1   : > { %v6870_v40 = vmax.f32 %v6869_v45, %v3992_v63  ;;  %v4603_v32 = vpop.f32.mrf.mxu1 }
 0x3d2   : > { %v6576_v27 = vmax.f32 %v6575_v57, %v4603_v32  ;;  %v3994_v37 = vpop.f32.mrf.mxu0 }
 0x3d3   : > { %v6939_v5 = vmax.f32 %v6938_v47, %v3994_v37  ;;  %v4605_v9 = vpop.f32.mrf.mxu1 }
 0x3d4   : > { %v6508_v49 = vmax.f32 %v6507_v12, %v4605_v9  ;;  %v3998_v2 = vpop.f32.mrf.mxu0  ;;  %4237 = vmatmul.mubr.bf16.gmra.mxu0 %v9928_v25 }
 0x3d5   : > { %v6871_v7 = vmax.f32 %v6870_v40, %v3998_v2  ;;  %v4607_v48 = vpop.f32.mrf.mxu1  ;;  %4246 = vmatprep.mubr.bf16.mxu0 %v11124_v59 }
 0x3d6   : > { %v6577_v50 = vmax.f32 %v6576_v27, %v4607_v48  ;;  %v4000_v16 = vpop.f32.mrf.mxu0 }
 0x3d7   : > { %v6940_v23 = vmax.f32 %v6939_v5, %v4000_v16  ;;  %v4611_v13 = vpop.f32.mrf.mxu1  ;;  %4850 = vmatmul.mubr.bf16.gmra.mxu1 %v9892_v60  ;;  %v11144_v60 = vld [vmem:[#allocation15_spill] sm:$0xff] }
 0x3d8   : > { %v6509_v45 = vmax.f32 %v6508_v49, %v4611_v13  ;;  %v4002_v33 = vpop.f32.mrf.mxu0  ;;  %4859 = vmatprep.mubr.bf16.mxu1 %v11124_v59 }
 0x3d9   : > { %v6872_v57 = vmax.f32 %v6871_v7, %v4002_v33  ;;  %v4613_v47 = vpop.f32.mrf.mxu1 }
 0x3da   : > { %v6578_v15 = vmax.f32 %v6577_v50, %v4613_v47  ;;  %v4004_v12 = vpop.f32.mrf.mxu0 }
 0x3db   : > { %v6941_v63 = vmax.f32 %v6940_v23, %v4004_v12  ;;  %v4615_v32 = vpop.f32.mrf.mxu1 }
 0x3dc   : > { %v6510_v40 = vmax.f32 %v6509_v45, %v4615_v32  ;;  %v4008_v37 = vpop.f32.mrf.mxu0  ;;  %4247 = vmatmul.mubr.bf16.gmra.mxu0 %v9925_v58 }
 0x3dd   : > { %v6873_v27 = vmax.f32 %v6872_v57, %v4008_v37  ;;  %v4617_v9 = vpop.f32.mrf.mxu1  ;;  %4256 = vmatprep.mubr.bf16.mxu0 %v11124_v59 }
 0x3de   : > { %v6579_v5 = vmax.f32 %v6578_v15, %v4617_v9  ;;  %v4010_v2 = vpop.f32.mrf.mxu0 }
 0x3df   : > { %v6942_v49 = vmax.f32 %v6941_v63, %v4010_v2  ;;  %v4621_v48 = vpop.f32.mrf.mxu1  ;;  %4860 = vmatmul.mubr.bf16.gmra.mxu1 %v9889_v20 }
 0x3e0   : > { %v6511_v7 = vmax.f32 %v6510_v40, %v4621_v48  ;;  %v4012_v16 = vpop.f32.mrf.mxu0  ;;  %4869 = vmatprep.mubr.bf16.mxu1 %v11124_v59 }
 0x3e1   : > { %v6874_v50 = vmax.f32 %v6873_v27, %v4012_v16  ;;  %v4623_v23 = vpop.f32.mrf.mxu1 }
 0x3e2   : > { %v6580_v13 = vmax.f32 %v6579_v5, %v4623_v23  ;;  %v4014_v45 = vpop.f32.mrf.mxu0 }
 0x3e3   : > { %v6943_v33 = vmax.f32 %v6942_v49, %v4014_v45  ;;  %v4625_v47 = vpop.f32.mrf.mxu1 }
 0x3e4   : > { %v6512_v57 = vmax.f32 %v6511_v7, %v4625_v47  ;;  %v4018_v12 = vpop.f32.mrf.mxu0  ;;  %4257 = vmatmul.mubr.bf16.gmra.mxu0 %v9940_v28 }
 0x3e5   : > { %v6875_v15 = vmax.f32 %v6874_v50, %v4018_v12  ;;  %v4627_v32 = vpop.f32.mrf.mxu1  ;;  %4266 = vmatprep.mubr.bf16.mxu0 %v11124_v59 }
 0x3e6   : > { %v6581_v63 = vmax.f32 %v6580_v13, %v4627_v32  ;;  %v4020_v37 = vpop.f32.mrf.mxu0 }
 0x3e7   : > { %v6944_v40 = vmax.f32 %v6943_v33, %v4020_v37  ;;  %v4631_v9 = vpop.f32.mrf.mxu1  ;;  %4870 = vmatmul.mubr.bf16.gmra.mxu1 %v9904_v41 }
 0x3e8   : > { %v6513_v27 = vmax.f32 %v6512_v57, %v4631_v9  ;;  %v4022_v2 = vpop.f32.mrf.mxu0  ;;  %4879 = vmatprep.mubr.bf16.mxu1 %v11124_v59 }
 0x3e9   : > { %v6876_v5 = vmax.f32 %v6875_v15, %v4022_v2  ;;  %v4633_v49 = vpop.f32.mrf.mxu1 }
 0x3ea   : > { %v6582_v48 = vmax.f32 %v6581_v63, %v4633_v49  ;;  %v4024_v7 = vpop.f32.mrf.mxu0 }
 0x3eb   : > { %v6945_v16 = vmax.f32 %v6944_v40, %v4024_v7  ;;  %v4635_v23 = vpop.f32.mrf.mxu1 }
 0x3ec   : > { %v6514_v50 = vmax.f32 %v6513_v27, %v4635_v23  ;;  %v4028_v45 = vpop.f32.mrf.mxu0  ;;  %4267 = vmatmul.mubr.bf16.gmra.mxu0 %v9937_v18 }
 0x3ed   : > { %v6877_v13 = vmax.f32 %v6876_v5, %v4028_v45  ;;  %v4637_v47 = vpop.f32.mrf.mxu1  ;;  %4276 = vmatprep.mubr.bf16.mxu0 %v11124_v59 }
 0x3ee   : > { %v6583_v33 = vmax.f32 %v6582_v48, %v4637_v47  ;;  %v4030_v12 = vpop.f32.mrf.mxu0 }
 0x3ef   : > { %v6946_v57 = vmax.f32 %v6945_v16, %v4030_v12  ;;  %v4641_v32 = vpop.f32.mrf.mxu1  ;;  %4880 = vmatmul.mubr.bf16.gmra.mxu1 %v9901_v53 }
 0x3f0   : > { %v6515_v15 = vmax.f32 %v6514_v50, %v4641_v32  ;;  %v4032_v37 = vpop.f32.mrf.mxu0  ;;  %4889 = vmatprep.mubr.bf16.mxu1 %v11124_v59 }
 0x3f1   : > { %v6878_v63 = vmax.f32 %v6877_v13, %v4032_v37  ;;  %v4643_v40 = vpop.f32.mrf.mxu1 }
 0x3f2   : > { %v6584_v9 = vmax.f32 %v6583_v33, %v4643_v40  ;;  %v4034_v27 = vpop.f32.mrf.mxu0 }
 0x3f3   : > { %v6947_v2 = vmax.f32 %v6946_v57, %v4034_v27  ;;  %v4645_v49 = vpop.f32.mrf.mxu1  ;;  %v8679_v57 = vmov 1983009808  }
 0x3f4   : > { %v6516_v5 = vmax.f32 %v6515_v15, %v4645_v49  ;;  %v4038_v7 = vpop.f32.mrf.mxu0  ;;  %4277 = vmatmul.mubr.bf16.gmra.mxu0 %v9964_v34  ;;  %v7441_v15 = vunpack.c.l.s4 %v8679_v57 }
 0x3f5   : > { %v6879_v48 = vmax.f32 %v6878_v63, %v4038_v7  ;;  %v4647_v23 = vpop.f32.mrf.mxu1  ;;  %4286 = vmatprep.mubr.bf16.mxu0 %v11124_v59  ;;  %v7443_v63 = vlaneseq }
 0x3f6   : > { %v6517_v16 = vrot.slane %v6516_v5, 4  ;;  %v6585_v45 = vmax.f32 %v6584_v9, %v4647_v23  ;;  %v4040_v50 = vpop.f32.mrf.mxu0 }
 0x3f7   : > { %v6948_v47 = vmax.f32 %v6947_v2, %v4040_v50  ;;  %v4651_v12 = vpop.f32.mrf.mxu1  ;;  %4890 = vmatmul.mubr.bf16.gmra.mxu1 %v9916_v62  ;;  %v10126_v57 = vshrl.u32 %v7443_v63, 7 }
 0x3f8   : > { %v6518_v13 = vmax.f32 %v6516_v5, %v6517_v16  ;;  %v6586_v33 = vrot.slane %v6585_v45, 4  ;;  %v4042_v32 = vpop.f32.mrf.mxu0  ;;  %4899 = vmatprep.mubr.bf16.mxu1 %v11124_v59  ;;  %v7442_v5 = vunpack.c.0.s8 %v7441_v15 }
 0x3f9   : > { %v6880_v37 = vmax.f32 %v6879_v48, %v4042_v32  ;;  %v4653_v40 = vpop.f32.mrf.mxu1  ;;  %11125 = vst [vmem:[#allocation69_spill] sm:$0xff] %v10126_v57 }
 0x3fa   : > { %v6519_v27 = vrot.slane %v6518_v13, 2  ;;  %v6587_v49 = vmax.f32 %v6585_v45, %v6586_v33  ;;  %v4044_v7 = vpop.f32.mrf.mxu0 }
 0x3fb   : > { %v6949_v10 = vmax.f32 %v6948_v47, %v4044_v7  ;;  %v4655_v9 = vpop.f32.mrf.mxu1 }
 0x3fc   : > { %v6520_v23 = vmax.f32 %v6518_v13, %v6519_v27  ;;  %v6588_v2 = vrot.slane %v6587_v49, 2  ;;  %v7006_v50 = vmax.f32 %v4651_v12, %v4655_v9  ;;  %v4048_v53 = vpop.f32.mrf.mxu0  ;;  %4287 = vmatmul.mubr.bf16.gmra.mxu0 %v9958_v46 }
 0x3fd   : > { %v6881_v16 = vmax.f32 %v6880_v37, %v4048_v53  ;;  %v4657_v62 = vpop.f32.mrf.mxu1  ;;  %5002 = vmatprep.mubr.bf16.mxu0 %v11124_v59  ;;  %v10131_v37 = vsub.s32 %v7442_v5, %v10126_v57  ;;  %v11127_v5 = vcombine.low %v10096_v43, %v10098_v39  ;;  %v11134_v57 = vld [vmem:[#allocation14_spill] sm:$0xff] }
 0x3fe   : > { %v6521_v48 = vrot.slane %v6520_v23, 1  ;;  %v6589_v32 = vmax.f32 %v6587_v49, %v6588_v2  ;;  %v7075_v41 = vmax.f32 %v4653_v40, %v4657_v62  ;;  %v4050_v45 = vpop.f32.mrf.mxu0 }
 0x3ff   : > { %v6950_v33 = vmax.f32 %v6949_v10, %v4050_v45  ;;  %v4661_v47 = vpop.f32.mrf.mxu1  ;;  %4900 = vmatmul.mubr.bf16.gmra.mxu1 %v9913_v29  ;;  %11126 = vst [vmem:[#allocation70_spill] sm:$0xff] %v10131_v37 }
 0x400   : > { %v6590_v13 = vrot.slane %v6589_v32, 1  ;;  %v7007_v12 = vmax.f32 %v7006_v50, %v4661_v47  ;;  %v4052_v27 = vpop.f32.mrf.mxu0  ;;  %4909 = vmatprep.mubr.bf16.mxu1 %v11124_v59  ;;  %v6522_v63 = vmax.f32 %v6520_v23, %v6521_v48 }
 0x401   : > { %v6882_v15 = vmax.f32 %v6881_v16, %v4052_v27  ;;  %v4663_v53 = vpop.f32.mrf.mxu1  ;;  %v10139_v16 = vrot.slane %v11127_v5, %v10131_v37 }
 0x402   : > { %v6591_v7 = vmax.f32 %v6589_v32, %v6590_v13  ;;  %v7076_v9 = vmax.f32 %v7075_v41, %v4663_v53  ;;  %v4054_v49 = vpop.f32.mrf.mxu0  ;;  %v11133_v13 = vld [vmem:[#allocation12_spill] sm:$0xff] }
 0x403   : > { %v6951_v62 = vmax.f32 %v6950_v33, %v4054_v49  ;;  %v4665_v40 = vpop.f32.mrf.mxu1  ;;  %11128 = vst [vmem:[#allocation71_spill] sm:$0xff] %v10139_v16 }
 0x404   : > { %v7439_v10 = vcombine.low %v6522_v63, %v6591_v7  ;;  %v7008_v2 = vmax.f32 %v7007_v12, %v4665_v40  ;;  %v4058_v45 = vpop.f32.mrf.mxu0  ;;  %5003 = vmatmul.mubr.bf16.vlgmr.msra.gmra.mxu0 %v9439_v51 }
 0x405   : > { %v6883_v50 = vmax.f32 %v6882_v15, %v4058_v45  ;;  %v4667_v47 = vpop.f32.mrf.mxu1  ;;  %5012 = vmatprep.mubr.bf16.mxu0 %v11124_v59 }
 0x406   : > { %v10142_v41 = vrot.slane %v7439_v10, %v10131_v37  ;;  %v7077_v23 = vmax.f32 %v7076_v9, %v4667_v47  ;;  %v4060_v48 = vpop.f32.mrf.mxu0 }
 0x407   : > { %v6952_v32 = vmax.f32 %v6951_v62, %v4060_v48  ;;  %v4671_v33 = vpop.f32.mrf.mxu1  ;;  %4910 = vmatmul.mubr.bf16.gmra.mxu1 %v9928_v25 }
 0x408   : > { %11129 = vst [vmem:[#allocation72_spill] sm:$0xff] %v10142_v41  ;;  %v7009_v12 = vmax.f32 %v7008_v2, %v4671_v33  ;;  %v4062_v27 = vpop.f32.mrf.mxu0  ;;  %4919 = vmatprep.mubr.bf16.mxu1 %v11124_v59 }
 0x409   : > { %v6884_v15 = vmax.f32 %v6883_v50, %v4062_v27  ;;  %v4673_v43 = vpop.f32.mrf.mxu1 }
 0x40a   : > { %v7078_v39 = vmax.f32 %v7077_v23, %v4673_v43  ;;  %v4064_v53 = vpop.f32.mrf.mxu0 }
 0x40b   : > { %v6953_v63 = vmax.f32 %v6952_v32, %v4064_v53  ;;  %v4675_v7 = vpop.f32.mrf.mxu1 }
 0x40c   : > { %v7010_v49 = vmax.f32 %v7009_v12, %v4675_v7  ;;  %v4068_v9 = vpop.f32.mrf.mxu0  ;;  %5013 = vmatmul.mubr.bf16.gmra.mxu0 %v9457_v3 }
 0x40d   : > { %v6885_v62 = vmax.f32 %v6884_v15, %v4068_v9  ;;  %v4677_v40 = vpop.f32.mrf.mxu1  ;;  %5022 = vmatprep.mubr.bf16.mxu0 %v11124_v59 }
 0x40e   : > { %v7079_v10 = vmax.f32 %v7078_v39, %v4677_v40  ;;  %v4070_v45 = vpop.f32.mrf.mxu0 }
 0x40f   : > { %v6954_v2 = vmax.f32 %v6953_v63, %v4070_v45  ;;  %v4681_v47 = vpop.f32.mrf.mxu1  ;;  %4920 = vmatmul.mubr.bf16.gmra.mxu1 %v9925_v58 }
 0x410   : > { %v7011_v50 = vmax.f32 %v7010_v49, %v4681_v47  ;;  %v4072_v5 = vpop.f32.mrf.mxu0  ;;  %4929 = vmatprep.mubr.bf16.mxu1 %v11124_v59 }
 0x411   : > { %v6886_v23 = vmax.f32 %v6885_v62, %v4072_v5  ;;  %v4683_v48 = vpop.f32.mrf.mxu1 }
 0x412   : > { %v7080_v32 = vmax.f32 %v7079_v10, %v4683_v48  ;;  %v4074_v33 = vpop.f32.mrf.mxu0 }
 0x413   : > { %v6955_v12 = vmax.f32 %v6954_v2, %v4074_v33  ;;  %v4685_v27 = vpop.f32.mrf.mxu1  ;;  %v11130_v33 = vld [vmem:[#allocation9_spill] sm:$0xff] }
 0x414   : > { %v7012_v15 = vmax.f32 %v7011_v50, %v4685_v27  ;;  %v4078_v43 = vpop.f32.mrf.mxu0  ;;  %5023 = vmatmul.mubr.bf16.gmra.mxu0 %v9476_v36 }
 0x415   : > { %v6887_v39 = vmax.f32 %v6886_v23, %v4078_v43  ;;  %v4687_v53 = vpop.f32.mrf.mxu1  ;;  %5032 = vmatprep.mubr.bf16.mxu0 %v11124_v59 }
 0x416   : > { %v7081_v63 = vmax.f32 %v7080_v32, %v4687_v53  ;;  %v4080_v7 = vpop.f32.mrf.mxu0 }
 0x417   : > { %v6956_v49 = vmax.f32 %v6955_v12, %v4080_v7  ;;  %v4691_v9 = vpop.f32.mrf.mxu1  ;;  %4930 = vmatmul.mubr.bf16.gmra.mxu1 %v9940_v28 }
 0x418   : > { %v7013_v62 = vmax.f32 %v7012_v15, %v4691_v9  ;;  %v4082_v40 = vpop.f32.mrf.mxu0  ;;  %4939 = vmatprep.mubr.bf16.mxu1 %v11124_v59 }
 0x419   : > { %v6888_v10 = vmax.f32 %v6887_v39, %v4082_v40  ;;  %v4693_v45 = vpop.f32.mrf.mxu1 }
 0x41a   : > { %v7082_v2 = vmax.f32 %v7081_v63, %v4693_v45  ;;  %v4084_v47 = vpop.f32.mrf.mxu0 }
 0x41b   : > { %v6957_v50 = vmax.f32 %v6956_v49, %v4084_v47  ;;  %v4695_v5 = vpop.f32.mrf.mxu1 }
 0x41c   : > { %v7014_v23 = vmax.f32 %v7013_v62, %v4695_v5  ;;  %v4088_v48 = vpop.f32.mrf.mxu0  ;;  %5033 = vmatmul.mubr.bf16.gmra.mxu0 %v11130_v33  ;;  %v11131_v5 = vld [vmem:[#allocation10_spill] sm:$0xff] }
 0x41d   : > { %v6889_v32 = vmax.f32 %v6888_v10, %v4088_v48  ;;  %v4697_v27 = vpop.f32.mrf.mxu1  ;;  %5042 = vmatprep.mubr.bf16.mxu0 %v11124_v59 }
 0x41e   : > { %v7083_v12 = vmax.f32 %v7082_v2, %v4697_v27  ;;  %v4090_v43 = vpop.f32.mrf.mxu0 }
 0x41f   : > { %v6958_v15 = vmax.f32 %v6957_v50, %v4090_v43  ;;  %v4701_v53 = vpop.f32.mrf.mxu1  ;;  %4940 = vmatmul.mubr.bf16.gmra.mxu1 %v9937_v18 }
 0x420   : > { %v7015_v39 = vmax.f32 %v7014_v23, %v4701_v53  ;;  %v4092_v7 = vpop.f32.mrf.mxu0  ;;  %4949 = vmatprep.mubr.bf16.mxu1 %v11124_v59 }
 0x421   : > { %v6890_v63 = vmax.f32 %v6889_v32, %v4092_v7  ;;  %v4703_v49 = vpop.f32.mrf.mxu1 }
 0x422   : > { %v7084_v9 = vmax.f32 %v7083_v12, %v4703_v49  ;;  %v4094_v62 = vpop.f32.mrf.mxu0 }
 0x423   : > { %v6959_v40 = vmax.f32 %v6958_v15, %v4094_v62  ;;  %v4705_v45 = vpop.f32.mrf.mxu1 }
 0x424   : > { %v7016_v10 = vmax.f32 %v7015_v39, %v4705_v45  ;;  %v4098_v47 = vpop.f32.mrf.mxu0  ;;  %5043 = vmatmul.mubr.bf16.gmra.mxu0 %v11131_v5 }
 0x425   : > { %v6891_v2 = vmax.f32 %v6890_v63, %v4098_v47  ;;  %v4707_v48 = vpop.f32.mrf.mxu1  ;;  %5052 = vmatprep.mubr.bf16.mxu0 %v11124_v59  ;;  %v11132_v47 = vld [vmem:[#allocation11_spill] sm:$0xff] }
 0x426   : > { %v7085_v50 = vmax.f32 %v7084_v9, %v4707_v48  ;;  %v4100_v27 = vpop.f32.mrf.mxu0 }
 0x427   : > { %v6960_v23 = vmax.f32 %v6959_v40, %v4100_v27  ;;  %v4711_v43 = vpop.f32.mrf.mxu1  ;;  %4950 = vmatmul.mubr.bf16.gmra.mxu1 %v9964_v34 }
 0x428   : > { %v7017_v32 = vmax.f32 %v7016_v10, %v4711_v43  ;;  %v4102_v53 = vpop.f32.mrf.mxu0  ;;  %4959 = vmatprep.mubr.bf16.mxu1 %v11124_v59 }
 0x429   : > { %v6892_v12 = vmax.f32 %v6891_v2, %v4102_v53  ;;  %v4713_v15 = vpop.f32.mrf.mxu1 }
 0x42a   : > { %v7086_v39 = vmax.f32 %v7085_v50, %v4713_v15  ;;  %v4104_v7 = vpop.f32.mrf.mxu0 }
 0x42b   : > { %v6961_v49 = vmax.f32 %v6960_v23, %v4104_v7  ;;  %v4715_v62 = vpop.f32.mrf.mxu1 }
 0x42c   : > { %v7018_v63 = vmax.f32 %v7017_v32, %v4715_v62  ;;  %v4108_v45 = vpop.f32.mrf.mxu0  ;;  %5053 = vmatmul.mubr.bf16.gmra.mxu0 %v11132_v47 }
 0x42d   : > { %v6893_v9 = vmax.f32 %v6892_v12, %v4108_v45  ;;  %v4717_v48 = vpop.f32.mrf.mxu1  ;;  %5062 = vmatprep.mubr.bf16.mxu0 %v11124_v59 }
 0x42e   : > { %v7087_v40 = vmax.f32 %v7086_v39, %v4717_v48  ;;  %v4110_v27 = vpop.f32.mrf.mxu0 }
 0x42f   : > { %v6962_v10 = vmax.f32 %v6961_v49, %v4110_v27  ;;  %v4721_v43 = vpop.f32.mrf.mxu1  ;;  %4960 = vmatmul.mubr.bf16.gmra.mxu1 %v9958_v46  ;;  %v11143_v46 = vld [vmem:[#allocation17_spill] sm:$0xff] }
 0x430   : > { %v7019_v2 = vmax.f32 %v7018_v63, %v4721_v43  ;;  %v4112_v53 = vpop.f32.mrf.mxu0  ;;  %5675 = vmatprep.mubr.bf16.mxu1 %v11124_v59 }
 0x431   : > { %v6894_v50 = vmax.f32 %v6893_v9, %v4112_v53  ;;  %v4723_v23 = vpop.f32.mrf.mxu1 }
 0x432   : > { %v7088_v32 = vmax.f32 %v7087_v40, %v4723_v23  ;;  %v4114_v15 = vpop.f32.mrf.mxu0 }
 0x433   : > { %v6963_v7 = vmax.f32 %v6962_v10, %v4114_v15  ;;  %v4725_v62 = vpop.f32.mrf.mxu1 }
 0x434   : > { %v7020_v12 = vmax.f32 %v7019_v2, %v4725_v62  ;;  %v4118_v45 = vpop.f32.mrf.mxu0  ;;  %5063 = vmatmul.mubr.bf16.gmra.mxu0 %v11133_v13 }
 0x435   : > { %v6895_v39 = vmax.f32 %v6894_v50, %v4118_v45  ;;  %v4727_v48 = vpop.f32.mrf.mxu1  ;;  %5072 = vmatprep.mubr.bf16.mxu0 %v11124_v59 }
 0x436   : > { %v7089_v49 = vmax.f32 %v7088_v32, %v4727_v48  ;;  %v4120_v27 = vpop.f32.mrf.mxu0 }
 0x437   : > { %v6964_v63 = vmax.f32 %v6963_v7, %v4120_v27  ;;  %v4731_v43 = vpop.f32.mrf.mxu1  ;;  %5676 = vmatmul.mubr.bf16.vlgmr.msra.gmra.mxu1 %v9439_v51 }
 0x438   : > { %v7021_v9 = vmax.f32 %v7020_v12, %v4731_v43  ;;  %v4122_v53 = vpop.f32.mrf.mxu0  ;;  %5685 = vmatprep.mubr.bf16.mxu1 %v11124_v59 }
 0x439   : > { %v6896_v40 = vmax.f32 %v6895_v39, %v4122_v53  ;;  %v4733_v10 = vpop.f32.mrf.mxu1 }
 0x43a   : > { %v7090_v2 = vmax.f32 %v7089_v49, %v4733_v10  ;;  %v4124_v23 = vpop.f32.mrf.mxu0 }
 0x43b   : > { %v6965_v15 = vmax.f32 %v6964_v63, %v4124_v23  ;;  %v4735_v62 = vpop.f32.mrf.mxu1 }
 0x43c   : > { %v7022_v50 = vmax.f32 %v7021_v9, %v4735_v62  ;;  %v4128_v45 = vpop.f32.mrf.mxu0  ;;  %5073 = vmatmul.mubr.bf16.gmra.mxu0 %v11134_v57 }
 0x43d   : > { %v6897_v32 = vmax.f32 %v6896_v40, %v4128_v45  ;;  %v4737_v48 = vpop.f32.mrf.mxu1  ;;  %5082 = vmatprep.mubr.bf16.mxu0 %v11124_v59  ;;  %v11135_v45 = vld [vmem:[#allocation16_spill] sm:$0xff] }
 0x43e   : > { %v7091_v7 = vmax.f32 %v7090_v2, %v4737_v48  ;;  %v4130_v51 = vpop.f32.mrf.mxu0 }
 0x43f   : > { %v6966_v12 = vmax.f32 %v6965_v15, %v4130_v51  ;;  %v4741_v27 = vpop.f32.mrf.mxu1  ;;  %5686 = vmatmul.mubr.bf16.gmra.mxu1 %v9457_v3 }
 0x440   : > { %v7023_v39 = vmax.f32 %v7022_v50, %v4741_v27  ;;  %v4132_v43 = vpop.f32.mrf.mxu0  ;;  %5695 = vmatprep.mubr.bf16.mxu1 %v11124_v59 }
 0x441   : > { %v6898_v49 = vmax.f32 %v6897_v32, %v4132_v43  ;;  %v4743_v63 = vpop.f32.mrf.mxu1 }
 0x442   : > { %v7092_v9 = vmax.f32 %v7091_v7, %v4743_v63  ;;  %v4134_v53 = vpop.f32.mrf.mxu0 }
 0x443   : > { %v6967_v10 = vmax.f32 %v6966_v12, %v4134_v53  ;;  %v4745_v23 = vpop.f32.mrf.mxu1 }
 0x444   : > { %v7024_v40 = vmax.f32 %v7023_v39, %v4745_v23  ;;  %v4138_v62 = vpop.f32.mrf.mxu0  ;;  %5083 = vmatmul.mubr.bf16.gmra.mxu0 %v11135_v45 }
 0x445   : > { %v6899_v2 = vmax.f32 %v6898_v49, %v4138_v62  ;;  %v4747_v48 = vpop.f32.mrf.mxu1  ;;  %5092 = vmatprep.mubr.bf16.mxu0 %v11124_v59  ;;  %v11136_v62 = vld [vmem:[#allocation19_spill] sm:$0xff] }
 0x446   : > { %v7093_v15 = vmax.f32 %v7092_v9, %v4747_v48  ;;  %v4140_v3 = vpop.f32.mrf.mxu0 }
 0x447   : > { %v6968_v50 = vmax.f32 %v6967_v10, %v4140_v3  ;;  %v4751_v51 = vpop.f32.mrf.mxu1  ;;  %5696 = vmatmul.mubr.bf16.gmra.mxu1 %v9476_v36 }
 0x448   : > { %v7025_v32 = vmax.f32 %v7024_v40, %v4751_v51  ;;  %v4142_v27 = vpop.f32.mrf.mxu0  ;;  %5705 = vmatprep.mubr.bf16.mxu1 %v11124_v59 }
 0x449   : > { %v6900_v7 = vmax.f32 %v6899_v2, %v4142_v27  ;;  %v4753_v12 = vpop.f32.mrf.mxu1 }
 0x44a   : > { %v7094_v39 = vmax.f32 %v7093_v15, %v4753_v12  ;;  %v4144_v43 = vpop.f32.mrf.mxu0 }
 0x44b   : > { %v6969_v63 = vmax.f32 %v6968_v50, %v4144_v43  ;;  %v4755_v53 = vpop.f32.mrf.mxu1 }
 0x44c   : > { %v7026_v49 = vmax.f32 %v7025_v32, %v4755_v53  ;;  %v4148_v23 = vpop.f32.mrf.mxu0  ;;  %5093 = vmatmul.mubr.bf16.gmra.mxu0 %v11136_v62 }
 0x44d   : > { %v6901_v9 = vmax.f32 %v6900_v7, %v4148_v23  ;;  %v4757_v48 = vpop.f32.mrf.mxu1  ;;  %5102 = vmatprep.mubr.bf16.mxu0 %v11124_v59  ;;  %v11137_v23 = vld [vmem:[#allocation22_spill] sm:$0xff] }
 0x44e   : > { %v7095_v10 = vmax.f32 %v7094_v39, %v4757_v48  ;;  %v4150_v36 = vpop.f32.mrf.mxu0 }
 0x44f   : > { %v6970_v40 = vmax.f32 %v6969_v63, %v4150_v36  ;;  %v4761_v3 = vpop.f32.mrf.mxu1  ;;  %5706 = vmatmul.mubr.bf16.gmra.mxu1 %v11130_v33 }
 0x450   : > { %v7027_v2 = vmax.f32 %v7026_v49, %v4761_v3  ;;  %v4152_v51 = vpop.f32.mrf.mxu0  ;;  %5715 = vmatprep.mubr.bf16.mxu1 %v11124_v59 }
 0x451   : > { %v6902_v15 = vmax.f32 %v6901_v9, %v4152_v51  ;;  %v4763_v50 = vpop.f32.mrf.mxu1 }
 0x452   : > { %v7096_v32 = vmax.f32 %v7095_v10, %v4763_v50  ;;  %v4154_v27 = vpop.f32.mrf.mxu0 }
 0x453   : > { %v6971_v12 = vmax.f32 %v6970_v40, %v4154_v27  ;;  %v4765_v43 = vpop.f32.mrf.mxu1 }
 0x454   : > { %v7028_v7 = vmax.f32 %v7027_v2, %v4765_v43  ;;  %v4158_v53 = vpop.f32.mrf.mxu0  ;;  %5103 = vmatmul.mubr.bf16.gmra.mxu0 %v11137_v23 }
 0x455   : > { %v6903_v39 = vmax.f32 %v6902_v15, %v4158_v53  ;;  %v4767_v48 = vpop.f32.mrf.mxu1  ;;  %5112 = vmatprep.mubr.bf16.mxu0 %v11124_v59  ;;  %v11138_v53 = vld [vmem:[#allocation25_spill] sm:$0xff] }
 0x456   : > { %v7097_v63 = vmax.f32 %v7096_v32, %v4767_v48  ;;  %v4160_v33 = vpop.f32.mrf.mxu0 }
 0x457   : > { %v6972_v49 = vmax.f32 %v6971_v12, %v4160_v33  ;;  %v4771_v36 = vpop.f32.mrf.mxu1  ;;  %5716 = vmatmul.mubr.bf16.gmra.mxu1 %v11131_v5 }
 0x458   : > { %v7029_v9 = vmax.f32 %v7028_v7, %v4771_v36  ;;  %v4162_v3 = vpop.f32.mrf.mxu0  ;;  %5725 = vmatprep.mubr.bf16.mxu1 %v11124_v59 }
 0x459   : > { %v6904_v10 = vmax.f32 %v6903_v39, %v4162_v3  ;;  %v4773_v40 = vpop.f32.mrf.mxu1 }
 0x45a   : > { %v7098_v2 = vmax.f32 %v7097_v63, %v4773_v40  ;;  %v4164_v51 = vpop.f32.mrf.mxu0 }
 0x45b   : > { %v6973_v50 = vmax.f32 %v6972_v49, %v4164_v51  ;;  %v4775_v27 = vpop.f32.mrf.mxu1 }
 0x45c   : > { %v7030_v15 = vmax.f32 %v7029_v9, %v4775_v27  ;;  %v4168_v43 = vpop.f32.mrf.mxu0  ;;  %5113 = vmatmul.mubr.bf16.gmra.mxu0 %v11138_v53 }
 0x45d   : > { %v6905_v32 = vmax.f32 %v6904_v10, %v4168_v43  ;;  %v4777_v48 = vpop.f32.mrf.mxu1  ;;  %5122 = vmatprep.mubr.bf16.mxu0 %v11124_v59  ;;  %v11139_v43 = vld [vmem:[#allocation27_spill] sm:$0xff] }
 0x45e   : > { %v7099_v12 = vmax.f32 %v7098_v2, %v4777_v48  ;;  %v4170_v5 = vpop.f32.mrf.mxu0 }
 0x45f   : > { %v6974_v7 = vmax.f32 %v6973_v50, %v4170_v5  ;;  %v4781_v33 = vpop.f32.mrf.mxu1  ;;  %5726 = vmatmul.mubr.bf16.gmra.mxu1 %v11132_v47 }
 0x460   : > { %v7031_v39 = vmax.f32 %v7030_v15, %v4781_v33  ;;  %v4172_v36 = vpop.f32.mrf.mxu0  ;;  %5735 = vmatprep.mubr.bf16.mxu1 %v11124_v59 }
 0x461   : > { %v6906_v63 = vmax.f32 %v6905_v32, %v4172_v36  ;;  %v4783_v49 = vpop.f32.mrf.mxu1 }
 0x462   : > { %v7100_v9 = vmax.f32 %v7099_v12, %v4783_v49  ;;  %v4174_v3 = vpop.f32.mrf.mxu0 }
 0x463   : > { %v6975_v40 = vmax.f32 %v6974_v7, %v4174_v3  ;;  %v4785_v51 = vpop.f32.mrf.mxu1 }
 0x464   : > { %v7032_v10 = vmax.f32 %v7031_v39, %v4785_v51  ;;  %v4178_v27 = vpop.f32.mrf.mxu0  ;;  %5123 = vmatmul.mubr.bf16.gmra.mxu0 %v11139_v43 }
 0x465   : > { %v6907_v2 = vmax.f32 %v6906_v63, %v4178_v27  ;;  %v4787_v48 = vpop.f32.mrf.mxu1  ;;  %5132 = vmatprep.mubr.bf16.mxu0 %v11124_v59  ;;  %v11140_v27 = vld [vmem:[#allocation30_spill] sm:$0xff] }
 0x466   : > { %v7101_v50 = vmax.f32 %v7100_v9, %v4787_v48  ;;  %v4180_v47 = vpop.f32.mrf.mxu0 }
 0x467   : > { %v6976_v15 = vmax.f32 %v6975_v40, %v4180_v47  ;;  %v4791_v5 = vpop.f32.mrf.mxu1  ;;  %5736 = vmatmul.mubr.bf16.gmra.mxu1 %v11133_v13 }
 0x468   : > { %v7033_v32 = vmax.f32 %v7032_v10, %v4791_v5  ;;  %v4182_v33 = vpop.f32.mrf.mxu0  ;;  %5745 = vmatprep.mubr.bf16.mxu1 %v11124_v59 }
 0x469   : > { %v6908_v12 = vmax.f32 %v6907_v2, %v4182_v33  ;;  %v4793_v7 = vpop.f32.mrf.mxu1 }
 0x46a   : > { %v7102_v39 = vmax.f32 %v7101_v50, %v4793_v7  ;;  %v4184_v36 = vpop.f32.mrf.mxu0 }
 0x46b   : > { %v6977_v49 = vmax.f32 %v6976_v15, %v4184_v36  ;;  %v4795_v3 = vpop.f32.mrf.mxu1 }
 0x46c   : > { %v7034_v63 = vmax.f32 %v7033_v32, %v4795_v3  ;;  %v4188_v51 = vpop.f32.mrf.mxu0  ;;  %5133 = vmatmul.mubr.bf16.gmra.mxu0 %v11140_v27 }
 0x46d   : > { %v6909_v9 = vmax.f32 %v6908_v12, %v4188_v51  ;;  %v4797_v48 = vpop.f32.mrf.mxu1  ;;  %5142 = vmatprep.mubr.bf16.mxu0 %v11124_v59 }
 0x46e   : > { %v7103_v40 = vmax.f32 %v7102_v39, %v4797_v48  ;;  %v4190_v13 = vpop.f32.mrf.mxu0 }
 0x46f   : > { %v10198_v10 = vmax.f32 %v6977_v49, %v4190_v13  ;;  %v4801_v47 = vpop.f32.mrf.mxu1  ;;  %5746 = vmatmul.mubr.bf16.gmra.mxu1 %v11134_v57  ;;  %v11141_v49 = vld [vmem:[#allocation33_spill] sm:$0xff] }
 0x470   : > { %v7035_v2 = vmax.f32 %v7034_v63, %v4801_v47  ;;  %v4192_v50 = vpop.f32.mrf.mxu0  ;;  %5755 = vmatprep.mubr.bf16.mxu1 %v11124_v59 }
 0x471   : > { %v6910_v15 = vmax.f32 %v6909_v9, %v4192_v50  ;;  %v4803_v5 = vpop.f32.mrf.mxu1 }
 0x472   : > { %v10202_v32 = vmax.f32 %v7103_v40, %v4803_v5  ;;  %v10204_v33 = vpop.f32.mrf.mxu0 }
 0x473   : > { %v4805_v7 = vpop.f32.mrf.mxu1  ;;  %v11147_v55 = vmax.f32 %v10198_v10, %v10204_v33 }
 0x474   : > { %v7036_v39 = vmax.f32 %v7035_v2, %v4805_v7  ;;  %v4198_v36 = vpop.f32.mrf.mxu0  ;;  %5143 = vmatmul.mubr.bf16.gmra.mxu0 %v11141_v49 }
 0x475   : > { %v10209_v3 = vmax.f32 %v6910_v15, %v4198_v36  ;;  %v10211_v57 = vpop.f32.mrf.mxu1  ;;  %5152 = vmatprep.mubr.bf16.mxu0 %v11124_v59  ;;  %v11142_v15 = vld [vmem:[#allocation13_spill] sm:$0xff] }
 0x476   : > { %v4200_v51 = vpop.f32.mrf.mxu0 }
 0x477   : > { %v4811_v9 = vpop.f32.mrf.mxu1  ;;  %5756 = vmatmul.mubr.bf16.gmra.mxu1 %v11135_v45  ;;  %v6980_v41 = vmax.f32 %v11147_v55, %v4200_v51 }
 0x478   : > { %v10217_v48 = vmax.f32 %v7036_v39, %v4811_v9  ;;  %v4202_v40 = vpop.f32.mrf.mxu0  ;;  %5765 = vmatprep.mubr.bf16.mxu1 %v11124_v59 }
 0x479   : > { %v10220_v13 = vpop.f32.mrf.mxu1  ;;  %v6912_v16 = vmax.f32 %v10209_v3, %v4202_v40 }
 0x47a   : > { %v10222_v47 = vpop.f32.mrf.mxu0 }
 0x47b   : > { %v10224_v2 = vpop.f32.mrf.mxu1  ;;  %v6981_v35 = vmax.f32 %v6980_v41, %v10222_v47 }
 0x47c   : > { %v4208_v50 = vpop.f32.mrf.mxu0  ;;  %5153 = vmatmul.mubr.bf16.gmra.mxu0 %v11142_v15 }
 0x47d   : > { %v10227_v5 = vpop.f32.mrf.mxu1  ;;  %5162 = vmatprep.mubr.bf16.mxu0 %v11124_v59  ;;  %v6913_v21 = vmax.f32 %v6912_v16, %v4208_v50 }
 0x47e   : > { %v4210_v7 = vpop.f32.mrf.mxu0 }
 0x47f   : > { %v10230_v45 = vpop.f32.mrf.mxu1  ;;  %5766 = vmatmul.mubr.bf16.gmra.mxu1 %v11136_v62  ;;  %v6982_v0 = vmax.f32 %v6981_v35, %v4210_v7 }
 0x480   : > { %v4212_v39 = vpop.f32.mrf.mxu0  ;;  %5775 = vmatprep.mubr.bf16.mxu1 %v11124_v59 }
 0x481   : > { %v10234_v36 = vpop.f32.mrf.mxu1  ;;  %v6914_v10 = vmax.f32 %v6913_v21, %v4212_v39 }
 0x482   : > { %v4214_v9 = vpop.f32.mrf.mxu0 }
 0x483   : > { %v10236_v63 = vpop.f32.mrf.mxu1  ;;  %v6983_v3 = vmax.f32 %v6982_v0, %v4214_v9 }
 0x484   : > { %v4218_v12 = vpop.f32.mrf.mxu0  ;;  %5163 = vmatmul.mubr.bf16.gmra.mxu0 %v11143_v46 }
 0x485   : > { %v10239_v34 = vpop.f32.mrf.mxu1  ;;  %5172 = vmatprep.mubr.bf16.mxu0 %v11124_v59  ;;  %v6915_v51 = vmax.f32 %v6914_v10, %v4218_v12 }
 0x486   : > { %v4220_v18 = vpop.f32.mrf.mxu0 }
 0x487   : > { %v10242_v28 = vpop.f32.mrf.mxu1  ;;  %5776 = vmatmul.mubr.bf16.gmra.mxu1 %v11137_v23  ;;  %v6984_v16 = vmax.f32 %v6983_v3, %v4220_v18 }
 0x488   : > { %v4222_v62 = vpop.f32.mrf.mxu0  ;;  %5785 = vmatprep.mubr.bf16.mxu1 %v11124_v59 }
 0x489   : > { %v10246_v58 = vpop.f32.mrf.mxu1  ;;  %v6916_v41 = vmax.f32 %v6915_v51, %v4222_v62  ;;  %v11149_v51 = vld [vmem:[#allocation21_spill] sm:$0xff] }
 0x48a   : > { %v4224_v25 = vpop.f32.mrf.mxu0 }
 0x48b   : > { %v10248_v29 = vpop.f32.mrf.mxu1  ;;  %v6985_v50 = vmax.f32 %v6984_v16, %v4224_v25 }
 0x48c   : > { %v4228_v20 = vpop.f32.mrf.mxu0  ;;  %5173 = vmatmul.mubr.bf16.gmra.mxu0 %v11144_v60 }
 0x48d   : > { %v10251_v14 = vpop.f32.mrf.mxu1  ;;  %5182 = vmatprep.mubr.bf16.mxu0 %v11124_v59  ;;  %v6917_v35 = vmax.f32 %v6916_v41, %v4228_v20 }
 0x48e   : > { %v4230_v8 = vpop.f32.mrf.mxu0 }
 0x48f   : > { %v10254_v19 = vpop.f32.mrf.mxu1  ;;  %5786 = vmatmul.mubr.bf16.gmra.mxu1 %v11138_v53  ;;  %v6986_v12 = vmax.f32 %v6985_v50, %v4230_v8 }
 0x490   : > { %v4232_v23 = vpop.f32.mrf.mxu0  ;;  %5795 = vmatprep.mubr.bf16.mxu1 %v11124_v59 }
 0x491   : > { %v10258_v31 = vpop.f32.mrf.mxu1  ;;  %v6918_v7 = vmax.f32 %v6917_v35, %v4232_v23 }
 0x492   : > { %v4234_v22 = vpop.f32.mrf.mxu0 }
 0x493   : > { %v10260_v44 = vpop.f32.mrf.mxu1  ;;  %v6987_v9 = vmax.f32 %v6986_v12, %v4234_v22 }
 0x494   : > { %v4238_v6 = vpop.f32.mrf.mxu0  ;;  %5183 = vmatmul.mubr.bf16.gmra.mxu0 %v11145_v1 }
 0x495   : > { %v10263_v11 = vpop.f32.mrf.mxu1  ;;  %5192 = vmatprep.mubr.bf16.mxu0 %v11124_v59  ;;  %v6919_v62 = vmax.f32 %v6918_v7, %v4238_v6 }
 0x496   : > { %v4240_v61 = vpop.f32.mrf.mxu0 }
 0x497   : > { %v10266_v30 = vpop.f32.mrf.mxu1  ;;  %5796 = vmatmul.mubr.bf16.gmra.mxu1 %v11139_v43  ;;  %v6988_v25 = vmax.f32 %v6987_v9, %v4240_v61 }
 0x498   : > { %v4242_v53 = vpop.f32.mrf.mxu0  ;;  %5805 = vmatprep.mubr.bf16.mxu1 %v11124_v59 }
 0x499   : > { %v10270_v17 = vpop.f32.mrf.mxu1  ;;  %v6920_v20 = vmax.f32 %v6919_v62, %v4242_v53  ;;  %v11150_v62 = vld [vmem:[#allocation26_spill] sm:$0xff] }
 0x49a   : > { %v4244_v52 = vpop.f32.mrf.mxu0 }
 0x49b   : > { %v10272_v38 = vpop.f32.mrf.mxu1  ;;  %v6989_v41 = vmax.f32 %v6988_v25, %v4244_v52 }
 0x49c   : > { %v4248_v24 = vpop.f32.mrf.mxu0  ;;  %5193 = vmatmul.mubr.bf16.gmra.mxu0 %v11146_v42  ;;  %v11148_v42 = vld [vmem:[#allocation23_spill] sm:$0xff] }
 0x49d   : > { %v10279_v37 = vpop.f32.mrf.mxu1  ;;  %5202 = vmatprep.mubr.bf16.mxu0 %v11124_v59  ;;  %v6921_v8 = vmax.f32 %v6920_v20, %v4248_v24 }
 0x49e   : > { %v4250_v43 = vpop.f32.mrf.mxu0 }
 0x49f   : > { %v10283_v4 = vpop.f32.mrf.mxu1  ;;  %5806 = vmatmul.mubr.bf16.gmra.mxu1 %v11140_v27  ;;  %v6990_v6 = vmax.f32 %v6989_v41, %v4250_v43 }
 0x4a0   : > { %v4252_v54 = vpop.f32.mrf.mxu0  ;;  %5815 = vmatprep.mubr.bf16.mxu1 %v11124_v59 }
 0x4a1   : > { %v10287_v55 = vpop.f32.mrf.mxu1  ;;  %v6922_v50 = vmax.f32 %v6921_v8, %v4252_v54 }
 0x4a2   : > { %v4254_v33 = vpop.f32.mrf.mxu0 }
 0x4a3   : > { %v10289_v40 = vpop.f32.mrf.mxu1  ;;  %v6991_v53 = vmax.f32 %v6990_v6, %v4254_v33 }
 0x4a4   : > { %v4258_v26 = vpop.f32.mrf.mxu0  ;;  %5203 = vmatmul.mubr.bf16.gmra.mxu0 %v11148_v42 }
 0x4a5   : > { %v10292_v47 = vpop.f32.mrf.mxu1  ;;  %5212 = vmatprep.mubr.bf16.mxu0 %v11124_v59  ;;  %v6923_v12 = vmax.f32 %v6922_v50, %v4258_v26  ;;  %v11151_v26 = vmax.f32 %v10202_v32, %v10211_v57 }
 0x4a6   : > { %v4260_v27 = vpop.f32.mrf.mxu0 }
 0x4a7   : > { %v10295_v21 = vpop.f32.mrf.mxu1  ;;  %5816 = vmatmul.mubr.bf16.gmra.mxu1 %v11141_v49  ;;  %v6992_v24 = vmax.f32 %v6991_v53, %v4260_v27  ;;  %v7106_v33 = vmax.f32 %v11151_v26, %v10220_v13  ;;  %v7038_v27 = vmax.f32 %v10217_v48, %v10224_v2  ;;  %v11152_v13 = vld [vmem:[#allocation24_spill] sm:$0xff] }
 0x4a8   : > { %v4262_v0 = vpop.f32.mrf.mxu0  ;;  %5825 = vmatprep.mubr.bf16.mxu1 %v11124_v59 }
 0x4a9   : > { %v10299_v39 = vpop.f32.mrf.mxu1  ;;  %v6924_v52 = vmax.f32 %v6923_v12, %v4262_v0 }
 0x4aa   : > { %v4264_v18 = vpop.f32.mrf.mxu0 }
 0x4ab   : > { %v10301_v10 = vpop.f32.mrf.mxu1  ;;  %v6993_v20 = vmax.f32 %v6992_v24, %v4264_v18  ;;  %v7107_v18 = vmax.f32 %v7106_v33, %v10227_v5 }
 0x4ac   : > { %v4268_v3 = vpop.f32.mrf.mxu0  ;;  %5213 = vmatmul.mubr.bf16.gmra.mxu0 %v11149_v51 }
 0x4ad   : > { %v10304_v16 = vpop.f32.mrf.mxu1  ;;  %5222 = vmatprep.mubr.bf16.mxu0 %v11124_v59  ;;  %v6925_v43 = vmax.f32 %v6924_v52, %v4268_v3  ;;  %v7039_v3 = vmax.f32 %v7038_v27, %v10230_v45  ;;  %v7108_v32 = vmax.f32 %v7107_v18, %v10234_v36 }
 0x4ae   : > { %v4270_v49 = vpop.f32.mrf.mxu0 }
 0x4af   : > { %v10307_v23 = vpop.f32.mrf.mxu1  ;;  %5826 = vmatmul.mubr.bf16.gmra.mxu1 %v11142_v15  ;;  %v6994_v41 = vmax.f32 %v6993_v20, %v4270_v49  ;;  %v7040_v57 = vmax.f32 %v7039_v3, %v10236_v63  ;;  %v7109_v5 = vmax.f32 %v7108_v32, %v10239_v34 }
 0x4b0   : > { %v4272_v22 = vpop.f32.mrf.mxu0  ;;  %5835 = vmatprep.mubr.bf16.mxu1 %v11124_v59 }
 0x4b1   : > { %v10311_v35 = vpop.f32.mrf.mxu1  ;;  %v6926_v8 = vmax.f32 %v6925_v43, %v4272_v22  ;;  %v7041_v45 = vmax.f32 %v7040_v57, %v10242_v28  ;;  %v7110_v63 = vmax.f32 %v7109_v5, %v10246_v58 }
 0x4b2   : > { %v4274_v61 = vpop.f32.mrf.mxu0 }
 0x4b3   : > { %v10313_v7 = vpop.f32.mrf.mxu1  ;;  %v6995_v50 = vmax.f32 %v6994_v41, %v4274_v61  ;;  %v7042_v36 = vmax.f32 %v7041_v45, %v10248_v29  ;;  %v7111_v28 = vmax.f32 %v7110_v63, %v10251_v14 }
 0x4b4   : > { %v4278_v9 = vpop.f32.mrf.mxu0  ;;  %5223 = vmatmul.mubr.bf16.gmra.mxu0 %v11150_v62 }
 0x4b5   : > { %v10316_v25 = vpop.f32.mrf.mxu1  ;;  %5232 = vmatprep.mubr.bf16.mxu0 %v11124_v59  ;;  %v6927_v53 = vmax.f32 %v6926_v8, %v4278_v9  ;;  %v7043_v34 = vmax.f32 %v7042_v36, %v10254_v19  ;;  %v11153_v8 = vld [vmem:[#allocation28_spill] sm:$0xff] }
 0x4b6   : > { %v4280_v15 = vpop.f32.mrf.mxu0 }
 0x4b7   : > { %v10319_v54 = vpop.f32.mrf.mxu1  ;;  %5836 = vmatmul.mubr.bf16.gmra.mxu1 %v11143_v46  ;;  %v6996_v2 = vmax.f32 %v6995_v50, %v4280_v15  ;;  %v7044_v29 = vmax.f32 %v7043_v34, %v10260_v44 }
 0x4b8   : > { %v4282_v0 = vpop.f32.mrf.mxu0  ;;  %5845 = vmatprep.mubr.bf16.mxu1 %v11124_v59 }
 0x4b9   : > { %v10329_v6 = vpop.f32.mrf.mxu1  ;;  %v6928_v49 = vmax.f32 %v6927_v53, %v4282_v0  ;;  %v7045_v14 = vmax.f32 %v7044_v29, %v10266_v30 }
 0x4ba   : > { %v4284_v46 = vpop.f32.mrf.mxu0 }
 0x4bb   : > { %v10333_v12 = vpop.f32.mrf.mxu1  ;;  %v6997_v9 = vmax.f32 %v6996_v2, %v4284_v46  ;;  %v7046_v44 = vmax.f32 %v7045_v14, %v10272_v38 }
 0x4bc   : > { %v4288_v48 = vpop.f32.mrf.mxu0  ;;  %5233 = vmatmul.mubr.bf16.gmra.mxu0 %v11152_v13 }
 0x4bd   : > { %v10338_v22 = vpop.f32.mrf.mxu1  ;;  %5242 = vmatprep.mubr.bf16.mxu0 %v11124_v59  ;;  %v6929_v24 = vmax.f32 %v6928_v49, %v4288_v48  ;;  %v7047_v45 = vmax.f32 %v7046_v44, %v10283_v4 }
 0x4be   : > { %v4290_v61 = vpop.f32.mrf.mxu0 }
 0x4bf   : > { %v10343_v52 = vpop.f32.mrf.mxu1  ;;  %5846 = vmatmul.mubr.bf16.gmra.mxu1 %v11144_v60  ;;  %v6998_v20 = vmax.f32 %v6997_v9, %v4290_v61  ;;  %v7112_v60 = vmax.f32 %v7111_v28, %v10258_v31 }
 0x4c0   : > { %v4292_v15 = vpop.f32.mrf.mxu0  ;;  %5855 = vmatprep.mubr.bf16.mxu1 %v11124_v59 }
 0x4c1   : > { %v6930_v43 = vmax.f32 %v6929_v24, %v4292_v15  ;;  %v10349_v26 = vpop.f32.mrf.mxu1  ;;  %v7113_v19 = vmax.f32 %v7112_v60, %v10263_v11 }
 0x4c2   : > { %v4294_v33 = vpop.f32.mrf.mxu0 }
 0x4c3   : > { %v6931_v27 = vrot.slane %v6930_v43, 4  ;;  %v6999_v0 = vmax.f32 %v6998_v20, %v4294_v33  ;;  %v10353_v41 = vpop.f32.mrf.mxu1  ;;  %v7114_v31 = vmax.f32 %v7113_v19, %v10270_v17  ;;  %v7048_v17 = vmax.f32 %v7047_v45, %v10289_v40 }
 0x4c4   : > { %v5004_v58 = vpop.f32.mrf.mxu0  ;;  %5243 = vmatmul.mubr.bf16.gmra.mxu0 %v11153_v8 }
 0x4c5   : > { %v6932_v18 = vmax.f32 %v6930_v43, %v6931_v27  ;;  %v7000_v3 = vrot.slane %v6999_v0, 4  ;;  %v10358_v46 = vpop.f32.mrf.mxu1  ;;  %5252 = vmatprep.mubr.bf16.mxu0 %v11124_v59  ;;  %v7115_v30 = vmax.f32 %v7114_v31, %v10279_v37  ;;  %v7049_v37 = vmax.f32 %v7048_v17, %v10295_v21  ;;  %v11154_v27 = vld [vmem:[#allocation18_spill] sm:$0xff] }
 0x4c6   : > { %v5006_v50 = vpop.f32.mrf.mxu0 }
 0x4c7   : > { %v6933_v53 = vrot.slane %v6932_v18, 2  ;;  %v7001_v32 = vmax.f32 %v6999_v0, %v7000_v3  ;;  %v10363_v57 = vpop.f32.mrf.mxu1  ;;  %5856 = vmatmul.mubr.bf16.gmra.mxu1 %v11145_v1  ;;  %v7116_v38 = vmax.f32 %v7115_v30, %v10287_v55  ;;  %v7050_v60 = vmax.f32 %v7049_v37, %v10301_v10 }
 0x4c8   : > { %v5008_v48 = vpop.f32.mrf.mxu0  ;;  %5865 = vmatprep.mubr.bf16.mxu1 %v11124_v59 }
 0x4c9   : > { %v6934_v2 = vmax.f32 %v6932_v18, %v6933_v53  ;;  %v7002_v49 = vrot.slane %v7001_v32, 2  ;;  %v6592_v5 = vmax.f32 %v5004_v58, %v5008_v48  ;;  %v10369_v11 = vpop.f32.mrf.mxu1  ;;  %v7117_v4 = vmax.f32 %v7116_v38, %v10292_v47 }
 0x4ca   : > { %v5010_v61 = vpop.f32.mrf.mxu0  ;;  %v7051_v3 = vmax.f32 %v7050_v60, %v10307_v23 }
 0x4cb   : > { %v6935_v9 = vrot.slane %v6934_v2, 1  ;;  %v7003_v24 = vmax.f32 %v7001_v32, %v7002_v49  ;;  %v6661_v1 = vmax.f32 %v5006_v50, %v5010_v61  ;;  %v10373_v63 = vpop.f32.mrf.mxu1  ;;  %v7118_v0 = vmax.f32 %v7117_v4, %v10299_v39  ;;  %v11155_v32 = vld [vmem:[#allocation31_spill] sm:$0xff] }
 0x4cc   : > { %v5014_v36 = vpop.f32.mrf.mxu0  ;;  %5253 = vmatmul.mubr.bf16.gmra.mxu0 %v9678_v56  ;;  %v7052_v39 = vmax.f32 %v7051_v3, %v10313_v7 }
 0x4cd   : > { %v7004_v15 = vrot.slane %v7003_v24, 1  ;;  %v6593_v20 = vmax.f32 %v6592_v5, %v5014_v36  ;;  %v10378_v43 = vpop.f32.mrf.mxu1  ;;  %5262 = vmatprep.mubr.bf16.mxu0 %v11124_v59  ;;  %v10383_v34 = vmax.f32 %v6934_v2, %v6935_v9  ;;  %v7119_v18 = vmax.f32 %v7118_v0, %v10304_v16 }
 0x4ce   : > { %v5016_v28 = vpop.f32.mrf.mxu0  ;;  %v7053_v16 = vmax.f32 %v7052_v39, %v10319_v54 }
 0x4cf   : > { %v10385_v33 = vmax.f32 %v7003_v24, %v7004_v15  ;;  %v6662_v55 = vmax.f32 %v6661_v1, %v5016_v28  ;;  %v4921_v40 = vpop.f32.mrf.mxu1  ;;  %5866 = vmatmul.mubr.bf16.gmra.mxu1 %v11154_v27  ;;  %v7120_v53 = vmax.f32 %v7119_v18, %v10311_v35  ;;  %v11157_v18 = vld [vmem:[#allocation34_spill] sm:$0xff] }
 0x4d0   : > { %v5018_v29 = vpop.f32.mrf.mxu0  ;;  %5875 = vmatprep.mubr.bf16.mxu1 %v11124_v59  ;;  %v7054_v7 = vmax.f32 %v7053_v16, %v10333_v12 }
 0x4d1   : > { %v7472_v47 = vcombine.low %v10383_v34, %v10385_v33  ;;  %v6594_v21 = vmax.f32 %v6593_v20, %v5018_v29  ;;  %v4923_v58 = vpop.f32.mrf.mxu1  ;;  %v7121_v48 = vmax.f32 %v7120_v53, %v10316_v25 }
 0x4d2   : > { %v5020_v19 = vpop.f32.mrf.mxu0  ;;  %v7055_v25 = vmax.f32 %v7054_v7, %v10343_v52 }
 0x4d3   : > { %v6663_v14 = vmax.f32 %v6662_v55, %v5020_v19  ;;  %v4925_v50 = vpop.f32.mrf.mxu1  ;;  %v7122_v35 = vmax.f32 %v7121_v48, %v10329_v6  ;;  %v11156_v6 = vld [vmem:[#allocation29_spill] sm:$0xff] }
 0x4d4   : > { %v5024_v10 = vpop.f32.mrf.mxu0  ;;  %5263 = vmatmul.mubr.bf16.gmra.mxu0 %v11155_v32 }
 0x4d5   : > { %v6595_v31 = vmax.f32 %v6594_v21, %v5024_v10  ;;  %v4927_v44 = vpop.f32.mrf.mxu1  ;;  %5272 = vmatprep.mubr.bf16.mxu0 %v11124_v59  ;;  %v7123_v61 = vmax.f32 %v7122_v35, %v10338_v22  ;;  %v11158_v35 = vld [vmem:[#allocation32_spill] sm:$0xff] }
 0x4d6   : > { %v5026_v2 = vpop.f32.mrf.mxu0 }
 0x4d7   : > { %v6664_v23 = vmax.f32 %v6663_v14, %v5026_v2  ;;  %v4931_v49 = vpop.f32.mrf.mxu1  ;;  %5876 = vmatmul.mubr.bf16.gmra.mxu1 %v11148_v42  ;;  %v7124_v1 = vmax.f32 %v7123_v61, %v10349_v26  ;;  %v7056_v42 = vmax.f32 %v7055_v25, %v10353_v41 }
 0x4d8   : > { %v5028_v5 = vpop.f32.mrf.mxu0  ;;  %5885 = vmatprep.mubr.bf16.mxu1 %v11124_v59 }
 0x4d9   : > { %v6596_v30 = vmax.f32 %v6595_v31, %v5028_v5  ;;  %v4933_v45 = vpop.f32.mrf.mxu1  ;;  %v7125_v36 = vmax.f32 %v7124_v1, %v10358_v46  ;;  %v7057_v22 = vmax.f32 %v7056_v42, %v10363_v57 }
 0x4da   : > { %v5030_v9 = vpop.f32.mrf.mxu0 }
 0x4db   : > { %v6665_v54 = vmax.f32 %v6664_v23, %v5030_v9  ;;  %v4935_v24 = vpop.f32.mrf.mxu1  ;;  %v7126_v26 = vmax.f32 %v7125_v36, %v10369_v11  ;;  %v7058_v41 = vmax.f32 %v7057_v22, %v10373_v63 }
 0x4dc   : > { %v5034_v38 = vpop.f32.mrf.mxu0  ;;  %5273 = vmatmul.mubr.bf16.gmra.mxu0 %v11156_v6 }
 0x4dd   : > { %v6597_v12 = vmax.f32 %v6596_v30, %v5034_v38  ;;  %v4937_v17 = vpop.f32.mrf.mxu1  ;;  %5282 = vmatprep.mubr.bf16.mxu0 %v11124_v59  ;;  %v7127_v55 = vmax.f32 %v7126_v26, %v10378_v43  ;;  %v7059_v27 = vmax.f32 %v7058_v41, %v4921_v40  ;;  %v11159_v26 = vld [vmem:[#allocation36_spill] sm:$0xff] }
 0x4de   : > { %v5036_v15 = vpop.f32.mrf.mxu0 }
 0x4df   : > { %v6666_v52 = vmax.f32 %v6665_v54, %v5036_v15  ;;  %v4941_v20 = vpop.f32.mrf.mxu1  ;;  %5886 = vmatmul.mubr.bf16.gmra.mxu1 %v11149_v51  ;;  %v7128_v60 = vmax.f32 %v7127_v55, %v4923_v58  ;;  %v7060_v29 = vmax.f32 %v7059_v27, %v4925_v50 }
 0x4e0   : > { %v5038_v4 = vpop.f32.mrf.mxu0  ;;  %5895 = vmatprep.mubr.bf16.mxu1 %v11124_v59 }
 0x4e1   : > { %v6598_v37 = vmax.f32 %v6597_v12, %v5038_v4  ;;  %v4943_v28 = vpop.f32.mrf.mxu1  ;;  %v7129_v63 = vmax.f32 %v7128_v60, %v4927_v44  ;;  %v7061_v3 = vmax.f32 %v7060_v29, %v4931_v49 }
 0x4e2   : > { %v5040_v46 = vpop.f32.mrf.mxu0 }
 0x4e3   : > { %v6667_v0 = vmax.f32 %v6666_v52, %v5040_v46  ;;  %v4945_v57 = vpop.f32.mrf.mxu1  ;;  %v7130_v43 = vmax.f32 %v7129_v63, %v4933_v45  ;;  %v7062_v40 = vmax.f32 %v7061_v3, %v4935_v24 }
 0x4e4   : > { %v5044_v21 = vpop.f32.mrf.mxu0  ;;  %5283 = vmatmul.mubr.bf16.gmra.mxu0 %v11157_v18 }
 0x4e5   : > { %v6599_v51 = vmax.f32 %v6598_v37, %v5044_v21  ;;  %v4947_v11 = vpop.f32.mrf.mxu1  ;;  %5292 = vmatprep.mubr.bf16.mxu0 %v11124_v59  ;;  %v7131_v10 = vmax.f32 %v7130_v43, %v4937_v17  ;;  %v7063_v31 = vmax.f32 %v7062_v40, %v4941_v20  ;;  %v11160_v40 = vld [vmem:[#allocation35_spill] sm:$0xff] }
 0x4e6   : > { %v5046_v19 = vpop.f32.mrf.mxu0 }
 0x4e7   : > { %v6668_v14 = vmax.f32 %v6667_v0, %v5046_v19  ;;  %v4951_v53 = vpop.f32.mrf.mxu1  ;;  %5896 = vmatmul.mubr.bf16.gmra.mxu1 %v11150_v62  ;;  %v7132_v23 = vmax.f32 %v7131_v10, %v4943_v28  ;;  %v7064_v44 = vmax.f32 %v7063_v31, %v4945_v57 }
 0x4e8   : > { %v5048_v39 = vpop.f32.mrf.mxu0  ;;  %5905 = vmatprep.mubr.bf16.mxu1 %v11124_v59 }
 0x4e9   : > { %v6600_v58 = vmax.f32 %v6599_v51, %v5048_v39  ;;  %v4953_v50 = vpop.f32.mrf.mxu1  ;;  %v7133_v62 = vmax.f32 %v7132_v23, %v4947_v11  ;;  %v7065_v30 = vmax.f32 %v7064_v44, %v4951_v53 }
 0x4ea   : > { %v5050_v48 = vpop.f32.mrf.mxu0 }
 0x4eb   : > { %v6669_v16 = vmax.f32 %v6668_v14, %v5050_v48  ;;  %v4955_v2 = vpop.f32.mrf.mxu1  ;;  %v7134_v9 = vmax.f32 %v7133_v62, %v4953_v50 }
 0x4ec   : > { %v5054_v49 = vpop.f32.mrf.mxu0  ;;  %5293 = vmatmul.mubr.bf16.gmra.mxu0 %v11158_v35  ;;  %v7066_v54 = vmax.f32 %v7065_v30, %v4955_v2 }
 0x4ed   : > { %v6601_v7 = vmax.f32 %v6600_v58, %v5054_v49  ;;  %v4957_v5 = vpop.f32.mrf.mxu1  ;;  %5302 = vmatprep.mubr.bf16.mxu0 %v11124_v59 }
 0x4ee   : > { %v5056_v45 = vpop.f32.mrf.mxu0  ;;  %v7135_v38 = vmax.f32 %v7134_v9, %v4957_v5 }
 0x4ef   : > { %v6670_v61 = vmax.f32 %v6669_v16, %v5056_v45  ;;  %v4961_v25 = vpop.f32.mrf.mxu1  ;;  %5906 = vmatmul.mubr.bf16.gmra.mxu1 %v11152_v13 }
 0x4f0   : > { %v5058_v24 = vpop.f32.mrf.mxu0  ;;  %5915 = vmatprep.mubr.bf16.mxu1 %v11124_v59  ;;  %v7067_v12 = vmax.f32 %v7066_v54, %v4961_v25 }
 0x4f1   : > { %v6602_v1 = vmax.f32 %v6601_v7, %v5058_v24  ;;  %v4963_v42 = vpop.f32.mrf.mxu1 }
 0x4f2   : > { %v5060_v17 = vpop.f32.mrf.mxu0  ;;  %v7136_v15 = vmax.f32 %v7135_v38, %v4963_v42  ;;  %v11162_v38 = vld [vmem:[#allocation70_spill] sm:$0xff] }
 0x4f3   : > { %v6671_v36 = vmax.f32 %v6670_v61, %v5060_v17  ;;  %v4965_v22 = vpop.f32.mrf.mxu1 }
 0x4f4   : > { %v7068_v52 = vmax.f32 %v7067_v12, %v4965_v22  ;;  %v5064_v20 = vpop.f32.mrf.mxu0  ;;  %5303 = vmatmul.mubr.bf16.gmra.mxu0 %v11159_v26  ;;  %v7480_v12 = vrot.slane %v7472_v47, %v11162_v38 }
 0x4f5   : > { %v6603_v41 = vmax.f32 %v6602_v1, %v5064_v20  ;;  %v4967_v4 = vpop.f32.mrf.mxu1  ;;  %5312 = vmatprep.mubr.bf16.mxu0 %v11124_v59  ;;  %v11161_v1 = vld [vmem:[#allocation38_spill] sm:$0xff] }
 0x4f6   : > { %v7069_v13 = vrot.slane %v7068_v52, 4  ;;  %v7137_v37 = vmax.f32 %v7136_v15, %v4967_v4  ;;  %v5066_v28 = vpop.f32.mrf.mxu0 }
 0x4f7   : > { %v6672_v55 = vmax.f32 %v6671_v36, %v5066_v28  ;;  %v5677_v27 = vpop.f32.mrf.mxu1  ;;  %5916 = vmatmul.mubr.bf16.gmra.mxu1 %v11153_v8 }
 0x4f8   : > { %v7070_v46 = vmax.f32 %v7068_v52, %v7069_v13  ;;  %v7138_v0 = vrot.slane %v7137_v37, 4  ;;  %v5068_v57 = vpop.f32.mrf.mxu0  ;;  %5925 = vmatprep.mubr.bf16.mxu1 %v11124_v59 }
 0x4f9   : > { %v6604_v60 = vmax.f32 %v6603_v41, %v5068_v57  ;;  %v5679_v29 = vpop.f32.mrf.mxu1 }
 0x4fa   : > { %v7071_v21 = vrot.slane %v7070_v46, 2  ;;  %v7139_v51 = vmax.f32 %v7137_v37, %v7138_v0  ;;  %v5070_v11 = vpop.f32.mrf.mxu0 }
 0x4fb   : > { %v6673_v63 = vmax.f32 %v6672_v55, %v5070_v11  ;;  %v5681_v3 = vpop.f32.mrf.mxu1 }
 0x4fc   : > { %v7072_v19 = vmax.f32 %v7070_v46, %v7071_v21  ;;  %v7140_v14 = vrot.slane %v7139_v51, 2  ;;  %v6730_v53 = vmax.f32 %v5677_v27, %v5681_v3  ;;  %v5074_v43 = vpop.f32.mrf.mxu0  ;;  %5313 = vmatmul.mubr.bf16.gmra.mxu0 %v11160_v40  ;;  %v11163_v27 = vld [vmem:[#allocation71_spill] sm:$0xff]  ;;  %v11164_v46 = vld [vmem:[#allocation72_spill] sm:$0xff] }
 0x4fd   : > { %v6605_v39 = vmax.f32 %v6604_v60, %v5074_v43  ;;  %v5683_v8 = vpop.f32.mrf.mxu1  ;;  %5322 = vmatprep.mubr.bf16.mxu0 %v11124_v59  ;;  %v11165_v0 = vcombine.low %v11163_v27, %v11164_v46  ;;  %v7420_v21 = vld [vmem:[%s8960_s20] sm:$0xff] }
 0x4fe   : > { %v7073_v58 = vrot.slane %v7072_v19, 1  ;;  %v7141_v50 = vmax.f32 %v7139_v51, %v7140_v14  ;;  %v6799_v10 = vmax.f32 %v5679_v29, %v5683_v8  ;;  %v5076_v31 = vpop.f32.mrf.mxu0  ;;  %v11166_v29 = vld [vmem:[#allocation37_spill] sm:$0xff] }
 0x4ff   : > { %v6674_v48 = vmax.f32 %v6673_v63, %v5076_v31  ;;  %v5687_v16 = vpop.f32.mrf.mxu1  ;;  %5926 = vmatmul.mubr.bf16.gmra.mxu1 %v9678_v56 }
 0x500   : > { %v7142_v2 = vrot.slane %v7141_v50, 1  ;;  %v6731_v23 = vmax.f32 %v6730_v53, %v5687_v16  ;;  %v5078_v44 = vpop.f32.mrf.mxu0  ;;  %5935 = vmatprep.mubr.bf16.mxu1 %v11124_v59  ;;  %v7074_v5 = vmax.f32 %v7072_v19, %v7073_v58 }
 0x501   : > { %v6606_v49 = vmax.f32 %v6605_v39, %v5078_v44  ;;  %v5689_v7 = vpop.f32.mrf.mxu1 }
 0x502   : > { %v7143_v62 = vmax.f32 %v7141_v50, %v7142_v2  ;;  %v6800_v30 = vmax.f32 %v6799_v10, %v5689_v7  ;;  %v5080_v45 = vpop.f32.mrf.mxu0  ;;  %v11167_v7 = vld [vmem:[#allocation40_spill] sm:$0xff] }
 0x503   : > { %v6675_v61 = vmax.f32 %v6674_v48, %v5080_v45  ;;  %v5691_v25 = vpop.f32.mrf.mxu1 }
 0x504   : > { %v7473_v9 = vcombine.low %v7074_v5, %v7143_v62  ;;  %v6732_v54 = vmax.f32 %v6731_v23, %v5691_v25  ;;  %v5084_v24 = vpop.f32.mrf.mxu0  ;;  %5323 = vmatmul.mubr.bf16.gmra.mxu0 %v11161_v1 }
 0x505   : > { %v6607_v42 = vmax.f32 %v6606_v49, %v5084_v24  ;;  %v5693_v56 = vpop.f32.mrf.mxu1  ;;  %5332 = vmatprep.mubr.bf16.mxu0 %v11124_v59 }
 0x506   : > { %v7487_v17 = vrot.slane %v7473_v9, %v11162_v38  ;;  %v6801_v36 = vmax.f32 %v6800_v30, %v5693_v56  ;;  %v5086_v22 = vpop.f32.mrf.mxu0 }
 0x507   : > { %v6676_v15 = vmax.f32 %v6675_v61, %v5086_v22  ;;  %v5697_v52 = vpop.f32.mrf.mxu1  ;;  %5936 = vmatmul.mubr.bf16.gmra.mxu1 %v11155_v32 }
 0x508   : > { %v7488_v20 = vcombine.low %v7480_v12, %v7487_v17  ;;  %v6733_v41 = vmax.f32 %v6732_v54, %v5697_v52  ;;  %v5088_v4 = vpop.f32.mrf.mxu0  ;;  %5945 = vmatprep.mubr.bf16.mxu1 %v11124_v59 }
 0x509   : > { %v6608_v13 = vmax.f32 %v6607_v42, %v5088_v4  ;;  %v5699_v37 = vpop.f32.mrf.mxu1 }
 0x50a   : > { %v7510_v28 = vrot.slane %v7488_v20, 7  ;;  %v6802_v34 = vmax.f32 %v6801_v36, %v5699_v37  ;;  %v5090_v33 = vpop.f32.mrf.mxu0 }
 0x50b   : > { %v6677_v47 = vmax.f32 %v6676_v15, %v5090_v33  ;;  %v5701_v55 = vpop.f32.mrf.mxu1  ;;  %v11168_v15 = vld [vmem:[#allocation39_spill] sm:$0xff] }
 0x50c   : > { %v7512_v32 = vsel %vm7511_vm1, %v7510_v28, %v11165_v0  ;;  %v6734_v57 = vmax.f32 %v6733_v41, %v5701_v55  ;;  %v5094_v60 = vpop.f32.mrf.mxu0  ;;  %5333 = vmatmul.mubr.bf16.gmra.mxu0 %v11166_v29 }
 0x50d   : > { %v7514_v51 = vsel %vm7513_vm2, %v7510_v28, %v7512_v32  ;;  %v6609_v11 = vmax.f32 %v6608_v13, %v5094_v60  ;;  %v5703_v63 = vpop.f32.mrf.mxu1  ;;  %5342 = vmatprep.mubr.bf16.mxu0 %v11124_v59 }
 0x50e   : > { %v7516_v3 = vsel %vm7515_vm3, %v7510_v28, %v7514_v51  ;;  %v6803_v19 = vmax.f32 %v6802_v34, %v5703_v63  ;;  %v5096_v14 = vpop.f32.mrf.mxu0 }
 0x50f   : > { %v7518_v53 = vsel %vm7517_vm4, %v7510_v28, %v7516_v3  ;;  %v6678_v43 = vmax.f32 %v6677_v47, %v5096_v14  ;;  %v5707_v39 = vpop.f32.mrf.mxu1  ;;  %5946 = vmatmul.mubr.bf16.gmra.mxu1 %v11156_v6 }
 0x510   : > { %v7528_v8 = vmax.f32 %v7420_v21, %v7518_v53  ;;  %v6735_v58 = vmax.f32 %v6734_v57, %v5707_v39  ;;  %v5098_v50 = vpop.f32.mrf.mxu0  ;;  %5955 = vmatprep.mubr.bf16.mxu1 %v11124_v59  ;;  %v11169_v57 = vld [vmem:[#allocation42_spill] sm:$0xff] }
 0x511   : > { %v6610_v10 = vmax.f32 %v6609_v11, %v5098_v50  ;;  %v5709_v31 = vpop.f32.mrf.mxu1 }
 0x512   : > { %7530 = vst [vmem:[%s8960_s20] sm:$0xff] %v7528_v8  ;;  %v6804_v48 = vmax.f32 %v6803_v19, %v5709_v31  ;;  %v5100_v16 = vpop.f32.mrf.mxu0  ;;  %v11170_v31 = vld [vmem:[#allocation41_spill] sm:$0xff] }
 0x513   : > { %v6679_v2 = vmax.f32 %v6678_v43, %v5100_v16  ;;  %v5711_v23 = vpop.f32.mrf.mxu1 }
 0x514   : > { %v6736_v44 = vmax.f32 %v6735_v58, %v5711_v23  ;;  %v5104_v49 = vpop.f32.mrf.mxu0  ;;  %5343 = vmatmul.mubr.bf16.gmra.mxu0 %v11167_v7 }
 0x515   : > { %v6611_v5 = vmax.f32 %v6610_v10, %v5104_v49  ;;  %v5713_v62 = vpop.f32.mrf.mxu1  ;;  %5352 = vmatprep.mubr.bf16.mxu0 %v11124_v59 }
 0x516   : > { %v6805_v6 = vmax.f32 %v6804_v48, %v5713_v62  ;;  %v5106_v30 = vpop.f32.mrf.mxu0 }
 0x517   : > { %v6680_v45 = vmax.f32 %v6679_v2, %v5106_v30  ;;  %v5717_v61 = vpop.f32.mrf.mxu1  ;;  %5956 = vmatmul.mubr.bf16.gmra.mxu1 %v11157_v18 }
 0x518   : > { %v6737_v25 = vmax.f32 %v6736_v44, %v5717_v61  ;;  %v5108_v9 = vpop.f32.mrf.mxu0  ;;  %5965 = vmatprep.mubr.bf16.mxu1 %v11124_v59 }
 0x519   : > { %v6612_v54 = vmax.f32 %v6611_v5, %v5108_v9  ;;  %v5719_v24 = vpop.f32.mrf.mxu1 }
 0x51a   : > { %v6806_v42 = vmax.f32 %v6805_v6, %v5719_v24  ;;  %v5110_v56 = vpop.f32.mrf.mxu0  ;;  %v11171_v24 = vld [vmem:[#allocation44_spill] sm:$0xff] }
 0x51b   : > { %v6681_v12 = vmax.f32 %v6680_v45, %v5110_v56  ;;  %v5721_v17 = vpop.f32.mrf.mxu1 }
 0x51c   : > { %v6738_v36 = vmax.f32 %v6737_v25, %v5721_v17  ;;  %v5114_v22 = vpop.f32.mrf.mxu0  ;;  %5353 = vmatmul.mubr.bf16.gmra.mxu0 %v11168_v15 }
 0x51d   : > { %v6613_v52 = vmax.f32 %v6612_v54, %v5114_v22  ;;  %v5723_v20 = vpop.f32.mrf.mxu1  ;;  %5362 = vmatprep.mubr.bf16.mxu0 %v11124_v59 }
 0x51e   : > { %v6807_v41 = vmax.f32 %v6806_v42, %v5723_v20  ;;  %v5116_v18 = vpop.f32.mrf.mxu0 }
 0x51f   : > { %v6682_v4 = vmax.f32 %v6681_v12, %v5116_v18  ;;  %v5727_v13 = vpop.f32.mrf.mxu1  ;;  %5966 = vmatmul.mubr.bf16.gmra.mxu1 %v11158_v35 }
 0x520   : > { %v6739_v37 = vmax.f32 %v6738_v36, %v5727_v13  ;;  %v5118_v28 = vpop.f32.mrf.mxu0  ;;  %5975 = vmatprep.mubr.bf16.mxu1 %v11124_v59 }
 0x521   : > { %v6614_v34 = vmax.f32 %v6613_v52, %v5118_v28  ;;  %v5729_v33 = vpop.f32.mrf.mxu1 }
 0x522   : > { %v6808_v47 = vmax.f32 %v6807_v41, %v5729_v33  ;;  %v5120_v55 = vpop.f32.mrf.mxu0  ;;  %v11172_v33 = vld [vmem:[#allocation43_spill] sm:$0xff] }
 0x523   : > { %v6683_v27 = vmax.f32 %v6682_v4, %v5120_v55  ;;  %v5731_v46 = vpop.f32.mrf.mxu1 }
 0x524   : > { %v6740_v0 = vmax.f32 %v6739_v37, %v5731_v46  ;;  %v5124_v32 = vpop.f32.mrf.mxu0  ;;  %5363 = vmatmul.mubr.bf16.gmra.mxu0 %v11169_v57 }
 0x525   : > { %v6615_v60 = vmax.f32 %v6614_v34, %v5124_v32  ;;  %v5733_v21 = vpop.f32.mrf.mxu1  ;;  %5372 = vmatprep.mubr.bf16.mxu0 %v11124_v59 }
 0x526   : > { %v6809_v51 = vmax.f32 %v6808_v47, %v5733_v21  ;;  %v5126_v35 = vpop.f32.mrf.mxu0 }
 0x527   : > { %v6684_v11 = vmax.f32 %v6683_v27, %v5126_v35  ;;  %v5737_v63 = vpop.f32.mrf.mxu1  ;;  %5976 = vmatmul.mubr.bf16.gmra.mxu1 %v11159_v26 }
 0x528   : > { %v6741_v3 = vmax.f32 %v6740_v0, %v5737_v63  ;;  %v5128_v19 = vpop.f32.mrf.mxu0  ;;  %5985 = vmatprep.mubr.bf16.mxu1 %v11124_v59 }
 0x529   : > { %v6616_v14 = vmax.f32 %v6615_v60, %v5128_v19  ;;  %v5739_v53 = vpop.f32.mrf.mxu1 }
 0x52a   : > { %v6810_v43 = vmax.f32 %v6809_v51, %v5739_v53  ;;  %v5130_v39 = vpop.f32.mrf.mxu0  ;;  %v11173_v53 = vld [vmem:[#allocation46_spill] sm:$0xff] }
 0x52b   : > { %v6685_v8 = vmax.f32 %v6684_v11, %v5130_v39  ;;  %v5741_v58 = vpop.f32.mrf.mxu1 }
 0x52c   : > { %v6742_v50 = vmax.f32 %v6741_v3, %v5741_v58  ;;  %v5134_v10 = vpop.f32.mrf.mxu0  ;;  %5373 = vmatmul.mubr.bf16.gmra.mxu0 %v11170_v31 }
 0x52d   : > { %v6617_v48 = vmax.f32 %v6616_v14, %v5134_v10  ;;  %v5743_v16 = vpop.f32.mrf.mxu1  ;;  %5382 = vmatprep.mubr.bf16.mxu0 %v11124_v59 }
 0x52e   : > { %v6811_v2 = vmax.f32 %v6810_v43, %v5743_v16  ;;  %v5136_v26 = vpop.f32.mrf.mxu0 }
 0x52f   : > { %v6686_v23 = vmax.f32 %v6685_v8, %v5136_v26  ;;  %v5747_v44 = vpop.f32.mrf.mxu1  ;;  %5986 = vmatmul.mubr.bf16.gmra.mxu1 %v11160_v40 }
 0x530   : > { %v6743_v49 = vmax.f32 %v6742_v50, %v5747_v44  ;;  %v5138_v5 = vpop.f32.mrf.mxu0  ;;  %5995 = vmatprep.mubr.bf16.mxu1 %v11124_v59 }
 0x531   : > { %v6618_v62 = vmax.f32 %v6617_v48, %v5138_v5  ;;  %v5749_v6 = vpop.f32.mrf.mxu1 }
 0x532   : > { %v6812_v30 = vmax.f32 %v6811_v2, %v5749_v6  ;;  %v5140_v45 = vpop.f32.mrf.mxu0  ;;  %v11174_v6 = vld [vmem:[#allocation45_spill] sm:$0xff] }
 0x533   : > { %v6687_v61 = vmax.f32 %v6686_v23, %v5140_v45  ;;  %v5751_v25 = vpop.f32.mrf.mxu1 }
 0x534   : > { %v6744_v9 = vmax.f32 %v6743_v49, %v5751_v25  ;;  %v5144_v54 = vpop.f32.mrf.mxu0  ;;  %5383 = vmatmul.mubr.bf16.gmra.mxu0 %v11171_v24 }
 0x535   : > { %v6619_v42 = vmax.f32 %v6618_v62, %v5144_v54  ;;  %v5753_v56 = vpop.f32.mrf.mxu1  ;;  %5392 = vmatprep.mubr.bf16.mxu0 %v11124_v59 }
 0x536   : > { %v6813_v12 = vmax.f32 %v6812_v30, %v5753_v56  ;;  %v5146_v40 = vpop.f32.mrf.mxu0 }
 0x537   : > { %v6688_v17 = vmax.f32 %v6687_v61, %v5146_v40  ;;  %v5757_v36 = vpop.f32.mrf.mxu1  ;;  %5996 = vmatmul.mubr.bf16.gmra.mxu1 %v11161_v1 }
 0x538   : > { %v6745_v22 = vmax.f32 %v6744_v9, %v5757_v36  ;;  %v5148_v52 = vpop.f32.mrf.mxu0  ;;  %6005 = vmatprep.mubr.bf16.mxu1 %v11124_v59 }
 0x539   : > { %v6620_v20 = vmax.f32 %v6619_v42, %v5148_v52  ;;  %v5759_v41 = vpop.f32.mrf.mxu1 }
 0x53a   : > { %v6814_v18 = vmax.f32 %v6813_v12, %v5759_v41  ;;  %v5150_v4 = vpop.f32.mrf.mxu0  ;;  %v11175_v41 = vld [vmem:[#allocation48_spill] sm:$0xff] }
 0x53b   : > { %v6689_v13 = vmax.f32 %v6688_v17, %v5150_v4  ;;  %v5761_v37 = vpop.f32.mrf.mxu1 }
 0x53c   : > { %v6746_v28 = vmax.f32 %v6745_v22, %v5761_v37  ;;  %v5154_v34 = vpop.f32.mrf.mxu0  ;;  %5393 = vmatmul.mubr.bf16.gmra.mxu0 %v11172_v33 }
 0x53d   : > { %v6621_v47 = vmax.f32 %v6620_v20, %v5154_v34  ;;  %v5763_v55 = vpop.f32.mrf.mxu1  ;;  %5402 = vmatprep.mubr.bf16.mxu0 %v11124_v59 }
 0x53e   : > { %v6815_v27 = vmax.f32 %v6814_v18, %v5763_v55  ;;  %v5156_v1 = vpop.f32.mrf.mxu0 }
 0x53f   : > { %v6690_v46 = vmax.f32 %v6689_v13, %v5156_v1  ;;  %v5767_v0 = vpop.f32.mrf.mxu1  ;;  %6006 = vmatmul.mubr.bf16.gmra.mxu1 %v11166_v29 }
 0x540   : > { %v6747_v32 = vmax.f32 %v6746_v28, %v5767_v0  ;;  %v5158_v60 = vpop.f32.mrf.mxu0  ;;  %6015 = vmatprep.mubr.bf16.mxu1 %v11124_v59 }
 0x541   : > { %v6622_v21 = vmax.f32 %v6621_v47, %v5158_v60  ;;  %v5769_v51 = vpop.f32.mrf.mxu1 }
 0x542   : > { %v6816_v35 = vmax.f32 %v6815_v27, %v5769_v51  ;;  %v5160_v11 = vpop.f32.mrf.mxu0  ;;  %v11176_v51 = vld [vmem:[#allocation47_spill] sm:$0xff] }
 0x543   : > { %v6691_v63 = vmax.f32 %v6690_v46, %v5160_v11  ;;  %v5771_v3 = vpop.f32.mrf.mxu1 }
 0x544   : > { %v6748_v19 = vmax.f32 %v6747_v32, %v5771_v3  ;;  %v5164_v14 = vpop.f32.mrf.mxu0  ;;  %5403 = vmatmul.mubr.bf16.gmra.mxu0 %v11173_v53 }
 0x545   : > { %v6623_v43 = vmax.f32 %v6622_v21, %v5164_v14  ;;  %v5773_v39 = vpop.f32.mrf.mxu1  ;;  %5412 = vmatprep.mubr.bf16.mxu0 %v11124_v59 }
 0x546   : > { %v6817_v8 = vmax.f32 %v6816_v35, %v5773_v39  ;;  %v5166_v29 = vpop.f32.mrf.mxu0 }
 0x547   : > { %v6692_v58 = vmax.f32 %v6691_v63, %v5166_v29  ;;  %v5777_v50 = vpop.f32.mrf.mxu1  ;;  %6016 = vmatmul.mubr.bf16.gmra.mxu1 %v11167_v7 }
 0x548   : > { %v6749_v10 = vmax.f32 %v6748_v19, %v5777_v50  ;;  %v5168_v48 = vpop.f32.mrf.mxu0  ;;  %6025 = vmatprep.mubr.bf16.mxu1 %v11124_v59 }
 0x549   : > { %v6624_v16 = vmax.f32 %v6623_v43, %v5168_v48  ;;  %v5779_v2 = vpop.f32.mrf.mxu1 }
 0x54a   : > { %v6818_v26 = vmax.f32 %v6817_v8, %v5779_v2  ;;  %v5170_v23 = vpop.f32.mrf.mxu0  ;;  %v11177_v2 = vld [vmem:[#allocation50_spill] sm:$0xff] }
 0x54b   : > { %v6693_v44 = vmax.f32 %v6692_v58, %v5170_v23  ;;  %v5781_v49 = vpop.f32.mrf.mxu1 }
 0x54c   : > { %v6750_v5 = vmax.f32 %v6749_v10, %v5781_v49  ;;  %v5174_v62 = vpop.f32.mrf.mxu0  ;;  %5413 = vmatmul.mubr.bf16.gmra.mxu0 %v11174_v6 }
 0x54d   : > { %v6625_v30 = vmax.f32 %v6624_v16, %v5174_v62  ;;  %v5783_v45 = vpop.f32.mrf.mxu1  ;;  %5422 = vmatprep.mubr.bf16.mxu0 %v11124_v59 }
 0x54e   : > { %v6819_v61 = vmax.f32 %v6818_v26, %v5783_v45  ;;  %v5176_v7 = vpop.f32.mrf.mxu0 }
 0x54f   : > { %v6694_v25 = vmax.f32 %v6693_v44, %v5176_v7  ;;  %v5787_v9 = vpop.f32.mrf.mxu1  ;;  %6026 = vmatmul.mubr.bf16.gmra.mxu1 %v11168_v15 }
 0x550   : > { %v6751_v54 = vmax.f32 %v6750_v5, %v5787_v9  ;;  %v5178_v42 = vpop.f32.mrf.mxu0  ;;  %6035 = vmatprep.mubr.bf16.mxu1 %v11124_v59 }
 0x551   : > { %v6626_v56 = vmax.f32 %v6625_v30, %v5178_v42  ;;  %v5789_v12 = vpop.f32.mrf.mxu1 }
 0x552   : > { %v6820_v40 = vmax.f32 %v6819_v61, %v5789_v12  ;;  %v5180_v17 = vpop.f32.mrf.mxu0  ;;  %v11178_v12 = vld [vmem:[#allocation49_spill] sm:$0xff] }
 0x553   : > { %v6695_v36 = vmax.f32 %v6694_v25, %v5180_v17  ;;  %v5791_v22 = vpop.f32.mrf.mxu1 }
 0x554   : > { %v6752_v52 = vmax.f32 %v6751_v54, %v5791_v22  ;;  %v5184_v20 = vpop.f32.mrf.mxu0  ;;  %5423 = vmatmul.mubr.bf16.gmra.mxu0 %v11175_v41 }
 0x555   : > { %v6627_v18 = vmax.f32 %v6626_v56, %v5184_v20  ;;  %v5793_v4 = vpop.f32.mrf.mxu1  ;;  %5432 = vmatprep.mubr.bf16.mxu0 %v11124_v59 }
 0x556   : > { %v6821_v13 = vmax.f32 %v6820_v40, %v5793_v4  ;;  %v5186_v15 = vpop.f32.mrf.mxu0 }
 0x557   : > { %v6696_v37 = vmax.f32 %v6695_v36, %v5186_v15  ;;  %v5797_v28 = vpop.f32.mrf.mxu1  ;;  %6036 = vmatmul.mubr.bf16.gmra.mxu1 %v11169_v57 }
 0x558   : > { %v6753_v34 = vmax.f32 %v6752_v52, %v5797_v28  ;;  %v5188_v47 = vpop.f32.mrf.mxu0  ;;  %6045 = vmatprep.mubr.bf16.mxu1 %v11124_v59 }
 0x559   : > { %v6628_v55 = vmax.f32 %v6627_v18, %v5188_v47  ;;  %v5799_v27 = vpop.f32.mrf.mxu1 }
 0x55a   : > { %v6822_v1 = vmax.f32 %v6821_v13, %v5799_v27  ;;  %v5190_v46 = vpop.f32.mrf.mxu0  ;;  %v11179_v27 = vld [vmem:[#allocation52_spill] sm:$0xff] }
 0x55b   : > { %v6697_v0 = vmax.f32 %v6696_v37, %v5190_v46  ;;  %v5801_v32 = vpop.f32.mrf.mxu1 }
 0x55c   : > { %v6754_v60 = vmax.f32 %v6753_v34, %v5801_v32  ;;  %v5194_v21 = vpop.f32.mrf.mxu0  ;;  %5433 = vmatmul.mubr.bf16.gmra.mxu0 %v11176_v51 }
 0x55d   : > { %v6629_v35 = vmax.f32 %v6628_v55, %v5194_v21  ;;  %v5803_v11 = vpop.f32.mrf.mxu1  ;;  %5442 = vmatprep.mubr.bf16.mxu0 %v11124_v59 }
 0x55e   : > { %v6823_v63 = vmax.f32 %v6822_v1, %v5803_v11  ;;  %v5196_v57 = vpop.f32.mrf.mxu0 }
 0x55f   : > { %v6698_v3 = vmax.f32 %v6697_v0, %v5196_v57  ;;  %v5807_v19 = vpop.f32.mrf.mxu1  ;;  %6046 = vmatmul.mubr.bf16.gmra.mxu1 %v11170_v31 }
 0x560   : > { %v6755_v14 = vmax.f32 %v6754_v60, %v5807_v19  ;;  %v5198_v43 = vpop.f32.mrf.mxu0  ;;  %6055 = vmatprep.mubr.bf16.mxu1 %v11124_v59 }
 0x561   : > { %v6630_v39 = vmax.f32 %v6629_v35, %v5198_v43  ;;  %v5809_v8 = vpop.f32.mrf.mxu1 }
 0x562   : > { %v6824_v29 = vmax.f32 %v6823_v63, %v5809_v8  ;;  %v5200_v58 = vpop.f32.mrf.mxu0  ;;  %v11180_v8 = vld [vmem:[#allocation51_spill] sm:$0xff] }
 0x563   : > { %v6699_v50 = vmax.f32 %v6698_v3, %v5200_v58  ;;  %v5811_v10 = vpop.f32.mrf.mxu1 }
 0x564   : > { %v6756_v48 = vmax.f32 %v6755_v14, %v5811_v10  ;;  %v5204_v16 = vpop.f32.mrf.mxu0  ;;  %5443 = vmatmul.mubr.bf16.gmra.mxu0 %v11177_v2 }
 0x565   : > { %v6631_v26 = vmax.f32 %v6630_v39, %v5204_v16  ;;  %v5813_v23 = vpop.f32.mrf.mxu1  ;;  %5452 = vmatprep.mubr.bf16.mxu0 %v11124_v59 }
 0x566   : > { %v6825_v44 = vmax.f32 %v6824_v29, %v5813_v23  ;;  %v5206_v31 = vpop.f32.mrf.mxu0 }
 0x567   : > { %v6700_v49 = vmax.f32 %v6699_v50, %v5206_v31  ;;  %v5817_v5 = vpop.f32.mrf.mxu1  ;;  %6056 = vmatmul.mubr.bf16.gmra.mxu1 %v11171_v24 }
 0x568   : > { %v6757_v62 = vmax.f32 %v6756_v48, %v5817_v5  ;;  %v5208_v30 = vpop.f32.mrf.mxu0  ;;  %6065 = vmatprep.mubr.bf16.mxu1 %v11124_v59 }
 0x569   : > { %v6632_v45 = vmax.f32 %v6631_v26, %v5208_v30  ;;  %v5819_v61 = vpop.f32.mrf.mxu1 }
 0x56a   : > { %v6826_v7 = vmax.f32 %v6825_v44, %v5819_v61  ;;  %v5210_v25 = vpop.f32.mrf.mxu0  ;;  %v11181_v61 = vld [vmem:[#allocation54_spill] sm:$0xff] }
 0x56b   : > { %v6701_v9 = vmax.f32 %v6700_v49, %v5210_v25  ;;  %v5821_v54 = vpop.f32.mrf.mxu1 }
 0x56c   : > { %v6758_v42 = vmax.f32 %v6757_v62, %v5821_v54  ;;  %v5214_v56 = vpop.f32.mrf.mxu0  ;;  %5453 = vmatmul.mubr.bf16.gmra.mxu0 %v11178_v12 }
 0x56d   : > { %v6633_v40 = vmax.f32 %v6632_v45, %v5214_v56  ;;  %v5823_v17 = vpop.f32.mrf.mxu1  ;;  %5462 = vmatprep.mubr.bf16.mxu0 %v11124_v59 }
 0x56e   : > { %v6827_v36 = vmax.f32 %v6826_v7, %v5823_v17  ;;  %v5216_v24 = vpop.f32.mrf.mxu0 }
 0x56f   : > { %v6702_v22 = vmax.f32 %v6701_v9, %v5216_v24  ;;  %v5827_v52 = vpop.f32.mrf.mxu1  ;;  %6066 = vmatmul.mubr.bf16.gmra.mxu1 %v11172_v33 }
 0x570   : > { %v6759_v20 = vmax.f32 %v6758_v42, %v5827_v52  ;;  %v5218_v18 = vpop.f32.mrf.mxu0  ;;  %6075 = vmatprep.mubr.bf16.mxu1 %v11124_v59 }
 0x571   : > { %v6634_v4 = vmax.f32 %v6633_v40, %v5218_v18  ;;  %v5829_v13 = vpop.f32.mrf.mxu1 }
 0x572   : > { %v6828_v15 = vmax.f32 %v6827_v36, %v5829_v13  ;;  %v5220_v37 = vpop.f32.mrf.mxu0  ;;  %v11182_v13 = vld [vmem:[#allocation53_spill] sm:$0xff] }
 0x573   : > { %v6703_v28 = vmax.f32 %v6702_v22, %v5220_v37  ;;  %v5831_v34 = vpop.f32.mrf.mxu1 }
 0x574   : > { %v6760_v47 = vmax.f32 %v6759_v20, %v5831_v34  ;;  %v5224_v55 = vpop.f32.mrf.mxu0  ;;  %5463 = vmatmul.mubr.bf16.gmra.mxu0 %v11179_v27 }
 0x575   : > { %v6635_v1 = vmax.f32 %v6634_v4, %v5224_v55  ;;  %v5833_v46 = vpop.f32.mrf.mxu1  ;;  %5472 = vmatprep.mubr.bf16.mxu0 %v11124_v59 }
 0x576   : > { %v6829_v0 = vmax.f32 %v6828_v15, %v5833_v46  ;;  %v5226_v33 = vpop.f32.mrf.mxu0 }
 0x577   : > { %v6704_v32 = vmax.f32 %v6703_v28, %v5226_v33  ;;  %v5837_v60 = vpop.f32.mrf.mxu1  ;;  %6076 = vmatmul.mubr.bf16.gmra.mxu1 %v11173_v53 }
 0x578   : > { %v6761_v21 = vmax.f32 %v6760_v47, %v5837_v60  ;;  %v5228_v35 = vpop.f32.mrf.mxu0  ;;  %6085 = vmatprep.mubr.bf16.mxu1 %v11124_v59 }
 0x579   : > { %v6636_v11 = vmax.f32 %v6635_v1, %v5228_v35  ;;  %v5839_v63 = vpop.f32.mrf.mxu1 }
 0x57a   : > { %v6830_v57 = vmax.f32 %v6829_v0, %v5839_v63  ;;  %v5230_v3 = vpop.f32.mrf.mxu0  ;;  %v11183_v63 = vld [vmem:[#allocation56_spill] sm:$0xff] }
 0x57b   : > { %v6705_v19 = vmax.f32 %v6704_v32, %v5230_v3  ;;  %v5841_v14 = vpop.f32.mrf.mxu1 }
 0x57c   : > { %v6762_v43 = vmax.f32 %v6761_v21, %v5841_v14  ;;  %v5234_v39 = vpop.f32.mrf.mxu0  ;;  %5473 = vmatmul.mubr.bf16.gmra.mxu0 %v11180_v8 }
 0x57d   : > { %v6637_v29 = vmax.f32 %v6636_v11, %v5234_v39  ;;  %v5843_v58 = vpop.f32.mrf.mxu1  ;;  %5482 = vmatprep.mubr.bf16.mxu0 %v11124_v59 }
 0x57e   : > { %v6831_v50 = vmax.f32 %v6830_v57, %v5843_v58  ;;  %v5236_v53 = vpop.f32.mrf.mxu0 }
 0x57f   : > { %v6706_v10 = vmax.f32 %v6705_v19, %v5236_v53  ;;  %v5847_v48 = vpop.f32.mrf.mxu1  ;;  %6086 = vmatmul.mubr.bf16.gmra.mxu1 %v11174_v6 }
 0x580   : > { %v6763_v16 = vmax.f32 %v6762_v43, %v5847_v48  ;;  %v5238_v26 = vpop.f32.mrf.mxu0  ;;  %6095 = vmatprep.mubr.bf16.mxu1 %v11124_v59 }
 0x581   : > { %v6638_v23 = vmax.f32 %v6637_v29, %v5238_v26  ;;  %v5849_v44 = vpop.f32.mrf.mxu1 }
 0x582   : > { %v6832_v31 = vmax.f32 %v6831_v50, %v5849_v44  ;;  %v5240_v49 = vpop.f32.mrf.mxu0  ;;  %v11184_v44 = vld [vmem:[#allocation55_spill] sm:$0xff] }
 0x583   : > { %v6707_v5 = vmax.f32 %v6706_v10, %v5240_v49  ;;  %v5851_v62 = vpop.f32.mrf.mxu1 }
 0x584   : > { %v6764_v30 = vmax.f32 %v6763_v16, %v5851_v62  ;;  %v5244_v45 = vpop.f32.mrf.mxu0  ;;  %5483 = vmatmul.mubr.bf16.gmra.mxu0 %v11181_v61 }
 0x585   : > { %v6639_v7 = vmax.f32 %v6638_v23, %v5244_v45  ;;  %v5853_v25 = vpop.f32.mrf.mxu1  ;;  %5492 = vmatprep.mubr.bf16.mxu0 %v11124_v59 }
 0x586   : > { %v6833_v9 = vmax.f32 %v6832_v31, %v5853_v25  ;;  %v5246_v6 = vpop.f32.mrf.mxu0 }
 0x587   : > { %v6708_v54 = vmax.f32 %v6707_v5, %v5246_v6  ;;  %v5857_v42 = vpop.f32.mrf.mxu1  ;;  %6096 = vmatmul.mubr.bf16.gmra.mxu1 %v11175_v41 }
 0x588   : > { %v6765_v56 = vmax.f32 %v6764_v30, %v5857_v42  ;;  %v5248_v40 = vpop.f32.mrf.mxu0  ;;  %6105 = vmatprep.mubr.bf16.mxu1 %v11124_v59 }
 0x589   : > { %v6640_v17 = vmax.f32 %v6639_v7, %v5248_v40  ;;  %v5859_v36 = vpop.f32.mrf.mxu1 }
 0x58a   : > { %v6834_v24 = vmax.f32 %v6833_v9, %v5859_v36  ;;  %v5250_v22 = vpop.f32.mrf.mxu0  ;;  %v11185_v36 = vld [vmem:[#allocation58_spill] sm:$0xff] }
 0x58b   : > { %v6709_v52 = vmax.f32 %v6708_v54, %v5250_v22  ;;  %v5861_v20 = vpop.f32.mrf.mxu1 }
 0x58c   : > { %v6766_v18 = vmax.f32 %v6765_v56, %v5861_v20  ;;  %v5254_v4 = vpop.f32.mrf.mxu0  ;;  %5493 = vmatmul.mubr.bf16.gmra.mxu0 %v11182_v13 }
 0x58d   : > { %v6641_v15 = vmax.f32 %v6640_v17, %v5254_v4  ;;  %v5863_v37 = vpop.f32.mrf.mxu1  ;;  %5502 = vmatprep.mubr.bf16.mxu0 %v11124_v59 }
 0x58e   : > { %v6835_v28 = vmax.f32 %v6834_v24, %v5863_v37  ;;  %v5256_v41 = vpop.f32.mrf.mxu0 }
 0x58f   : > { %v6710_v34 = vmax.f32 %v6709_v52, %v5256_v41  ;;  %v5867_v47 = vpop.f32.mrf.mxu1  ;;  %6106 = vmatmul.mubr.bf16.gmra.mxu1 %v11176_v51 }
 0x590   : > { %v6767_v55 = vmax.f32 %v6766_v18, %v5867_v47  ;;  %v5258_v1 = vpop.f32.mrf.mxu0  ;;  %6115 = vmatprep.mubr.bf16.mxu1 %v11124_v59 }
 0x591   : > { %v6642_v46 = vmax.f32 %v6641_v15, %v5258_v1  ;;  %v5869_v0 = vpop.f32.mrf.mxu1 }
 0x592   : > { %v6836_v33 = vmax.f32 %v6835_v28, %v5869_v0  ;;  %v5260_v32 = vpop.f32.mrf.mxu0  ;;  %v11186_v0 = vld [vmem:[#allocation57_spill] sm:$0xff] }
 0x593   : > { %v6711_v60 = vmax.f32 %v6710_v34, %v5260_v32  ;;  %v5871_v21 = vpop.f32.mrf.mxu1 }
 0x594   : > { %v6768_v35 = vmax.f32 %v6767_v55, %v5871_v21  ;;  %v5264_v11 = vpop.f32.mrf.mxu0  ;;  %5503 = vmatmul.mubr.bf16.gmra.mxu0 %v11183_v63 }
 0x595   : > { %v6643_v57 = vmax.f32 %v6642_v46, %v5264_v11  ;;  %v5873_v3 = vpop.f32.mrf.mxu1  ;;  %5512 = vmatprep.mubr.bf16.mxu0 %v11124_v59 }
 0x596   : > { %v6837_v19 = vmax.f32 %v6836_v33, %v5873_v3  ;;  %v5266_v51 = vpop.f32.mrf.mxu0 }
 0x597   : > { %v6712_v14 = vmax.f32 %v6711_v60, %v5266_v51  ;;  %v5877_v43 = vpop.f32.mrf.mxu1  ;;  %6116 = vmatmul.mubr.bf16.gmra.mxu1 %v11177_v2 }
 0x598   : > { %v6769_v39 = vmax.f32 %v6768_v35, %v5877_v43  ;;  %v5268_v29 = vpop.f32.mrf.mxu0  ;;  %6125 = vmatprep.mubr.bf16.mxu1 %v11124_v59 }
 0x599   : > { %v6644_v58 = vmax.f32 %v6643_v57, %v5268_v29  ;;  %v5879_v50 = vpop.f32.mrf.mxu1 }
 0x59a   : > { %v6838_v53 = vmax.f32 %v6837_v19, %v5879_v50  ;;  %v5270_v10 = vpop.f32.mrf.mxu0  ;;  %v11187_v50 = vld [vmem:[#allocation60_spill] sm:$0xff] }
 0x59b   : > { %v6713_v48 = vmax.f32 %v6712_v14, %v5270_v10  ;;  %v5881_v16 = vpop.f32.mrf.mxu1 }
 0x59c   : > { %v6770_v26 = vmax.f32 %v6769_v39, %v5881_v16  ;;  %v5274_v23 = vpop.f32.mrf.mxu0  ;;  %5513 = vmatmul.mubr.bf16.gmra.mxu0 %v11184_v44 }
 0x59d   : > { %v6645_v31 = vmax.f32 %v6644_v58, %v5274_v23  ;;  %v5883_v49 = vpop.f32.mrf.mxu1  ;;  %5522 = vmatprep.mubr.bf16.mxu0 %v11124_v59 }
 0x59e   : > { %v6839_v5 = vmax.f32 %v6838_v53, %v5883_v49  ;;  %v5276_v2 = vpop.f32.mrf.mxu0 }
 0x59f   : > { %v6714_v62 = vmax.f32 %v6713_v48, %v5276_v2  ;;  %v5887_v30 = vpop.f32.mrf.mxu1  ;;  %6126 = vmatmul.mubr.bf16.gmra.mxu1 %v11178_v12 }
 0x5a0   : > { %v6771_v45 = vmax.f32 %v6770_v26, %v5887_v30  ;;  %v5278_v7 = vpop.f32.mrf.mxu0  ;;  %6135 = vmatprep.mubr.bf16.mxu1 %v11124_v59 }
 0x5a1   : > { %v6646_v25 = vmax.f32 %v6645_v31, %v5278_v7  ;;  %v5889_v9 = vpop.f32.mrf.mxu1 }
 0x5a2   : > { %v6840_v6 = vmax.f32 %v6839_v5, %v5889_v9  ;;  %v5280_v54 = vpop.f32.mrf.mxu0  ;;  %v11188_v9 = vld [vmem:[#allocation59_spill] sm:$0xff] }
 0x5a3   : > { %v6715_v42 = vmax.f32 %v6714_v62, %v5280_v54  ;;  %v5891_v56 = vpop.f32.mrf.mxu1 }
 0x5a4   : > { %v6772_v40 = vmax.f32 %v6771_v45, %v5891_v56  ;;  %v5284_v17 = vpop.f32.mrf.mxu0  ;;  %5523 = vmatmul.mubr.bf16.gmra.mxu0 %v11185_v36 }
 0x5a5   : > { %v6647_v24 = vmax.f32 %v6646_v25, %v5284_v17  ;;  %v5893_v22 = vpop.f32.mrf.mxu1  ;;  %5532 = vmatprep.mubr.bf16.mxu0 %v11124_v59 }
 0x5a6   : > { %v6841_v52 = vmax.f32 %v6840_v6, %v5893_v22  ;;  %v5286_v12 = vpop.f32.mrf.mxu0 }
 0x5a7   : > { %v6716_v20 = vmax.f32 %v6715_v42, %v5286_v12  ;;  %v5897_v18 = vpop.f32.mrf.mxu1  ;;  %6136 = vmatmul.mubr.bf16.gmra.mxu1 %v11179_v27 }
 0x5a8   : > { %v6773_v4 = vmax.f32 %v6772_v40, %v5897_v18  ;;  %v5288_v15 = vpop.f32.mrf.mxu0  ;;  %6145 = vmatprep.mubr.bf16.mxu1 %v11124_v59 }
 0x5a9   : > { %v6648_v37 = vmax.f32 %v6647_v24, %v5288_v15  ;;  %v5899_v28 = vpop.f32.mrf.mxu1 }
 0x5aa   : > { %v6842_v41 = vmax.f32 %v6841_v52, %v5899_v28  ;;  %v5290_v34 = vpop.f32.mrf.mxu0 }
 0x5ab   : > { %v6717_v47 = vmax.f32 %v6716_v20, %v5290_v34  ;;  %v5901_v55 = vpop.f32.mrf.mxu1 }
 0x5ac   : > { %v6774_v1 = vmax.f32 %v6773_v4, %v5901_v55  ;;  %v5294_v46 = vpop.f32.mrf.mxu0  ;;  %5533 = vmatmul.mubr.bf16.gmra.mxu0 %v11186_v0 }
 0x5ad   : > { %v6649_v33 = vmax.f32 %v6648_v37, %v5294_v46  ;;  %v5903_v32 = vpop.f32.mrf.mxu1  ;;  %5542 = vmatprep.mubr.bf16.mxu0 %v11124_v59 }
 0x5ae   : > { %v6843_v60 = vmax.f32 %v6842_v41, %v5903_v32  ;;  %v5296_v27 = vpop.f32.mrf.mxu0  ;;  %v11189_v41 = vld [vmem:[#allocation62_spill] sm:$0xff] }
 0x5af   : > { %v6718_v21 = vmax.f32 %v6717_v47, %v5296_v27  ;;  %v5907_v35 = vpop.f32.mrf.mxu1  ;;  %6146 = vmatmul.mubr.bf16.gmra.mxu1 %v11180_v8 }
 0x5b0   : > { %v6775_v11 = vmax.f32 %v6774_v1, %v5907_v35  ;;  %v5298_v57 = vpop.f32.mrf.mxu0  ;;  %6155 = vmatprep.mubr.bf16.mxu1 %v11124_v59 }
 0x5b1   : > { %v6650_v3 = vmax.f32 %v6649_v33, %v5298_v57  ;;  %v5909_v19 = vpop.f32.mrf.mxu1 }
 0x5b2   : > { %v6844_v51 = vmax.f32 %v6843_v60, %v5909_v19  ;;  %v5300_v14 = vpop.f32.mrf.mxu0 }
 0x5b3   : > { %v6719_v43 = vmax.f32 %v6718_v21, %v5300_v14  ;;  %v5911_v39 = vpop.f32.mrf.mxu1 }
 0x5b4   : > { %v6776_v29 = vmax.f32 %v6775_v11, %v5911_v39  ;;  %v5304_v58 = vpop.f32.mrf.mxu0  ;;  %5543 = vmatmul.mubr.bf16.gmra.mxu0 %v11187_v50 }
 0x5b5   : > { %v6651_v53 = vmax.f32 %v6650_v3, %v5304_v58  ;;  %v5913_v10 = vpop.f32.mrf.mxu1  ;;  %5552 = vmatprep.mubr.bf16.mxu0 %v11124_v59 }
 0x5b6   : > { %v6845_v48 = vmax.f32 %v6844_v51, %v5913_v10  ;;  %v5306_v8 = vpop.f32.mrf.mxu0 }
 0x5b7   : > { %v6720_v16 = vmax.f32 %v6719_v43, %v5306_v8  ;;  %v5917_v26 = vpop.f32.mrf.mxu1  ;;  %6156 = vmatmul.mubr.bf16.gmra.mxu1 %v11181_v61 }
 0x5b8   : > { %v6777_v23 = vmax.f32 %v6776_v29, %v5917_v26  ;;  %v5308_v31 = vpop.f32.mrf.mxu0  ;;  %6165 = vmatprep.mubr.bf16.mxu1 %v11124_v59 }
 0x5b9   : > { %v6652_v49 = vmax.f32 %v6651_v53, %v5308_v31  ;;  %v5919_v5 = vpop.f32.mrf.mxu1  ;;  %v11190_v53 = vld [vmem:[#allocation61_spill] sm:$0xff] }
 0x5ba   : > { %v6846_v2 = vmax.f32 %v6845_v48, %v5919_v5  ;;  %v5310_v62 = vpop.f32.mrf.mxu0 }
 0x5bb   : > { %v6721_v30 = vmax.f32 %v6720_v16, %v5310_v62  ;;  %v5921_v45 = vpop.f32.mrf.mxu1 }
 0x5bc   : > { %v6778_v7 = vmax.f32 %v6777_v23, %v5921_v45  ;;  %v5314_v25 = vpop.f32.mrf.mxu0  ;;  %5553 = vmatmul.mubr.bf16.gmra.mxu0 %v11188_v9 }
 0x5bd   : > { %v6653_v6 = vmax.f32 %v6652_v49, %v5314_v25  ;;  %v5923_v54 = vpop.f32.mrf.mxu1  ;;  %5562 = vmatprep.mubr.bf16.mxu0 %v11124_v59 }
 0x5be   : > { %v6847_v42 = vmax.f32 %v6846_v2, %v5923_v54  ;;  %v5316_v61 = vpop.f32.mrf.mxu0 }
 0x5bf   : > { %v6722_v56 = vmax.f32 %v6721_v30, %v5316_v61  ;;  %v5927_v40 = vpop.f32.mrf.mxu1  ;;  %6166 = vmatmul.mubr.bf16.gmra.mxu1 %v11182_v13 }
 0x5c0   : > { %v6779_v17 = vmax.f32 %v6778_v7, %v5927_v40  ;;  %v5318_v24 = vpop.f32.mrf.mxu0  ;;  %6175 = vmatprep.mubr.bf16.mxu1 %v11124_v59 }
 0x5c1   : > { %v6654_v22 = vmax.f32 %v6653_v6, %v5318_v24  ;;  %v5929_v52 = vpop.f32.mrf.mxu1 }
 0x5c2   : > { %v6848_v12 = vmax.f32 %v6847_v42, %v5929_v52  ;;  %v5320_v20 = vpop.f32.mrf.mxu0 }
 0x5c3   : > { %v6655_v18 = vrot.slane %v6654_v22, 4  ;;  %v6723_v4 = vmax.f32 %v6722_v56, %v5320_v20  ;;  %v5931_v15 = vpop.f32.mrf.mxu1  ;;  %v11191_v56 = vld [vmem:[#allocation64_spill] sm:$0xff] }
 0x5c4   : > { %v6780_v37 = vmax.f32 %v6779_v17, %v5931_v15  ;;  %v5324_v28 = vpop.f32.mrf.mxu0  ;;  %5563 = vmatmul.mubr.bf16.gmra.mxu0 %v11189_v41 }
 0x5c5   : > { %v6656_v34 = vmax.f32 %v6654_v22, %v6655_v18  ;;  %v6724_v47 = vrot.slane %v6723_v4, 4  ;;  %v5933_v55 = vpop.f32.mrf.mxu1  ;;  %5572 = vmatprep.mubr.bf16.mxu0 %v11124_v59 }
 0x5c6   : > { %v6849_v13 = vmax.f32 %v6848_v12, %v5933_v55  ;;  %v5326_v1 = vpop.f32.mrf.mxu0 }
 0x5c7   : > { %v6657_v46 = vrot.slane %v6656_v34, 2  ;;  %v6725_v33 = vmax.f32 %v6723_v4, %v6724_v47  ;;  %v5937_v32 = vpop.f32.mrf.mxu1  ;;  %6176 = vmatmul.mubr.bf16.gmra.mxu1 %v11183_v63 }
 0x5c8   : > { %v6781_v60 = vmax.f32 %v6780_v37, %v5937_v32  ;;  %v5328_v27 = vpop.f32.mrf.mxu0  ;;  %6185 = vmatprep.mubr.bf16.mxu1 %v11124_v59 }
 0x5c9   : > { %v6658_v21 = vmax.f32 %v6656_v34, %v6657_v46  ;;  %v6726_v35 = vrot.slane %v6725_v33, 2  ;;  %v7144_v11 = vmax.f32 %v5324_v28, %v5328_v27  ;;  %v5939_v57 = vpop.f32.mrf.mxu1 }
 0x5ca   : > { %v6850_v3 = vmax.f32 %v6849_v13, %v5939_v57  ;;  %v5330_v19 = vpop.f32.mrf.mxu0  ;;  %v11192_v13 = vld [vmem:[#allocation63_spill] sm:$0xff] }
 0x5cb   : > { %v6659_v51 = vrot.slane %v6658_v21, 1  ;;  %v6727_v14 = vmax.f32 %v6725_v33, %v6726_v35  ;;  %v7213_v43 = vmax.f32 %v5326_v1, %v5330_v19  ;;  %v5941_v39 = vpop.f32.mrf.mxu1 }
 0x5cc   : > { %v6782_v29 = vmax.f32 %v6781_v60, %v5941_v39  ;;  %v5334_v58 = vpop.f32.mrf.mxu0  ;;  %5573 = vmatmul.mubr.bf16.gmra.mxu0 %v11190_v53  ;;  %v11193_v39 = vld [vmem:[#allocation66_spill] sm:$0xff] }
 0x5cd   : > { %v6728_v10 = vrot.slane %v6727_v14, 1  ;;  %v7145_v63 = vmax.f32 %v7144_v11, %v5334_v58  ;;  %v5943_v48 = vpop.f32.mrf.mxu1  ;;  %5582 = vmatprep.mubr.bf16.mxu0 %v11124_v59  ;;  %v10550_v26 = vmax.f32 %v6658_v21, %v6659_v51 }
 0x5ce   : > { %v6851_v8 = vmax.f32 %v6850_v3, %v5943_v48  ;;  %v5336_v16 = vpop.f32.mrf.mxu0 }
 0x5cf   : > { %v10552_v23 = vmax.f32 %v6727_v14, %v6728_v10  ;;  %v7214_v31 = vmax.f32 %v7213_v43, %v5336_v16  ;;  %v5947_v49 = vpop.f32.mrf.mxu1  ;;  %6186 = vmatmul.mubr.bf16.gmra.mxu1 %v11184_v44 }
 0x5d0   : > { %v6783_v5 = vmax.f32 %v6782_v29, %v5947_v49  ;;  %v5338_v2 = vpop.f32.mrf.mxu0  ;;  %6195 = vmatprep.mubr.bf16.mxu1 %v11124_v59 }
 0x5d1   : > { %v7455_v62 = vcombine.low %v10550_v26, %v10552_v23  ;;  %v7146_v30 = vmax.f32 %v7145_v63, %v5338_v2  ;;  %v5949_v45 = vpop.f32.mrf.mxu1 }
 0x5d2   : > { %v6852_v7 = vmax.f32 %v6851_v8, %v5949_v45  ;;  %v5340_v25 = vpop.f32.mrf.mxu0 }
 0x5d3   : > { %v7215_v6 = vmax.f32 %v7214_v31, %v5340_v25  ;;  %v5951_v54 = vpop.f32.mrf.mxu1 }
 0x5d4   : > { %v6784_v42 = vmax.f32 %v6783_v5, %v5951_v54  ;;  %v5344_v61 = vpop.f32.mrf.mxu0  ;;  %5583 = vmatmul.mubr.bf16.gmra.mxu0 %v11191_v56 }
 0x5d5   : > { %v7147_v40 = vmax.f32 %v7146_v30, %v5344_v61  ;;  %v5953_v17 = vpop.f32.mrf.mxu1  ;;  %5592 = vmatprep.mubr.bf16.mxu0 %v11124_v59 }
 0x5d6   : > { %v6853_v44 = vmax.f32 %v6852_v7, %v5953_v17  ;;  %v5346_v24 = vpop.f32.mrf.mxu0 }
 0x5d7   : > { %v7216_v22 = vmax.f32 %v7215_v6, %v5346_v24  ;;  %v5957_v52 = vpop.f32.mrf.mxu1  ;;  %6196 = vmatmul.mubr.bf16.gmra.mxu1 %v11185_v36  ;;  %v11194_v6 = vld [vmem:[#allocation65_spill] sm:$0xff] }
 0x5d8   : > { %v6785_v12 = vmax.f32 %v6784_v42, %v5957_v52  ;;  %v5348_v20 = vpop.f32.mrf.mxu0  ;;  %6205 = vmatprep.mubr.bf16.mxu1 %v11124_v59 }
 0x5d9   : > { %v7148_v18 = vmax.f32 %v7147_v40, %v5348_v20  ;;  %v5959_v4 = vpop.f32.mrf.mxu1 }
 0x5da   : > { %v6854_v15 = vmax.f32 %v6853_v44, %v5959_v4  ;;  %v5350_v37 = vpop.f32.mrf.mxu0 }
 0x5db   : > { %v7217_v28 = vmax.f32 %v7216_v22, %v5350_v37  ;;  %v5961_v34 = vpop.f32.mrf.mxu1 }
 0x5dc   : > { %v6786_v47 = vmax.f32 %v6785_v12, %v5961_v34  ;;  %v5354_v55 = vpop.f32.mrf.mxu0  ;;  %5593 = vmatmul.mubr.bf16.gmra.mxu0 %v11192_v13 }
 0x5dd   : > { %v7149_v1 = vmax.f32 %v7148_v18, %v5354_v55  ;;  %v5963_v46 = vpop.f32.mrf.mxu1  ;;  %5602 = vmatprep.mubr.bf16.mxu0 %v11124_v59 }
 0x5de   : > { %v6855_v33 = vmax.f32 %v6854_v15, %v5963_v46  ;;  %v5356_v36 = vpop.f32.mrf.mxu0 }
 0x5df   : > { %v7218_v32 = vmax.f32 %v7217_v28, %v5356_v36  ;;  %v5967_v60 = vpop.f32.mrf.mxu1  ;;  %6206 = vmatmul.mubr.bf16.gmra.mxu1 %v11186_v0  ;;  %v11195_v28 = vld [vmem:[#allocation68_spill] sm:$0xff] }
 0x5e0   : > { %v6787_v27 = vmax.f32 %v6786_v47, %v5967_v60  ;;  %v5358_v21 = vpop.f32.mrf.mxu0  ;;  %6215 = vmatprep.mubr.bf16.mxu1 %v11124_v59 }
 0x5e1   : > { %v7150_v35 = vmax.f32 %v7149_v1, %v5358_v21  ;;  %v5969_v11 = vpop.f32.mrf.mxu1 }
 0x5e2   : > { %v6856_v57 = vmax.f32 %v6855_v33, %v5969_v11  ;;  %v5360_v3 = vpop.f32.mrf.mxu0 }
 0x5e3   : > { %v7219_v19 = vmax.f32 %v7218_v32, %v5360_v3  ;;  %v5971_v51 = vpop.f32.mrf.mxu1 }
 0x5e4   : > { %v6788_v14 = vmax.f32 %v6787_v27, %v5971_v51  ;;  %v5364_v43 = vpop.f32.mrf.mxu0  ;;  %5603 = vmatmul.mubr.bf16.gmra.mxu0 %v11193_v39 }
 0x5e5   : > { %v7151_v29 = vmax.f32 %v7150_v35, %v5364_v43  ;;  %v5973_v58 = vpop.f32.mrf.mxu1  ;;  %5612 = vmatprep.mubr.bf16.mxu0 %v11124_v59 }
 0x5e6   : > { %v6857_v10 = vmax.f32 %v6856_v57, %v5973_v58  ;;  %v5366_v0 = vpop.f32.mrf.mxu0  ;;  %v11196_v58 = vld [vmem:[#allocation67_spill] sm:$0xff] }
 0x5e7   : > { %v7220_v63 = vmax.f32 %v7219_v19, %v5366_v0  ;;  %v5977_v48 = vpop.f32.mrf.mxu1  ;;  %6216 = vmatmul.mubr.bf16.gmra.mxu1 %v11187_v50 }
 0x5e8   : > { %v6789_v8 = vmax.f32 %v6788_v14, %v5977_v48  ;;  %v5368_v16 = vpop.f32.mrf.mxu0  ;;  %6225 = vmatprep.mubr.bf16.mxu1 %v11124_v59 }
 0x5e9   : > { %v7152_v31 = vmax.f32 %v7151_v29, %v5368_v16  ;;  %v5979_v49 = vpop.f32.mrf.mxu1 }
 0x5ea   : > { %v6858_v5 = vmax.f32 %v6857_v10, %v5979_v49  ;;  %v5370_v2 = vpop.f32.mrf.mxu0 }
 0x5eb   : > { %v7221_v30 = vmax.f32 %v7220_v63, %v5370_v2  ;;  %v5981_v45 = vpop.f32.mrf.mxu1 }
 0x5ec   : > { %v6790_v7 = vmax.f32 %v6789_v8, %v5981_v45  ;;  %v5374_v25 = vpop.f32.mrf.mxu0  ;;  %5613 = vmatmul.mubr.bf16.gmra.mxu0 %v11194_v6 }
 0x5ed   : > { %v7153_v54 = vmax.f32 %v7152_v31, %v5374_v25  ;;  %v5983_v42 = vpop.f32.mrf.mxu1  ;;  %5622 = vmatprep.mubr.bf16.mxu0 %v11124_v59 }
 0x5ee   : > { %v6859_v61 = vmax.f32 %v6858_v5, %v5983_v42  ;;  %v5376_v50 = vpop.f32.mrf.mxu0 }
 0x5ef   : > { %v7222_v40 = vmax.f32 %v7221_v30, %v5376_v50  ;;  %v5987_v17 = vpop.f32.mrf.mxu1  ;;  %6226 = vmatmul.mubr.bf16.gmra.mxu1 %v11188_v9 }
 0x5f0   : > { %v6791_v44 = vmax.f32 %v6790_v7, %v5987_v17  ;;  %v5378_v24 = vpop.f32.mrf.mxu0  ;;  %6235 = vmatprep.mubr.bf16.mxu1 %v11124_v59 }
 0x5f1   : > { %v7154_v22 = vmax.f32 %v7153_v54, %v5378_v24  ;;  %v5989_v52 = vpop.f32.mrf.mxu1 }
 0x5f2   : > { %v6860_v12 = vmax.f32 %v6859_v61, %v5989_v52  ;;  %v5380_v20 = vpop.f32.mrf.mxu0 }
 0x5f3   : > { %v7223_v18 = vmax.f32 %v7222_v40, %v5380_v20  ;;  %v5991_v4 = vpop.f32.mrf.mxu1 }
 0x5f4   : > { %v6792_v15 = vmax.f32 %v6791_v44, %v5991_v4  ;;  %v5384_v37 = vpop.f32.mrf.mxu0  ;;  %5623 = vmatmul.mubr.bf16.gmra.mxu0 %v11195_v28 }
 0x5f5   : > { %v7155_v34 = vmax.f32 %v7154_v22, %v5384_v37  ;;  %v5993_v47 = vpop.f32.mrf.mxu1  ;;  %5632 = vmatprep.mubr.bf16.mxu0 %v11124_v59 }
 0x5f6   : > { %v6793_v55 = vrot.slane %v6792_v15, 4  ;;  %v6861_v9 = vmax.f32 %v6860_v12, %v5993_v47  ;;  %v5386_v1 = vpop.f32.mrf.mxu0 }
 0x5f7   : > { %v7224_v46 = vmax.f32 %v7223_v18, %v5386_v1  ;;  %v5997_v33 = vpop.f32.mrf.mxu1  ;;  %6236 = vmatmul.mubr.bf16.gmra.mxu1 %v11189_v41 }
 0x5f8   : > { %v6794_v36 = vmax.f32 %v6792_v15, %v6793_v55  ;;  %v6862_v32 = vrot.slane %v6861_v9, 4  ;;  %v5388_v60 = vpop.f32.mrf.mxu0  ;;  %6245 = vmatprep.mubr.bf16.mxu1 %v11124_v59 }
 0x5f9   : > { %v7156_v27 = vmax.f32 %v7155_v34, %v5388_v60  ;;  %v5999_v21 = vpop.f32.mrf.mxu1 }
 0x5fa   : > { %v6795_v35 = vrot.slane %v6794_v36, 2  ;;  %v6863_v11 = vmax.f32 %v6861_v9, %v6862_v32  ;;  %v5390_v57 = vpop.f32.mrf.mxu0 }
 0x5fb   : > { %v7225_v3 = vmax.f32 %v7224_v46, %v5390_v57  ;;  %v6001_v19 = vpop.f32.mrf.mxu1 }
 0x5fc   : > { %v6796_v51 = vmax.f32 %v6794_v36, %v6795_v35  ;;  %v6864_v14 = vrot.slane %v6863_v11, 2  ;;  %v7282_v43 = vmax.f32 %v5997_v33, %v6001_v19  ;;  %v5394_v29 = vpop.f32.mrf.mxu0  ;;  %5633 = vmatmul.mubr.bf16.gmra.mxu0 %v11196_v58 }
 0x5fd   : > { %v7157_v10 = vmax.f32 %v7156_v27, %v5394_v29  ;;  %v6003_v41 = vpop.f32.mrf.mxu1 }
 0x5fe   : > { %v6797_v0 = vrot.slane %v6796_v51, 1  ;;  %v6865_v63 = vmax.f32 %v6863_v11, %v6864_v14  ;;  %v7351_v48 = vmax.f32 %v5999_v21, %v6003_v41  ;;  %v5396_v8 = vpop.f32.mrf.mxu0 }
 0x5ff   : > { %v7226_v16 = vmax.f32 %v7225_v3, %v5396_v8  ;;  %v6007_v31 = vpop.f32.mrf.mxu1  ;;  %6246 = vmatmul.mubr.bf16.gmra.mxu1 %v11190_v53  ;;  %v10585_v53 = vrot.slane %v7455_v62, %v11162_v38 }
 0x600   : > { %v6866_v49 = vrot.slane %v6865_v63, 1  ;;  %v7283_v5 = vmax.f32 %v7282_v43, %v6007_v31  ;;  %v5398_v2 = vpop.f32.mrf.mxu0  ;;  %6255 = vmatprep.mubr.bf16.mxu1 %v11124_v59  ;;  %v6798_v7 = vmax.f32 %v6796_v51, %v6797_v0 }
 0x601   : > { %v7158_v30 = vmax.f32 %v7157_v10, %v5398_v2  ;;  %v6009_v45 = vpop.f32.mrf.mxu1 }
 0x602   : > { %v6867_v25 = vmax.f32 %v6865_v63, %v6866_v49  ;;  %v7352_v54 = vmax.f32 %v7351_v48, %v6009_v45  ;;  %v5400_v42 = vpop.f32.mrf.mxu0 }
 0x603   : > { %v7227_v61 = vmax.f32 %v7226_v16, %v5400_v42  ;;  %v6011_v50 = vpop.f32.mrf.mxu1 }
 0x604   : > { %v7456_v40 = vcombine.low %v6798_v7, %v6867_v25  ;;  %v7284_v17 = vmax.f32 %v7283_v5, %v6011_v50  ;;  %v5404_v44 = vpop.f32.mrf.mxu0 }
 0x605   : > { %v7159_v24 = vmax.f32 %v7158_v30, %v5404_v44  ;;  %v6013_v22 = vpop.f32.mrf.mxu1 }
 0x606   : > { %v10588_v52 = vrot.slane %v7456_v40, %v11162_v38  ;;  %v7353_v12 = vmax.f32 %v7352_v54, %v6013_v22  ;;  %v5406_v20 = vpop.f32.mrf.mxu0 }
 0x607   : > { %v7228_v18 = vmax.f32 %v7227_v61, %v5406_v20  ;;  %v6017_v4 = vpop.f32.mrf.mxu1  ;;  %6256 = vmatmul.mubr.bf16.gmra.mxu1 %v11191_v56 }
 0x608   : > { %v7471_v15 = vcombine.low %v10585_v53, %v10588_v52  ;;  %v7285_v37 = vmax.f32 %v7284_v17, %v6017_v4  ;;  %v5408_v34 = vpop.f32.mrf.mxu0  ;;  %6265 = vmatprep.mubr.bf16.mxu1 %v11124_v59 }
 0x609   : > { %v7160_v47 = vmax.f32 %v7159_v24, %v5408_v34  ;;  %v6019_v26 = vpop.f32.mrf.mxu1 }
 0x60a   : > { %v7354_v23 = vmax.f32 %v7353_v12, %v6019_v26  ;;  %v5410_v62 = vpop.f32.mrf.mxu0 }
 0x60b   : > { %v7229_v55 = vmax.f32 %v7228_v18, %v5410_v62  ;;  %v6021_v9 = vpop.f32.mrf.mxu1 }
 0x60c   : > { %v7286_v1 = vmax.f32 %v7285_v37, %v6021_v9  ;;  %v5414_v46 = vpop.f32.mrf.mxu0 }
 0x60d   : > { %v7161_v33 = vmax.f32 %v7160_v47, %v5414_v46  ;;  %v6023_v36 = vpop.f32.mrf.mxu1 }
 0x60e   : > { %v7355_v32 = vmax.f32 %v7354_v23, %v6023_v36  ;;  %v5416_v60 = vpop.f32.mrf.mxu0 }
 0x60f   : > { %v7230_v56 = vmax.f32 %v7229_v55, %v5416_v60  ;;  %v6027_v27 = vpop.f32.mrf.mxu1  ;;  %6266 = vmatmul.mubr.bf16.gmra.mxu1 %v11192_v13 }
 0x610   : > { %v7287_v21 = vmax.f32 %v7286_v1, %v6027_v27  ;;  %v5418_v35 = vpop.f32.mrf.mxu0  ;;  %6275 = vmatprep.mubr.bf16.mxu1 %v11124_v59 }
 0x611   : > { %v7162_v11 = vmax.f32 %v7161_v33, %v5418_v35  ;;  %v6029_v57 = vpop.f32.mrf.mxu1 }
 0x612   : > { %v7356_v3 = vmax.f32 %v7355_v32, %v6029_v57  ;;  %v5420_v19 = vpop.f32.mrf.mxu0 }
 0x613   : > { %v7231_v51 = vmax.f32 %v7230_v56, %v5420_v19  ;;  %v6031_v14 = vpop.f32.mrf.mxu1 }
 0x614   : > { %v7288_v43 = vmax.f32 %v7287_v21, %v6031_v14  ;;  %v5424_v29 = vpop.f32.mrf.mxu0 }
 0x615   : > { %v7163_v10 = vmax.f32 %v7162_v11, %v5424_v29  ;;  %v6033_v41 = vpop.f32.mrf.mxu1 }
 0x616   : > { %v7357_v0 = vmax.f32 %v7356_v3, %v6033_v41  ;;  %v5426_v63 = vpop.f32.mrf.mxu0 }
 0x617   : > { %v7232_v48 = vmax.f32 %v7231_v51, %v5426_v63  ;;  %v6037_v8 = vpop.f32.mrf.mxu1  ;;  %6276 = vmatmul.mubr.bf16.gmra.mxu1 %v11193_v39 }
 0x618   : > { %v7289_v13 = vmax.f32 %v7288_v43, %v6037_v8  ;;  %v5428_v16 = vpop.f32.mrf.mxu0  ;;  %6285 = vmatprep.mubr.bf16.mxu1 %v11124_v59 }
 0x619   : > { %v7164_v31 = vmax.f32 %v7163_v10, %v5428_v16  ;;  %v6039_v49 = vpop.f32.mrf.mxu1 }
 0x61a   : > { %v7358_v5 = vmax.f32 %v7357_v0, %v6039_v49  ;;  %v5430_v2 = vpop.f32.mrf.mxu0 }
 0x61b   : > { %v7233_v30 = vmax.f32 %v7232_v48, %v5430_v2  ;;  %v6041_v45 = vpop.f32.mrf.mxu1 }
 0x61c   : > { %v7290_v7 = vmax.f32 %v7289_v13, %v6041_v45  ;;  %v5434_v25 = vpop.f32.mrf.mxu0 }
 0x61d   : > { %v7165_v54 = vmax.f32 %v7164_v31, %v5434_v25  ;;  %v6043_v42 = vpop.f32.mrf.mxu1 }
 0x61e   : > { %v7359_v61 = vmax.f32 %v7358_v5, %v6043_v42  ;;  %v5436_v50 = vpop.f32.mrf.mxu0 }
 0x61f   : > { %v7234_v40 = vmax.f32 %v7233_v30, %v5436_v50  ;;  %v6047_v17 = vpop.f32.mrf.mxu1  ;;  %6286 = vmatmul.mubr.bf16.gmra.mxu1 %v11194_v6 }
 0x620   : > { %v7291_v39 = vmax.f32 %v7290_v7, %v6047_v17  ;;  %v5438_v44 = vpop.f32.mrf.mxu0  ;;  %6295 = vmatprep.mubr.bf16.mxu1 %v11124_v59 }
 0x621   : > { %v7166_v24 = vmax.f32 %v7165_v54, %v5438_v44  ;;  %v6049_v22 = vpop.f32.mrf.mxu1 }
 0x622   : > { %v7360_v12 = vmax.f32 %v7359_v61, %v6049_v22  ;;  %v5440_v20 = vpop.f32.mrf.mxu0 }
 0x623   : > { %v7235_v18 = vmax.f32 %v7234_v40, %v5440_v20  ;;  %v6051_v4 = vpop.f32.mrf.mxu1 }
 0x624   : > { %v7292_v37 = vmax.f32 %v7291_v39, %v6051_v4  ;;  %v5444_v34 = vpop.f32.mrf.mxu0 }
 0x625   : > { %v7167_v47 = vmax.f32 %v7166_v24, %v5444_v34  ;;  %v6053_v26 = vpop.f32.mrf.mxu1 }
 0x626   : > { %v7361_v23 = vmax.f32 %v7360_v12, %v6053_v26  ;;  %v5446_v62 = vpop.f32.mrf.mxu0 }
 0x627   : > { %v7236_v55 = vmax.f32 %v7235_v18, %v5446_v62  ;;  %v6057_v9 = vpop.f32.mrf.mxu1  ;;  %6296 = vmatmul.mubr.bf16.gmra.mxu1 %v11195_v28 }
 0x628   : > { %v7293_v6 = vmax.f32 %v7292_v37, %v6057_v9  ;;  %v5448_v1 = vpop.f32.mrf.mxu0  ;;  %6305 = vmatprep.mubr.bf16.mxu1 %v11124_v59 }
 0x629   : > { %v7168_v46 = vmax.f32 %v7167_v47, %v5448_v1  ;;  %v6059_v33 = vpop.f32.mrf.mxu1 }
 0x62a   : > { %v7362_v36 = vmax.f32 %v7361_v23, %v6059_v33  ;;  %v5450_v32 = vpop.f32.mrf.mxu0 }
 0x62b   : > { %v7237_v60 = vmax.f32 %v7236_v55, %v5450_v32  ;;  %v6061_v56 = vpop.f32.mrf.mxu1 }
 0x62c   : > { %v7294_v27 = vmax.f32 %v7293_v6, %v6061_v56  ;;  %v5454_v21 = vpop.f32.mrf.mxu0 }
 0x62d   : > { %v7169_v35 = vmax.f32 %v7168_v46, %v5454_v21  ;;  %v6063_v11 = vpop.f32.mrf.mxu1 }
 0x62e   : > { %v7363_v57 = vmax.f32 %v7362_v36, %v6063_v11  ;;  %v5456_v3 = vpop.f32.mrf.mxu0 }
 0x62f   : > { %v7238_v19 = vmax.f32 %v7237_v60, %v5456_v3  ;;  %v6067_v51 = vpop.f32.mrf.mxu1  ;;  %6306 = vmatmul.mubr.bf16.gmra.mxu1 %v11196_v58 }
 0x630   : > { %v7295_v28 = vmax.f32 %v7294_v27, %v6067_v51  ;;  %v5458_v14 = vpop.f32.mrf.mxu0 }
 0x631   : > { %v7170_v43 = vmax.f32 %v7169_v35, %v5458_v14  ;;  %v6069_v59 = vpop.f32.mrf.mxu1 }
 0x632   : > { %v7364_v29 = vmax.f32 %v7363_v57, %v6069_v59  ;;  %v5460_v10 = vpop.f32.mrf.mxu0 }
 0x633   : > { %v7239_v41 = vmax.f32 %v7238_v19, %v5460_v10  ;;  %v6071_v0 = vpop.f32.mrf.mxu1 }
 0x634   : > { %v7296_v63 = vmax.f32 %v7295_v28, %v6071_v0  ;;  %v5464_v48 = vpop.f32.mrf.mxu0 }
 0x635   : > { %v7171_v8 = vmax.f32 %v7170_v43, %v5464_v48  ;;  %v6073_v13 = vpop.f32.mrf.mxu1 }
 0x636   : > { %v7365_v16 = vmax.f32 %v7364_v29, %v6073_v13  ;;  %v5466_v31 = vpop.f32.mrf.mxu0 }
 0x637   : > { %v7240_v49 = vmax.f32 %v7239_v41, %v5466_v31  ;;  %v6077_v5 = vpop.f32.mrf.mxu1 }
 0x638   : > { %v7297_v2 = vmax.f32 %v7296_v63, %v6077_v5  ;;  %v5468_v30 = vpop.f32.mrf.mxu0 }
 0x639   : > { %v7172_v45 = vmax.f32 %v7171_v8, %v5468_v30  ;;  %v6079_v58 = vpop.f32.mrf.mxu1 }
 0x63a   : > { %v7366_v7 = vmax.f32 %v7365_v16, %v6079_v58  ;;  %v5470_v25 = vpop.f32.mrf.mxu0 }
 0x63b   : > { %v7241_v54 = vmax.f32 %v7240_v49, %v5470_v25  ;;  %v6081_v42 = vpop.f32.mrf.mxu1 }
 0x63c   : > { %v7298_v61 = vmax.f32 %v7297_v2, %v6081_v42  ;;  %v5474_v50 = vpop.f32.mrf.mxu0 }
 0x63d   : > { %v7173_v40 = vmax.f32 %v7172_v45, %v5474_v50  ;;  %v6083_v17 = vpop.f32.mrf.mxu1 }
 0x63e   : > { %v7367_v39 = vmax.f32 %v7366_v7, %v6083_v17  ;;  %v5476_v44 = vpop.f32.mrf.mxu0 }
 0x63f   : > { %v10603_v24 = vmax.f32 %v7241_v54, %v5476_v44  ;;  %v6087_v22 = vpop.f32.mrf.mxu1 }
 0x640   : > { %v7299_v12 = vmax.f32 %v7298_v61, %v6087_v22  ;;  %v5478_v20 = vpop.f32.mrf.mxu0 }
 0x641   : > { %v7174_v18 = vmax.f32 %v7173_v40, %v5478_v20  ;;  %v6089_v4 = vpop.f32.mrf.mxu1 }
 0x642   : > { %v7368_v37 = vmax.f32 %v7367_v39, %v6089_v4  ;;  %v10605_v34 = vpop.f32.mrf.mxu0 }
 0x643   : > { %v7243_v47 = vmax.f32 %v10603_v24, %v10605_v34  ;;  %v6091_v26 = vpop.f32.mrf.mxu1 }
 0x644   : > { %v7300_v23 = vmax.f32 %v7299_v12, %v6091_v26  ;;  %v5484_v62 = vpop.f32.mrf.mxu0 }
 0x645   : > { %v10609_v55 = vmax.f32 %v7174_v18, %v5484_v62  ;;  %v6093_v9 = vpop.f32.mrf.mxu1 }
 0x646   : > { %v7369_v6 = vmax.f32 %v7368_v37, %v6093_v9  ;;  %v10611_v1 = vpop.f32.mrf.mxu0 }
 0x647   : > { %v6097_v46 = vpop.f32.mrf.mxu1 }
 0x648   : > { %v7301_v33 = vmax.f32 %v7300_v23, %v6097_v46  ;;  %v10613_v36 = vpop.f32.mrf.mxu0 }
 0x649   : > { %v6099_v32 = vpop.f32.mrf.mxu1 }
 0x64a   : > { %v7370_v60 = vmax.f32 %v7369_v6, %v6099_v32  ;;  %v10615_v56 = vpop.f32.mrf.mxu0 }
 0x64b   : > { %v6101_v27 = vpop.f32.mrf.mxu1 }
 0x64c   : > { %v7302_v21 = vmax.f32 %v7301_v33, %v6101_v27  ;;  %v10617_v35 = vpop.f32.mrf.mxu0 }
 0x64d   : > { %v6103_v11 = vpop.f32.mrf.mxu1 }
 0x64e   : > { %v7371_v57 = vmax.f32 %v7370_v60, %v6103_v11  ;;  %v10619_v3 = vpop.f32.mrf.mxu0 }
 0x64f   : > { %v6107_v19 = vpop.f32.mrf.mxu1 }
 0x650   : > { %v7303_v51 = vmax.f32 %v7302_v21, %v6107_v19  ;;  %v10621_v28 = vpop.f32.mrf.mxu0 }
 0x651   : > { %v6109_v14 = vpop.f32.mrf.mxu1 }
 0x652   : > { %v7372_v43 = vmax.f32 %v7371_v57, %v6109_v14  ;;  %v10623_v59 = vpop.f32.mrf.mxu0 }
 0x653   : > { %v6111_v29 = vpop.f32.mrf.mxu1 }
 0x654   : > { %v7304_v10 = vmax.f32 %v7303_v51, %v6111_v29  ;;  %v10625_v41 = vpop.f32.mrf.mxu0 }
 0x655   : > { %v6113_v0 = vpop.f32.mrf.mxu1 }
 0x656   : > { %v7373_v63 = vmax.f32 %v7372_v43, %v6113_v0  ;;  %v10627_v48 = vpop.f32.mrf.mxu0 }
 0x657   : > { %v6117_v8 = vpop.f32.mrf.mxu1 }
 0x658   : > { %v7305_v13 = vmax.f32 %v7304_v10, %v6117_v8  ;;  %v10629_v16 = vpop.f32.mrf.mxu0 }
 0x659   : > { %v6119_v31 = vpop.f32.mrf.mxu1 }
 0x65a   : > { %v7374_v49 = vmax.f32 %v7373_v63, %v6119_v31  ;;  %v10631_v5 = vpop.f32.mrf.mxu0 }
 0x65b   : > { %v6121_v2 = vpop.f32.mrf.mxu1 }
 0x65c   : > { %v7306_v30 = vmax.f32 %v7305_v13, %v6121_v2  ;;  %v10633_v45 = vpop.f32.mrf.mxu0 }
 0x65d   : > { %v6123_v58 = vpop.f32.mrf.mxu1 }
 0x65e   : > { %v7375_v7 = vmax.f32 %v7374_v49, %v6123_v58  ;;  %v10635_v25 = vpop.f32.mrf.mxu0 }
 0x65f   : > { %v6127_v54 = vpop.f32.mrf.mxu1 }
 0x660   : > { %v7307_v42 = vmax.f32 %v7306_v30, %v6127_v54  ;;  %v10637_v61 = vpop.f32.mrf.mxu0 }
 0x661   : > { %v6129_v50 = vpop.f32.mrf.mxu1 }
 0x662   : > { %v7376_v40 = vmax.f32 %v7375_v7, %v6129_v50  ;;  %v10639_v17 = vpop.f32.mrf.mxu0 }
 0x663   : > { %v6131_v39 = vpop.f32.mrf.mxu1 }
 0x664   : > { %v7308_v44 = vmax.f32 %v7307_v42, %v6131_v39  ;;  %v10641_v22 = vpop.f32.mrf.mxu0 }
 0x665   : > { %v6133_v12 = vpop.f32.mrf.mxu1 }
 0x666   : > { %v7377_v20 = vmax.f32 %v7376_v40, %v6133_v12  ;;  %v10643_v18 = vpop.f32.mrf.mxu0 }
 0x667   : > { %v6137_v4 = vpop.f32.mrf.mxu1 }
 0x668   : > { %v7309_v37 = vmax.f32 %v7308_v44, %v6137_v4  ;;  %v10645_v26 = vpop.f32.mrf.mxu0  ;;  %v7244_v4 = vmax.f32 %v7243_v47, %v10611_v1 }
 0x669   : > { %v6139_v23 = vpop.f32.mrf.mxu1 }
 0x66a   : > { %v7378_v62 = vmax.f32 %v7377_v20, %v6139_v23  ;;  %v10647_v9 = vpop.f32.mrf.mxu0 }
 0x66b   : > { %v6141_v6 = vpop.f32.mrf.mxu1 }
 0x66c   : > { %v7310_v46 = vmax.f32 %v7309_v37, %v6141_v6  ;;  %v10649_v33 = vpop.f32.mrf.mxu0  ;;  %v7176_v37 = vmax.f32 %v10609_v55, %v10613_v36  ;;  %v7245_v6 = vmax.f32 %v7244_v4, %v10615_v56 }
 0x66d   : > { %v6143_v32 = vpop.f32.mrf.mxu1 }
 0x66e   : > { %v7379_v60 = vmax.f32 %v7378_v62, %v6143_v32  ;;  %v10651_v27 = vpop.f32.mrf.mxu0 }
 0x66f   : > { %v6147_v21 = vpop.f32.mrf.mxu1 }
 0x670   : > { %v7311_v11 = vmax.f32 %v7310_v46, %v6147_v21  ;;  %v10653_v57 = vpop.f32.mrf.mxu0  ;;  %v7177_v46 = vmax.f32 %v7176_v37, %v10617_v35  ;;  %v7246_v21 = vmax.f32 %v7245_v6, %v10619_v3 }
 0x671   : > { %v6149_v19 = vpop.f32.mrf.mxu1 }
 0x672   : > { %v10655_v51 = vmax.f32 %v7379_v60, %v6149_v19  ;;  %v10657_v14 = vpop.f32.mrf.mxu0  ;;  %v7247_v47 = vmax.f32 %v7246_v21, %v10623_v59 }
 0x673   : > { %v6151_v43 = vpop.f32.mrf.mxu1 }
 0x674   : > { %v7312_v29 = vmax.f32 %v7311_v11, %v6151_v43  ;;  %v10659_v10 = vpop.f32.mrf.mxu0  ;;  %v7178_v11 = vmax.f32 %v7177_v46, %v10621_v28  ;;  %v7248_v56 = vmax.f32 %v7247_v47, %v10627_v48 }
 0x675   : > { %v10661_v0 = vpop.f32.mrf.mxu1 }
 0x676   : > { %v7381_v63 = vmax.f32 %v10655_v51, %v10661_v0  ;;  %v10665_v8 = vpop.f32.mrf.mxu0  ;;  %v7179_v55 = vmax.f32 %v7178_v11, %v10625_v41  ;;  %v7249_v3 = vmax.f32 %v7248_v56, %v10631_v5 }
 0x677   : > { %v6157_v13 = vpop.f32.mrf.mxu1 }
 0x678   : > { %v10667_v31 = vmax.f32 %v7312_v29, %v6157_v13  ;;  %v10669_v49 = vpop.f32.mrf.mxu0  ;;  %v7180_v35 = vmax.f32 %v7179_v55, %v10629_v16  ;;  %v7250_v59 = vmax.f32 %v7249_v3, %v10635_v25 }
 0x679   : > { %v10671_v2 = vpop.f32.mrf.mxu1 }
 0x67a   : > { %v10673_v30 = vpop.f32.mrf.mxu0  ;;  %v7181_v28 = vmax.f32 %v7180_v35, %v10633_v45  ;;  %v7251_v48 = vmax.f32 %v7250_v59, %v10639_v17 }
 0x67b   : > { %v10675_v58 = vpop.f32.mrf.mxu1 }
 0x67c   : > { %v5554_v7 = vpop.f32.mrf.mxu0  ;;  %v7182_v41 = vmax.f32 %v7181_v28, %v10637_v61  ;;  %v7252_v5 = vmax.f32 %v7251_v48, %v10643_v18 }
 0x67d   : > { %v10677_v54 = vpop.f32.mrf.mxu1 }
 0x67e   : > { %v10679_v42 = vpop.f32.mrf.mxu0  ;;  %v7183_v16 = vmax.f32 %v7182_v41, %v10641_v22  ;;  %v7253_v25 = vmax.f32 %v7252_v5, %v10647_v9 }
 0x67f   : > { %v10681_v50 = vpop.f32.mrf.mxu1 }
 0x680   : > { %v10683_v40 = vpop.f32.mrf.mxu0  ;;  %v7184_v45 = vmax.f32 %v7183_v16, %v10645_v26  ;;  %v7254_v17 = vmax.f32 %v7253_v25, %v10651_v27 }
 0x681   : > { %v10685_v39 = vpop.f32.mrf.mxu1 }
 0x682   : > { %v10687_v44 = vpop.f32.mrf.mxu0  ;;  %v7185_v61 = vmax.f32 %v7184_v45, %v10649_v33  ;;  %v7255_v18 = vmax.f32 %v7254_v17, %v10657_v14 }
 0x683   : > { %v10689_v12 = vpop.f32.mrf.mxu1 }
 0x684   : > { %v5564_v20 = vpop.f32.mrf.mxu0  ;;  %v7186_v22 = vmax.f32 %v7185_v61, %v10653_v57  ;;  %v7256_v9 = vmax.f32 %v7255_v18, %v10665_v8 }
 0x685   : > { %v10697_v23 = vpop.f32.mrf.mxu1 }
 0x686   : > { %v5566_v62 = vpop.f32.mrf.mxu0  ;;  %v7187_v26 = vmax.f32 %v7186_v22, %v10659_v10  ;;  %v7257_v27 = vmax.f32 %v7256_v9, %v10673_v30 }
 0x687   : > { %v10701_v32 = vpop.f32.mrf.mxu1 }
 0x688   : > { %v10703_v60 = vpop.f32.mrf.mxu0  ;;  %v7188_v33 = vmax.f32 %v7187_v26, %v10669_v49  ;;  %v7258_v14 = vmax.f32 %v7257_v27, %v10679_v42 }
 0x689   : > { %v10707_v24 = vpop.f32.mrf.mxu1 }
 0x68a   : > { %v5570_v34 = vpop.f32.mrf.mxu0  ;;  %v7189_v57 = vmax.f32 %v7188_v33, %v5554_v7  ;;  %v7259_v8 = vmax.f32 %v7258_v14, %v10687_v44 }
 0x68b   : > { %v10711_v1 = vpop.f32.mrf.mxu1 }
 0x68c   : > { %v5574_v36 = vpop.f32.mrf.mxu0  ;;  %v7190_v10 = vmax.f32 %v7189_v57, %v10683_v40  ;;  %v7260_v17 = vmax.f32 %v7259_v8, %v5566_v62 }
 0x68d   : > { %v10715_v19 = vpop.f32.mrf.mxu1 }
 0x68e   : > { %v5576_v43 = vpop.f32.mrf.mxu0  ;;  %v7191_v25 = vmax.f32 %v7190_v10, %v5564_v20  ;;  %v7261_v18 = vmax.f32 %v7260_v17, %v5570_v34 }
 0x68f   : > { %v10719_v29 = vpop.f32.mrf.mxu1 }
 0x690   : > { %v5578_v13 = vpop.f32.mrf.mxu0  ;;  %v7192_v30 = vmax.f32 %v7191_v25, %v10703_v60  ;;  %v7262_v9 = vmax.f32 %v7261_v18, %v5576_v43 }
 0x691   : > { %v10723_v4 = vpop.f32.mrf.mxu1 }
 0x692   : > { %v5580_v37 = vpop.f32.mrf.mxu0  ;;  %v7193_v26 = vmax.f32 %v7192_v30, %v5574_v36 }
 0x693   : > { %v10727_v6 = vpop.f32.mrf.mxu1  ;;  %v7263_v20 = vmax.f32 %v7262_v9, %v5580_v37 }
 0x694   : > { %v5584_v46 = vpop.f32.mrf.mxu0  ;;  %v7194_v33 = vmax.f32 %v7193_v26, %v5578_v13 }
 0x695   : > { %v10731_v21 = vpop.f32.mrf.mxu1 }
 0x696   : > { %v5586_v11 = vpop.f32.mrf.mxu0  ;;  %v7195_v57 = vmax.f32 %v7194_v33, %v5584_v46 }
 0x697   : > { %v10735_v47 = vpop.f32.mrf.mxu1  ;;  %v7264_v10 = vmax.f32 %v7263_v20, %v5586_v11 }
 0x698   : > { %v5588_v55 = vpop.f32.mrf.mxu0 }
 0x699   : > { %v10739_v56 = vpop.f32.mrf.mxu1  ;;  %v7196_v60 = vmax.f32 %v7195_v57, %v5588_v55 }
 0x69a   : > { %v5590_v35 = vpop.f32.mrf.mxu0 }
 0x69b   : > { %v10743_v3 = vpop.f32.mrf.mxu1  ;;  %v7265_v34 = vmax.f32 %v7264_v10, %v5590_v35 }
 0x69c   : > { %v5594_v28 = vpop.f32.mrf.mxu0 }
 0x69d   : > { %v10747_v59 = vpop.f32.mrf.mxu1  ;;  %v7197_v36 = vmax.f32 %v7196_v60, %v5594_v28 }
 0x69e   : > { %v5596_v41 = vpop.f32.mrf.mxu0 }
 0x69f   : > { %v10750_v48 = vpop.f32.mrf.mxu1  ;;  %v7266_v43 = vmax.f32 %v7265_v34, %v5596_v41  ;;  %v7382_v41 = vmax.f32 %v7381_v63, %v10671_v2 }
 0x6a0   : > { %v5598_v16 = vpop.f32.mrf.mxu0 }
 0x6a1   : > { %v10754_v5 = vpop.f32.mrf.mxu1  ;;  %v7198_v13 = vmax.f32 %v7197_v36, %v5598_v16  ;;  %v7314_v16 = vmax.f32 %v10667_v31, %v10675_v58 }
 0x6a2   : > { %v5600_v45 = vpop.f32.mrf.mxu0 }
 0x6a3   : > { %v10757_v49 = vpop.f32.mrf.mxu1  ;;  %v7267_v37 = vmax.f32 %v7266_v43, %v5600_v45 }
 0x6a4   : > { %v5604_v61 = vpop.f32.mrf.mxu0 }
 0x6a5   : > { %v10760_v7 = vpop.f32.mrf.mxu1  ;;  %v7199_v46 = vmax.f32 %v7198_v13, %v5604_v61 }
 0x6a6   : > { %v5606_v22 = vpop.f32.mrf.mxu0 }
 0x6a7   : > { %v10762_v42 = vpop.f32.mrf.mxu1  ;;  %v7268_v11 = vmax.f32 %v7267_v37, %v5606_v22 }
 0x6a8   : > { %v5608_v40 = vpop.f32.mrf.mxu0 }
 0x6a9   : > { %v10764_v27 = vpop.f32.mrf.mxu1  ;;  %v7200_v55 = vmax.f32 %v7199_v46, %v5608_v40  ;;  %v7383_v40 = vmax.f32 %v7382_v41, %v10677_v54 }
 0x6aa   : > { %v5610_v44 = vpop.f32.mrf.mxu0 }
 0x6ab   : > { %v10766_v14 = vpop.f32.mrf.mxu1  ;;  %v7269_v35 = vmax.f32 %v7268_v11, %v5610_v44  ;;  %v7315_v44 = vmax.f32 %v7314_v16, %v10681_v50  ;;  %v7384_v51 = vmax.f32 %v7383_v40, %v10685_v39 }
 0x6ac   : > { %v5614_v62 = vpop.f32.mrf.mxu0 }
 0x6ad   : > { %v10768_v8 = vpop.f32.mrf.mxu1  ;;  %v7201_v28 = vmax.f32 %v7200_v55, %v5614_v62  ;;  %v7316_v0 = vmax.f32 %v7315_v44, %v10689_v12 }
 0x6ae   : > { %v5616_v25 = vpop.f32.mrf.mxu0 }
 0x6af   : > { %v10770_v17 = vpop.f32.mrf.mxu1  ;;  %v7270_v61 = vmax.f32 %v7269_v35, %v5616_v25  ;;  %v7385_v25 = vmax.f32 %v7384_v51, %v10697_v23  ;;  %v7317_v54 = vmax.f32 %v7316_v0, %v10701_v32 }
 0x6b0   : > { %v5618_v30 = vpop.f32.mrf.mxu0 }
 0x6b1   : > { %v10772_v18 = vpop.f32.mrf.mxu1  ;;  %v7202_v60 = vmax.f32 %v7201_v28, %v5618_v30  ;;  %v7386_v37 = vmax.f32 %v7385_v25, %v10707_v24  ;;  %v7318_v46 = vmax.f32 %v7317_v54, %v10711_v1 }
 0x6b2   : > { %v5620_v26 = vpop.f32.mrf.mxu0 }
 0x6b3   : > { %v10774_v9 = vpop.f32.mrf.mxu1  ;;  %v7271_v34 = vmax.f32 %v7270_v61, %v5620_v26  ;;  %v7387_v55 = vmax.f32 %v7386_v37, %v10715_v19 }
 0x6b4   : > { %v5624_v33 = vpop.f32.mrf.mxu0 }
 0x6b5   : > { %v10776_v20 = vpop.f32.mrf.mxu1  ;;  %v7203_v36 = vmax.f32 %v7202_v60, %v5624_v33  ;;  %v7388_v41 = vmax.f32 %v7387_v55, %v10723_v4 }
 0x6b6   : > { %v5626_v57 = vpop.f32.mrf.mxu0 }
 0x6b7   : > { %v10778_v10 = vpop.f32.mrf.mxu1  ;;  %v7272_v31 = vmax.f32 %v7271_v34, %v5626_v57  ;;  %v7319_v57 = vmax.f32 %v7318_v46, %v10719_v29  ;;  %v7389_v1 = vmax.f32 %v7388_v41, %v10731_v21 }
 0x6b8   : > { %v5628_v45 = vpop.f32.mrf.mxu0 }
 0x6b9   : > { %v10786_v22 = vpop.f32.mrf.mxu1  ;;  %v7204_v2 = vmax.f32 %v7203_v36, %v5628_v45  ;;  %v7320_v16 = vmax.f32 %v7319_v57, %v10727_v6  ;;  %v7390_v29 = vmax.f32 %v7389_v1, %v10739_v56 }
 0x6ba   : > { %v5630_v62 = vpop.f32.mrf.mxu0 }
 0x6bb   : > { %v10790_v43 = vpop.f32.mrf.mxu1  ;;  %v7273_v50 = vmax.f32 %v7272_v31, %v5630_v62  ;;  %v7321_v60 = vmax.f32 %v7320_v16, %v10735_v47  ;;  %v7391_v4 = vmax.f32 %v7390_v29, %v10747_v59 }
 0x6bc   : > { %v5634_v63 = vpop.f32.mrf.mxu0 }
 0x6bd   : > { %v10794_v58 = vpop.f32.mrf.mxu1  ;;  %v7205_v13 = vmax.f32 %v7204_v2, %v5634_v63  ;;  %v7322_v62 = vmax.f32 %v7321_v60, %v10743_v3  ;;  %v7392_v21 = vmax.f32 %v7391_v4, %v10754_v5 }
 0x6be   : > { %v5636_v30 = vpop.f32.mrf.mxu0 }
 0x6bf   : > { %v6247_v26 = vpop.f32.mrf.mxu1  ;;  %v7274_v33 = vmax.f32 %v7273_v50, %v5636_v30  ;;  %v7323_v6 = vmax.f32 %v7322_v62, %v10750_v48  ;;  %v7393_v56 = vmax.f32 %v7392_v21, %v10760_v7 }
 0x6c0   : > { %v5638_v39 = vpop.f32.mrf.mxu0 }
 0x6c1   : > { %v7206_v12 = vmax.f32 %v7205_v13, %v5638_v39  ;;  %v6249_v11 = vpop.f32.mrf.mxu1  ;;  %v7324_v47 = vmax.f32 %v7323_v6, %v10757_v49  ;;  %v7394_v48 = vmax.f32 %v7393_v56, %v10764_v27 }
 0x6c2   : > { %v5640_v35 = vpop.f32.mrf.mxu0 }
 0x6c3   : > { %v7207_v23 = vrot.slane %v7206_v12, 4  ;;  %v7275_v28 = vmax.f32 %v7274_v33, %v5640_v35  ;;  %v6251_v32 = vpop.f32.mrf.mxu1  ;;  %v7325_v3 = vmax.f32 %v7324_v47, %v10762_v42  ;;  %v7395_v49 = vmax.f32 %v7394_v48, %v10768_v8 }
 0x6c5   : > { %v7208_v45 = vmax.f32 %v7206_v12, %v7207_v23  ;;  %v7276_v24 = vrot.slane %v7275_v28, 4  ;;  %v6253_v61 = vpop.f32.mrf.mxu1  ;;  %v7326_v50 = vmax.f32 %v7325_v3, %v10766_v14  ;;  %v7396_v42 = vmax.f32 %v7395_v49, %v10772_v18 }
 0x6c7   : > { %v7209_v40 = vrot.slane %v7208_v45, 2  ;;  %v7277_v44 = vmax.f32 %v7275_v28, %v7276_v24  ;;  %v6257_v19 = vpop.f32.mrf.mxu1  ;;  %v7327_v37 = vmax.f32 %v7326_v50, %v10770_v17  ;;  %v7397_v33 = vmax.f32 %v7396_v42, %v10776_v20 }
 0x6c9   : > { %v7210_v34 = vmax.f32 %v7208_v45, %v7209_v40  ;;  %v7278_v36 = vrot.slane %v7277_v44, 2  ;;  %v6259_v51 = vpop.f32.mrf.mxu1  ;;  %v7328_v46 = vmax.f32 %v7327_v37, %v10774_v9  ;;  %v7398_v14 = vmax.f32 %v7397_v33, %v10786_v22 }
 0x6cb   : > { %v7211_v0 = vrot.slane %v7210_v34, 1  ;;  %v7279_v63 = vmax.f32 %v7277_v44, %v7278_v36  ;;  %v6261_v31 = vpop.f32.mrf.mxu1  ;;  %v7329_v27 = vmax.f32 %v7328_v46, %v10778_v10  ;;  %v7399_v8 = vmax.f32 %v7398_v14, %v10794_v58 }
 0x6cd   : > { %v7280_v2 = vrot.slane %v7279_v63, 1  ;;  %v6263_v25 = vpop.f32.mrf.mxu1  ;;  %v10814_v54 = vmax.f32 %v7210_v34, %v7211_v0  ;;  %v7330_v55 = vmax.f32 %v7329_v27, %v10790_v43  ;;  %v7400_v23 = vmax.f32 %v7399_v8, %v6249_v11 }
 0x6cf   : > { %v10816_v30 = vmax.f32 %v7279_v63, %v7280_v2  ;;  %v6267_v59 = vpop.f32.mrf.mxu1  ;;  %v7331_v35 = vmax.f32 %v7330_v55, %v6247_v26  ;;  %v7401_v41 = vmax.f32 %v7400_v23, %v6253_v61 }
 0x6d1   : > { %v7489_v5 = vcombine.low %v10814_v54, %v10816_v30  ;;  %v6269_v13 = vpop.f32.mrf.mxu1  ;;  %v7332_v28 = vmax.f32 %v7331_v35, %v6251_v32  ;;  %v7402_v45 = vmax.f32 %v7401_v41, %v6259_v51 }
 0x6d3   : > { %v6271_v7 = vpop.f32.mrf.mxu1  ;;  %v7333_v9 = vmax.f32 %v7332_v28, %v6257_v19  ;;  %v7403_v10 = vmax.f32 %v7402_v45, %v6263_v25  ;;  %v7421_v28 = vld [vmem:[%s8960_s20 + $0x8] sm:$0xff] }
 0x6d5   : > { %v6273_v39 = vpop.f32.mrf.mxu1  ;;  %v7334_v20 = vmax.f32 %v7333_v9, %v6261_v31  ;;  %v7404_v22 = vmax.f32 %v7403_v10, %v6269_v13 }
 0x6d7   : > { %v6277_v12 = vpop.f32.mrf.mxu1  ;;  %v7335_v1 = vmax.f32 %v7334_v20, %v6267_v59  ;;  %v7405_v44 = vmax.f32 %v7404_v22, %v6273_v39 }
 0x6d9   : > { %v6279_v57 = vpop.f32.mrf.mxu1  ;;  %v7336_v40 = vmax.f32 %v7335_v1, %v6271_v7 }
 0x6da   : > { %v7406_v26 = vmax.f32 %v7405_v44, %v6279_v57  ;;  %v7497_v57 = vrot.slane %v7489_v5, %v11162_v38 }
 0x6db   : > { %v6281_v17 = vpop.f32.mrf.mxu1  ;;  %v7337_v29 = vmax.f32 %v7336_v40, %v6277_v12 }
 0x6dd   : > { %v6283_v18 = vpop.f32.mrf.mxu1  ;;  %v7338_v62 = vmax.f32 %v7337_v29, %v6281_v17 }
 0x6de   : > { %v7407_v32 = vmax.f32 %v7406_v26, %v6283_v18 }
 0x6df   : > { %v6287_v16 = vpop.f32.mrf.mxu1 }
 0x6e0   : > { %v7339_v34 = vmax.f32 %v7338_v62, %v6287_v16 }
 0x6e1   : > { %v6289_v24 = vpop.f32.mrf.mxu1 }
 0x6e2   : > { %v7408_v19 = vmax.f32 %v7407_v32, %v6289_v24 }
 0x6e3   : > { %v6291_v60 = vpop.f32.mrf.mxu1 }
 0x6e4   : > { %v7340_v36 = vmax.f32 %v7339_v34, %v6291_v60 }
 0x6e5   : > { %v6293_v43 = vpop.f32.mrf.mxu1 }
 0x6e6   : > { %v7409_v4 = vmax.f32 %v7408_v19, %v6293_v43 }
 0x6e7   : > { %v6297_v58 = vpop.f32.mrf.mxu1 }
 0x6e8   : > { %v7341_v6 = vmax.f32 %v7340_v36, %v6297_v58 }
 0x6e9   : > { %v6299_v11 = vpop.f32.mrf.mxu1 }
 0x6ea   : > { %v7410_v63 = vmax.f32 %v7409_v4, %v6299_v11 }
 0x6eb   : > { %v6301_v61 = vpop.f32.mrf.mxu1 }
 0x6ec   : > { %v7342_v31 = vmax.f32 %v7341_v6, %v6301_v61 }
 0x6ed   : > { %v6303_v51 = vpop.f32.mrf.mxu1 }
 0x6ee   : > { %v7411_v47 = vmax.f32 %v7410_v63, %v6303_v51 }
 0x6ef   : > { %v6307_v0 = vpop.f32.mrf.mxu1 }
 0x6f0   : > { %v7343_v2 = vmax.f32 %v7342_v31, %v6307_v0 }
 0x6f1   : > { %v6309_v21 = vpop.f32.mrf.mxu1 }
 0x6f2   : > { %v7412_v56 = vmax.f32 %v7411_v47, %v6309_v21 }
 0x6f3   : > { %v6311_v25 = vpop.f32.mrf.mxu1 }
 0x6f4   : > { %v7344_v3 = vmax.f32 %v7343_v2, %v6311_v25 }
 0x6f5   : > { %v6313_v59 = vpop.f32.mrf.mxu1 }
 0x6f6   : > { %v7345_v48 = vrot.slane %v7344_v3, 4  ;;  %v7413_v50 = vmax.f32 %v7412_v56, %v6313_v59 }
 0x6f8   : > { %v7346_v13 = vmax.f32 %v7344_v3, %v7345_v48  ;;  %v7414_v49 = vrot.slane %v7413_v50, 4 }
 0x6fa   : > { %v7347_v37 = vrot.slane %v7346_v13, 2  ;;  %v7415_v7 = vmax.f32 %v7413_v50, %v7414_v49 }
 0x6fc   : > { %v7348_v42 = vmax.f32 %v7346_v13, %v7347_v37  ;;  %v7416_v46 = vrot.slane %v7415_v7, 2 }
 0x6fe   : > { %v7349_v39 = vrot.slane %v7348_v42, 1  ;;  %v7417_v33 = vmax.f32 %v7415_v7, %v7416_v46 }
 0x700   : > { %v7418_v27 = vrot.slane %v7417_v33, 1  ;;  %v7350_v12 = vmax.f32 %v7348_v42, %v7349_v39 }
 0x702   : > { %v7419_v14 = vmax.f32 %v7417_v33, %v7418_v27 }
 0x704   : > { %v7490_v55 = vcombine.low %v7350_v12, %v7419_v14 }
 0x706   : > { %v7504_v8 = vrot.slane %v7490_v55, %v11162_v38 }
 0x708   : > { %v7505_v35 = vcombine.low %v7497_v57, %v7504_v8 }
 0x70a   : > { %v7521_v17 = vrot.slane %v7505_v35, 7 }
 0x70c   : > { %v7522_v23 = vsel %vm7511_vm1, %v7521_v17, %v7471_v15 }
 0x70d   : > { %v7523_v18 = vsel %vm7513_vm2, %v7521_v17, %v7522_v23 }
 0x70e   : > { %v7524_v41 = vsel %vm7515_vm3, %v7521_v17, %v7523_v18  ;;  %7535 = sbr.rel (%p7987_p4) target bundleno = 1829 (0x725), region = 97 }
 0x70f   : > { %v7525_v9 = vsel %vm7517_vm4, %v7521_v17, %v7524_v41 }
 0x710   : > { %v7529_v16 = vmax.f32 %v7421_v28, %v7525_v9 }
 0x712   : > { %7531 = vst [vmem:[%s8960_s20 + $0x8] sm:$0xff] %v7529_v16 }
 0x713   : > { %v7538_v38 = vld [vmem:[%s10924_s6] sm:$0xff]  ;;  %v11198_v32 = vld [vmem:[#allocation70_spill] sm:$0xff] }
 0x714   : > { %v11197_v54 = vld [vmem:[#allocation69_spill] sm:$0xff] }
 0x715   : > { %v7542_v53 = vsub.s32 0, %v11197_v54  ;;  %v7546_v52 = vsub.s32 1, %v11197_v54  ;;  %v7550_v15 = vsub.s32 2, %v11197_v54  ;;  %v7554_v30 = vsub.s32 3, %v11197_v54  ;;  %v7536_v19 = vld [vmem:[%s8960_s20] sm:$0xff] }
 0x716   : > { %v7558_v5 = vsub.s32 4, %v11197_v54  ;;  %v7562_v45 = vsub.s32 5, %v11197_v54  ;;  %v7566_v20 = vsub.s32 6, %v11197_v54  ;;  %v7570_v24 = vsub.s32 7, %v11197_v54 }
 0x717   : > { %v7543_v10 = vrot.slane %v7538_v38, %v7542_v53  ;;  %v7547_v1 = vrot.slane %v7538_v38, %v7546_v52  ;;  %v7551_v60 = vrot.slane %v7538_v38, %v7550_v15  ;;  %v7555_v22 = vrot.slane %v7538_v38, %v7554_v30 }
 0x718   : > { %v7559_v40 = vrot.slane %v7538_v38, %v7558_v5  ;;  %v7563_v43 = vrot.slane %v7538_v38, %v7562_v45  ;;  %v7567_v44 = vrot.slane %v7538_v38, %v7566_v20  ;;  %v7571_v29 = vrot.slane %v7538_v38, %v7570_v24 }
 0x719   : > { %v7572_v58 = vcombine.low %v7543_v10, %v7547_v1  ;;  %v7573_v26 = vcombine.low %v7551_v60, %v7555_v22  ;;  %v7537_v6 = vld [vmem:[%s8960_s20 + $0x8] sm:$0xff] }
 0x71a   : > { %v7589_v62 = vcombine.low %v7559_v40, %v7563_v43  ;;  %v7590_v11 = vcombine.low %v7567_v44, %v7571_v29 }
 0x71b   : > { %v7580_v34 = vrot.slane %v7572_v58, %v11198_v32  ;;  %v7587_v61 = vrot.slane %v7573_v26, %v11198_v32 }
 0x71c   : > { %v7597_v36 = vrot.slane %v7589_v62, %v11198_v32  ;;  %v7604_v51 = vrot.slane %v7590_v11, %v11198_v32 }
 0x71d   : > { %v7588_v4 = vcombine.low %v7580_v34, %v7587_v61 }
 0x71e   : > { %v7605_v0 = vcombine.low %v7597_v36, %v7604_v51 }
 0x71f   : > { %v7608_v63 = vadd.f32 %v7588_v4, %v7536_v19 }
 0x720   : > { %v7609_v31 = vadd.f32 %v7605_v0, %v7537_v6 }
 0x721   : > { %v7610_v21 = vmax.f32 %v7608_v63, 0.0 }
 0x722   : > { %v7611_v47 = vmax.f32 %v7609_v31, 0.0 }
 0x723   : > { %7612 = vst [vmem:[%s8960_s20] sm:$0xff] %v7610_v21 }
 0x724   : > { %7613 = vst [vmem:[%s8960_s20 + $0x8] sm:$0xff] %v7611_v47 }
 0x725 PF: > { %s7994_s29 = sshll.u32 %s8663_s30, 8  ;;  %s7629_s27 = sshll.u32 %s8960_s20, 4  ;;  %s7630_s27 = int_to_ptr.vmem [resolvable:$true] %s7629_s27 }
 0x726   : > { %s7627_s16 = scalar_lea.hbm %s10925_s7, %s7994_s29  ;;  %s7615_s15 = scalar_lea.sflag [#allocation4], %s843_s14 }
 0x727   : > { %s8567_s17 = scalar_lea.vmem %s7630_s27, 256  ;;  %s8680_s13 = smov [#allocation3]  }
 0x728   : > { %p8568_p5 = scmp.ne.s32.totalorder %s7630_s27, %s8567_s17  ;;  %s8571_s22 = sshll.u32 %s8680_s13, 4  ;;  %s8572_s22 = int_to_ptr.vmem [resolvable:$false] %s8571_s22 }
 0x729   : > { %s8573_s12 = scalar_lea.vmem %s8572_s22, 512  ;;  %p8574_p9 = scmp.lt.s32.totalorder %s7630_s27, %s8572_s22 }
 0x72a   : > { %p8569_p6 = pnand %p8568_p5, %p8793_p7  ;;  %p8575_p10 = scmp.lt.s32.totalorder %s8573_s12, %s8567_s17 }
 0x72c   : > { %p8570_p8 = pneg %p8569_p6  ;;  %p8576_p11 = por %p8575_p10, %p8574_p9 }
 0x72e   : > { %p8577_p13 = pnand %p8576_p11, %p8570_p8 }
 0x730   : > { %8580 = shalt.err (!%p8577_p13)
}
 0x731   : > { %s8581_s30 = scalar_lea.hbm %s7627_s16, 256  ;;  %s8585_s29 = scalar_lea.hbm %s10925_s7, 512 }
 0x732   : > { %p8582_p0 = scmp.ne.s32.totalorder %s7627_s16, %s8581_s30  ;;  %p8586_p3 = scmp.lt.s32.totalorder %s7627_s16, %s10925_s7 }
 0x733   : > { %p8587_p4 = scmp.lt.s32.totalorder %s8585_s29, %s8581_s30 }
 0x734   : > { %p8583_p1 = pnand %p8582_p0, %p8793_p7 }
 0x735   : > { %p8588_p5 = por %p8587_p4, %p8586_p3 }
 0x736   : > { %p8584_p2 = pneg %p8583_p1 }
 0x738   : > { %p8589_p6 = pnand %p8588_p5, %p8584_p2 }
 0x73a   : > { %8592 = shalt.err (!%p8589_p6)
}
 0x73b   : > { %8403 = dma.vmem_to_hbm [thread:$0]  (%p8793_p7), %s7630_s27, 256, %s7627_s16, %s7615_s15  }
 0x73c PF: > { %p8409_p8 = scmp.ge.s32.totalorder %s8675_s10, 2  ;;  %s7641_s13 = sand.u32 1, %s8639_s24  }
 0x73d   : > { %s7642_s22 = scalar_lea.sflag [#allocation4], %s7641_s13 }
 0x73e   : > { %p8406_p9 = pnand %p8409_p8, %p8801_p12 }
 0x740   : > { %p8407_p10 = pneg %p8406_p9 }
 0x742   : > { %8634 = dma.done.wait (%p8407_p10), %s7642_s22, 256  }
 0x743   : > { %8636 = vsyncadd (%p8407_p10), %s7642_s22, 4294967040  ;;  %s20_s10 = sadd.s32 1, %s8675_s10   ;;  %s11200_s19 = sld [smem:[#allocation6_spill]] }
 0x744   : > { %p17_p11 = scmp.ge.s32.totalorder %s20_s10, 6   ;;  %s11201_s16 = sld [smem:[#allocation7_spill]] }
 0x745   : > { %s11202_s24 = smov %s8643_s25  ;;  %s11203_s25 = smov %s8647_s26 }
 0x746   : > { %s11204_s26 = smov %s8806_s23  ;;  %s11205_s27 = smov %s8655_s28 }
 0x747   : > { %s11206_s28 = smov %s8809_s11  ;;  %s11207_s29 = smov %s8667_s8 }
 0x748   : > { %s11208_s30 = smov %s8671_s9  ;;  %19 = sbr.rel (!%p17_p11) target bundleno = 6 (0x6), region = 137 }
 0x749   : > { %s11209_s8 = smov %s11200_s19 }
 0x74a   : > { %s11210_s9 = smov %s11201_s16 }
 0x74d   :  { %7647 = vsyncpa [#allocation4], 1 }
 0x74e   :  { %7649 = vsyncpa [#allocation4 + $0x1], 1 }

</bundles_post_ra>
